<compile_context>
chip_gen: v6e
topology: v6e:2x2x1
jax: 0.10.0
libtpu: 0.0.40
codegen_flags: <defaults>
</compile_context>

<pallas_src>
import functools

import numpy as np
import jax
import jax.numpy as jnp
from jax import lax
from jax.experimental import pallas as pl
from jax.experimental.pallas import tpu as pltpu


# --------------------------------- kernel -------------------------------------

def _encoder_lstm_kernel(emb_ref, wih1T_ref, w1cat_ref, whh2T_ref, b1_ref, b2_ref,
                         h_out_ref, c_out_ref,
                         gx1_sc, rec1_sc, c1_sc, h2_sc, c2_sc,
                         *, unroll):
    """One sequence tile of the fused 2-layer LSTM recurrence.

    emb_ref  : (Ts, Bs, E)  f32 embedded tokens for this tile (auto-pipelined)
    wih1T    : (E, 4H)      layer-1 input weights  (mxu dtype), gate order [i,f,o,g]
    w1cat    : (H, 8H)      [W_hh1^T | W_ih2^T]    (mxu dtype)
    whh2T    : (H, 4H)      layer-2 recurrent weights (mxu dtype)
    b1, b2   : (1, 4H)      fused biases (f32)
    h_out, c_out : (2, Bs, H) final hidden / cell, written only on the last tile
    scratch  : gx1 (Ts*Bs, 4H), rec1 (Bs, 4H), c1/h2/c2 (Bs, H) — persist across tiles.
    """
    s = pl.program_id(1)                      # sequence-tile index (innermost grid axis)
    Ts, Bs, E = emb_ref.shape
    H = whh2T_ref.shape[0]
    mxu_dtype = wih1T_ref.dtype

    # Fresh sequence for this batch shard: zero the carried state.
    @pl.when(s == 0)
    def _():
        rec1_sc[...] = jnp.zeros_like(rec1_sc)
        c1_sc[...] = jnp.zeros_like(c1_sc)
        h2_sc[...] = jnp.zeros_like(h2_sc)
        c2_sc[...] = jnp.zeros_like(c2_sc)

    # ---- tile prologue: layer-1 input projection for all Ts steps in one big-M matmul ----
    x2d = emb_ref[...].reshape(Ts * Bs, E).astype(mxu_dtype)
    gx1_sc[...] = (jnp.dot(x2d, wih1T_ref[...], preferred_element_type=jnp.float32)
                   + b1_ref[...])

    # Weights / bias loaded once, hoisted out of the time loop.
    w1cat = w1cat_ref[...]
    whh2T = whh2T_ref[...]
    b2 = jnp.broadcast_to(b2_ref[...], (Bs, 4 * H))   # hoisted: no per-step broadcast

    def lstm_cell(gates, c):
        # Gate order [i, f, o, g]: one sigmoid over (Bs, 3H), one tanh over (Bs, H).
        sig = jax.nn.sigmoid(gates[:, :3 * H])
        i = sig[:, 0 * H:1 * H]
        f = sig[:, 1 * H:2 * H]
        o = sig[:, 2 * H:3 * H]
        g = jnp.tanh(gates[:, 3 * H:])
        c_new = f * c + i * g
        h_new = o * jnp.tanh(c_new)
        return h_new, c_new

    def step(t, carry):
        _, rec1, c1, h2, c2 = carry
        row0 = pl.multiple_of(t * Bs, Bs)
        # Layer 1: precomputed input term + carried recurrent term.
        gates1 = gx1_sc[pl.ds(row0, Bs), :] + rec1
        h1, c1 = lstm_cell(gates1, c1)
        # Shared-LHS fused dot: [layer-1 recurrent term for t+1 | layer-2 input term for t].
        p = jnp.dot(h1.astype(mxu_dtype), w1cat, preferred_element_type=jnp.float32)
        rec1_next = p[:, :4 * H]
        gates2 = (p[:, 4 * H:]
                  + jnp.dot(h2.astype(mxu_dtype), whh2T, preferred_element_type=jnp.float32)
                  + b2)
        h2, c2 = lstm_cell(gates2, c2)
        return (h1, rec1_next, c1, h2, c2)

    zeros = jnp.zeros((Bs, H), jnp.float32)
    init = (zeros, rec1_sc[...], c1_sc[...], h2_sc[...], c2_sc[...])
    h1, rec1, c1, h2, c2 = lax.fori_loop(0, Ts, step, init, unroll=unroll)

    # Carry state to the next sequence tile.
    rec1_sc[...] = rec1
    c1_sc[...] = c1
    h2_sc[...] = h2
    c2_sc[...] = c2

    # Final-state writeback: once, on the last sequence tile.
    @pl.when(s == pl.num_programs(1) - 1)
    def _():
        h_out_ref[0] = h1
        h_out_ref[1] = h2
        c_out_ref[0] = c1
        c_out_ref[1] = c2


# ----------------------------- VMEM sizing helpers -----------------------------

def _vmem_bytes_estimate(seq_tile, bs, E, H, mxu_bytes):
    """Rough per-core VMEM footprint (double-buffered inputs, conservative on weights)."""
    emb_tile = 2 * seq_tile * bs * E * 4                               # f32 tile, 2 buffers
    weights = 2 * (E * 4 * H + H * 8 * H + H * 4 * H) * mxu_bytes      # wih1T, w1cat, whh2T
    biases = 2 * 2 * 4 * H * 4
    gx1 = seq_tile * bs * 4 * H * 4
    state = bs * (4 * H + 3 * H) * 4
    outs = 2 * 2 * 2 * bs * H * 4
    return emb_tile + weights + biases + gx1 + state + outs


def _choose_seq_tile(S, bs, E, H, mxu_bytes, budget_bytes=32 << 20, max_tile=64):
    """Largest divisor of S (<= max_tile) whose footprint fits the budget.

    Budget is kept <= 32 MiB so the same tile is also safe on v7x (64 MiB physical VMEM).
    """
    best = 1
    for d in range(1, S + 1):
        if S % d == 0 and d <= max_tile and \
                _vmem_bytes_estimate(d, bs, E, H, mxu_bytes) <= budget_bytes:
            best = d
    return best


# --------------------------------- wrapper -------------------------------------

def encoder_forward(x_tokens, params, *, mxu_dtype=jnp.bfloat16, batch_shards=1,
                    seq_tile=None):
    """Encoder.forward: returns (hidden, cell), each (num_layers=2, B, H)."""
    emb = params["embedding"][x_tokens]          # (S, B, E) gather — JAX glue
    # Dropout: identity (eval mode). TODO(synk): training-mode dropout.
    l1, l2 = params["layers"]
    S, B, E = emb.shape
    H = l1["whhT"].shape[0]
    assert H % 128 == 0, "H must be a multiple of 128 to keep gate slices lane-dense"
    assert B % batch_shards == 0
    Bs = B // batch_shards
    assert batch_shards == 1 or Bs % 8 == 0, "per-shard batch must be sublane-aligned"

    mxu_bytes = jnp.dtype(mxu_dtype).itemsize
    if seq_tile is None:
        seq_tile = _choose_seq_tile(S, Bs, E, H, mxu_bytes)
    assert S % seq_tile == 0, "sequence length must be a multiple of the sequence tile"
    n_seq_tiles = S // seq_tile

    # Param prep (once, outside the kernel): bf16 MXU operands, shared-LHS concat.
    wih1T = l1["wihT"].astype(mxu_dtype)                                   # (E, 4H)
    w1cat = jnp.concatenate([l1["whhT"], l2["wihT"]], axis=1).astype(mxu_dtype)  # (H, 8H)
    whh2T = l2["whhT"].astype(mxu_dtype)                                   # (H, 4H)
    b1 = l1["b"]                                                           # (1, 4H) f32
    b2 = l2["b"]                                                           # (1, 4H) f32

    est = _vmem_bytes_estimate(seq_tile, Bs, E, H, mxu_bytes)
    vmem_limit = int(min(max(2 * est, 16 << 20), 48 << 20))

    kernel = functools.partial(_encoder_lstm_kernel, unroll=min(8, seq_tile))

    def full_spec(shape):
        return pl.BlockSpec(shape, lambda b, s, _shape=shape: tuple(0 for _ in _shape))

    grid_spec = pltpu.PrefetchScalarGridSpec(
        num_scalar_prefetch=0,
        grid=(batch_shards, n_seq_tiles),                 # (parallel, sequential recurrence)
        in_specs=[
            pl.BlockSpec((seq_tile, Bs, E), lambda b, s: (s, b, 0)),   # streamed emb tile
            full_spec((E, 4 * H)),
            full_spec((H, 8 * H)),
            full_spec((H, 4 * H)),
            full_spec((1, 4 * H)),
            full_spec((1, 4 * H)),
        ],
        out_specs=(
            pl.BlockSpec((2, Bs, H), lambda b, s: (0, b, 0)),
            pl.BlockSpec((2, Bs, H), lambda b, s: (0, b, 0)),
        ),
        scratch_shapes=[
            pltpu.VMEM((seq_tile * Bs, 4 * H), jnp.float32),   # gx1 (per-tile projection)
            pltpu.VMEM((Bs, 4 * H), jnp.float32),              # rec1 carry
            pltpu.VMEM((Bs, H), jnp.float32),                  # c1
            pltpu.VMEM((Bs, H), jnp.float32),                  # h2
            pltpu.VMEM((Bs, H), jnp.float32),                  # c2
        ],
    )

    hidden, cell = pl.pallas_call(
        kernel,
        grid_spec=grid_spec,
        out_shape=(jax.ShapeDtypeStruct((2, B, H), jnp.float32),
                   jax.ShapeDtypeStruct((2, B, H), jnp.float32)),
        compiler_params=pltpu.CompilerParams(
            dimension_semantics=("parallel", "arbitrary"),
            vmem_limit_bytes=vmem_limit),
    )(emb, wih1T, w1cat, whh2T, b1, b2)
    return hidden, cell


# ----------------------------- pure-JAX reference -----------------------------

def lstm_layer_ref(x_seq, wihT, whhT, b, mxu_dtype):
    """Reference LSTM layer (gate layout [i, f, o, g]); matmul operands cast like the kernel."""
    B = x_seq.shape[1]
    H = whhT.shape[0]
    wihT_m = wihT.astype(mxu_dtype)
    whhT_m = whhT.astype(mxu_dtype)

    def step(carry, x_t):
        h, c = carry
        gates = (jnp.dot(x_t.astype(mxu_dtype), wihT_m, preferred_element_type=jnp.float32)
                 + jnp.dot(h.astype(mxu_dtype), whhT_m, preferred_element_type=jnp.float32)
                 + b)
        i = jax.nn.sigmoid(gates[:, 0 * H:1 * H])
        f = jax.nn.sigmoid(gates[:, 1 * H:2 * H])
        o = jax.nn.sigmoid(gates[:, 2 * H:3 * H])
        g = jnp.tanh(gates[:, 3 * H:4 * H])
        c = f * c + i * g
        h = o * jnp.tanh(c)
        return (h, c), h

    init = (jnp.zeros((B, H), jnp.float32), jnp.zeros((B, H), jnp.float32))
    (h, c), outs = lax.scan(step, init, x_seq)
    return outs, h, c


def encoder_forward_ref(x_tokens, params, mxu_dtype=jnp.float32):
    emb = params["embedding"][x_tokens]
    layer_in = emb
    hs, cs = [], []
    for lp in params["layers"]:
        outs, hN, cN = lstm_layer_ref(layer_in, lp["wihT"], lp["whhT"], lp["b"], mxu_dtype)
        hs.append(hN)
        cs.append(cN)
        layer_in = outs
    return jnp.stack(hs, 0), jnp.stack(cs, 0)


# --------------------------------- params -------------------------------------

def _reorder_ifgo_to_ifog(w, axis=0):
    """PyTorch packs LSTM gates as [i, f, g, o]; repack to [i, f, o, g]."""
    i, f, g, o = jnp.split(w, 4, axis=axis)
    return jnp.concatenate([i, f, o, g], axis=axis)


def init_params(key, input_size, embedding_size, hidden_size, num_layers):
    keys = jax.random.split(key, 1 + 4 * num_layers)
    embedding = jax.random.normal(keys[0], (input_size, embedding_size), jnp.float32)
    layers = []
    bound = 1.0 / np.sqrt(hidden_size)
    for l in range(num_layers):
        in_dim = embedding_size if l == 0 else hidden_size
        k_ih, k_hh, k_bih, k_bhh = keys[1 + 4 * l: 1 + 4 * (l + 1)]
        w_ih = jax.random.uniform(k_ih, (4 * hidden_size, in_dim), jnp.float32, -bound, bound)
        w_hh = jax.random.uniform(k_hh, (4 * hidden_size, hidden_size), jnp.float32, -bound, bound)
        b_ih = jax.random.uniform(k_bih, (4 * hidden_size,), jnp.float32, -bound, bound)
        b_hh = jax.random.uniform(k_bhh, (4 * hidden_size,), jnp.float32, -bound, bound)
        layers.append({
            # Pre-transposed, gate order [i, f, o, g].
            "wihT": _reorder_ifgo_to_ifog(w_ih, 0).T,                        # (in_dim, 4H)
            "whhT": _reorder_ifgo_to_ifog(w_hh, 0).T,                        # (H, 4H)
            "b": _reorder_ifgo_to_ifog(b_ih + b_hh, 0).reshape(1, 4 * hidden_size),
        })
    return {"embedding": embedding, "layers": layers}


if __name__ == "__main__":
    # Small shapes consistent with the module (H multiple of 128, B sublane-aligned).
    input_size = 100       # vocab
    embedding_size = 128
    hidden_size = 256
    num_layers = 2
    seq_len = 16
    batch = 8

    key = jax.random.PRNGKey(0)
    k_par, k_tok = jax.random.split(key)
    params = init_params(k_par, input_size, embedding_size, hidden_size, num_layers)
    x = jax.random.randint(k_tok, (seq_len, batch), 0, input_size, dtype=jnp.int32)

    # 1) f32 MXU path, seq_tile=4 -> 4 grid steps: exercises the cross-tile state carry,
    #    verified tightly against the pure-JAX reference.
    h_f32, c_f32 = encoder_forward(x, params, mxu_dtype=jnp.float32, seq_tile=4)
    jax.block_until_ready((h_f32, c_f32))
    h_ref, c_ref = encoder_forward_ref(x, params, mxu_dtype=jnp.float32)
    np.testing.assert_allclose(np.asarray(h_f32), np.asarray(h_ref), rtol=1e-4, atol=1e-4)
    np.testing.assert_allclose(np.asarray(c_f32), np.asarray(c_ref), rtol=1e-4, atol=1e-4)

    # 2) bf16 MXU path (default; native MXU dtype on v6e/v7x), auto-chosen seq tile.
    #    The reference applies the same bf16 casts; residual drift is accumulation order,
    #    so a looser tolerance is expected (per review).
    h_bf, c_bf = encoder_forward(x, params)    # mxu_dtype=bf16, seq_tile auto
    jax.block_until_ready((h_bf, c_bf))
    h_refb, c_refb = encoder_forward_ref(x, params, mxu_dtype=jnp.bfloat16)
    np.testing.assert_allclose(np.asarray(h_bf), np.asarray(h_refb), rtol=2e-2, atol=2e-2)
    np.testing.assert_allclose(np.asarray(c_bf), np.asarray(c_refb), rtol=2e-2, atol=2e-2)

    assert h_bf.shape == (num_layers, batch, hidden_size)
    assert c_bf.shape == (num_layers, batch, hidden_size)
    print("KERNEL_OK")
</pallas_src>

<mosaic_0001>
module attributes {stable_mosaic.version = 11 : i64} {
  func.func @_encoder_lstm_kernel(%arg0: i32, %arg1: i32, %arg2: memref<4x8x128xf32, #tpu.memory_space<vmem>>, %arg3: memref<128x1024xf32, #tpu.memory_space<vmem>>, %arg4: memref<256x2048xf32, #tpu.memory_space<vmem>>, %arg5: memref<256x1024xf32, #tpu.memory_space<vmem>>, %arg6: memref<1x1024xf32, #tpu.memory_space<vmem>>, %arg7: memref<1x1024xf32, #tpu.memory_space<vmem>>, %arg8: memref<2x8x256xf32, #tpu.memory_space<vmem>>, %arg9: memref<2x8x256xf32, #tpu.memory_space<vmem>>, %arg10: memref<32x1024xf32, #tpu.memory_space<vmem>>, %arg11: memref<8x1024xf32, #tpu.memory_space<vmem>>, %arg12: memref<8x256xf32, #tpu.memory_space<vmem>>, %arg13: memref<8x256xf32, #tpu.memory_space<vmem>>, %arg14: memref<8x256xf32, #tpu.memory_space<vmem>>) attributes {dimension_semantics = [#tpu.dimension_semantics<parallel>, #tpu.dimension_semantics<arbitrary>], iteration_bounds = array<i64: 1, 4>, scalar_prefetch = 0 : i64, scratch_operands = 5 : i64, tpu.core_type = #tpu.core_type<tc>, window_params = [{transform_indices = @transform_0, window_bounds = array<i64: 4, 8, 128>}, {pipeline_mode = #tpu.pipeline_mode<synchronous>, transform_indices = @transform_1, window_bounds = array<i64: 128, 1024>}, {pipeline_mode = #tpu.pipeline_mode<synchronous>, transform_indices = @transform_2, window_bounds = array<i64: 256, 2048>}, {pipeline_mode = #tpu.pipeline_mode<synchronous>, transform_indices = @transform_3, window_bounds = array<i64: 256, 1024>}, {pipeline_mode = #tpu.pipeline_mode<synchronous>, transform_indices = @transform_4, window_bounds = array<i64: 1, 1024>}, {pipeline_mode = #tpu.pipeline_mode<synchronous>, transform_indices = @transform_5, window_bounds = array<i64: 1, 1024>}, {transform_indices = @transform_6, window_bounds = array<i64: 2, 8, 256>}, {transform_indices = @transform_7, window_bounds = array<i64: 2, 8, 256>}]} {
    %c0_i32 = arith.constant 0 : i32
    %0 = arith.cmpi eq, %arg1, %c0_i32 : i32
    %1 = arith.extui %0 : i1 to i32
    %c0_i32_0 = arith.constant 0 : i32
    %2 = arith.cmpi ne, %1, %c0_i32_0 : i32
    scf.if %2 {
      %cst_58 = arith.constant 0.000000e+00 : f32
      %200 = vector.broadcast %cst_58 : f32 to vector<8x1024xf32>
      %c0_59 = arith.constant 0 : index
      %c0_60 = arith.constant 0 : index
      %201 = vector.load %arg11[%c0_59, %c0_60] : memref<8x1024xf32, #tpu.memory_space<vmem>>, vector<8x1024xf32>
      tpu.vector_store %arg11[%c0_59, %c0_60], %200 {strides = array<i32>} : memref<8x1024xf32, #tpu.memory_space<vmem>>, vector<8x1024xf32>,
      %cst_61 = arith.constant 0.000000e+00 : f32
      %202 = vector.broadcast %cst_61 : f32 to vector<8x256xf32>
      %c0_62 = arith.constant 0 : index
      %c0_63 = arith.constant 0 : index
      %203 = vector.load %arg12[%c0_62, %c0_63] : memref<8x256xf32, #tpu.memory_space<vmem>>, vector<8x256xf32>
      tpu.vector_store %arg12[%c0_62, %c0_63], %202 {strides = array<i32>} : memref<8x256xf32, #tpu.memory_space<vmem>>, vector<8x256xf32>,
      %cst_64 = arith.constant 0.000000e+00 : f32
      %204 = vector.broadcast %cst_64 : f32 to vector<8x256xf32>
      %c0_65 = arith.constant 0 : index
      %c0_66 = arith.constant 0 : index
      %205 = vector.load %arg13[%c0_65, %c0_66] : memref<8x256xf32, #tpu.memory_space<vmem>>, vector<8x256xf32>
      tpu.vector_store %arg13[%c0_65, %c0_66], %204 {strides = array<i32>} : memref<8x256xf32, #tpu.memory_space<vmem>>, vector<8x256xf32>,
      %cst_67 = arith.constant 0.000000e+00 : f32
      %206 = vector.broadcast %cst_67 : f32 to vector<8x256xf32>
      %c0_68 = arith.constant 0 : index
      %c0_69 = arith.constant 0 : index
      %207 = vector.load %arg14[%c0_68, %c0_69] : memref<8x256xf32, #tpu.memory_space<vmem>>, vector<8x256xf32>
      tpu.vector_store %arg14[%c0_68, %c0_69], %206 {strides = array<i32>} : memref<8x256xf32, #tpu.memory_space<vmem>>, vector<8x256xf32>,
    } else {
    }
    %c0 = arith.constant 0 : index
    %c0_1 = arith.constant 0 : index
    %c0_2 = arith.constant 0 : index
    %3 = vector.load %arg2[%c0, %c0_1, %c0_2] : memref<4x8x128xf32, #tpu.memory_space<vmem>>, vector<4x8x128xf32>
    %4 = vector.shape_cast %3 : vector<4x8x128xf32> to vector<32x128xf32>
    %c0_3 = arith.constant 0 : index
    %c0_4 = arith.constant 0 : index
    %5 = vector.load %arg3[%c0_3, %c0_4] : memref<128x1024xf32, #tpu.memory_space<vmem>>, vector<128x1024xf32>
    %cst = arith.constant dense<0.000000e+00> : vector<32x1024xf32>
    %6 = tpu.matmul %4, %5, %cst {dimension_numbers = #tpu.dot_dimension_numbers<[1], [0], [0], [1], [0, 0, 1, 1], [], []>} : vector<32x128xf32>, vector<128x1024xf32>, vector<32x1024xf32> -> vector<32x1024xf32>
    %c0_5 = arith.constant 0 : index
    %c0_6 = arith.constant 0 : index
    %7 = vector.load %arg6[%c0_5, %c0_6] : memref<1x1024xf32, #tpu.memory_space<vmem>>, vector<1x1024xf32>
    %8 = vector.broadcast %7 : vector<1x1024xf32> to vector<32x1024xf32>
    %9 = arith.addf %6, %8 : vector<32x1024xf32>
    %c0_7 = arith.constant 0 : index
    %c0_8 = arith.constant 0 : index
    %10 = vector.load %arg10[%c0_7, %c0_8] : memref<32x1024xf32, #tpu.memory_space<vmem>>, vector<32x1024xf32>
    tpu.vector_store %arg10[%c0_7, %c0_8], %9 {strides = array<i32>} : memref<32x1024xf32, #tpu.memory_space<vmem>>, vector<32x1024xf32>,
    %c0_9 = arith.constant 0 : index
    %c0_10 = arith.constant 0 : index
    %11 = vector.load %arg4[%c0_9, %c0_10] : memref<256x2048xf32, #tpu.memory_space<vmem>>, vector<256x2048xf32>
    %c0_11 = arith.constant 0 : index
    %c0_12 = arith.constant 0 : index
    %12 = vector.load %arg5[%c0_11, %c0_12] : memref<256x1024xf32, #tpu.memory_space<vmem>>, vector<256x1024xf32>
    %c0_13 = arith.constant 0 : index
    %c0_14 = arith.constant 0 : index
    %13 = vector.load %arg7[%c0_13, %c0_14] : memref<1x1024xf32, #tpu.memory_space<vmem>>, vector<1x1024xf32>
    %14 = vector.shape_cast %13 : vector<1x1024xf32> to vector<1x1024xf32>
    %15 = vector.broadcast %14 : vector<1x1024xf32> to vector<8x1024xf32>
    %cst_15 = arith.constant 0.000000e+00 : f32
    %16 = vector.broadcast %cst_15 : f32 to vector<8x256xf32>
    %c0_16 = arith.constant 0 : index
    %c0_17 = arith.constant 0 : index
    %17 = vector.load %arg11[%c0_16, %c0_17] : memref<8x1024xf32, #tpu.memory_space<vmem>>, vector<8x1024xf32>
    %c0_18 = arith.constant 0 : index
    %c0_19 = arith.constant 0 : index
    %18 = vector.load %arg12[%c0_18, %c0_19] : memref<8x256xf32, #tpu.memory_space<vmem>>, vector<8x256xf32>
    %c0_20 = arith.constant 0 : index
    %c0_21 = arith.constant 0 : index
    %19 = vector.load %arg13[%c0_20, %c0_21] : memref<8x256xf32, #tpu.memory_space<vmem>>, vector<8x256xf32>
    %c0_22 = arith.constant 0 : index
    %c0_23 = arith.constant 0 : index
    %20 = vector.load %arg14[%c0_22, %c0_23] : memref<8x256xf32, #tpu.memory_space<vmem>>, vector<8x256xf32>
    %c0_i32_24 = arith.constant 0 : i32
    %c8_i32 = arith.constant 8 : i32
    %21 = arith.muli %c0_i32_24, %c8_i32 : i32
    %22 = tpu.assume_multiple %21, 8 : i32
    %23 = arith.index_cast %22 : i32 to index
    %c0_25 = arith.constant 0 : index
    %24 = vector.load %arg10[%23, %c0_25] : memref<32x1024xf32, #tpu.memory_space<vmem>>, vector<8x1024xf32>
    %25 = arith.addf %24, %17 : vector<8x1024xf32>
    %26 = vector.extract_strided_slice %25 {offsets = [0, 0], sizes = [8, 768], strides = [1, 1]} : vector<8x1024xf32> to vector<8x768xf32>
    %27 = arith.negf %26 : vector<8x768xf32>
    %28 = math.exp %27 : vector<8x768xf32>
    %cst_26 = arith.constant 1.000000e+00 : f32
    %29 = vector.broadcast %cst_26 : f32 to vector<8x768xf32>
    %30 = arith.addf %29, %28 : vector<8x768xf32>
    %31 = arith.divf %29, %30 : vector<8x768xf32>
    %32 = vector.extract_strided_slice %31 {offsets = [0, 0], sizes = [8, 256], strides = [1, 1]} : vector<8x768xf32> to vector<8x256xf32>
    %33 = vector.extract_strided_slice %31 {offsets = [0, 256], sizes = [8, 256], strides = [1, 1]} : vector<8x768xf32> to vector<8x256xf32>
    %34 = vector.extract_strided_slice %31 {offsets = [0, 512], sizes = [8, 256], strides = [1, 1]} : vector<8x768xf32> to vector<8x256xf32>
    %35 = vector.extract_strided_slice %25 {offsets = [0, 768], sizes = [8, 256], strides = [1, 1]} : vector<8x1024xf32> to vector<8x256xf32>
    %36 = math.tanh %35 : vector<8x256xf32>
    %37 = arith.mulf %33, %18 : vector<8x256xf32>
    %38 = arith.mulf %32, %36 : vector<8x256xf32>
    %39 = arith.addf %37, %38 : vector<8x256xf32>
    %40 = math.tanh %39 : vector<8x256xf32>
    %41 = arith.mulf %34, %40 : vector<8x256xf32>
    %cst_27 = arith.constant dense<0.000000e+00> : vector<8x2048xf32>
    %42 = tpu.matmul %41, %11, %cst_27 {dimension_numbers = #tpu.dot_dimension_numbers<[1], [0], [0], [1], [0, 0, 1, 1], [], []>} : vector<8x256xf32>, vector<256x2048xf32>, vector<8x2048xf32> -> vector<8x2048xf32>
    %43 = vector.extract_strided_slice %42 {offsets = [0, 0], sizes = [8, 1024], strides = [1, 1]} : vector<8x2048xf32> to vector<8x1024xf32>
    %44 = vector.extract_strided_slice %42 {offsets = [0, 1024], sizes = [8, 1024], strides = [1, 1]} : vector<8x2048xf32> to vector<8x1024xf32>
    %cst_28 = arith.constant dense<0.000000e+00> : vector<8x1024xf32>
    %45 = tpu.matmul %19, %12, %cst_28 {dimension_numbers = #tpu.dot_dimension_numbers<[1], [0], [0], [1], [0, 0, 1, 1], [], []>} : vector<8x256xf32>, vector<256x1024xf32>, vector<8x1024xf32> -> vector<8x1024xf32>
    %46 = arith.addf %44, %45 : vector<8x1024xf32>
    %47 = arith.addf %46, %15 : vector<8x1024xf32>
    %48 = vector.extract_strided_slice %47 {offsets = [0, 0], sizes = [8, 768], strides = [1, 1]} : vector<8x1024xf32> to vector<8x768xf32>
    %49 = arith.negf %48 : vector<8x768xf32>
    %50 = math.exp %49 : vector<8x768xf32>
    %cst_29 = arith.constant 1.000000e+00 : f32
    %51 = vector.broadcast %cst_29 : f32 to vector<8x768xf32>
    %52 = arith.addf %51, %50 : vector<8x768xf32>
    %53 = arith.divf %51, %52 : vector<8x768xf32>
    %54 = vector.extract_strided_slice %53 {offsets = [0, 0], sizes = [8, 256], strides = [1, 1]} : vector<8x768xf32> to vector<8x256xf32>
    %55 = vector.extract_strided_slice %53 {offsets = [0, 256], sizes = [8, 256], strides = [1, 1]} : vector<8x768xf32> to vector<8x256xf32>
    %56 = vector.extract_strided_slice %53 {offsets = [0, 512], sizes = [8, 256], strides = [1, 1]} : vector<8x768xf32> to vector<8x256xf32>
    %57 = vector.extract_strided_slice %47 {offsets = [0, 768], sizes = [8, 256], strides = [1, 1]} : vector<8x1024xf32> to vector<8x256xf32>
    %58 = math.tanh %57 : vector<8x256xf32>
    %59 = arith.mulf %55, %20 : vector<8x256xf32>
    %60 = arith.mulf %54, %58 : vector<8x256xf32>
    %61 = arith.addf %59, %60 : vector<8x256xf32>
    %62 = math.tanh %61 : vector<8x256xf32>
    %63 = arith.mulf %56, %62 : vector<8x256xf32>
    %c1_i32 = arith.constant 1 : i32
    %c8_i32_30 = arith.constant 8 : i32
    %64 = arith.muli %c1_i32, %c8_i32_30 : i32
    %65 = tpu.assume_multiple %64, 8 : i32
    %66 = arith.index_cast %65 : i32 to index
    %c0_31 = arith.constant 0 : index
    %67 = vector.load %arg10[%66, %c0_31] : memref<32x1024xf32, #tpu.memory_space<vmem>>, vector<8x1024xf32>
    %68 = arith.addf %67, %43 : vector<8x1024xf32>
    %69 = vector.extract_strided_slice %68 {offsets = [0, 0], sizes = [8, 768], strides = [1, 1]} : vector<8x1024xf32> to vector<8x768xf32>
    %70 = arith.negf %69 : vector<8x768xf32>
    %71 = math.exp %70 : vector<8x768xf32>
    %cst_32 = arith.constant 1.000000e+00 : f32
    %72 = vector.broadcast %cst_32 : f32 to vector<8x768xf32>
    %73 = arith.addf %72, %71 : vector<8x768xf32>
    %74 = arith.divf %72, %73 : vector<8x768xf32>
    %75 = vector.extract_strided_slice %74 {offsets = [0, 0], sizes = [8, 256], strides = [1, 1]} : vector<8x768xf32> to vector<8x256xf32>
    %76 = vector.extract_strided_slice %74 {offsets = [0, 256], sizes = [8, 256], strides = [1, 1]} : vector<8x768xf32> to vector<8x256xf32>
    %77 = vector.extract_strided_slice %74 {offsets = [0, 512], sizes = [8, 256], strides = [1, 1]} : vector<8x768xf32> to vector<8x256xf32>
    %78 = vector.extract_strided_slice %68 {offsets = [0, 768], sizes = [8, 256], strides = [1, 1]} : vector<8x1024xf32> to vector<8x256xf32>
    %79 = math.tanh %78 : vector<8x256xf32>
    %80 = arith.mulf %76, %39 : vector<8x256xf32>
    %81 = arith.mulf %75, %79 : vector<8x256xf32>
    %82 = arith.addf %80, %81 : vector<8x256xf32>
    %83 = math.tanh %82 : vector<8x256xf32>
    %84 = arith.mulf %77, %83 : vector<8x256xf32>
    %cst_33 = arith.constant dense<0.000000e+00> : vector<8x2048xf32>
    %85 = tpu.matmul %84, %11, %cst_33 {dimension_numbers = #tpu.dot_dimension_numbers<[1], [0], [0], [1], [0, 0, 1, 1], [], []>} : vector<8x256xf32>, vector<256x2048xf32>, vector<8x2048xf32> -> vector<8x2048xf32>
    %86 = vector.extract_strided_slice %85 {offsets = [0, 0], sizes = [8, 1024], strides = [1, 1]} : vector<8x2048xf32> to vector<8x1024xf32>
    %87 = vector.extract_strided_slice %85 {offsets = [0, 1024], sizes = [8, 1024], strides = [1, 1]} : vector<8x2048xf32> to vector<8x1024xf32>
    %cst_34 = arith.constant dense<0.000000e+00> : vector<8x1024xf32>
    %88 = tpu.matmul %63, %12, %cst_34 {dimension_numbers = #tpu.dot_dimension_numbers<[1], [0], [0], [1], [0, 0, 1, 1], [], []>} : vector<8x256xf32>, vector<256x1024xf32>, vector<8x1024xf32> -> vector<8x1024xf32>
    %89 = arith.addf %87, %88 : vector<8x1024xf32>
    %90 = arith.addf %89, %15 : vector<8x1024xf32>
    %91 = vector.extract_strided_slice %90 {offsets = [0, 0], sizes = [8, 768], strides = [1, 1]} : vector<8x1024xf32> to vector<8x768xf32>
    %92 = arith.negf %91 : vector<8x768xf32>
    %93 = math.exp %92 : vector<8x768xf32>
    %cst_35 = arith.constant 1.000000e+00 : f32
    %94 = vector.broadcast %cst_35 : f32 to vector<8x768xf32>
    %95 = arith.addf %94, %93 : vector<8x768xf32>
    %96 = arith.divf %94, %95 : vector<8x768xf32>
    %97 = vector.extract_strided_slice %96 {offsets = [0, 0], sizes = [8, 256], strides = [1, 1]} : vector<8x768xf32> to vector<8x256xf32>
    %98 = vector.extract_strided_slice %96 {offsets = [0, 256], sizes = [8, 256], strides = [1, 1]} : vector<8x768xf32> to vector<8x256xf32>
    %99 = vector.extract_strided_slice %96 {offsets = [0, 512], sizes = [8, 256], strides = [1, 1]} : vector<8x768xf32> to vector<8x256xf32>
    %100 = vector.extract_strided_slice %90 {offsets = [0, 768], sizes = [8, 256], strides = [1, 1]} : vector<8x1024xf32> to vector<8x256xf32>
    %101 = math.tanh %100 : vector<8x256xf32>
    %102 = arith.mulf %98, %61 : vector<8x256xf32>
    %103 = arith.mulf %97, %101 : vector<8x256xf32>
    %104 = arith.addf %102, %103 : vector<8x256xf32>
    %105 = math.tanh %104 : vector<8x256xf32>
    %106 = arith.mulf %99, %105 : vector<8x256xf32>
    %c2_i32 = arith.constant 2 : i32
    %c8_i32_36 = arith.constant 8 : i32
    %107 = arith.muli %c2_i32, %c8_i32_36 : i32
    %108 = tpu.assume_multiple %107, 8 : i32
    %109 = arith.index_cast %108 : i32 to index
    %c0_37 = arith.constant 0 : index
    %110 = vector.load %arg10[%109, %c0_37] : memref<32x1024xf32, #tpu.memory_space<vmem>>, vector<8x1024xf32>
    %111 = arith.addf %110, %86 : vector<8x1024xf32>
    %112 = vector.extract_strided_slice %111 {offsets = [0, 0], sizes = [8, 768], strides = [1, 1]} : vector<8x1024xf32> to vector<8x768xf32>
    %113 = arith.negf %112 : vector<8x768xf32>
    %114 = math.exp %113 : vector<8x768xf32>
    %cst_38 = arith.constant 1.000000e+00 : f32
    %115 = vector.broadcast %cst_38 : f32 to vector<8x768xf32>
    %116 = arith.addf %115, %114 : vector<8x768xf32>
    %117 = arith.divf %115, %116 : vector<8x768xf32>
    %118 = vector.extract_strided_slice %117 {offsets = [0, 0], sizes = [8, 256], strides = [1, 1]} : vector<8x768xf32> to vector<8x256xf32>
    %119 = vector.extract_strided_slice %117 {offsets = [0, 256], sizes = [8, 256], strides = [1, 1]} : vector<8x768xf32> to vector<8x256xf32>
    %120 = vector.extract_strided_slice %117 {offsets = [0, 512], sizes = [8, 256], strides = [1, 1]} : vector<8x768xf32> to vector<8x256xf32>
    %121 = vector.extract_strided_slice %111 {offsets = [0, 768], sizes = [8, 256], strides = [1, 1]} : vector<8x1024xf32> to vector<8x256xf32>
    %122 = math.tanh %121 : vector<8x256xf32>
    %123 = arith.mulf %119, %82 : vector<8x256xf32>
    %124 = arith.mulf %118, %122 : vector<8x256xf32>
    %125 = arith.addf %123, %124 : vector<8x256xf32>
    %126 = math.tanh %125 : vector<8x256xf32>
    %127 = arith.mulf %120, %126 : vector<8x256xf32>
    %cst_39 = arith.constant dense<0.000000e+00> : vector<8x2048xf32>
    %128 = tpu.matmul %127, %11, %cst_39 {dimension_numbers = #tpu.dot_dimension_numbers<[1], [0], [0], [1], [0, 0, 1, 1], [], []>} : vector<8x256xf32>, vector<256x2048xf32>, vector<8x2048xf32> -> vector<8x2048xf32>
    %129 = vector.extract_strided_slice %128 {offsets = [0, 0], sizes = [8, 1024], strides = [1, 1]} : vector<8x2048xf32> to vector<8x1024xf32>
    %130 = vector.extract_strided_slice %128 {offsets = [0, 1024], sizes = [8, 1024], strides = [1, 1]} : vector<8x2048xf32> to vector<8x1024xf32>
    %cst_40 = arith.constant dense<0.000000e+00> : vector<8x1024xf32>
    %131 = tpu.matmul %106, %12, %cst_40 {dimension_numbers = #tpu.dot_dimension_numbers<[1], [0], [0], [1], [0, 0, 1, 1], [], []>} : vector<8x256xf32>, vector<256x1024xf32>, vector<8x1024xf32> -> vector<8x1024xf32>
    %132 = arith.addf %130, %131 : vector<8x1024xf32>
    %133 = arith.addf %132, %15 : vector<8x1024xf32>
    %134 = vector.extract_strided_slice %133 {offsets = [0, 0], sizes = [8, 768], strides = [1, 1]} : vector<8x1024xf32> to vector<8x768xf32>
    %135 = arith.negf %134 : vector<8x768xf32>
    %136 = math.exp %135 : vector<8x768xf32>
    %cst_41 = arith.constant 1.000000e+00 : f32
    %137 = vector.broadcast %cst_41 : f32 to vector<8x768xf32>
    %138 = arith.addf %137, %136 : vector<8x768xf32>
    %139 = arith.divf %137, %138 : vector<8x768xf32>
    %140 = vector.extract_strided_slice %139 {offsets = [0, 0], sizes = [8, 256], strides = [1, 1]} : vector<8x768xf32> to vector<8x256xf32>
    %141 = vector.extract_strided_slice %139 {offsets = [0, 256], sizes = [8, 256], strides = [1, 1]} : vector<8x768xf32> to vector<8x256xf32>
    %142 = vector.extract_strided_slice %139 {offsets = [0, 512], sizes = [8, 256], strides = [1, 1]} : vector<8x768xf32> to vector<8x256xf32>
    %143 = vector.extract_strided_slice %133 {offsets = [0, 768], sizes = [8, 256], strides = [1, 1]} : vector<8x1024xf32> to vector<8x256xf32>
    %144 = math.tanh %143 : vector<8x256xf32>
    %145 = arith.mulf %141, %104 : vector<8x256xf32>
    %146 = arith.mulf %140, %144 : vector<8x256xf32>
    %147 = arith.addf %145, %146 : vector<8x256xf32>
    %148 = math.tanh %147 : vector<8x256xf32>
    %149 = arith.mulf %142, %148 : vector<8x256xf32>
    %c3_i32 = arith.constant 3 : i32
    %c8_i32_42 = arith.constant 8 : i32
    %150 = arith.muli %c3_i32, %c8_i32_42 : i32
    %151 = tpu.assume_multiple %150, 8 : i32
    %152 = arith.index_cast %151 : i32 to index
    %c0_43 = arith.constant 0 : index
    %153 = vector.load %arg10[%152, %c0_43] : memref<32x1024xf32, #tpu.memory_space<vmem>>, vector<8x1024xf32>
    %154 = arith.addf %153, %129 : vector<8x1024xf32>
    %155 = vector.extract_strided_slice %154 {offsets = [0, 0], sizes = [8, 768], strides = [1, 1]} : vector<8x1024xf32> to vector<8x768xf32>
    %156 = arith.negf %155 : vector<8x768xf32>
    %157 = math.exp %156 : vector<8x768xf32>
    %cst_44 = arith.constant 1.000000e+00 : f32
    %158 = vector.broadcast %cst_44 : f32 to vector<8x768xf32>
    %159 = arith.addf %158, %157 : vector<8x768xf32>
    %160 = arith.divf %158, %159 : vector<8x768xf32>
    %161 = vector.extract_strided_slice %160 {offsets = [0, 0], sizes = [8, 256], strides = [1, 1]} : vector<8x768xf32> to vector<8x256xf32>
    %162 = vector.extract_strided_slice %160 {offsets = [0, 256], sizes = [8, 256], strides = [1, 1]} : vector<8x768xf32> to vector<8x256xf32>
    %163 = vector.extract_strided_slice %160 {offsets = [0, 512], sizes = [8, 256], strides = [1, 1]} : vector<8x768xf32> to vector<8x256xf32>
    %164 = vector.extract_strided_slice %154 {offsets = [0, 768], sizes = [8, 256], strides = [1, 1]} : vector<8x1024xf32> to vector<8x256xf32>
    %165 = math.tanh %164 : vector<8x256xf32>
    %166 = arith.mulf %162, %125 : vector<8x256xf32>
    %167 = arith.mulf %161, %165 : vector<8x256xf32>
    %168 = arith.addf %166, %167 : vector<8x256xf32>
    %169 = math.tanh %168 : vector<8x256xf32>
    %170 = arith.mulf %163, %169 : vector<8x256xf32>
    %cst_45 = arith.constant dense<0.000000e+00> : vector<8x2048xf32>
    %171 = tpu.matmul %170, %11, %cst_45 {dimension_numbers = #tpu.dot_dimension_numbers<[1], [0], [0], [1], [0, 0, 1, 1], [], []>} : vector<8x256xf32>, vector<256x2048xf32>, vector<8x2048xf32> -> vector<8x2048xf32>
    %172 = vector.extract_strided_slice %171 {offsets = [0, 0], sizes = [8, 1024], strides = [1, 1]} : vector<8x2048xf32> to vector<8x1024xf32>
    %173 = vector.extract_strided_slice %171 {offsets = [0, 1024], sizes = [8, 1024], strides = [1, 1]} : vector<8x2048xf32> to vector<8x1024xf32>
    %cst_46 = arith.constant dense<0.000000e+00> : vector<8x1024xf32>
    %174 = tpu.matmul %149, %12, %cst_46 {dimension_numbers = #tpu.dot_dimension_numbers<[1], [0], [0], [1], [0, 0, 1, 1], [], []>} : vector<8x256xf32>, vector<256x1024xf32>, vector<8x1024xf32> -> vector<8x1024xf32>
    %175 = arith.addf %173, %174 : vector<8x1024xf32>
    %176 = arith.addf %175, %15 : vector<8x1024xf32>
    %177 = vector.extract_strided_slice %176 {offsets = [0, 0], sizes = [8, 768], strides = [1, 1]} : vector<8x1024xf32> to vector<8x768xf32>
    %178 = arith.negf %177 : vector<8x768xf32>
    %179 = math.exp %178 : vector<8x768xf32>
    %cst_47 = arith.constant 1.000000e+00 : f32
    %180 = vector.broadcast %cst_47 : f32 to vector<8x768xf32>
    %181 = arith.addf %180, %179 : vector<8x768xf32>
    %182 = arith.divf %180, %181 : vector<8x768xf32>
    %183 = vector.extract_strided_slice %182 {offsets = [0, 0], sizes = [8, 256], strides = [1, 1]} : vector<8x768xf32> to vector<8x256xf32>
    %184 = vector.extract_strided_slice %182 {offsets = [0, 256], sizes = [8, 256], strides = [1, 1]} : vector<8x768xf32> to vector<8x256xf32>
    %185 = vector.extract_strided_slice %182 {offsets = [0, 512], sizes = [8, 256], strides = [1, 1]} : vector<8x768xf32> to vector<8x256xf32>
    %186 = vector.extract_strided_slice %176 {offsets = [0, 768], sizes = [8, 256], strides = [1, 1]} : vector<8x1024xf32> to vector<8x256xf32>
    %187 = math.tanh %186 : vector<8x256xf32>
    %188 = arith.mulf %184, %147 : vector<8x256xf32>
    %189 = arith.mulf %183, %187 : vector<8x256xf32>
    %190 = arith.addf %188, %189 : vector<8x256xf32>
    %191 = math.tanh %190 : vector<8x256xf32>
    %192 = arith.mulf %185, %191 : vector<8x256xf32>
    %c4_i32 = arith.constant 4 : i32
    %c0_48 = arith.constant 0 : index
    %c0_49 = arith.constant 0 : index
    %193 = vector.load %arg11[%c0_48, %c0_49] : memref<8x1024xf32, #tpu.memory_space<vmem>>, vector<8x1024xf32>
    tpu.vector_store %arg11[%c0_48, %c0_49], %172 {strides = array<i32>} : memref<8x1024xf32, #tpu.memory_space<vmem>>, vector<8x1024xf32>,
    %c0_50 = arith.constant 0 : index
    %c0_51 = arith.constant 0 : index
    %194 = vector.load %arg12[%c0_50, %c0_51] : memref<8x256xf32, #tpu.memory_space<vmem>>, vector<8x256xf32>
    tpu.vector_store %arg12[%c0_50, %c0_51], %168 {strides = array<i32>} : memref<8x256xf32, #tpu.memory_space<vmem>>, vector<8x256xf32>,
    %c0_52 = arith.constant 0 : index
    %c0_53 = arith.constant 0 : index
    %195 = vector.load %arg13[%c0_52, %c0_53] : memref<8x256xf32, #tpu.memory_space<vmem>>, vector<8x256xf32>
    tpu.vector_store %arg13[%c0_52, %c0_53], %192 {strides = array<i32>} : memref<8x256xf32, #tpu.memory_space<vmem>>, vector<8x256xf32>,
    %c0_54 = arith.constant 0 : index
    %c0_55 = arith.constant 0 : index
    %196 = vector.load %arg14[%c0_54, %c0_55] : memref<8x256xf32, #tpu.memory_space<vmem>>, vector<8x256xf32>
    tpu.vector_store %arg14[%c0_54, %c0_55], %190 {strides = array<i32>} : memref<8x256xf32, #tpu.memory_space<vmem>>, vector<8x256xf32>,
    %c3_i32_56 = arith.constant 3 : i32
    %197 = arith.cmpi eq, %arg1, %c3_i32_56 : i32
    %198 = arith.extui %197 : i1 to i32
    %c0_i32_57 = arith.constant 0 : i32
    %199 = arith.cmpi ne, %198, %c0_i32_57 : i32
    scf.if %199 {
      %c0_58 = arith.constant 0 : index
      %c0_59 = arith.constant 0 : index
      %c0_60 = arith.constant 0 : index
      %200 = vector.load %arg8[%c0_58, %c0_59, %c0_60] : memref<2x8x256xf32, #tpu.memory_space<vmem>>, vector<1x8x256xf32>
      %201 = vector.shape_cast %200 : vector<1x8x256xf32> to vector<8x256xf32>
      %202 = vector.shape_cast %170 : vector<8x256xf32> to vector<1x8x256xf32>
      tpu.vector_store %arg8[%c0_58, %c0_59, %c0_60], %202 {strides = array<i32>} : memref<2x8x256xf32, #tpu.memory_space<vmem>>, vector<1x8x256xf32>,
      %c1 = arith.constant 1 : index
      %c0_61 = arith.constant 0 : index
      %c0_62 = arith.constant 0 : index
      %203 = vector.load %arg8[%c1, %c0_61, %c0_62] : memref<2x8x256xf32, #tpu.memory_space<vmem>>, vector<1x8x256xf32>
      %204 = vector.shape_cast %203 : vector<1x8x256xf32> to vector<8x256xf32>
      %205 = vector.shape_cast %192 : vector<8x256xf32> to vector<1x8x256xf32>
      tpu.vector_store %arg8[%c1, %c0_61, %c0_62], %205 {strides = array<i32>} : memref<2x8x256xf32, #tpu.memory_space<vmem>>, vector<1x8x256xf32>,
      %c0_63 = arith.constant 0 : index
      %c0_64 = arith.constant 0 : index
      %c0_65 = arith.constant 0 : index
      %206 = vector.load %arg9[%c0_63, %c0_64, %c0_65] : memref<2x8x256xf32, #tpu.memory_space<vmem>>, vector<1x8x256xf32>
      %207 = vector.shape_cast %206 : vector<1x8x256xf32> to vector<8x256xf32>
      %208 = vector.shape_cast %168 : vector<8x256xf32> to vector<1x8x256xf32>
      tpu.vector_store %arg9[%c0_63, %c0_64, %c0_65], %208 {strides = array<i32>} : memref<2x8x256xf32, #tpu.memory_space<vmem>>, vector<1x8x256xf32>,
      %c1_66 = arith.constant 1 : index
      %c0_67 = arith.constant 0 : index
      %c0_68 = arith.constant 0 : index
      %209 = vector.load %arg9[%c1_66, %c0_67, %c0_68] : memref<2x8x256xf32, #tpu.memory_space<vmem>>, vector<1x8x256xf32>
      %210 = vector.shape_cast %209 : vector<1x8x256xf32> to vector<8x256xf32>
      %211 = vector.shape_cast %190 : vector<8x256xf32> to vector<1x8x256xf32>
      tpu.vector_store %arg9[%c1_66, %c0_67, %c0_68], %211 {strides = array<i32>} : memref<2x8x256xf32, #tpu.memory_space<vmem>>, vector<1x8x256xf32>,
    } else {
    }
    return
  }
  func.func @transform_0(%arg0: i32, %arg1: i32) -> (i32, i32, i32) {
    %c0_i32 = arith.constant 0 : i32
    %c0_i32_0 = arith.constant 0 : i32
    return %arg1, %arg0, %c0_i32 : i32, i32, i32
  }
  func.func @transform_1(%arg0: i32, %arg1: i32) -> (i32, i32) {
    %c0_i32 = arith.constant 0 : i32
    %c0_i32_0 = arith.constant 0 : i32
    %c0_i32_1 = arith.constant 0 : i32
    return %c0_i32, %c0_i32_0 : i32, i32
  }
  func.func @transform_2(%arg0: i32, %arg1: i32) -> (i32, i32) {
    %c0_i32 = arith.constant 0 : i32
    %c0_i32_0 = arith.constant 0 : i32
    %c0_i32_1 = arith.constant 0 : i32
    return %c0_i32, %c0_i32_0 : i32, i32
  }
  func.func @transform_3(%arg0: i32, %arg1: i32) -> (i32, i32) {
    %c0_i32 = arith.constant 0 : i32
    %c0_i32_0 = arith.constant 0 : i32
    %c0_i32_1 = arith.constant 0 : i32
    return %c0_i32, %c0_i32_0 : i32, i32
  }
  func.func @transform_4(%arg0: i32, %arg1: i32) -> (i32, i32) {
    %c0_i32 = arith.constant 0 : i32
    %c0_i32_0 = arith.constant 0 : i32
    %c0_i32_1 = arith.constant 0 : i32
    return %c0_i32, %c0_i32_0 : i32, i32
  }
  func.func @transform_5(%arg0: i32, %arg1: i32) -> (i32, i32) {
    %c0_i32 = arith.constant 0 : i32
    %c0_i32_0 = arith.constant 0 : i32
    %c0_i32_1 = arith.constant 0 : i32
    return %c0_i32, %c0_i32_0 : i32, i32
  }
  func.func @transform_6(%arg0: i32, %arg1: i32) -> (i32, i32, i32) {
    %c0_i32 = arith.constant 0 : i32
    %c0_i32_0 = arith.constant 0 : i32
    %c0_i32_1 = arith.constant 0 : i32
    return %c0_i32, %arg0, %c0_i32_0 : i32, i32, i32
  }
  func.func @transform_7(%arg0: i32, %arg1: i32) -> (i32, i32, i32) {
    %c0_i32 = arith.constant 0 : i32
    %c0_i32_0 = arith.constant 0 : i32
    %c0_i32_1 = arith.constant 0 : i32
    return %c0_i32, %arg0, %c0_i32_0 : i32, i32, i32
  }
}

</mosaic_0001>

<bundles_post_ra>
// kernel: tpu_custom_call.1
= control target key start
LH: loop header
LB: loop body
LE: loop exit
PB: predicated region body
PF: predicated region fallthrough
CT: control target
= control target key end

     0   :  { %s9726_s0 = inlined_call_operand.hbm [shape: f32[16,8,128], index: 0, kind: input, shape index: {}]   ;;  %s9727_s1 = inlined_call_operand.hbm [shape: f32[128,1024], index: 1, kind: input, shape index: {}]   ;;  %s9728_s2 = inlined_call_operand.hbm [shape: f32[256,2048], index: 2, kind: input, shape index: {}]   ;;  %s9729_s3 = inlined_call_operand.hbm [shape: f32[256,1024], index: 3, kind: input, shape index: {}]   ;;  %s9730_s4 = inlined_call_operand.hbm [shape: f32[1,1024], index: 4, kind: input, shape index: {}]   ;;  %s9731_s5 = inlined_call_operand.hbm [shape: f32[1,1024], index: 5, kind: input, shape index: {}]   ;;  %s9732_s6 = inlined_call_operand.hbm [shape: f32[2,8,256], index: 6, kind: output, shape index: {0}]   ;;  %s9733_s7 = inlined_call_operand.hbm [shape: f32[2,8,256], index: 7, kind: output, shape index: {1}]  }
   0x1   :  { %9739 = sst [smem:[#allocation27_spill]] %s9727_s1 }
   0x2   :  { %13 = vsyncpa [#allocation8], 0 }
   0x3   :  { %15 = vsyncpa [#allocation8 + $0x1], 0 }
   0x4   :  { %16 = vsyncpa [#allocation11], 0 }
   0x5   :  { %17 = vsyncpa [#allocation14], 0 }
   0x6   :  { %18 = vsyncpa [#allocation17], 0 }
   0x7   :  { %19 = vsyncpa [#allocation9], 0 }
   0x8   :  { %20 = vsyncpa [#allocation20], 0  ;;  %s8997_s24 = smov 0   ;;  %s8999_s25 = smov 0  }
   0x9   :  { %s9001_s26 = smov 0   ;;  %s9003_s27 = smov 0  }
   0xa   :  { %s9005_s28 = smov 0   ;;  %s9007_s29 = smov 0  }
   0xb LB: > { %s9737_s30 = sadd.s32 4294967295, %s8938_s29   ;;  %p5899_p0 = scmp.ge.s32.totalorder %s8938_s29, 1  ;;  %s8938_s29 = sphi %s9007_s29, %s26_s29   ;;  %s8934_s28 = sphi %s9005_s28, %s9758_s28   ;;  %s8930_s27 = sphi %s9003_s27, %s9757_s27   ;;  %s8926_s26 = sphi %s9001_s26, %s9756_s26   ;;  %s8922_s25 = sphi %s8999_s25, %s9755_s25   ;;  %s8918_s24 = sphi %s8997_s24, %s9754_s24  }
   0xc   : > { %p9031_p1 = scmp.eq.s32.totalorder %s9737_s30, 0  ;;  %p228_p2 = scmp.lt.s32.totalorder %s8938_s29, 5 }
   0xd   : > { %s8940_s10 = smov [#allocation10]   ;;  %s8941_s13 = smov [#allocation13]  }
   0xe   : > { %s9740_s8 = scalar_select %p9031_p1, 1, 0 }
   0xf   : > { %p9036_p3 = pnand %p5899_p0, %p228_p2  ;;  %s240_s11 = sshll.u32 %s8940_s10, 4  ;;  %s241_s11 = int_to_ptr.vmem [resolvable:$true] %s240_s11 }
  0x10   : > { %s266_s14 = sshll.u32 %s8941_s13, 4  ;;  %s8942_s15 = smov [#allocation12]   ;;  %s267_s14 = int_to_ptr.vmem [resolvable:$true] %s266_s14 }
  0x11   : > { %s9741_s9 = scalar_select %p9036_p3, 1, 0 }
  0x12   : > { %p6003_p4 = pneg %p9036_p3  ;;  %s253_s16 = sshll.u32 %s8942_s15, 4  ;;  %s254_s16 = int_to_ptr.vmem [resolvable:$true] %s253_s16 }
  0x13   : > { %s8673_s18 = scalar_lea.vmem %s241_s11, 16384  ;;  %p8681_p10 = scmp.lt.s32.totalorder %s241_s11, %s241_s11 }
  0x14   : > { %p9044_p5 = pnand %p6003_p4, %p9031_p1  ;;  %p8674_p7 = scmp.ne.s32.totalorder %s241_s11, %s8673_s18 }
  0x15   : > { %p8682_p11 = scmp.lt.s32.totalorder %s8673_s18, %s8673_s18 }
  0x16   : > { %p9050_p6 = pneg %p9044_p5 }
  0x17   : > { %p8683_p12 = por %p8682_p11, %p8681_p10 }
  0x18   : > { %p8676_p8 = pnand %p8674_p7, %p9050_p6 }
  0x1a   : > { %p8677_p9 = pneg %p8676_p8 }
  0x1c   : > { %p8684_p13 = pnand %p8683_p12, %p8677_p9 }
  0x1e   : > { %8687 = shalt.err (!%p8684_p13)
}
  0x1f   : > { %s8943_s19 = smov 1024   ;;  %s8944_s20 = smov 64  }
  0x20   : > { %s9744_s1 = sld [smem:[#allocation27_spill]]  ;;  %s8699_s23 = scalar_lea.vmem %s267_s14, 32768 }
  0x21   : > { %p8700_p0 = scmp.ne.s32.totalorder %s267_s14, %s8699_s23  ;;  %p8707_p7 = scmp.lt.s32.totalorder %s267_s14, %s267_s14 }
  0x22   : > { %p8708_p8 = scmp.lt.s32.totalorder %s8699_s23, %s8699_s23 }
  0x23   : > { %p8702_p2 = pnand %p8700_p0, %p9050_p6 }
  0x24   : > { %p8709_p3 = por %p8708_p8, %p8707_p7 }
  0x25   : > { %p8703_p4 = pneg %p8702_p2 }
  0x26   : > { %6006 = dma.hbm_to_vmem [thread:$0]  (!%p9044_p5), %s9744_s1, 16384, %s241_s11, [#allocation11], %s8943_s19, %s8943_s19, %s8944_s20  }
  0x27   : > { %p8710_p10 = pnand %p8709_p3, %p8703_p4 }
  0x29   : > { %8713 = shalt.err (!%p8710_p10)
}
  0x2a   : > { %6012 = dma.hbm_to_vmem [thread:$0]  (!%p9044_p5), %s9729_s3, 32768, %s267_s14, [#allocation14], %s8943_s19, %s8943_s19, %s8944_s20  }
  0x2b   : > { %s8725_s15 = scalar_lea.vmem %s254_s16, 65536  ;;  %p8733_p13 = scmp.lt.s32.totalorder %s254_s16, %s254_s16 }
  0x2c   : > { %p8726_p9 = scmp.ne.s32.totalorder %s254_s16, %s8725_s15  ;;  %p8734_p0 = scmp.lt.s32.totalorder %s8725_s15, %s8725_s15 }
  0x2e   : > { %p8728_p11 = pnand %p8726_p9, %p9050_p6  ;;  %p8735_p2 = por %p8734_p0, %p8733_p13 }
  0x30   : > { %p8729_p12 = pneg %p8728_p11 }
  0x32   : > { %p8736_p1 = pnand %p8735_p2, %p8729_p12 }
  0x34   : > { %8739 = shalt.err (!%p8736_p1)
}
  0x35   : > { %s8945_s11 = smov 2048   ;;  %s9738_s18 = smov 128  }
  0x36   : > { %6009 = dma.hbm_to_vmem [thread:$0]  (!%p9044_p5), %s9728_s2, 65536, %s254_s16, [#allocation11], %s8945_s11, %s8945_s11, %s9738_s18  }
  0x37   : > { %s8947_s14 = smov [#allocation15]   ;;  %s8948_s20 = smov [#allocation16]  }
  0x38   : > { %s280_s19 = sshll.u32 %s8947_s14, 4  ;;  %s291_s23 = sshll.u32 %s8948_s20, 4  ;;  %s281_s19 = int_to_ptr.vmem [resolvable:$true] %s280_s19  ;;  %s292_s23 = int_to_ptr.vmem [resolvable:$true] %s291_s23 }
  0x39   : > { %s8751_s10 = scalar_lea.vmem %s281_s19, 128  ;;  %p8759_p7 = scmp.lt.s32.totalorder %s281_s19, %s281_s19 }
  0x3a   : > { %p8752_p3 = scmp.ne.s32.totalorder %s281_s19, %s8751_s10  ;;  %p8760_p8 = scmp.lt.s32.totalorder %s8751_s10, %s8751_s10 }
  0x3c   : > { %p8754_p4 = pnand %p8752_p3, %p9050_p6  ;;  %p8761_p10 = por %p8760_p8, %p8759_p7 }
  0x3e   : > { %p8755_p1 = pneg %p8754_p4 }
  0x40   : > { %p8762_p9 = pnand %p8761_p10, %p8755_p1 }
  0x42   : > { %8765 = shalt.err (!%p8762_p9)
}
  0x43   : > { %6015 = dma.hbm_to_vmem [thread:$0]  (!%p9044_p5), %s9730_s4, 128, %s281_s19, [#allocation14]  }
  0x44   : > { %s8777_s16 = scalar_lea.vmem %s292_s23, 128  ;;  %p8785_p0 = scmp.lt.s32.totalorder %s292_s23, %s292_s23 }
  0x45   : > { %p8778_p11 = scmp.ne.s32.totalorder %s292_s23, %s8777_s16  ;;  %p8786_p2 = scmp.lt.s32.totalorder %s8777_s16, %s8777_s16 }
  0x47   : > { %p8780_p12 = pnand %p8778_p11, %p9050_p6  ;;  %p8787_p3 = por %p8786_p2, %p8785_p0 }
  0x49   : > { %p8781_p13 = pneg %p8780_p12 }
  0x4b   : > { %p8788_p4 = pnand %p8787_p3, %p8781_p13 }
  0x4d   : > { %8791 = shalt.err (!%p8788_p4)
}
  0x4e   : > { %6018 = dma.hbm_to_vmem [thread:$0]  (!%p9044_p5), %s9731_s5, 128, %s292_s23, [#allocation17]  }
  0x4f   : > { %s35_s17 = sadd.s32 1, %s8934_s28  ;;  %s47_s12 = sadd.s32 1, %s8926_s26 }
  0x50   : > { %p36_p6 = scmp.ge.s32.totalorder %s35_s17, 4  ;;  %p54_p1 = scmp.ne.s32.totalorder %s8926_s26, %s8922_s25 }
  0x51   : > { %p55_p7 = scmp.eq.s32.totalorder %s8938_s29, 0  ;;  %p60_p10 = scmp.ne.s32.totalorder %s8922_s25, %s8918_s24 }
  0x52   : > { %s9760_s17 = smov (%p36_p6, %s35_s17), 0  ;;  %p6028_p9 = scmp.lt.s32.totalorder %s8938_s29, 4 }
  0x53   : > { %p9097_p8 = por %p55_p7, %p54_p1  ;;  %s42_s14 = ssub.s32 %s8934_s28, %s9760_s17 }
  0x54   : > { %p45_p11 = scmp.eq.s32.totalorder %s42_s14, 0  ;;  %p9746_p12 = scmp.ne.s32.totalorder %s9740_s8, 0 }
  0x55   : > { %s302_s20 = sand.u32 1, %s8926_s26   ;;  %s5972_s23 = sshll.u32 %s8934_s28, 9 }
  0x56   : > { %p9108_p13 = por %p9746_p12, %p60_p10  ;;  %s5906_s13 = sshll.u32 %s302_s20, 5 }
  0x57   : > { %s9115_s10 = scalar_select %p45_p11, %s8926_s26, %s47_s12  }
  0x58   : > { %s313_s11 = scalar_lea.hbm %s9726_s0, %s5972_s23  ;;  %s306_s21 = scalar_lea.vmem [#allocation7], %s5906_s13 }
  0x59   : > { %s314_s30 = sshll.u32 %s306_s21, 4  ;;  %p9122_p5 = pnand %p6028_p9, %p9097_p8  ;;  %s315_s30 = int_to_ptr.vmem [resolvable:$true] %s314_s30 }
  0x5a   : > { %s303_s14 = scalar_lea.sflag [#allocation8], %s302_s20  ;;  %s8805_s18 = scalar_lea.vmem %s315_s30, 512 }
  0x5b   : > { %p8794_p0 = pneg %p9122_p5  ;;  %p8806_p2 = scmp.ne.s32.totalorder %s315_s30, %s8805_s18 }
  0x5c   : > { %s8949_s12 = smov [#allocation7]  }
  0x5d   : > { %p8808_p3 = pnand %p8806_p2, %p8794_p0  ;;  %s8810_s1 = sshll.u32 %s8949_s12, 4  ;;  %s8811_s1 = int_to_ptr.vmem [resolvable:$false] %s8810_s1 }
  0x5e   : > { %s8812_s23 = scalar_lea.vmem %s8811_s1, 1024  ;;  %p8813_p6 = scmp.lt.s32.totalorder %s315_s30, %s8811_s1 }
  0x5f   : > { %p8809_p4 = pneg %p8808_p3  ;;  %p8814_p1 = scmp.lt.s32.totalorder %s8812_s23, %s8805_s18 }
  0x61   : > { %p8815_p7 = por %p8814_p1, %p8813_p6 }
  0x63   : > { %p8816_p8 = pnand %p8815_p7, %p8809_p4 }
  0x65   : > { %8819 = shalt.err (!%p8816_p8)
}
  0x66   : > { %s8950_s22 = smov 8   ;;  %s9749_s13 = smov 128  }
  0x67   : > { %6022 = dma.hbm_to_vmem [thread:$0]  (!%p9122_p5), %s313_s11, 512, %s315_s30, %s303_s14, %s9749_s13, %s9749_s13, %s8950_s22  }
  0x68   : > { %p9750_p10 = scmp.ne.s32.totalorder %s9741_s9, 0 }
  0x69   : > { %s328_s20 = sand.u32 (!%p9750_p10), 1, %s8922_s25  }
  0x6a   : > { %326 = sbr.rel (%p9750_p10) target bundleno = 2230 (0x8b6), region = 44  ;;  %s5910_s15 = sshll.u32 (!%p9750_p10), %s328_s20, 5 }
  0x6b   : > { %s329_s16 = scalar_lea.sflag (!%p9750_p10), [#allocation8], %s328_s20  ;;  %s9135_s21 = scalar_lea.vmem (!%p9750_p10), [#allocation7], %s5910_s15 }
  0x6f   : > { %8893 = dma.done.wait (%p9108_p13), %s329_s16, 512  }
  0x70   : > { %8895 = vsyncadd (%p9108_p13), %s329_s16, 4294966784  ;;  %p9751_p9 = scmp.ne.s32.totalorder %s9740_s8, 0 }
  0x72   : > { %8897 = dma.done.wait (%p9751_p9), [#allocation11], 81920  }
  0x73   : > { %8899 = vsyncadd (%p9751_p9), [#allocation11], 4294885376 }
  0x74   : > { %8901 = dma.done.wait (%p9751_p9), [#allocation14], 32896  }
  0x75   : > { %8903 = vsyncadd (%p9751_p9), [#allocation14], 4294934400 }
  0x76   : > { %8905 = dma.done.wait (%p9751_p9), [#allocation17], 128  }
  0x77   : > { %8907 = vsyncadd (%p9751_p9), [#allocation17], 4294967168  ;;  %p5916_p11 = scmp.ne.s32.totalorder %s8930_s27, 0 }
  0x79   : > { %382 = sbr.rel (%p5916_p11) target bundleno = 134 (0x86), region = 72 }
  0x7e   : > { %v8951_v0 = vmov 0.0  }
  0x7f   : > { %383 = vst [vmem:[#allocation3 + $0x30] sm:$0xff] %v8951_v0  ;;  %384 = vst [vmem:[#allocation3] sm:$0xff] %v8951_v0 }
  0x80   : > { %385 = vst [vmem:[#allocation3 + $0x18] sm:$0xff] %v8951_v0  ;;  %386 = vst [vmem:[#allocation3 + $0x10] sm:$0xff] %v8951_v0 }
  0x81   : > { %387 = vst [vmem:[#allocation3 + $0x8] sm:$0xff] %v8951_v0  ;;  %388 = vst [vmem:[#allocation3 + $0x20] sm:$0xff] %v8951_v0 }
  0x82   : > { %389 = vst [vmem:[#allocation3 + $0x28] sm:$0xff] %v8951_v0  ;;  %390 = vst [vmem:[#allocation3 + $0x38] sm:$0xff] %v8951_v0 }
  0x83   : > { %391 = vst [vmem:[#allocation4] sm:$0xff] %v8951_v0  ;;  %392 = vst [vmem:[#allocation4 + $0x8] sm:$0xff] %v8951_v0 }
  0x84   : > { %393 = vst [vmem:[#allocation5] sm:$0xff] %v8951_v0  ;;  %394 = vst [vmem:[#allocation5 + $0x8] sm:$0xff] %v8951_v0 }
  0x85   : > { %395 = vst [vmem:[#allocation6] sm:$0xff] %v8951_v0  ;;  %396 = vst [vmem:[#allocation6 + $0x8] sm:$0xff] %v8951_v0 }
  0x86 PF: > { %v522_v1 = vld [vmem:[#allocation10 + $0x3c8] sm:$0xff]  ;;  %v524_v2 = vld [vmem:[#allocation10 + $0x3d8] sm:$0xff]  ;;  %v521_v3 = vld [vmem:[#allocation10 + $0x3c0] sm:$0xff]  ;;  %p5965_p12 = scmp.ne.s32.totalorder %s8930_s27, 3 }
  0x87   : > { %571 = vmatprep.subr.mxu0 %v522_v1  ;;  %660 = vmatprep.subr.mxu1 %v524_v2  ;;  %v523_v4 = vld [vmem:[#allocation10 + $0x3d0] sm:$0xff]  ;;  %v514_v5 = vld [vmem:[#allocation10 + $0x388] sm:$0xff]  ;;  %v516_v6 = vld [vmem:[#allocation10 + $0x398] sm:$0xff]  ;;  %v8952_v2 = vmov 0.0  }
  0x88   : > { %572 = vmatpush1.msra.mxu0 %v521_v3  ;;  %661 = vmatpush1.msra.mxu1 %v523_v4  ;;  %v513_v7 = vld [vmem:[#allocation10 + $0x380] sm:$0xff]  ;;  %v515_v8 = vld [vmem:[#allocation10 + $0x390] sm:$0xff]  ;;  %v506_v9 = vld [vmem:[#allocation10 + $0x348] sm:$0xff] }
  0x89   : > { %573 = vmatprep.subr.mxu0 %v514_v5  ;;  %662 = vmatprep.subr.mxu1 %v516_v6  ;;  %v508_v10 = vld [vmem:[#allocation10 + $0x358] sm:$0xff]  ;;  %v505_v11 = vld [vmem:[#allocation10 + $0x340] sm:$0xff]  ;;  %v507_v12 = vld [vmem:[#allocation10 + $0x350] sm:$0xff] }
  0x8a   : > { %574 = vmatpush1.msra.mxu0 %v513_v7  ;;  %663 = vmatpush1.msra.mxu1 %v515_v8  ;;  %v498_v13 = vld [vmem:[#allocation10 + $0x308] sm:$0xff]  ;;  %v500_v14 = vld [vmem:[#allocation10 + $0x318] sm:$0xff]  ;;  %v497_v15 = vld [vmem:[#allocation10 + $0x300] sm:$0xff] }
  0x8b   : > { %575 = vmatprep.subr.mxu0 %v506_v9  ;;  %664 = vmatprep.subr.mxu1 %v508_v10  ;;  %v499_v16 = vld [vmem:[#allocation10 + $0x310] sm:$0xff]  ;;  %v490_v17 = vld [vmem:[#allocation10 + $0x2c8] sm:$0xff]  ;;  %v492_v18 = vld [vmem:[#allocation10 + $0x2d8] sm:$0xff] }
  0x8c   : > { %576 = vmatpush1.msra.mxu0 %v505_v11  ;;  %665 = vmatpush1.msra.mxu1 %v507_v12  ;;  %v489_v19 = vld [vmem:[#allocation10 + $0x2c0] sm:$0xff]  ;;  %v491_v20 = vld [vmem:[#allocation10 + $0x2d0] sm:$0xff]  ;;  %v482_v21 = vld [vmem:[#allocation10 + $0x288] sm:$0xff] }
  0x8d   : > { %577 = vmatprep.subr.mxu0 %v498_v13  ;;  %666 = vmatprep.subr.mxu1 %v500_v14  ;;  %v484_v22 = vld [vmem:[#allocation10 + $0x298] sm:$0xff]  ;;  %v481_v23 = vld [vmem:[#allocation10 + $0x280] sm:$0xff]  ;;  %v483_v24 = vld [vmem:[#allocation10 + $0x290] sm:$0xff] }
  0x8e   : > { %578 = vmatpush1.msra.mxu0 %v497_v15  ;;  %667 = vmatpush1.msra.mxu1 %v499_v16  ;;  %v474_v25 = vld [vmem:[#allocation10 + $0x248] sm:$0xff]  ;;  %v476_v26 = vld [vmem:[#allocation10 + $0x258] sm:$0xff]  ;;  %v473_v27 = vld [vmem:[#allocation10 + $0x240] sm:$0xff] }
  0x8f   : > { %579 = vmatprep.subr.mxu0 %v490_v17  ;;  %668 = vmatprep.subr.mxu1 %v492_v18  ;;  %v475_v28 = vld [vmem:[#allocation10 + $0x250] sm:$0xff]  ;;  %v466_v29 = vld [vmem:[#allocation10 + $0x208] sm:$0xff]  ;;  %v468_v30 = vld [vmem:[#allocation10 + $0x218] sm:$0xff] }
  0x90   : > { %580 = vmatpush1.msra.mxu0 %v489_v19  ;;  %669 = vmatpush1.msra.mxu1 %v491_v20  ;;  %v465_v31 = vld [vmem:[#allocation10 + $0x200] sm:$0xff]  ;;  %v467_v32 = vld [vmem:[#allocation10 + $0x210] sm:$0xff]  ;;  %v458_v33 = vld [vmem:[#allocation10 + $0x1c8] sm:$0xff] }
  0x91   : > { %581 = vmatprep.subr.mxu0 %v482_v21  ;;  %670 = vmatprep.subr.mxu1 %v484_v22  ;;  %v460_v34 = vld [vmem:[#allocation10 + $0x1d8] sm:$0xff]  ;;  %v457_v35 = vld [vmem:[#allocation10 + $0x1c0] sm:$0xff]  ;;  %v459_v36 = vld [vmem:[#allocation10 + $0x1d0] sm:$0xff] }
  0x92   : > { %582 = vmatpush1.msra.mxu0 %v481_v23  ;;  %671 = vmatpush1.msra.mxu1 %v483_v24  ;;  %v450_v37 = vld [vmem:[#allocation10 + $0x188] sm:$0xff]  ;;  %v452_v38 = vld [vmem:[#allocation10 + $0x198] sm:$0xff]  ;;  %v449_v39 = vld [vmem:[#allocation10 + $0x180] sm:$0xff] }
  0x93   : > { %583 = vmatprep.subr.mxu0 %v474_v25  ;;  %672 = vmatprep.subr.mxu1 %v476_v26  ;;  %v451_v40 = vld [vmem:[#allocation10 + $0x190] sm:$0xff]  ;;  %v442_v41 = vld [vmem:[#allocation10 + $0x148] sm:$0xff]  ;;  %v444_v42 = vld [vmem:[#allocation10 + $0x158] sm:$0xff] }
  0x94   : > { %584 = vmatpush1.msra.mxu0 %v473_v27  ;;  %673 = vmatpush1.msra.mxu1 %v475_v28  ;;  %v441_v43 = vld [vmem:[#allocation10 + $0x140] sm:$0xff]  ;;  %v443_v44 = vld [vmem:[#allocation10 + $0x150] sm:$0xff]  ;;  %v434_v45 = vld [vmem:[#allocation10 + $0x108] sm:$0xff] }
  0x95   : > { %585 = vmatprep.subr.mxu0 %v466_v29  ;;  %674 = vmatprep.subr.mxu1 %v468_v30  ;;  %v436_v46 = vld [vmem:[#allocation10 + $0x118] sm:$0xff]  ;;  %v433_v47 = vld [vmem:[#allocation10 + $0x100] sm:$0xff]  ;;  %v435_v48 = vld [vmem:[#allocation10 + $0x110] sm:$0xff] }
  0x96   : > { %586 = vmatpush1.msra.mxu0 %v465_v31  ;;  %675 = vmatpush1.msra.mxu1 %v467_v32  ;;  %v426_v49 = vld [vmem:[#allocation10 + $0xc8] sm:$0xff]  ;;  %v428_v50 = vld [vmem:[#allocation10 + $0xd8] sm:$0xff]  ;;  %v425_v51 = vld [vmem:[#allocation10 + $0xc0] sm:$0xff] }
  0x97   : > { %587 = vmatprep.subr.mxu0 %v458_v33  ;;  %676 = vmatprep.subr.mxu1 %v460_v34  ;;  %v427_v52 = vld [vmem:[#allocation10 + $0xd0] sm:$0xff]  ;;  %v418_v53 = vld [vmem:[#allocation10 + $0x88] sm:$0xff]  ;;  %v420_v54 = vld [vmem:[#allocation10 + $0x98] sm:$0xff] }
  0x98   : > { %588 = vmatpush1.msra.mxu0 %v457_v35  ;;  %677 = vmatpush1.msra.mxu1 %v459_v36  ;;  %v417_v55 = vld [vmem:[#allocation10 + $0x80] sm:$0xff]  ;;  %v419_v56 = vld [vmem:[#allocation10 + $0x90] sm:$0xff]  ;;  %v410_v57 = vld [vmem:[#allocation10 + $0x48] sm:$0xff] }
  0x99   : > { %589 = vmatprep.subr.mxu0 %v450_v37  ;;  %678 = vmatprep.subr.mxu1 %v452_v38  ;;  %v412_v58 = vld [vmem:[#allocation10 + $0x58] sm:$0xff]  ;;  %v409_v59 = vld [vmem:[#allocation10 + $0x40] sm:$0xff]  ;;  %v411_v60 = vld [vmem:[#allocation10 + $0x50] sm:$0xff] }
  0x9a   : > { %590 = vmatpush1.msra.mxu0 %v449_v39  ;;  %679 = vmatpush1.msra.mxu1 %v451_v40  ;;  %v402_v61 = vld [vmem:[#allocation10 + $0x8] sm:$0xff]  ;;  %v404_v62 = vld [vmem:[#allocation10 + $0x18] sm:$0xff]  ;;  %v401_v63 = vld [vmem:[#allocation10] sm:$0xff] }
  0x9b   : > { %591 = vmatprep.subr.mxu0 %v442_v41  ;;  %680 = vmatprep.subr.mxu1 %v444_v42  ;;  %v403_v0 = vld [vmem:[#allocation10 + $0x10] sm:$0xff]  ;;  %v9155_v1 = vld [vmem:[%s9135_s21] sm:$0xff]  ;;  %v526_v3 = vld [vmem:[#allocation10 + $0x3e8] sm:$0xff] }
  0x9c   : > { %592 = vmatpush1.msra.mxu0 %v441_v43  ;;  %681 = vmatpush1.msra.mxu1 %v443_v44  ;;  %v528_v4 = vld [vmem:[#allocation10 + $0x3f8] sm:$0xff]  ;;  %v525_v5 = vld [vmem:[#allocation10 + $0x3e0] sm:$0xff]  ;;  %v527_v6 = vld [vmem:[#allocation10 + $0x3f0] sm:$0xff] }
  0x9d   : > { %593 = vmatprep.subr.mxu0 %v434_v45  ;;  %682 = vmatprep.subr.mxu1 %v436_v46  ;;  %v518_v7 = vld [vmem:[#allocation10 + $0x3a8] sm:$0xff]  ;;  %v520_v8 = vld [vmem:[#allocation10 + $0x3b8] sm:$0xff]  ;;  %v517_v9 = vld [vmem:[#allocation10 + $0x3a0] sm:$0xff] }
  0x9e   : > { %594 = vmatpush1.msra.mxu0 %v433_v47  ;;  %683 = vmatpush1.msra.mxu1 %v435_v48  ;;  %v519_v10 = vld [vmem:[#allocation10 + $0x3b0] sm:$0xff]  ;;  %v510_v11 = vld [vmem:[#allocation10 + $0x368] sm:$0xff]  ;;  %v512_v12 = vld [vmem:[#allocation10 + $0x378] sm:$0xff] }
  0x9f   : > { %595 = vmatprep.subr.mxu0 %v426_v49  ;;  %684 = vmatprep.subr.mxu1 %v428_v50  ;;  %v509_v13 = vld [vmem:[#allocation10 + $0x360] sm:$0xff]  ;;  %v511_v14 = vld [vmem:[#allocation10 + $0x370] sm:$0xff]  ;;  %v502_v15 = vld [vmem:[#allocation10 + $0x328] sm:$0xff] }
  0xa0   : > { %596 = vmatpush1.msra.mxu0 %v425_v51  ;;  %685 = vmatpush1.msra.mxu1 %v427_v52  ;;  %v504_v16 = vld [vmem:[#allocation10 + $0x338] sm:$0xff]  ;;  %v501_v17 = vld [vmem:[#allocation10 + $0x320] sm:$0xff]  ;;  %v503_v18 = vld [vmem:[#allocation10 + $0x330] sm:$0xff] }
  0xa1   : > { %597 = vmatprep.subr.mxu0 %v418_v53  ;;  %686 = vmatprep.subr.mxu1 %v420_v54  ;;  %v494_v19 = vld [vmem:[#allocation10 + $0x2e8] sm:$0xff]  ;;  %v496_v20 = vld [vmem:[#allocation10 + $0x2f8] sm:$0xff]  ;;  %v493_v21 = vld [vmem:[#allocation10 + $0x2e0] sm:$0xff] }
  0xa2   : > { %598 = vmatpush1.msra.mxu0 %v417_v55  ;;  %687 = vmatpush1.msra.mxu1 %v419_v56  ;;  %v495_v22 = vld [vmem:[#allocation10 + $0x2f0] sm:$0xff]  ;;  %v486_v23 = vld [vmem:[#allocation10 + $0x2a8] sm:$0xff]  ;;  %v488_v24 = vld [vmem:[#allocation10 + $0x2b8] sm:$0xff] }
  0xa3   : > { %599 = vmatprep.subr.mxu0 %v410_v57  ;;  %688 = vmatprep.subr.mxu1 %v412_v58  ;;  %v485_v25 = vld [vmem:[#allocation10 + $0x2a0] sm:$0xff]  ;;  %v487_v26 = vld [vmem:[#allocation10 + $0x2b0] sm:$0xff]  ;;  %v478_v27 = vld [vmem:[#allocation10 + $0x268] sm:$0xff] }
  0xa4   : > { %600 = vmatpush1.msra.mxu0 %v409_v59  ;;  %689 = vmatpush1.msra.mxu1 %v411_v60  ;;  %v480_v28 = vld [vmem:[#allocation10 + $0x278] sm:$0xff]  ;;  %v477_v29 = vld [vmem:[#allocation10 + $0x260] sm:$0xff]  ;;  %v479_v30 = vld [vmem:[#allocation10 + $0x270] sm:$0xff] }
  0xa5   : > { %601 = vmatprep.subr.mxu0 %v402_v61  ;;  %690 = vmatprep.subr.mxu1 %v404_v62  ;;  %v470_v31 = vld [vmem:[#allocation10 + $0x228] sm:$0xff]  ;;  %v472_v32 = vld [vmem:[#allocation10 + $0x238] sm:$0xff]  ;;  %v469_v33 = vld [vmem:[#allocation10 + $0x220] sm:$0xff] }
  0xa6   : > { %602 = vmatpush1.msra.mxu0 %v401_v63  ;;  %635 = vmatprep.mubr.f32.mxu0 %v8952_v2  ;;  %v471_v34 = vld [vmem:[#allocation10 + $0x230] sm:$0xff]  ;;  %v462_v35 = vld [vmem:[#allocation10 + $0x1e8] sm:$0xff]  ;;  %v464_v36 = vld [vmem:[#allocation10 + $0x1f8] sm:$0xff] }
  0xa7   : > { %691 = vmatpush1.msra.mxu1 %v403_v0  ;;  %724 = vmatprep.mubr.f32.mxu1 %v8952_v2  ;;  %v461_v37 = vld [vmem:[#allocation10 + $0x1e0] sm:$0xff]  ;;  %v463_v38 = vld [vmem:[#allocation10 + $0x1f0] sm:$0xff]  ;;  %v9162_v39 = vld [vmem:[%s9135_s21 + $0x8] sm:$0xff] }
  0xa8   : > { %636 = vmatmul.mubr.f32.vlgmr.msra.gmra.mxu0 %v9155_v1  ;;  %725 = vmatmul.mubr.f32.vlgmr.msra.gmra.mxu1 %v9155_v1  ;;  %v454_v40 = vld [vmem:[#allocation10 + $0x1a8] sm:$0xff]  ;;  %v456_v41 = vld [vmem:[#allocation10 + $0x1b8] sm:$0xff]  ;;  %v453_v42 = vld [vmem:[#allocation10 + $0x1a0] sm:$0xff] }
  0xa9   : > { %749 = vmatprep.subr.mxu0 %v526_v3  ;;  %838 = vmatprep.subr.mxu1 %v528_v4  ;;  %v455_v43 = vld [vmem:[#allocation10 + $0x1b0] sm:$0xff]  ;;  %v446_v44 = vld [vmem:[#allocation10 + $0x168] sm:$0xff]  ;;  %v448_v45 = vld [vmem:[#allocation10 + $0x178] sm:$0xff] }
  0xaa   : > { %750 = vmatpush1.msra.mxu0 %v525_v5  ;;  %839 = vmatpush1.msra.mxu1 %v527_v6  ;;  %v445_v46 = vld [vmem:[#allocation10 + $0x160] sm:$0xff]  ;;  %v447_v47 = vld [vmem:[#allocation10 + $0x170] sm:$0xff]  ;;  %v438_v49 = vld [vmem:[#allocation10 + $0x128] sm:$0xff] }
  0xab   : > { %751 = vmatprep.subr.mxu0 %v518_v7  ;;  %840 = vmatprep.subr.mxu1 %v520_v8  ;;  %v399_v48 = vld [vmem:[%s9135_s21 + $0x10] sm:$0xff]  ;;  %v440_v50 = vld [vmem:[#allocation10 + $0x138] sm:$0xff]  ;;  %v437_v51 = vld [vmem:[#allocation10 + $0x120] sm:$0xff] }
  0xac   : > { %752 = vmatpush1.msra.mxu0 %v517_v9  ;;  %841 = vmatpush1.msra.mxu1 %v519_v10  ;;  %v439_v52 = vld [vmem:[#allocation10 + $0x130] sm:$0xff]  ;;  %v430_v53 = vld [vmem:[#allocation10 + $0xe8] sm:$0xff]  ;;  %v432_v54 = vld [vmem:[#allocation10 + $0xf8] sm:$0xff] }
  0xad   : > { %753 = vmatprep.subr.mxu0 %v510_v11  ;;  %842 = vmatprep.subr.mxu1 %v512_v12  ;;  %v429_v55 = vld [vmem:[#allocation10 + $0xe0] sm:$0xff]  ;;  %v431_v56 = vld [vmem:[#allocation10 + $0xf0] sm:$0xff]  ;;  %v400_v57 = vld [vmem:[%s9135_s21 + $0x18] sm:$0xff] }
  0xae   : > { %754 = vmatpush1.msra.mxu0 %v509_v13  ;;  %843 = vmatpush1.msra.mxu1 %v511_v14  ;;  %v422_v58 = vld [vmem:[#allocation10 + $0xa8] sm:$0xff]  ;;  %v424_v59 = vld [vmem:[#allocation10 + $0xb8] sm:$0xff]  ;;  %v421_v60 = vld [vmem:[#allocation10 + $0xa0] sm:$0xff] }
  0xaf   : > { %755 = vmatprep.subr.mxu0 %v502_v15  ;;  %844 = vmatprep.subr.mxu1 %v504_v16  ;;  %v423_v61 = vld [vmem:[#allocation10 + $0xb0] sm:$0xff]  ;;  %v414_v62 = vld [vmem:[#allocation10 + $0x68] sm:$0xff]  ;;  %v416_v63 = vld [vmem:[#allocation10 + $0x78] sm:$0xff] }
  0xb0   : > { %756 = vmatpush1.msra.mxu0 %v501_v17  ;;  %845 = vmatpush1.msra.mxu1 %v503_v18  ;;  %v413_v0 = vld [vmem:[#allocation10 + $0x60] sm:$0xff]  ;;  %v415_v3 = vld [vmem:[#allocation10 + $0x70] sm:$0xff]  ;;  %v406_v4 = vld [vmem:[#allocation10 + $0x28] sm:$0xff] }
  0xb1   : > { %757 = vmatprep.subr.mxu0 %v494_v19  ;;  %846 = vmatprep.subr.mxu1 %v496_v20  ;;  %v408_v5 = vld [vmem:[#allocation10 + $0x38] sm:$0xff]  ;;  %v405_v6 = vld [vmem:[#allocation10 + $0x20] sm:$0xff]  ;;  %v407_v7 = vld [vmem:[#allocation10 + $0x30] sm:$0xff] }
  0xb2   : > { %758 = vmatpush1.msra.mxu0 %v493_v21  ;;  %847 = vmatpush1.msra.mxu1 %v495_v22  ;;  %v1202_v8 = vld [vmem:[#allocation12 + $0x798] sm:$0xff]  ;;  %v1199_v9 = vld [vmem:[#allocation12 + $0x780] sm:$0xff]  ;;  %v1201_v10 = vld [vmem:[#allocation12 + $0x790] sm:$0xff] }
  0xb3   : > { %759 = vmatprep.subr.mxu0 %v486_v23  ;;  %848 = vmatprep.subr.mxu1 %v488_v24  ;;  %v1184_v11 = vld [vmem:[#allocation12 + $0x708] sm:$0xff]  ;;  %v1186_v12 = vld [vmem:[#allocation12 + $0x718] sm:$0xff]  ;;  %v1183_v13 = vld [vmem:[#allocation12 + $0x700] sm:$0xff] }
  0xb4   : > { %760 = vmatpush1.msra.mxu0 %v485_v25  ;;  %849 = vmatpush1.msra.mxu1 %v487_v26  ;;  %v1185_v14 = vld [vmem:[#allocation12 + $0x710] sm:$0xff]  ;;  %v1168_v15 = vld [vmem:[#allocation12 + $0x688] sm:$0xff]  ;;  %v1167_v16 = vld [vmem:[#allocation12 + $0x680] sm:$0xff] }
  0xb5   : > { %761 = vmatprep.subr.mxu0 %v478_v27  ;;  %850 = vmatprep.subr.mxu1 %v480_v28  ;;  %v1169_v17 = vld [vmem:[#allocation12 + $0x690] sm:$0xff]  ;;  %v1152_v18 = vld [vmem:[#allocation12 + $0x608] sm:$0xff]  ;;  %v1154_v19 = vld [vmem:[#allocation12 + $0x618] sm:$0xff] }
  0xb6   : > { %762 = vmatpush1.msra.mxu0 %v477_v29  ;;  %851 = vmatpush1.msra.mxu1 %v479_v30  ;;  %v1151_v20 = vld [vmem:[#allocation12 + $0x600] sm:$0xff]  ;;  %v1153_v21 = vld [vmem:[#allocation12 + $0x610] sm:$0xff]  ;;  %v1136_v22 = vld [vmem:[#allocation12 + $0x588] sm:$0xff] }
  0xb7   : > { %763 = vmatprep.subr.mxu0 %v470_v31  ;;  %852 = vmatprep.subr.mxu1 %v472_v32  ;;  %v1138_v23 = vld [vmem:[#allocation12 + $0x598] sm:$0xff]  ;;  %v1135_v24 = vld [vmem:[#allocation12 + $0x580] sm:$0xff]  ;;  %v1137_v25 = vld [vmem:[#allocation12 + $0x590] sm:$0xff] }
  0xb8   : > { %764 = vmatpush1.msra.mxu0 %v469_v33  ;;  %853 = vmatpush1.msra.mxu1 %v471_v34  ;;  %v1120_v26 = vld [vmem:[#allocation12 + $0x508] sm:$0xff]  ;;  %v1122_v27 = vld [vmem:[#allocation12 + $0x518] sm:$0xff]  ;;  %v1119_v28 = vld [vmem:[#allocation12 + $0x500] sm:$0xff] }
  0xb9   : > { %765 = vmatprep.subr.mxu0 %v462_v35  ;;  %854 = vmatprep.subr.mxu1 %v464_v36  ;;  %v1121_v29 = vld [vmem:[#allocation12 + $0x510] sm:$0xff]  ;;  %v1104_v30 = vld [vmem:[#allocation12 + $0x488] sm:$0xff]  ;;  %v1106_v31 = vld [vmem:[#allocation12 + $0x498] sm:$0xff] }
  0xba   : > { %641 = vmatprep.mubr.f32.mxu0 %v8952_v2  ;;  %730 = vmatprep.mubr.f32.mxu1 %v8952_v2  ;;  %v1103_v32 = vld [vmem:[#allocation12 + $0x480] sm:$0xff]  ;;  %v1105_v33 = vld [vmem:[#allocation12 + $0x490] sm:$0xff]  ;;  %v1088_v34 = vld [vmem:[#allocation12 + $0x408] sm:$0xff] }
  0xbb   : > { %766 = vmatpush1.msra.mxu0 %v461_v37  ;;  %855 = vmatpush1.msra.mxu1 %v463_v38  ;;  %v1090_v35 = vld [vmem:[#allocation12 + $0x418] sm:$0xff]  ;;  %v1087_v36 = vld [vmem:[#allocation12 + $0x400] sm:$0xff]  ;;  %v1089_v37 = vld [vmem:[#allocation12 + $0x410] sm:$0xff] }
  0xbc   : > { %642 = vmatmul.mubr.f32.gmra.mxu0 %v9162_v39  ;;  %731 = vmatmul.mubr.f32.gmra.mxu1 %v9162_v39  ;;  %v1072_v38 = vld [vmem:[#allocation12 + $0x388] sm:$0xff] }
  0xbd   : > { %767 = vmatprep.subr.mxu0 %v454_v40  ;;  %856 = vmatprep.subr.mxu1 %v456_v41  ;;  %v1071_v40 = vld [vmem:[#allocation12 + $0x380] sm:$0xff]  ;;  %v1073_v41 = vld [vmem:[#allocation12 + $0x390] sm:$0xff] }
  0xbe   : > { %768 = vmatpush1.msra.mxu0 %v453_v42  ;;  %857 = vmatpush1.msra.mxu1 %v455_v43  ;;  %v1056_v42 = vld [vmem:[#allocation12 + $0x308] sm:$0xff]  ;;  %v1058_v43 = vld [vmem:[#allocation12 + $0x318] sm:$0xff] }
  0xbf   : > { %769 = vmatprep.subr.mxu0 %v446_v44  ;;  %858 = vmatprep.subr.mxu1 %v448_v45  ;;  %v1055_v44 = vld [vmem:[#allocation12 + $0x300] sm:$0xff]  ;;  %v1057_v45 = vld [vmem:[#allocation12 + $0x310] sm:$0xff] }
  0xc0   : > { %647 = vmatprep.mubr.f32.mxu0 %v8952_v2  ;;  %736 = vmatprep.mubr.f32.mxu1 %v8952_v2 }
  0xc1   : > { %770 = vmatpush1.msra.mxu0 %v445_v46  ;;  %859 = vmatpush1.msra.mxu1 %v447_v47  ;;  %v1040_v46 = vld [vmem:[#allocation12 + $0x288] sm:$0xff]  ;;  %v1042_v47 = vld [vmem:[#allocation12 + $0x298] sm:$0xff] }
  0xc2   : > { %648 = vmatmul.mubr.f32.gmra.mxu0 %v399_v48  ;;  %737 = vmatmul.mubr.f32.gmra.mxu1 %v399_v48 }
  0xc3   : > { %771 = vmatprep.subr.mxu0 %v438_v49  ;;  %860 = vmatprep.subr.mxu1 %v440_v50  ;;  %v1041_v49 = vld [vmem:[#allocation12 + $0x290] sm:$0xff]  ;;  %v1024_v50 = vld [vmem:[#allocation12 + $0x208] sm:$0xff] }
  0xc4   : > { %772 = vmatpush1.msra.mxu0 %v437_v51  ;;  %861 = vmatpush1.msra.mxu1 %v439_v52  ;;  %v1026_v51 = vld [vmem:[#allocation12 + $0x218] sm:$0xff]  ;;  %v1023_v52 = vld [vmem:[#allocation12 + $0x200] sm:$0xff] }
  0xc5   : > { %773 = vmatprep.subr.mxu0 %v430_v53  ;;  %862 = vmatprep.subr.mxu1 %v432_v54  ;;  %v1025_v53 = vld [vmem:[#allocation12 + $0x210] sm:$0xff]  ;;  %v1008_v54 = vld [vmem:[#allocation12 + $0x188] sm:$0xff] }
  0xc6   : > { %653 = vmatprep.mubr.f32.mxu0 %v8952_v2  ;;  %742 = vmatprep.mubr.f32.mxu1 %v8952_v2 }
  0xc7   : > { %774 = vmatpush1.msra.mxu0 %v429_v55  ;;  %863 = vmatpush1.msra.mxu1 %v431_v56  ;;  %v1010_v55 = vld [vmem:[#allocation12 + $0x198] sm:$0xff]  ;;  %v1007_v56 = vld [vmem:[#allocation12 + $0x180] sm:$0xff] }
  0xc8   : > { %654 = vmatmul.mubr.f32.gmra.mxu0 %v400_v57  ;;  %743 = vmatmul.mubr.f32.gmra.mxu1 %v400_v57 }
  0xc9   : > { %775 = vmatprep.subr.mxu0 %v422_v58  ;;  %864 = vmatprep.subr.mxu1 %v424_v59  ;;  %v992_v58 = vld [vmem:[#allocation12 + $0x108] sm:$0xff]  ;;  %v994_v59 = vld [vmem:[#allocation12 + $0x118] sm:$0xff] }
  0xca   : > { %776 = vmatpush1.msra.mxu0 %v421_v60  ;;  %865 = vmatpush1.msra.mxu1 %v423_v61  ;;  %v991_v60 = vld [vmem:[#allocation12 + $0x100] sm:$0xff]  ;;  %v993_v61 = vld [vmem:[#allocation12 + $0x110] sm:$0xff] }
  0xcb   : > { %777 = vmatprep.subr.mxu0 %v414_v62  ;;  %866 = vmatprep.subr.mxu1 %v416_v63  ;;  %v976_v62 = vld [vmem:[#allocation12 + $0x88] sm:$0xff]  ;;  %v978_v63 = vld [vmem:[#allocation12 + $0x98] sm:$0xff] }
  0xcc   : > { %778 = vmatpush1.msra.mxu0 %v413_v0  ;;  %867 = vmatpush1.msra.mxu1 %v415_v3  ;;  %v975_v0 = vld [vmem:[#allocation12 + $0x80] sm:$0xff]  ;;  %v977_v3 = vld [vmem:[#allocation12 + $0x90] sm:$0xff] }
  0xcd   : > { %779 = vmatprep.subr.mxu0 %v406_v4  ;;  %868 = vmatprep.subr.mxu1 %v408_v5  ;;  %v960_v4 = vld [vmem:[#allocation12 + $0x8] sm:$0xff]  ;;  %v962_v5 = vld [vmem:[#allocation12 + $0x18] sm:$0xff] }
  0xce   : > { %780 = vmatpush1.msra.mxu0 %v405_v6  ;;  %813 = vmatprep.mubr.f32.mxu0 %v8952_v2  ;;  %v959_v6 = vld [vmem:[#allocation12] sm:$0xff] }
  0xcf   : > { %869 = vmatpush1.msra.mxu1 %v407_v7  ;;  %902 = vmatprep.mubr.f32.mxu1 %v8952_v2  ;;  %v961_v7 = vld [vmem:[#allocation12 + $0x10] sm:$0xff] }
  0xd0   : > { %814 = vmatmul.mubr.f32.vlgmr.msra.gmra.mxu0 %v9155_v1  ;;  %903 = vmatmul.mubr.f32.vlgmr.msra.gmra.mxu1 %v9155_v1  ;;  %v1200_v1 = vld [vmem:[#allocation12 + $0x788] sm:$0xff] }
  0xd1   : > { %819 = vmatprep.mubr.f32.mxu0 %v8952_v2  ;;  %908 = vmatprep.mubr.f32.mxu1 %v8952_v2 }
  0xd2   : > { %1850 = vmatprep.subr.mxu0 %v1200_v1  ;;  %1921 = vmatprep.subr.mxu1 %v1202_v8  ;;  %v1456_v1 = vld [vmem:[#allocation12 + $0xf88] sm:$0xff]  ;;  %v1458_v8 = vld [vmem:[#allocation12 + $0xf98] sm:$0xff] }
  0xd3   : > { %1851 = vmatpush1.msra.mxu0 %v1199_v9  ;;  %1922 = vmatpush1.msra.mxu1 %v1201_v10  ;;  %v1455_v9 = vld [vmem:[#allocation12 + $0xf80] sm:$0xff]  ;;  %v1457_v10 = vld [vmem:[#allocation12 + $0xf90] sm:$0xff] }
  0xd4   : > { %820 = vmatmul.mubr.f32.gmra.mxu0 %v9162_v39  ;;  %909 = vmatmul.mubr.f32.gmra.mxu1 %v9162_v39  ;;  %v1074_v39 = vld [vmem:[#allocation12 + $0x398] sm:$0xff] }
  0xd5   : > { %825 = vmatprep.mubr.f32.mxu0 %v8952_v2  ;;  %914 = vmatprep.mubr.f32.mxu1 %v8952_v2 }
  0xd6   : > { %1852 = vmatprep.subr.mxu0 %v1184_v11  ;;  %1923 = vmatprep.subr.mxu1 %v1186_v12  ;;  %v1440_v11 = vld [vmem:[#allocation12 + $0xf08] sm:$0xff]  ;;  %v1442_v12 = vld [vmem:[#allocation12 + $0xf18] sm:$0xff] }
  0xd7   : > { %1853 = vmatpush1.msra.mxu0 %v1183_v13  ;;  %1924 = vmatpush1.msra.mxu1 %v1185_v14  ;;  %v1439_v13 = vld [vmem:[#allocation12 + $0xf00] sm:$0xff]  ;;  %v1441_v14 = vld [vmem:[#allocation12 + $0xf10] sm:$0xff] }
  0xd8   : > { %826 = vmatmul.mubr.f32.gmra.mxu0 %v399_v48  ;;  %915 = vmatmul.mubr.f32.gmra.mxu1 %v399_v48  ;;  %v1039_v48 = vld [vmem:[#allocation12 + $0x280] sm:$0xff] }
  0xd9   : > { %831 = vmatprep.mubr.f32.mxu0 %v8952_v2  ;;  %920 = vmatprep.mubr.f32.mxu1 %v8952_v2  ;;  %v1170_v2 = vld [vmem:[#allocation12 + $0x698] sm:$0xff] }
  0xda   : > { %1854 = vmatprep.subr.mxu0 %v1168_v15  ;;  %1925 = vmatprep.subr.mxu1 %v1170_v2  ;;  %v1424_v15 = vld [vmem:[#allocation12 + $0xe88] sm:$0xff]  ;;  %v1426_v2 = vld [vmem:[#allocation12 + $0xe98] sm:$0xff] }
  0xdb   : > { %1855 = vmatpush1.msra.mxu0 %v1167_v16  ;;  %1926 = vmatpush1.msra.mxu1 %v1169_v17  ;;  %v1423_v16 = vld [vmem:[#allocation12 + $0xe80] sm:$0xff]  ;;  %v1425_v17 = vld [vmem:[#allocation12 + $0xe90] sm:$0xff] }
  0xdc   : > { %832 = vmatmul.mubr.f32.gmra.mxu0 %v400_v57  ;;  %921 = vmatmul.mubr.f32.gmra.mxu1 %v400_v57  ;;  %v1009_v57 = vld [vmem:[#allocation12 + $0x190] sm:$0xff] }
  0xdd   : > { %1856 = vmatprep.subr.mxu0 %v1152_v18  ;;  %1927 = vmatprep.subr.mxu1 %v1154_v19  ;;  %v1408_v18 = vld [vmem:[#allocation12 + $0xe08] sm:$0xff]  ;;  %v1410_v19 = vld [vmem:[#allocation12 + $0xe18] sm:$0xff] }
  0xde   : > { %1857 = vmatpush1.msra.mxu0 %v1151_v20  ;;  %1928 = vmatpush1.msra.mxu1 %v1153_v21  ;;  %v1407_v20 = vld [vmem:[#allocation12 + $0xe00] sm:$0xff]  ;;  %v1409_v21 = vld [vmem:[#allocation12 + $0xe10] sm:$0xff] }
  0xdf   : > { %1858 = vmatprep.subr.mxu0 %v1136_v22  ;;  %1929 = vmatprep.subr.mxu1 %v1138_v23  ;;  %v1392_v22 = vld [vmem:[#allocation12 + $0xd88] sm:$0xff]  ;;  %v1394_v23 = vld [vmem:[#allocation12 + $0xd98] sm:$0xff] }
  0xe0   : > { %1859 = vmatpush1.msra.mxu0 %v1135_v24  ;;  %1930 = vmatpush1.msra.mxu1 %v1137_v25  ;;  %v1391_v24 = vld [vmem:[#allocation12 + $0xd80] sm:$0xff]  ;;  %v1393_v25 = vld [vmem:[#allocation12 + $0xd90] sm:$0xff] }
  0xe1   : > { %1860 = vmatprep.subr.mxu0 %v1120_v26  ;;  %1931 = vmatprep.subr.mxu1 %v1122_v27  ;;  %v1376_v26 = vld [vmem:[#allocation12 + $0xd08] sm:$0xff]  ;;  %v1378_v27 = vld [vmem:[#allocation12 + $0xd18] sm:$0xff] }
  0xe2   : > { %1861 = vmatpush1.msra.mxu0 %v1119_v28  ;;  %1932 = vmatpush1.msra.mxu1 %v1121_v29  ;;  %v1375_v28 = vld [vmem:[#allocation12 + $0xd00] sm:$0xff]  ;;  %v1377_v29 = vld [vmem:[#allocation12 + $0xd10] sm:$0xff] }
  0xe3   : > { %1862 = vmatprep.subr.mxu0 %v1104_v30  ;;  %1933 = vmatprep.subr.mxu1 %v1106_v31  ;;  %v1360_v30 = vld [vmem:[#allocation12 + $0xc88] sm:$0xff]  ;;  %v1362_v31 = vld [vmem:[#allocation12 + $0xc98] sm:$0xff] }
  0xe4   : > { %1863 = vmatpush1.msra.mxu0 %v1103_v32  ;;  %1934 = vmatpush1.msra.mxu1 %v1105_v33  ;;  %v1359_v32 = vld [vmem:[#allocation12 + $0xc80] sm:$0xff]  ;;  %v1361_v33 = vld [vmem:[#allocation12 + $0xc90] sm:$0xff] }
  0xe5   : > { %1864 = vmatprep.subr.mxu0 %v1088_v34  ;;  %1935 = vmatprep.subr.mxu1 %v1090_v35  ;;  %v1344_v34 = vld [vmem:[#allocation12 + $0xc08] sm:$0xff]  ;;  %v1346_v35 = vld [vmem:[#allocation12 + $0xc18] sm:$0xff] }
  0xe6   : > { %1865 = vmatpush1.msra.mxu0 %v1087_v36  ;;  %1936 = vmatpush1.msra.mxu1 %v1089_v37  ;;  %v1343_v36 = vld [vmem:[#allocation12 + $0xc00] sm:$0xff]  ;;  %v1345_v37 = vld [vmem:[#allocation12 + $0xc10] sm:$0xff] }
  0xe7   : > { %1866 = vmatprep.subr.mxu0 %v1072_v38  ;;  %1937 = vmatprep.subr.mxu1 %v1074_v39  ;;  %v1328_v38 = vld [vmem:[#allocation12 + $0xb88] sm:$0xff]  ;;  %v1330_v39 = vld [vmem:[#allocation12 + $0xb98] sm:$0xff] }
  0xe8   : > { %1867 = vmatpush1.msra.mxu0 %v1071_v40  ;;  %1938 = vmatpush1.msra.mxu1 %v1073_v41  ;;  %v1327_v40 = vld [vmem:[#allocation12 + $0xb80] sm:$0xff]  ;;  %v1329_v41 = vld [vmem:[#allocation12 + $0xb90] sm:$0xff] }
  0xe9   : > { %1868 = vmatprep.subr.mxu0 %v1056_v42  ;;  %1939 = vmatprep.subr.mxu1 %v1058_v43  ;;  %v1312_v42 = vld [vmem:[#allocation12 + $0xb08] sm:$0xff]  ;;  %v1314_v43 = vld [vmem:[#allocation12 + $0xb18] sm:$0xff] }
  0xea   : > { %1869 = vmatpush1.msra.mxu0 %v1055_v44  ;;  %1940 = vmatpush1.msra.mxu1 %v1057_v45  ;;  %v1311_v44 = vld [vmem:[#allocation12 + $0xb00] sm:$0xff]  ;;  %v1313_v45 = vld [vmem:[#allocation12 + $0xb10] sm:$0xff] }
  0xeb   : > { %1870 = vmatprep.subr.mxu0 %v1040_v46  ;;  %1941 = vmatprep.subr.mxu1 %v1042_v47  ;;  %v1296_v46 = vld [vmem:[#allocation12 + $0xa88] sm:$0xff]  ;;  %v1298_v47 = vld [vmem:[#allocation12 + $0xa98] sm:$0xff] }
  0xec   : > { %1871 = vmatpush1.msra.mxu0 %v1039_v48  ;;  %1942 = vmatpush1.msra.mxu1 %v1041_v49  ;;  %v1295_v48 = vld [vmem:[#allocation12 + $0xa80] sm:$0xff]  ;;  %v1297_v49 = vld [vmem:[#allocation12 + $0xa90] sm:$0xff] }
  0xed   : > { %1872 = vmatprep.subr.mxu0 %v1024_v50  ;;  %1943 = vmatprep.subr.mxu1 %v1026_v51  ;;  %v1280_v50 = vld [vmem:[#allocation12 + $0xa08] sm:$0xff]  ;;  %v1282_v51 = vld [vmem:[#allocation12 + $0xa18] sm:$0xff] }
  0xee   : > { %1873 = vmatpush1.msra.mxu0 %v1023_v52  ;;  %1944 = vmatpush1.msra.mxu1 %v1025_v53  ;;  %v1279_v52 = vld [vmem:[#allocation12 + $0xa00] sm:$0xff]  ;;  %v1281_v53 = vld [vmem:[#allocation12 + $0xa10] sm:$0xff] }
  0xef   : > { %1874 = vmatprep.subr.mxu0 %v1008_v54  ;;  %1945 = vmatprep.subr.mxu1 %v1010_v55  ;;  %v1264_v54 = vld [vmem:[#allocation12 + $0x988] sm:$0xff]  ;;  %v1266_v55 = vld [vmem:[#allocation12 + $0x998] sm:$0xff] }
  0xf0   : > { %1875 = vmatpush1.msra.mxu0 %v1007_v56  ;;  %1946 = vmatpush1.msra.mxu1 %v1009_v57  ;;  %v1263_v56 = vld [vmem:[#allocation12 + $0x980] sm:$0xff]  ;;  %v1265_v57 = vld [vmem:[#allocation12 + $0x990] sm:$0xff] }
  0xf1   : > { %1876 = vmatprep.subr.mxu0 %v992_v58  ;;  %1947 = vmatprep.subr.mxu1 %v994_v59  ;;  %v1248_v58 = vld [vmem:[#allocation12 + $0x908] sm:$0xff]  ;;  %v1250_v59 = vld [vmem:[#allocation12 + $0x918] sm:$0xff] }
  0xf2   : > { %1877 = vmatpush1.msra.mxu0 %v991_v60  ;;  %1948 = vmatpush1.msra.mxu1 %v993_v61  ;;  %v1247_v60 = vld [vmem:[#allocation12 + $0x900] sm:$0xff]  ;;  %v1249_v61 = vld [vmem:[#allocation12 + $0x910] sm:$0xff] }
  0xf3   : > { %1878 = vmatprep.subr.mxu0 %v976_v62  ;;  %1949 = vmatprep.subr.mxu1 %v978_v63  ;;  %v1232_v62 = vld [vmem:[#allocation12 + $0x888] sm:$0xff]  ;;  %v1234_v63 = vld [vmem:[#allocation12 + $0x898] sm:$0xff] }
  0xf4   : > { %1879 = vmatpush1.msra.mxu0 %v975_v0  ;;  %1950 = vmatpush1.msra.mxu1 %v977_v3  ;;  %v1231_v0 = vld [vmem:[#allocation12 + $0x880] sm:$0xff]  ;;  %v1233_v3 = vld [vmem:[#allocation12 + $0x890] sm:$0xff] }
  0xf5   : > { %1880 = vmatprep.subr.mxu0 %v960_v4  ;;  %1951 = vmatprep.subr.mxu1 %v962_v5  ;;  %v1216_v4 = vld [vmem:[#allocation12 + $0x808] sm:$0xff]  ;;  %v1218_v5 = vld [vmem:[#allocation12 + $0x818] sm:$0xff] }
  0xf6   : > { %1881 = vmatpush1.msra.mxu0 %v959_v6  ;;  %1952 = vmatpush1.msra.mxu1 %v961_v7  ;;  %v1215_v6 = vld [vmem:[#allocation12 + $0x800] sm:$0xff]  ;;  %v1217_v7 = vld [vmem:[#allocation12 + $0x810] sm:$0xff] }
  0xf7   : > { %1882 = vmatprep.subr.mxu0 %v1456_v1  ;;  %1953 = vmatprep.subr.mxu1 %v1458_v8  ;;  %v1204_v1 = vld [vmem:[#allocation12 + $0x7a8] sm:$0xff]  ;;  %v1206_v8 = vld [vmem:[#allocation12 + $0x7b8] sm:$0xff] }
  0xf8   : > { %1883 = vmatpush2.msra.mxu0 %v1455_v9  ;;  %1954 = vmatpush2.msra.mxu1 %v1457_v10  ;;  %v531_v9 = vlaneseq }
  0xf9   : > { %1884 = vmatprep.subr.mxu0 %v1440_v11  ;;  %1955 = vmatprep.subr.mxu1 %v1442_v12  ;;  %v9189_v12 = vld [vmem:[#allocation15] sm:$0xff] }
  0xfa   : > { %1885 = vmatpush2.msra.mxu0 %v1439_v13  ;;  %1956 = vmatpush2.msra.mxu1 %v1441_v14  ;;  %v9186_v10 = vshrl.u32 %v531_v9, 7 }
  0xfb   : > { %1886 = vmatprep.subr.mxu0 %v1424_v15  ;;  %1957 = vmatprep.subr.mxu1 %v1426_v2 }
  0xfc   : > { %1887 = vmatpush2.msra.mxu0 %v1423_v16  ;;  %1958 = vmatpush2.msra.mxu1 %v1425_v17  ;;  %v533_v11 = vsub.s32 0, %v9186_v10  ;;  %v541_v13 = vsub.s32 2, %v9186_v10  ;;  %v537_v14 = vsub.s32 1, %v9186_v10  ;;  %v545_v17 = vsub.s32 3, %v9186_v10 }
  0xfd   : > { %1888 = vmatprep.subr.mxu0 %v1408_v18  ;;  %1959 = vmatprep.subr.mxu1 %v1410_v19 }
  0xfe   : > { %1889 = vmatpush2.msra.mxu0 %v1407_v20  ;;  %1960 = vmatpush2.msra.mxu1 %v1409_v21  ;;  %v534_v15 = vrot.slane %v9189_v12, %v533_v11  ;;  %v542_v16 = vrot.slane %v9189_v12, %v541_v13  ;;  %v538_v19 = vrot.slane %v9189_v12, %v537_v14 }
  0xff   : > { %1890 = vmatprep.subr.mxu0 %v1392_v22  ;;  %1961 = vmatprep.subr.mxu1 %v1394_v23  ;;  %v1769_v22 = vld [vmem:[#allocation3 + $0x30] sm:$0xff] }
 0x100   : > { %1891 = vmatpush2.msra.mxu0 %v1391_v24  ;;  %1962 = vmatpush2.msra.mxu1 %v1393_v25  ;;  %v546_v24 = vrot.slane %v9189_v12, %v545_v17  ;;  %v1771_v25 = vld [vmem:[#allocation3 + $0x18] sm:$0xff] }
 0x101   : > { %1892 = vmatprep.subr.mxu0 %v1376_v26  ;;  %1963 = vmatprep.subr.mxu1 %v1378_v27 }
 0x102   : > { %1893 = vmatpush2.msra.mxu0 %v1375_v28  ;;  %1964 = vmatpush2.msra.mxu1 %v1377_v29  ;;  %v1770_v29 = vld [vmem:[#allocation3] sm:$0xff] }
 0x103   : > { %1894 = vmatprep.subr.mxu0 %v1360_v30  ;;  %1965 = vmatprep.subr.mxu1 %v1362_v31 }
 0x104   : > { %1895 = vmatpush2.msra.mxu0 %v1359_v32  ;;  %1966 = vmatpush2.msra.mxu1 %v1361_v33  ;;  %v1772_v32 = vld [vmem:[#allocation3 + $0x10] sm:$0xff] }
 0x105   : > { %1896 = vmatprep.subr.mxu0 %v1344_v34  ;;  %1967 = vmatprep.subr.mxu1 %v1346_v35 }
 0x106   : > { %1897 = vmatpush2.msra.mxu0 %v1343_v36  ;;  %1968 = vmatpush2.msra.mxu1 %v1345_v37 }
 0x107   : > { %1898 = vmatprep.subr.mxu0 %v1328_v38  ;;  %1969 = vmatprep.subr.mxu1 %v1330_v39 }
 0x108   : > { %1899 = vmatpush2.msra.mxu0 %v1327_v40  ;;  %1970 = vmatpush2.msra.mxu1 %v1329_v41 }
 0x109   : > { %1900 = vmatprep.subr.mxu0 %v1312_v42  ;;  %1971 = vmatprep.subr.mxu1 %v1314_v43 }
 0x10a   : > { %1901 = vmatpush2.msra.mxu0 %v1311_v44  ;;  %1972 = vmatpush2.msra.mxu1 %v1313_v45 }
 0x10b   : > { %1902 = vmatprep.subr.mxu0 %v1296_v46  ;;  %1973 = vmatprep.subr.mxu1 %v1298_v47 }
 0x10c   : > { %1903 = vmatpush2.msra.mxu0 %v1295_v48  ;;  %1974 = vmatpush2.msra.mxu1 %v1297_v49 }
 0x10d   : > { %1904 = vmatprep.subr.mxu0 %v1280_v50  ;;  %1975 = vmatprep.subr.mxu1 %v1282_v51 }
 0x10e   : > { %1905 = vmatpush2.msra.mxu0 %v1279_v52  ;;  %1976 = vmatpush2.msra.mxu1 %v1281_v53 }
 0x10f   : > { %1906 = vmatprep.subr.mxu0 %v1264_v54  ;;  %1977 = vmatprep.subr.mxu1 %v1266_v55 }
 0x110   : > { %1907 = vmatpush2.msra.mxu0 %v1263_v56  ;;  %1978 = vmatpush2.msra.mxu1 %v1265_v57 }
 0x111   : > { %1908 = vmatprep.subr.mxu0 %v1248_v58  ;;  %1979 = vmatprep.subr.mxu1 %v1250_v59  ;;  %v549_v59 = vsub.s32 4, %v9186_v10 }
 0x112   : > { %1909 = vmatpush2.msra.mxu0 %v1247_v60  ;;  %1980 = vmatpush2.msra.mxu1 %v1249_v61  ;;  %v557_v60 = vsub.s32 6, %v9186_v10 }
 0x113   : > { %1910 = vmatprep.subr.mxu0 %v1232_v62  ;;  %1981 = vmatprep.subr.mxu1 %v1234_v63 }
 0x114   : > { %1911 = vmatpush2.msra.mxu0 %v1231_v0  ;;  %1982 = vmatpush2.msra.mxu1 %v1233_v3  ;;  %v9242_v9 = vrot.slane %v9189_v12, %v557_v60 }
 0x115   : > { %1912 = vmatprep.subr.mxu0 %v1216_v4  ;;  %1983 = vmatprep.subr.mxu1 %v1218_v5  ;;  %v553_v5 = vsub.s32 5, %v9186_v10 }
 0x116   : > { %1913 = vmatpush2.msra.mxu0 %v1215_v6  ;;  %1984 = vmatpush2.msra.mxu1 %v1217_v7  ;;  %v561_v6 = vsub.s32 7, %v9186_v10  ;;  %v6903_v10 = vld [vmem:[#allocation13 + $0x1d8] sm:$0xff] }
 0x117   : > { %1992 = vmatprep.subr.mxu0 %v1204_v1  ;;  %2063 = vmatprep.subr.mxu1 %v1206_v8  ;;  %v9237_v8 = vrot.slane %v9189_v12, %v549_v59 }
 0x168   : > { %v637_v2 = vpop.f32.mrf.mxu0  ;;  %v726_v18 = vpop.f32.mrf.mxu1 }
 0x169   : > { %v638_v20 = vadd.f32 %v637_v2, %v534_v15  ;;  %v727_v23 = vadd.f32 %v726_v18, %v542_v16  ;;  %v9252_v18 = vrot.slane %v9189_v12, %v561_v6 }
 0x16a   : > { %v639_v21 = vpop.f32.mrf.mxu0  ;;  %v728_v26 = vpop.f32.mrf.mxu1 }
 0x16b   : > { %v640_v27 = vadd.f32 %v639_v21, %v538_v19  ;;  %v1794_v28 = vadd.f32 %v1769_v22, %v638_v20  ;;  %v1796_v30 = vadd.f32 %v1771_v25, %v727_v23  ;;  %v729_v31 = vadd.f32 %v728_v26, %v546_v24  ;;  %v1773_v21 = vld [vmem:[#allocation3 + $0x8] sm:$0xff] }
 0x16c   : > { %v1775_v23 = vld [vmem:[#allocation3 + $0x28] sm:$0xff] }
 0x16d   : > { %v1795_v33 = vadd.f32 %v1770_v29, %v640_v27  ;;  %v5917_v34 = vmul.f32 -1.442695, %v1794_v28  ;;  %v5919_v35 = vmul.f32 -1.442695, %v1796_v30  ;;  %v1797_v36 = vadd.f32 %v1772_v32, %v729_v31  ;;  %v1774_v28 = vld [vmem:[#allocation3 + $0x20] sm:$0xff]  ;;  %v1776_v30 = vld [vmem:[#allocation3 + $0x38] sm:$0xff] }
 0x16f   : > { %v5918_v37 = vmul.f32 -1.442695, %v1795_v33  ;;  %6102 = vpow2.f32 %v5917_v34  ;;  %v5920_v42 = vmul.f32 -1.442695, %v1797_v36 }
 0x170   : > { %6104 = vpow2.f32 %v5919_v35 }
 0x171   : > { %6106 = vpow2.f32 %v5918_v37 }
 0x172   : > { %6108 = vpow2.f32 %v5920_v42  ;;  %v1777_v42 = vld [vmem:[#allocation4] sm:$0xff] }
 0x17c   : > { %v643_v38 = vpop.f32.mrf.mxu0  ;;  %v732_v39 = vpop.f32.mrf.mxu1 }
 0x17d   : > { %v9206_v40 = vadd.f32 %v643_v38, %v534_v15  ;;  %v9208_v41 = vadd.f32 %v732_v39, %v542_v16  ;;  %v6103_v61 = vpop.eup %6102 }
 0x17e   : > { %v645_v43 = vpop.f32.mrf.mxu0  ;;  %v734_v44 = vpop.f32.mrf.mxu1  ;;  %v1820_v1 = vadd.f32 1.0, %v6103_v61 }
 0x17f   : > { %v9210_v45 = vadd.f32 %v645_v43, %v538_v19  ;;  %v9212_v46 = vadd.f32 %v734_v44, %v546_v24  ;;  %v6105_v0 = vpop.eup %6104 }
 0x180   : > { %v6107_v7 = vpop.eup %6106  ;;  %6110 = vrcp.f32 %v1820_v1 }
 0x181   : > { %v6109_v2 = vpop.eup %6108 }
 0x182   : > { %v649_v47 = vpop.f32.mrf.mxu0  ;;  %v738_v48 = vpop.f32.mrf.mxu1  ;;  %v1823_v26 = vadd.f32 1.0, %v6109_v2 }
 0x183   : > { %v9214_v49 = vadd.f32 %v649_v47, %v534_v15  ;;  %v9216_v50 = vadd.f32 %v738_v48, %v542_v16 }
 0x184   : > { %v651_v51 = vpop.f32.mrf.mxu0  ;;  %v740_v52 = vpop.f32.mrf.mxu1 }
 0x185   : > { %v9218_v53 = vadd.f32 %v651_v51, %v538_v19  ;;  %v9220_v54 = vadd.f32 %v740_v52, %v546_v24  ;;  %v1778_v52 = vld [vmem:[#allocation4 + $0x8] sm:$0xff] }
 0x188   : > { %v655_v55 = vpop.f32.mrf.mxu0  ;;  %v744_v56 = vpop.f32.mrf.mxu1 }
 0x189   : > { %v9222_v57 = vadd.f32 %v655_v55, %v534_v15  ;;  %v9224_v58 = vadd.f32 %v744_v56, %v542_v16  ;;  %v1822_v15 = vadd.f32 1.0, %v6105_v0  ;;  %v9247_v16 = vrot.slane %v9189_v12, %v553_v5 }
 0x18a   : > { %v657_v62 = vpop.f32.mrf.mxu0  ;;  %v746_v63 = vpop.f32.mrf.mxu1 }
 0x18b   : > { %v9228_v3 = vadd.f32 %v657_v62, %v538_v19  ;;  %v9230_v4 = vadd.f32 %v746_v63, %v546_v24  ;;  %v1821_v19 = vadd.f32 1.0, %v6107_v7  ;;  %6112 = vrcp.f32 %v1822_v15 }
 0x18d   : > { %6114 = vrcp.f32 %v1821_v19  ;;  %v6111_v38 = vpop.eup %6110 }
 0x190   : > { %v815_v20 = vpop.f32.mrf.mxu0  ;;  %v904_v22 = vpop.f32.mrf.mxu1 }
 0x191   : > { %v816_v24 = vadd.f32 %v815_v20, %v9237_v8  ;;  %v905_v25 = vadd.f32 %v904_v22, %v9242_v9 }
 0x192   : > { %v817_v27 = vpop.f32.mrf.mxu0  ;;  %v906_v29 = vpop.f32.mrf.mxu1 }
 0x193   : > { %v1798_v31 = vadd.f32 %v1773_v21, %v816_v24  ;;  %v1800_v32 = vadd.f32 %v1775_v23, %v905_v25  ;;  %v818_v12 = vadd.f32 %v817_v27, %v9247_v16  ;;  %v907_v33 = vadd.f32 %v906_v29, %v9252_v18  ;;  %v1203_v24 = vld [vmem:[#allocation12 + $0x7a0] sm:$0xff]  ;;  %v1205_v25 = vld [vmem:[#allocation12 + $0x7b0] sm:$0xff]  ;;  %v1190_v27 = vld [vmem:[#allocation12 + $0x738] sm:$0xff] }
 0x194   : > { %v1189_v29 = vld [vmem:[#allocation12 + $0x730] sm:$0xff] }
 0x195   : > { %v5921_v34 = vmul.f32 -1.442695, %v1798_v31  ;;  %6116 = vtanh.f32 %v1800_v32  ;;  %v1799_v35 = vadd.f32 %v1774_v28, %v818_v12  ;;  %v1801_v36 = vadd.f32 %v1776_v30, %v907_v33  ;;  %v1187_v28 = vld [vmem:[#allocation12 + $0x720] sm:$0xff]  ;;  %v1172_v30 = vld [vmem:[#allocation12 + $0x6a8] sm:$0xff]  ;;  %v1174_v31 = vld [vmem:[#allocation12 + $0x6b8] sm:$0xff] }
 0x196   : > { %6118 = vrcp.f32 %v1823_v26  ;;  %v1188_v26 = vld [vmem:[#allocation12 + $0x728] sm:$0xff]  ;;  %v1171_v32 = vld [vmem:[#allocation12 + $0x6a0] sm:$0xff]  ;;  %v1173_v12 = vld [vmem:[#allocation12 + $0x6b0] sm:$0xff] }
 0x197   : > { %6120 = vpow2.f32 %v5921_v34  ;;  %v5922_v37 = vmul.f32 -1.442695, %v1799_v35  ;;  %v1156_v33 = vld [vmem:[#allocation12 + $0x628] sm:$0xff]  ;;  %v1158_v34 = vld [vmem:[#allocation12 + $0x638] sm:$0xff]  ;;  %v1155_v35 = vld [vmem:[#allocation12 + $0x620] sm:$0xff] }
 0x198   : > { %6122 = vtanh.f32 %v1801_v36  ;;  %v6113_v39 = vpop.eup %6112  ;;  %v1157_v36 = vld [vmem:[#allocation12 + $0x630] sm:$0xff] }
 0x199   : > { %6124 = vpow2.f32 %v5922_v37  ;;  %v1840_v48 = vmul.f32 %v6113_v39, %v1777_v42  ;;  %v1140_v37 = vld [vmem:[#allocation12 + $0x5a8] sm:$0xff]  ;;  %v1139_v39 = vld [vmem:[#allocation12 + $0x5a0] sm:$0xff]  ;;  %v1141_v42 = vld [vmem:[#allocation12 + $0x5b0] sm:$0xff] }
 0x19a   : > { %v6115_v43 = vpop.eup %6114 }
 0x1a2   : > { %v6117_v44 = vpop.eup %6116 }
 0x1a3   : > { %v6119_v47 = vpop.eup %6118  ;;  %v1842_v51 = vmul.f32 %v6117_v44, %v6111_v38  ;;  %v1142_v38 = vld [vmem:[#allocation12 + $0x5b8] sm:$0xff] }
 0x1a4   : > { %v6121_v55 = vpop.eup %6120  ;;  %v1841_v0 = vmul.f32 %v6119_v47, %v1778_v52  ;;  %v1126_v44 = vld [vmem:[#allocation12 + $0x538] sm:$0xff]  ;;  %v1123_v47 = vld [vmem:[#allocation12 + $0x520] sm:$0xff] }
 0x1a5   : > { %v6123_v56 = vpop.eup %6122  ;;  %v1824_v61 = vadd.f32 1.0, %v6121_v55  ;;  %v9258_v62 = vadd.f32 %v1842_v51, %v1840_v48  ;;  %v1125_v48 = vld [vmem:[#allocation12 + $0x530] sm:$0xff]  ;;  %v1108_v51 = vld [vmem:[#allocation12 + $0x4a8] sm:$0xff]  ;;  %v1110_v52 = vld [vmem:[#allocation12 + $0x4b8] sm:$0xff] }
 0x1a6   : > { %v6125_v63 = vpop.eup %6124  ;;  %v1843_v7 = vmul.f32 %v6123_v56, %v6115_v43  ;;  %v1124_v43 = vld [vmem:[#allocation12 + $0x528] sm:$0xff]  ;;  %v1107_v55 = vld [vmem:[#allocation12 + $0x4a0] sm:$0xff]  ;;  %v1109_v56 = vld [vmem:[#allocation12 + $0x4b0] sm:$0xff] }
 0x1a7   : > { %6126 = vrcp.f32 %v1824_v61  ;;  %v1825_v1 = vadd.f32 1.0, %v6125_v63  ;;  %v1092_v61 = vld [vmem:[#allocation12 + $0x428] sm:$0xff]  ;;  %v1094_v63 = vld [vmem:[#allocation12 + $0x438] sm:$0xff] }
 0x1a8   : > { %6128 = vtanh.f32 %v9258_v62  ;;  %v9261_v15 = vadd.f32 %v1843_v7, %v1841_v0  ;;  %v1091_v0 = vld [vmem:[#allocation12 + $0x420] sm:$0xff]  ;;  %v1093_v7 = vld [vmem:[#allocation12 + $0x430] sm:$0xff] }
 0x1a9   : > { %6130 = vrcp.f32 %v1825_v1  ;;  %v1076_v1 = vld [vmem:[#allocation12 + $0x3a8] sm:$0xff] }
 0x1aa   : > { %6132 = vtanh.f32 %v9261_v15 }
 0x1b4   : > { %v6127_v2 = vpop.eup %6126 }
 0x1b5   : > { %v6129_v19 = vpop.eup %6128 }
 0x1b6   : > { %v6131_v20 = vpop.eup %6130  ;;  %v9266_v23 = vmul.f32 %v6129_v19, %v6127_v2  ;;  %v1078_v2 = vld [vmem:[#allocation12 + $0x3b8] sm:$0xff]  ;;  %v1075_v19 = vld [vmem:[#allocation12 + $0x3a0] sm:$0xff] }
 0x1b7   : > { %v6133_v21 = vpop.eup %6132 }
 0x1b8   : > { %v9264_v22 = vmul.f32 %v6133_v21, %v6131_v20  ;;  %v1077_v20 = vld [vmem:[#allocation12 + $0x3b0] sm:$0xff]  ;;  %v1060_v21 = vld [vmem:[#allocation12 + $0x328] sm:$0xff] }
 0x1ba   : > { %1914 = vmatprep.mubr.f32.mxu0 %v9264_v22  ;;  %1985 = vmatprep.mubr.f32.mxu1 %v9264_v22 }
 0x1bb   : > { %1915 = vmatmul.mubr.f32.vlgmr.msra.gmra.mxu0 %v9266_v23  ;;  %1986 = vmatmul.mubr.f32.vlgmr.msra.gmra.mxu1 %v9266_v23 }
 0x1bc   : > { %1993 = vmatpush1.msra.mxu0 %v1203_v24  ;;  %2064 = vmatpush1.msra.mxu1 %v1205_v25  ;;  %v1062_v24 = vld [vmem:[#allocation12 + $0x338] sm:$0xff]  ;;  %v1059_v25 = vld [vmem:[#allocation12 + $0x320] sm:$0xff] }
 0x1bd   : > { %1994 = vmatprep.subr.mxu0 %v1188_v26  ;;  %2056 = vmatprep.mubr.f32.mxu0 %v9264_v22  ;;  %v1061_v26 = vld [vmem:[#allocation12 + $0x330] sm:$0xff] }
 0x1be   : > { %2065 = vmatprep.subr.mxu1 %v1190_v27  ;;  %2127 = vmatprep.mubr.f32.mxu1 %v9264_v22  ;;  %v1044_v27 = vld [vmem:[#allocation12 + $0x2a8] sm:$0xff] }
 0x1bf   : > { %1995 = vmatpush1.msra.mxu0 %v1187_v28  ;;  %2066 = vmatpush1.msra.mxu1 %v1189_v29  ;;  %v1046_v28 = vld [vmem:[#allocation12 + $0x2b8] sm:$0xff]  ;;  %v1043_v29 = vld [vmem:[#allocation12 + $0x2a0] sm:$0xff] }
 0x1c0   : > { %1996 = vmatprep.subr.mxu0 %v1172_v30  ;;  %2067 = vmatprep.subr.mxu1 %v1174_v31  ;;  %v1045_v30 = vld [vmem:[#allocation12 + $0x2b0] sm:$0xff]  ;;  %v1028_v31 = vld [vmem:[#allocation12 + $0x228] sm:$0xff] }
 0x1c1   : > { %1997 = vmatpush1.msra.mxu0 %v1171_v32  ;;  %2068 = vmatpush1.msra.mxu1 %v1173_v12  ;;  %v1030_v32 = vld [vmem:[#allocation12 + $0x238] sm:$0xff]  ;;  %v1027_v12 = vld [vmem:[#allocation12 + $0x220] sm:$0xff] }
 0x1c2   : > { %1998 = vmatprep.subr.mxu0 %v1156_v33  ;;  %2069 = vmatprep.subr.mxu1 %v1158_v34  ;;  %v1029_v33 = vld [vmem:[#allocation12 + $0x230] sm:$0xff]  ;;  %v1012_v34 = vld [vmem:[#allocation12 + $0x1a8] sm:$0xff] }
 0x1c3   : > { %1999 = vmatpush1.msra.mxu0 %v1155_v35  ;;  %2070 = vmatpush1.msra.mxu1 %v1157_v36  ;;  %v1014_v35 = vld [vmem:[#allocation12 + $0x1b8] sm:$0xff]  ;;  %v1011_v36 = vld [vmem:[#allocation12 + $0x1a0] sm:$0xff] }
 0x1c4   : > { %2000 = vmatprep.subr.mxu0 %v1140_v37  ;;  %2071 = vmatprep.subr.mxu1 %v1142_v38  ;;  %v1013_v37 = vld [vmem:[#allocation12 + $0x1b0] sm:$0xff]  ;;  %v996_v38 = vld [vmem:[#allocation12 + $0x128] sm:$0xff] }
 0x1c5   : > { %2001 = vmatpush1.msra.mxu0 %v1139_v39  ;;  %2072 = vmatpush1.msra.mxu1 %v1141_v42  ;;  %v998_v39 = vld [vmem:[#allocation12 + $0x138] sm:$0xff]  ;;  %v995_v42 = vld [vmem:[#allocation12 + $0x120] sm:$0xff] }
 0x1c6   : > { %2002 = vmatprep.subr.mxu0 %v1124_v43  ;;  %2073 = vmatprep.subr.mxu1 %v1126_v44  ;;  %v997_v43 = vld [vmem:[#allocation12 + $0x130] sm:$0xff]  ;;  %v980_v44 = vld [vmem:[#allocation12 + $0xa8] sm:$0xff] }
 0x1c7   : > { %2003 = vmatpush1.msra.mxu0 %v1123_v47  ;;  %2074 = vmatpush1.msra.mxu1 %v1125_v48  ;;  %v982_v47 = vld [vmem:[#allocation12 + $0xb8] sm:$0xff]  ;;  %v979_v48 = vld [vmem:[#allocation12 + $0xa0] sm:$0xff] }
 0x1c8   : > { %2004 = vmatprep.subr.mxu0 %v1108_v51  ;;  %2075 = vmatprep.subr.mxu1 %v1110_v52  ;;  %v981_v51 = vld [vmem:[#allocation12 + $0xb0] sm:$0xff]  ;;  %v964_v52 = vld [vmem:[#allocation12 + $0x28] sm:$0xff] }
 0x1c9   : > { %2005 = vmatpush1.msra.mxu0 %v1107_v55  ;;  %2076 = vmatpush1.msra.mxu1 %v1109_v56  ;;  %v966_v55 = vld [vmem:[#allocation12 + $0x38] sm:$0xff]  ;;  %v963_v56 = vld [vmem:[#allocation12 + $0x20] sm:$0xff] }
 0x1ca   : > { %2006 = vmatprep.subr.mxu0 %v1092_v61  ;;  %2077 = vmatprep.subr.mxu1 %v1094_v63  ;;  %v965_v61 = vld [vmem:[#allocation12 + $0x30] sm:$0xff]  ;;  %v1460_v63 = vld [vmem:[#allocation12 + $0xfa8] sm:$0xff] }
 0x1cb   : > { %2007 = vmatpush1.msra.mxu0 %v1091_v0  ;;  %2078 = vmatpush1.msra.mxu1 %v1093_v7  ;;  %v1462_v0 = vld [vmem:[#allocation12 + $0xfb8] sm:$0xff]  ;;  %v1459_v7 = vld [vmem:[#allocation12 + $0xfa0] sm:$0xff] }
 0x1cc   : > { %2008 = vmatprep.subr.mxu0 %v1076_v1  ;;  %2079 = vmatprep.subr.mxu1 %v1078_v2  ;;  %v1461_v1 = vld [vmem:[#allocation12 + $0xfb0] sm:$0xff]  ;;  %v1444_v2 = vld [vmem:[#allocation12 + $0xf28] sm:$0xff] }
 0x1cd   : > { %2009 = vmatpush1.msra.mxu0 %v1075_v19  ;;  %2080 = vmatpush1.msra.mxu1 %v1077_v20  ;;  %v1446_v19 = vld [vmem:[#allocation12 + $0xf38] sm:$0xff]  ;;  %v1443_v20 = vld [vmem:[#allocation12 + $0xf20] sm:$0xff] }
 0x1ce   : > { %2010 = vmatprep.subr.mxu0 %v1060_v21  ;;  %2081 = vmatprep.subr.mxu1 %v1062_v24  ;;  %v1445_v21 = vld [vmem:[#allocation12 + $0xf30] sm:$0xff]  ;;  %v1428_v24 = vld [vmem:[#allocation12 + $0xea8] sm:$0xff] }
 0x1cf   : > { %2011 = vmatpush1.msra.mxu0 %v1059_v25  ;;  %2082 = vmatpush1.msra.mxu1 %v1061_v26  ;;  %v1430_v25 = vld [vmem:[#allocation12 + $0xeb8] sm:$0xff]  ;;  %v1427_v26 = vld [vmem:[#allocation12 + $0xea0] sm:$0xff] }
 0x1d0   : > { %2012 = vmatprep.subr.mxu0 %v1044_v27  ;;  %2083 = vmatprep.subr.mxu1 %v1046_v28  ;;  %v1429_v27 = vld [vmem:[#allocation12 + $0xeb0] sm:$0xff]  ;;  %v1412_v28 = vld [vmem:[#allocation12 + $0xe28] sm:$0xff] }
 0x1d1   : > { %2013 = vmatpush1.msra.mxu0 %v1043_v29  ;;  %2084 = vmatpush1.msra.mxu1 %v1045_v30  ;;  %v1414_v29 = vld [vmem:[#allocation12 + $0xe38] sm:$0xff]  ;;  %v1411_v30 = vld [vmem:[#allocation12 + $0xe20] sm:$0xff] }
 0x1d2   : > { %2014 = vmatprep.subr.mxu0 %v1028_v31  ;;  %2085 = vmatprep.subr.mxu1 %v1030_v32  ;;  %v1413_v31 = vld [vmem:[#allocation12 + $0xe30] sm:$0xff]  ;;  %v1396_v32 = vld [vmem:[#allocation12 + $0xda8] sm:$0xff] }
 0x1d3   : > { %2015 = vmatpush1.msra.mxu0 %v1027_v12  ;;  %2086 = vmatpush1.msra.mxu1 %v1029_v33  ;;  %v1398_v12 = vld [vmem:[#allocation12 + $0xdb8] sm:$0xff]  ;;  %v1395_v33 = vld [vmem:[#allocation12 + $0xda0] sm:$0xff] }
 0x1d4   : > { %2016 = vmatprep.subr.mxu0 %v1012_v34  ;;  %2087 = vmatprep.subr.mxu1 %v1014_v35  ;;  %v1397_v34 = vld [vmem:[#allocation12 + $0xdb0] sm:$0xff]  ;;  %v1380_v35 = vld [vmem:[#allocation12 + $0xd28] sm:$0xff] }
 0x1d5   : > { %2017 = vmatpush1.msra.mxu0 %v1011_v36  ;;  %2088 = vmatpush1.msra.mxu1 %v1013_v37  ;;  %v1382_v36 = vld [vmem:[#allocation12 + $0xd38] sm:$0xff]  ;;  %v1379_v37 = vld [vmem:[#allocation12 + $0xd20] sm:$0xff] }
 0x1d6   : > { %2018 = vmatprep.subr.mxu0 %v996_v38  ;;  %2089 = vmatprep.subr.mxu1 %v998_v39  ;;  %v1381_v38 = vld [vmem:[#allocation12 + $0xd30] sm:$0xff]  ;;  %v1364_v39 = vld [vmem:[#allocation12 + $0xca8] sm:$0xff] }
 0x1d7   : > { %2019 = vmatpush1.msra.mxu0 %v995_v42  ;;  %2090 = vmatpush1.msra.mxu1 %v997_v43  ;;  %v1366_v42 = vld [vmem:[#allocation12 + $0xcb8] sm:$0xff]  ;;  %v1363_v43 = vld [vmem:[#allocation12 + $0xca0] sm:$0xff] }
 0x1d8   : > { %2020 = vmatprep.subr.mxu0 %v980_v44  ;;  %2091 = vmatprep.subr.mxu1 %v982_v47  ;;  %v1365_v44 = vld [vmem:[#allocation12 + $0xcb0] sm:$0xff]  ;;  %v1348_v47 = vld [vmem:[#allocation12 + $0xc28] sm:$0xff] }
 0x1d9   : > { %2021 = vmatpush1.msra.mxu0 %v979_v48  ;;  %2092 = vmatpush1.msra.mxu1 %v981_v51  ;;  %v1350_v48 = vld [vmem:[#allocation12 + $0xc38] sm:$0xff]  ;;  %v1347_v51 = vld [vmem:[#allocation12 + $0xc20] sm:$0xff] }
 0x1da   : > { %2022 = vmatprep.subr.mxu0 %v964_v52  ;;  %2093 = vmatprep.subr.mxu1 %v966_v55  ;;  %v1349_v52 = vld [vmem:[#allocation12 + $0xc30] sm:$0xff]  ;;  %v1332_v55 = vld [vmem:[#allocation12 + $0xba8] sm:$0xff] }
 0x1db   : > { %2023 = vmatpush1.msra.mxu0 %v963_v56  ;;  %2094 = vmatpush1.msra.mxu1 %v965_v61  ;;  %v1334_v56 = vld [vmem:[#allocation12 + $0xbb8] sm:$0xff]  ;;  %v1331_v61 = vld [vmem:[#allocation12 + $0xba0] sm:$0xff] }
 0x1dc   : > { %2024 = vmatprep.subr.mxu0 %v1460_v63  ;;  %2095 = vmatprep.subr.mxu1 %v1462_v0  ;;  %v1333_v63 = vld [vmem:[#allocation12 + $0xbb0] sm:$0xff]  ;;  %v1316_v0 = vld [vmem:[#allocation12 + $0xb28] sm:$0xff] }
 0x1dd   : > { %2025 = vmatpush2.msra.mxu0 %v1459_v7  ;;  %2096 = vmatpush2.msra.mxu1 %v1461_v1  ;;  %v1318_v7 = vld [vmem:[#allocation12 + $0xb38] sm:$0xff]  ;;  %v1315_v1 = vld [vmem:[#allocation12 + $0xb20] sm:$0xff] }
 0x1de   : > { %2026 = vmatprep.subr.mxu0 %v1444_v2  ;;  %2097 = vmatprep.subr.mxu1 %v1446_v19  ;;  %v1317_v2 = vld [vmem:[#allocation12 + $0xb30] sm:$0xff]  ;;  %v1300_v19 = vld [vmem:[#allocation12 + $0xaa8] sm:$0xff] }
 0x1df   : > { %2027 = vmatpush2.msra.mxu0 %v1443_v20  ;;  %2098 = vmatpush2.msra.mxu1 %v1445_v21  ;;  %v1302_v20 = vld [vmem:[#allocation12 + $0xab8] sm:$0xff]  ;;  %v1299_v21 = vld [vmem:[#allocation12 + $0xaa0] sm:$0xff] }
 0x1e0   : > { %2028 = vmatprep.subr.mxu0 %v1428_v24  ;;  %2099 = vmatprep.subr.mxu1 %v1430_v25  ;;  %v1301_v24 = vld [vmem:[#allocation12 + $0xab0] sm:$0xff]  ;;  %v1284_v25 = vld [vmem:[#allocation12 + $0xa28] sm:$0xff] }
 0x1e1   : > { %2029 = vmatpush2.msra.mxu0 %v1427_v26  ;;  %2100 = vmatpush2.msra.mxu1 %v1429_v27  ;;  %v1286_v26 = vld [vmem:[#allocation12 + $0xa38] sm:$0xff]  ;;  %v1283_v27 = vld [vmem:[#allocation12 + $0xa20] sm:$0xff] }
 0x1e2   : > { %2030 = vmatprep.subr.mxu0 %v1412_v28  ;;  %2101 = vmatprep.subr.mxu1 %v1414_v29  ;;  %v1285_v28 = vld [vmem:[#allocation12 + $0xa30] sm:$0xff]  ;;  %v1268_v29 = vld [vmem:[#allocation12 + $0x9a8] sm:$0xff] }
 0x1e3   : > { %2031 = vmatpush2.msra.mxu0 %v1411_v30  ;;  %2102 = vmatpush2.msra.mxu1 %v1413_v31  ;;  %v1270_v30 = vld [vmem:[#allocation12 + $0x9b8] sm:$0xff]  ;;  %v1267_v31 = vld [vmem:[#allocation12 + $0x9a0] sm:$0xff] }
 0x1e4   : > { %2032 = vmatprep.subr.mxu0 %v1396_v32  ;;  %2103 = vmatprep.subr.mxu1 %v1398_v12  ;;  %v1269_v32 = vld [vmem:[#allocation12 + $0x9b0] sm:$0xff]  ;;  %v1252_v12 = vld [vmem:[#allocation12 + $0x928] sm:$0xff] }
 0x1e5   : > { %2033 = vmatpush2.msra.mxu0 %v1395_v33  ;;  %2104 = vmatpush2.msra.mxu1 %v1397_v34  ;;  %v1254_v33 = vld [vmem:[#allocation12 + $0x938] sm:$0xff]  ;;  %v1251_v34 = vld [vmem:[#allocation12 + $0x920] sm:$0xff] }
 0x1e6   : > { %2034 = vmatprep.subr.mxu0 %v1380_v35  ;;  %2105 = vmatprep.subr.mxu1 %v1382_v36  ;;  %v1253_v35 = vld [vmem:[#allocation12 + $0x930] sm:$0xff]  ;;  %v1236_v36 = vld [vmem:[#allocation12 + $0x8a8] sm:$0xff] }
 0x1e7   : > { %2035 = vmatpush2.msra.mxu0 %v1379_v37  ;;  %2106 = vmatpush2.msra.mxu1 %v1381_v38  ;;  %v1238_v37 = vld [vmem:[#allocation12 + $0x8b8] sm:$0xff]  ;;  %v1235_v38 = vld [vmem:[#allocation12 + $0x8a0] sm:$0xff] }
 0x1e8   : > { %2036 = vmatprep.subr.mxu0 %v1364_v39  ;;  %2107 = vmatprep.subr.mxu1 %v1366_v42  ;;  %v1237_v39 = vld [vmem:[#allocation12 + $0x8b0] sm:$0xff]  ;;  %v1220_v42 = vld [vmem:[#allocation12 + $0x828] sm:$0xff] }
 0x1e9   : > { %2037 = vmatpush2.msra.mxu0 %v1363_v43  ;;  %2108 = vmatpush2.msra.mxu1 %v1365_v44  ;;  %v1222_v43 = vld [vmem:[#allocation12 + $0x838] sm:$0xff]  ;;  %v1219_v44 = vld [vmem:[#allocation12 + $0x820] sm:$0xff] }
 0x1ea   : > { %2038 = vmatprep.subr.mxu0 %v1348_v47  ;;  %2109 = vmatprep.subr.mxu1 %v1350_v48  ;;  %v1221_v47 = vld [vmem:[#allocation12 + $0x830] sm:$0xff]  ;;  %v1208_v48 = vld [vmem:[#allocation12 + $0x7c8] sm:$0xff] }
 0x1eb   : > { %2039 = vmatpush2.msra.mxu0 %v1347_v51  ;;  %2110 = vmatpush2.msra.mxu1 %v1349_v52  ;;  %v1210_v51 = vld [vmem:[#allocation12 + $0x7d8] sm:$0xff]  ;;  %v1207_v52 = vld [vmem:[#allocation12 + $0x7c0] sm:$0xff] }
 0x1ec   : > { %2040 = vmatprep.subr.mxu0 %v1332_v55  ;;  %2111 = vmatprep.subr.mxu1 %v1334_v56  ;;  %v1209_v55 = vld [vmem:[#allocation12 + $0x7d0] sm:$0xff]  ;;  %v1192_v56 = vld [vmem:[#allocation12 + $0x748] sm:$0xff] }
 0x1ed   : > { %2041 = vmatpush2.msra.mxu0 %v1331_v61  ;;  %2112 = vmatpush2.msra.mxu1 %v1333_v63  ;;  %v1194_v61 = vld [vmem:[#allocation12 + $0x758] sm:$0xff]  ;;  %v1191_v63 = vld [vmem:[#allocation12 + $0x740] sm:$0xff] }
 0x1ee   : > { %2042 = vmatprep.subr.mxu0 %v1316_v0  ;;  %2113 = vmatprep.subr.mxu1 %v1318_v7  ;;  %v1193_v0 = vld [vmem:[#allocation12 + $0x750] sm:$0xff]  ;;  %v1176_v7 = vld [vmem:[#allocation12 + $0x6c8] sm:$0xff] }
 0x1ef   : > { %2043 = vmatpush2.msra.mxu0 %v1315_v1  ;;  %2114 = vmatpush2.msra.mxu1 %v1317_v2  ;;  %v1178_v1 = vld [vmem:[#allocation12 + $0x6d8] sm:$0xff]  ;;  %v1175_v2 = vld [vmem:[#allocation12 + $0x6c0] sm:$0xff] }
 0x1f0   : > { %2044 = vmatprep.subr.mxu0 %v1300_v19  ;;  %2115 = vmatprep.subr.mxu1 %v1302_v20  ;;  %v1177_v19 = vld [vmem:[#allocation12 + $0x6d0] sm:$0xff]  ;;  %v1160_v20 = vld [vmem:[#allocation12 + $0x648] sm:$0xff] }
 0x1f1   : > { %2045 = vmatpush2.msra.mxu0 %v1299_v21  ;;  %2116 = vmatpush2.msra.mxu1 %v1301_v24  ;;  %v1162_v21 = vld [vmem:[#allocation12 + $0x658] sm:$0xff]  ;;  %v1159_v24 = vld [vmem:[#allocation12 + $0x640] sm:$0xff] }
 0x1f2   : > { %2046 = vmatprep.subr.mxu0 %v1284_v25  ;;  %2117 = vmatprep.subr.mxu1 %v1286_v26  ;;  %v1161_v25 = vld [vmem:[#allocation12 + $0x650] sm:$0xff]  ;;  %v1144_v26 = vld [vmem:[#allocation12 + $0x5c8] sm:$0xff] }
 0x1f3   : > { %2047 = vmatpush2.msra.mxu0 %v1283_v27  ;;  %2118 = vmatpush2.msra.mxu1 %v1285_v28  ;;  %v1146_v27 = vld [vmem:[#allocation12 + $0x5d8] sm:$0xff]  ;;  %v1143_v28 = vld [vmem:[#allocation12 + $0x5c0] sm:$0xff] }
 0x1f4   : > { %2048 = vmatprep.subr.mxu0 %v1268_v29  ;;  %2119 = vmatprep.subr.mxu1 %v1270_v30  ;;  %v1145_v29 = vld [vmem:[#allocation12 + $0x5d0] sm:$0xff]  ;;  %v1128_v30 = vld [vmem:[#allocation12 + $0x548] sm:$0xff] }
 0x1f5   : > { %2049 = vmatpush2.msra.mxu0 %v1267_v31  ;;  %2120 = vmatpush2.msra.mxu1 %v1269_v32  ;;  %v1130_v31 = vld [vmem:[#allocation12 + $0x558] sm:$0xff]  ;;  %v1127_v32 = vld [vmem:[#allocation12 + $0x540] sm:$0xff] }
 0x1f6   : > { %2050 = vmatprep.subr.mxu0 %v1252_v12  ;;  %2121 = vmatprep.subr.mxu1 %v1254_v33  ;;  %v1129_v12 = vld [vmem:[#allocation12 + $0x550] sm:$0xff]  ;;  %v1112_v33 = vld [vmem:[#allocation12 + $0x4c8] sm:$0xff] }
 0x1f7   : > { %2051 = vmatpush2.msra.mxu0 %v1251_v34  ;;  %2122 = vmatpush2.msra.mxu1 %v1253_v35  ;;  %v1114_v34 = vld [vmem:[#allocation12 + $0x4d8] sm:$0xff]  ;;  %v1111_v35 = vld [vmem:[#allocation12 + $0x4c0] sm:$0xff] }
 0x1f8   : > { %2052 = vmatprep.subr.mxu0 %v1236_v36  ;;  %2123 = vmatprep.subr.mxu1 %v1238_v37  ;;  %v1113_v36 = vld [vmem:[#allocation12 + $0x4d0] sm:$0xff]  ;;  %v1096_v37 = vld [vmem:[#allocation12 + $0x448] sm:$0xff] }
 0x1f9   : > { %2053 = vmatpush2.msra.mxu0 %v1235_v38  ;;  %2124 = vmatpush2.msra.mxu1 %v1237_v39  ;;  %v1098_v38 = vld [vmem:[#allocation12 + $0x458] sm:$0xff]  ;;  %v1095_v39 = vld [vmem:[#allocation12 + $0x440] sm:$0xff] }
 0x1fa   : > { %2054 = vmatprep.subr.mxu0 %v1220_v42  ;;  %2125 = vmatprep.subr.mxu1 %v1222_v43  ;;  %v1097_v42 = vld [vmem:[#allocation12 + $0x450] sm:$0xff]  ;;  %v1080_v43 = vld [vmem:[#allocation12 + $0x3c8] sm:$0xff] }
 0x1fb   : > { %2055 = vmatpush2.msra.mxu0 %v1219_v44  ;;  %2126 = vmatpush2.msra.mxu1 %v1221_v47  ;;  %v1082_v44 = vld [vmem:[#allocation12 + $0x3d8] sm:$0xff]  ;;  %v1079_v47 = vld [vmem:[#allocation12 + $0x3c0] sm:$0xff] }
 0x1fc   : > { %2057 = vmatmul.mubr.f32.vlgmr.msra.gmra.mxu0 %v9266_v23  ;;  %2128 = vmatmul.mubr.f32.vlgmr.msra.gmra.mxu1 %v9266_v23 }
 0x1fd   : > { %2134 = vmatprep.subr.mxu0 %v1208_v48  ;;  %2205 = vmatprep.subr.mxu1 %v1210_v51  ;;  %v1081_v48 = vld [vmem:[#allocation12 + $0x3d0] sm:$0xff]  ;;  %v1064_v51 = vld [vmem:[#allocation12 + $0x348] sm:$0xff] }
 0x1fe   : > { %2135 = vmatpush1.msra.mxu0 %v1207_v52  ;;  %2198 = vmatprep.mubr.f32.mxu0 %v9264_v22  ;;  %v1066_v52 = vld [vmem:[#allocation12 + $0x358] sm:$0xff] }
 0x1ff   : > { %2206 = vmatpush1.msra.mxu1 %v1209_v55  ;;  %2269 = vmatprep.mubr.f32.mxu1 %v9264_v22  ;;  %v1063_v55 = vld [vmem:[#allocation12 + $0x340] sm:$0xff] }
 0x200   : > { %2136 = vmatprep.subr.mxu0 %v1192_v56  ;;  %2207 = vmatprep.subr.mxu1 %v1194_v61  ;;  %v1065_v56 = vld [vmem:[#allocation12 + $0x350] sm:$0xff]  ;;  %v1048_v61 = vld [vmem:[#allocation12 + $0x2c8] sm:$0xff] }
 0x201   : > { %2137 = vmatpush1.msra.mxu0 %v1191_v63  ;;  %2208 = vmatpush1.msra.mxu1 %v1193_v0  ;;  %v1050_v63 = vld [vmem:[#allocation12 + $0x2d8] sm:$0xff]  ;;  %v1047_v0 = vld [vmem:[#allocation12 + $0x2c0] sm:$0xff] }
 0x202   : > { %2138 = vmatprep.subr.mxu0 %v1176_v7  ;;  %2209 = vmatprep.subr.mxu1 %v1178_v1  ;;  %v1049_v7 = vld [vmem:[#allocation12 + $0x2d0] sm:$0xff]  ;;  %v1032_v1 = vld [vmem:[#allocation12 + $0x248] sm:$0xff] }
 0x203   : > { %2139 = vmatpush1.msra.mxu0 %v1175_v2  ;;  %2210 = vmatpush1.msra.mxu1 %v1177_v19  ;;  %v1034_v2 = vld [vmem:[#allocation12 + $0x258] sm:$0xff]  ;;  %v1031_v19 = vld [vmem:[#allocation12 + $0x240] sm:$0xff] }
 0x204   : > { %2140 = vmatprep.subr.mxu0 %v1160_v20  ;;  %2211 = vmatprep.subr.mxu1 %v1162_v21  ;;  %v1033_v20 = vld [vmem:[#allocation12 + $0x250] sm:$0xff]  ;;  %v1016_v21 = vld [vmem:[#allocation12 + $0x1c8] sm:$0xff] }
 0x205   : > { %2141 = vmatpush1.msra.mxu0 %v1159_v24  ;;  %2212 = vmatpush1.msra.mxu1 %v1161_v25  ;;  %v1018_v24 = vld [vmem:[#allocation12 + $0x1d8] sm:$0xff]  ;;  %v1015_v25 = vld [vmem:[#allocation12 + $0x1c0] sm:$0xff] }
 0x206   : > { %2142 = vmatprep.subr.mxu0 %v1144_v26  ;;  %2213 = vmatprep.subr.mxu1 %v1146_v27  ;;  %v1017_v26 = vld [vmem:[#allocation12 + $0x1d0] sm:$0xff]  ;;  %v1000_v27 = vld [vmem:[#allocation12 + $0x148] sm:$0xff] }
 0x207   : > { %2143 = vmatpush1.msra.mxu0 %v1143_v28  ;;  %2214 = vmatpush1.msra.mxu1 %v1145_v29  ;;  %v1002_v28 = vld [vmem:[#allocation12 + $0x158] sm:$0xff]  ;;  %v999_v29 = vld [vmem:[#allocation12 + $0x140] sm:$0xff] }
 0x208   : > { %2144 = vmatprep.subr.mxu0 %v1128_v30  ;;  %2215 = vmatprep.subr.mxu1 %v1130_v31  ;;  %v1001_v30 = vld [vmem:[#allocation12 + $0x150] sm:$0xff]  ;;  %v984_v31 = vld [vmem:[#allocation12 + $0xc8] sm:$0xff] }
 0x209   : > { %2145 = vmatpush1.msra.mxu0 %v1127_v32  ;;  %2216 = vmatpush1.msra.mxu1 %v1129_v12  ;;  %v986_v32 = vld [vmem:[#allocation12 + $0xd8] sm:$0xff]  ;;  %v983_v12 = vld [vmem:[#allocation12 + $0xc0] sm:$0xff] }
 0x20a   : > { %2146 = vmatprep.subr.mxu0 %v1112_v33  ;;  %2217 = vmatprep.subr.mxu1 %v1114_v34  ;;  %v985_v33 = vld [vmem:[#allocation12 + $0xd0] sm:$0xff]  ;;  %v968_v34 = vld [vmem:[#allocation12 + $0x48] sm:$0xff] }
 0x20b   : > { %2147 = vmatpush1.msra.mxu0 %v1111_v35  ;;  %2218 = vmatpush1.msra.mxu1 %v1113_v36  ;;  %v970_v35 = vld [vmem:[#allocation12 + $0x58] sm:$0xff]  ;;  %v967_v36 = vld [vmem:[#allocation12 + $0x40] sm:$0xff] }
 0x20c   : > { %2148 = vmatprep.subr.mxu0 %v1096_v37  ;;  %2219 = vmatprep.subr.mxu1 %v1098_v38  ;;  %v969_v37 = vld [vmem:[#allocation12 + $0x50] sm:$0xff]  ;;  %v1464_v38 = vld [vmem:[#allocation12 + $0xfc8] sm:$0xff] }
 0x20d   : > { %2149 = vmatpush1.msra.mxu0 %v1095_v39  ;;  %2220 = vmatpush1.msra.mxu1 %v1097_v42  ;;  %v1466_v39 = vld [vmem:[#allocation12 + $0xfd8] sm:$0xff]  ;;  %v1463_v42 = vld [vmem:[#allocation12 + $0xfc0] sm:$0xff] }
 0x20e   : > { %2150 = vmatprep.subr.mxu0 %v1080_v43  ;;  %2221 = vmatprep.subr.mxu1 %v1082_v44  ;;  %v1465_v43 = vld [vmem:[#allocation12 + $0xfd0] sm:$0xff]  ;;  %v1448_v44 = vld [vmem:[#allocation12 + $0xf48] sm:$0xff] }
 0x20f   : > { %2151 = vmatpush1.msra.mxu0 %v1079_v47  ;;  %2222 = vmatpush1.msra.mxu1 %v1081_v48  ;;  %v1450_v47 = vld [vmem:[#allocation12 + $0xf58] sm:$0xff]  ;;  %v1447_v48 = vld [vmem:[#allocation12 + $0xf40] sm:$0xff] }
 0x210   : > { %2152 = vmatprep.subr.mxu0 %v1064_v51  ;;  %2223 = vmatprep.subr.mxu1 %v1066_v52  ;;  %v1449_v51 = vld [vmem:[#allocation12 + $0xf50] sm:$0xff]  ;;  %v1432_v52 = vld [vmem:[#allocation12 + $0xec8] sm:$0xff] }
 0x211   : > { %2153 = vmatpush1.msra.mxu0 %v1063_v55  ;;  %2224 = vmatpush1.msra.mxu1 %v1065_v56  ;;  %v1434_v55 = vld [vmem:[#allocation12 + $0xed8] sm:$0xff]  ;;  %v1431_v56 = vld [vmem:[#allocation12 + $0xec0] sm:$0xff] }
 0x212   : > { %2154 = vmatprep.subr.mxu0 %v1048_v61  ;;  %2225 = vmatprep.subr.mxu1 %v1050_v63  ;;  %v1433_v61 = vld [vmem:[#allocation12 + $0xed0] sm:$0xff]  ;;  %v1416_v63 = vld [vmem:[#allocation12 + $0xe48] sm:$0xff] }
 0x213   : > { %2155 = vmatpush1.msra.mxu0 %v1047_v0  ;;  %2226 = vmatpush1.msra.mxu1 %v1049_v7  ;;  %v1418_v0 = vld [vmem:[#allocation12 + $0xe58] sm:$0xff]  ;;  %v1415_v7 = vld [vmem:[#allocation12 + $0xe40] sm:$0xff] }
 0x214   : > { %2156 = vmatprep.subr.mxu0 %v1032_v1  ;;  %2227 = vmatprep.subr.mxu1 %v1034_v2  ;;  %v1417_v1 = vld [vmem:[#allocation12 + $0xe50] sm:$0xff]  ;;  %v1400_v2 = vld [vmem:[#allocation12 + $0xdc8] sm:$0xff] }
 0x215   : > { %2157 = vmatpush1.msra.mxu0 %v1031_v19  ;;  %2228 = vmatpush1.msra.mxu1 %v1033_v20  ;;  %v1402_v19 = vld [vmem:[#allocation12 + $0xdd8] sm:$0xff]  ;;  %v1399_v20 = vld [vmem:[#allocation12 + $0xdc0] sm:$0xff] }
 0x216   : > { %2158 = vmatprep.subr.mxu0 %v1016_v21  ;;  %2229 = vmatprep.subr.mxu1 %v1018_v24  ;;  %v1401_v21 = vld [vmem:[#allocation12 + $0xdd0] sm:$0xff]  ;;  %v1384_v24 = vld [vmem:[#allocation12 + $0xd48] sm:$0xff] }
 0x217   : > { %2159 = vmatpush1.msra.mxu0 %v1015_v25  ;;  %2230 = vmatpush1.msra.mxu1 %v1017_v26  ;;  %v1386_v25 = vld [vmem:[#allocation12 + $0xd58] sm:$0xff]  ;;  %v1383_v26 = vld [vmem:[#allocation12 + $0xd40] sm:$0xff] }
 0x218   : > { %2160 = vmatprep.subr.mxu0 %v1000_v27  ;;  %2231 = vmatprep.subr.mxu1 %v1002_v28  ;;  %v1385_v27 = vld [vmem:[#allocation12 + $0xd50] sm:$0xff]  ;;  %v1368_v28 = vld [vmem:[#allocation12 + $0xcc8] sm:$0xff] }
 0x219   : > { %2161 = vmatpush1.msra.mxu0 %v999_v29  ;;  %2232 = vmatpush1.msra.mxu1 %v1001_v30  ;;  %v1370_v29 = vld [vmem:[#allocation12 + $0xcd8] sm:$0xff]  ;;  %v1367_v30 = vld [vmem:[#allocation12 + $0xcc0] sm:$0xff] }
 0x21a   : > { %2162 = vmatprep.subr.mxu0 %v984_v31  ;;  %2233 = vmatprep.subr.mxu1 %v986_v32  ;;  %v1369_v31 = vld [vmem:[#allocation12 + $0xcd0] sm:$0xff]  ;;  %v1352_v32 = vld [vmem:[#allocation12 + $0xc48] sm:$0xff] }
 0x21b   : > { %2163 = vmatpush1.msra.mxu0 %v983_v12  ;;  %2234 = vmatpush1.msra.mxu1 %v985_v33  ;;  %v1354_v12 = vld [vmem:[#allocation12 + $0xc58] sm:$0xff]  ;;  %v1351_v33 = vld [vmem:[#allocation12 + $0xc40] sm:$0xff] }
 0x21c   : > { %2164 = vmatprep.subr.mxu0 %v968_v34  ;;  %2235 = vmatprep.subr.mxu1 %v970_v35  ;;  %v1353_v34 = vld [vmem:[#allocation12 + $0xc50] sm:$0xff]  ;;  %v1336_v35 = vld [vmem:[#allocation12 + $0xbc8] sm:$0xff] }
 0x21d   : > { %2165 = vmatpush1.msra.mxu0 %v967_v36  ;;  %2236 = vmatpush1.msra.mxu1 %v969_v37  ;;  %v1338_v36 = vld [vmem:[#allocation12 + $0xbd8] sm:$0xff]  ;;  %v1335_v37 = vld [vmem:[#allocation12 + $0xbc0] sm:$0xff] }
 0x21e   : > { %2166 = vmatprep.subr.mxu0 %v1464_v38  ;;  %2237 = vmatprep.subr.mxu1 %v1466_v39  ;;  %v1337_v38 = vld [vmem:[#allocation12 + $0xbd0] sm:$0xff]  ;;  %v1320_v39 = vld [vmem:[#allocation12 + $0xb48] sm:$0xff] }
 0x21f   : > { %2167 = vmatpush2.msra.mxu0 %v1463_v42  ;;  %2238 = vmatpush2.msra.mxu1 %v1465_v43  ;;  %v1322_v42 = vld [vmem:[#allocation12 + $0xb58] sm:$0xff]  ;;  %v1319_v43 = vld [vmem:[#allocation12 + $0xb40] sm:$0xff] }
 0x220   : > { %2168 = vmatprep.subr.mxu0 %v1448_v44  ;;  %2239 = vmatprep.subr.mxu1 %v1450_v47  ;;  %v1321_v44 = vld [vmem:[#allocation12 + $0xb50] sm:$0xff]  ;;  %v1304_v47 = vld [vmem:[#allocation12 + $0xac8] sm:$0xff] }
 0x221   : > { %2169 = vmatpush2.msra.mxu0 %v1447_v48  ;;  %2240 = vmatpush2.msra.mxu1 %v1449_v51  ;;  %v1306_v48 = vld [vmem:[#allocation12 + $0xad8] sm:$0xff]  ;;  %v1303_v51 = vld [vmem:[#allocation12 + $0xac0] sm:$0xff] }
 0x222   : > { %2170 = vmatprep.subr.mxu0 %v1432_v52  ;;  %2241 = vmatprep.subr.mxu1 %v1434_v55  ;;  %v1305_v52 = vld [vmem:[#allocation12 + $0xad0] sm:$0xff]  ;;  %v1288_v55 = vld [vmem:[#allocation12 + $0xa48] sm:$0xff] }
 0x223   : > { %2171 = vmatpush2.msra.mxu0 %v1431_v56  ;;  %2242 = vmatpush2.msra.mxu1 %v1433_v61  ;;  %v1290_v56 = vld [vmem:[#allocation12 + $0xa58] sm:$0xff]  ;;  %v1287_v61 = vld [vmem:[#allocation12 + $0xa40] sm:$0xff] }
 0x224   : > { %2172 = vmatprep.subr.mxu0 %v1416_v63  ;;  %2243 = vmatprep.subr.mxu1 %v1418_v0  ;;  %v1289_v63 = vld [vmem:[#allocation12 + $0xa50] sm:$0xff]  ;;  %v1272_v0 = vld [vmem:[#allocation12 + $0x9c8] sm:$0xff] }
 0x225   : > { %2173 = vmatpush2.msra.mxu0 %v1415_v7  ;;  %2244 = vmatpush2.msra.mxu1 %v1417_v1  ;;  %v1274_v7 = vld [vmem:[#allocation12 + $0x9d8] sm:$0xff]  ;;  %v1271_v1 = vld [vmem:[#allocation12 + $0x9c0] sm:$0xff] }
 0x226   : > { %2174 = vmatprep.subr.mxu0 %v1400_v2  ;;  %2245 = vmatprep.subr.mxu1 %v1402_v19  ;;  %v1273_v2 = vld [vmem:[#allocation12 + $0x9d0] sm:$0xff]  ;;  %v1256_v19 = vld [vmem:[#allocation12 + $0x948] sm:$0xff] }
 0x227   : > { %2175 = vmatpush2.msra.mxu0 %v1399_v20  ;;  %2246 = vmatpush2.msra.mxu1 %v1401_v21  ;;  %v1258_v20 = vld [vmem:[#allocation12 + $0x958] sm:$0xff]  ;;  %v1255_v21 = vld [vmem:[#allocation12 + $0x940] sm:$0xff] }
 0x228   : > { %2176 = vmatprep.subr.mxu0 %v1384_v24  ;;  %2247 = vmatprep.subr.mxu1 %v1386_v25  ;;  %v1257_v24 = vld [vmem:[#allocation12 + $0x950] sm:$0xff]  ;;  %v1240_v25 = vld [vmem:[#allocation12 + $0x8c8] sm:$0xff] }
 0x229   : > { %2177 = vmatpush2.msra.mxu0 %v1383_v26  ;;  %2248 = vmatpush2.msra.mxu1 %v1385_v27  ;;  %v1242_v26 = vld [vmem:[#allocation12 + $0x8d8] sm:$0xff]  ;;  %v1239_v27 = vld [vmem:[#allocation12 + $0x8c0] sm:$0xff] }
 0x22a   : > { %2178 = vmatprep.subr.mxu0 %v1368_v28  ;;  %2249 = vmatprep.subr.mxu1 %v1370_v29  ;;  %v1241_v28 = vld [vmem:[#allocation12 + $0x8d0] sm:$0xff]  ;;  %v1224_v29 = vld [vmem:[#allocation12 + $0x848] sm:$0xff] }
 0x22b   : > { %2179 = vmatpush2.msra.mxu0 %v1367_v30  ;;  %2250 = vmatpush2.msra.mxu1 %v1369_v31  ;;  %v1226_v30 = vld [vmem:[#allocation12 + $0x858] sm:$0xff]  ;;  %v1223_v31 = vld [vmem:[#allocation12 + $0x840] sm:$0xff] }
 0x22c   : > { %2180 = vmatprep.subr.mxu0 %v1352_v32  ;;  %2251 = vmatprep.subr.mxu1 %v1354_v12  ;;  %v1225_v32 = vld [vmem:[#allocation12 + $0x850] sm:$0xff]  ;;  %v1212_v12 = vld [vmem:[#allocation12 + $0x7e8] sm:$0xff] }
 0x22d   : > { %2181 = vmatpush2.msra.mxu0 %v1351_v33  ;;  %2252 = vmatpush2.msra.mxu1 %v1353_v34  ;;  %v1214_v33 = vld [vmem:[#allocation12 + $0x7f8] sm:$0xff]  ;;  %v1211_v34 = vld [vmem:[#allocation12 + $0x7e0] sm:$0xff] }
 0x22e   : > { %2182 = vmatprep.subr.mxu0 %v1336_v35  ;;  %2253 = vmatprep.subr.mxu1 %v1338_v36  ;;  %v1213_v35 = vld [vmem:[#allocation12 + $0x7f0] sm:$0xff]  ;;  %v1196_v36 = vld [vmem:[#allocation12 + $0x768] sm:$0xff] }
 0x22f   : > { %2183 = vmatpush2.msra.mxu0 %v1335_v37  ;;  %2254 = vmatpush2.msra.mxu1 %v1337_v38  ;;  %v1198_v37 = vld [vmem:[#allocation12 + $0x778] sm:$0xff]  ;;  %v1195_v38 = vld [vmem:[#allocation12 + $0x760] sm:$0xff] }
 0x230   : > { %2184 = vmatprep.subr.mxu0 %v1320_v39  ;;  %2255 = vmatprep.subr.mxu1 %v1322_v42  ;;  %v1197_v39 = vld [vmem:[#allocation12 + $0x770] sm:$0xff]  ;;  %v1180_v42 = vld [vmem:[#allocation12 + $0x6e8] sm:$0xff] }
 0x231   : > { %2185 = vmatpush2.msra.mxu0 %v1319_v43  ;;  %2256 = vmatpush2.msra.mxu1 %v1321_v44  ;;  %v1182_v43 = vld [vmem:[#allocation12 + $0x6f8] sm:$0xff]  ;;  %v1179_v44 = vld [vmem:[#allocation12 + $0x6e0] sm:$0xff] }
 0x232   : > { %2186 = vmatprep.subr.mxu0 %v1304_v47  ;;  %2257 = vmatprep.subr.mxu1 %v1306_v48  ;;  %v1181_v47 = vld [vmem:[#allocation12 + $0x6f0] sm:$0xff]  ;;  %v1164_v48 = vld [vmem:[#allocation12 + $0x668] sm:$0xff] }
 0x233   : > { %2187 = vmatpush2.msra.mxu0 %v1303_v51  ;;  %2258 = vmatpush2.msra.mxu1 %v1305_v52  ;;  %v1166_v51 = vld [vmem:[#allocation12 + $0x678] sm:$0xff]  ;;  %v1163_v52 = vld [vmem:[#allocation12 + $0x660] sm:$0xff] }
 0x234   : > { %2188 = vmatprep.subr.mxu0 %v1288_v55  ;;  %2259 = vmatprep.subr.mxu1 %v1290_v56  ;;  %v1165_v55 = vld [vmem:[#allocation12 + $0x670] sm:$0xff]  ;;  %v1148_v56 = vld [vmem:[#allocation12 + $0x5e8] sm:$0xff] }
 0x235   : > { %2189 = vmatpush2.msra.mxu0 %v1287_v61  ;;  %2260 = vmatpush2.msra.mxu1 %v1289_v63  ;;  %v1150_v61 = vld [vmem:[#allocation12 + $0x5f8] sm:$0xff]  ;;  %v1149_v63 = vld [vmem:[#allocation12 + $0x5f0] sm:$0xff] }
 0x236   : > { %2190 = vmatprep.subr.mxu0 %v1272_v0  ;;  %2261 = vmatprep.subr.mxu1 %v1274_v7  ;;  %v1132_v0 = vld [vmem:[#allocation12 + $0x568] sm:$0xff]  ;;  %v1134_v7 = vld [vmem:[#allocation12 + $0x578] sm:$0xff] }
 0x237   : > { %2191 = vmatpush2.msra.mxu0 %v1271_v1  ;;  %2262 = vmatpush2.msra.mxu1 %v1273_v2  ;;  %v1131_v1 = vld [vmem:[#allocation12 + $0x560] sm:$0xff]  ;;  %v1133_v2 = vld [vmem:[#allocation12 + $0x570] sm:$0xff] }
 0x238   : > { %2192 = vmatprep.subr.mxu0 %v1256_v19  ;;  %2263 = vmatprep.subr.mxu1 %v1258_v20  ;;  %v1116_v19 = vld [vmem:[#allocation12 + $0x4e8] sm:$0xff]  ;;  %v1118_v20 = vld [vmem:[#allocation12 + $0x4f8] sm:$0xff] }
 0x239   : > { %2193 = vmatpush2.msra.mxu0 %v1255_v21  ;;  %2264 = vmatpush2.msra.mxu1 %v1257_v24  ;;  %v1115_v21 = vld [vmem:[#allocation12 + $0x4e0] sm:$0xff]  ;;  %v1117_v24 = vld [vmem:[#allocation12 + $0x4f0] sm:$0xff] }
 0x23a   : > { %2194 = vmatprep.subr.mxu0 %v1240_v25  ;;  %2265 = vmatprep.subr.mxu1 %v1242_v26  ;;  %v1100_v25 = vld [vmem:[#allocation12 + $0x468] sm:$0xff]  ;;  %v1102_v26 = vld [vmem:[#allocation12 + $0x478] sm:$0xff] }
 0x23b   : > { %2195 = vmatpush2.msra.mxu0 %v1239_v27  ;;  %2266 = vmatpush2.msra.mxu1 %v1241_v28  ;;  %v1099_v27 = vld [vmem:[#allocation12 + $0x460] sm:$0xff]  ;;  %v1101_v28 = vld [vmem:[#allocation12 + $0x470] sm:$0xff] }
 0x23c   : > { %2196 = vmatprep.subr.mxu0 %v1224_v29  ;;  %2267 = vmatprep.subr.mxu1 %v1226_v30  ;;  %v1084_v29 = vld [vmem:[#allocation12 + $0x3e8] sm:$0xff]  ;;  %v1086_v30 = vld [vmem:[#allocation12 + $0x3f8] sm:$0xff] }
 0x23d   : > { %2197 = vmatpush2.msra.mxu0 %v1223_v31  ;;  %2268 = vmatpush2.msra.mxu1 %v1225_v32  ;;  %v1083_v31 = vld [vmem:[#allocation12 + $0x3e0] sm:$0xff]  ;;  %v1085_v32 = vld [vmem:[#allocation12 + $0x3f0] sm:$0xff] }
 0x23e   : > { %2199 = vmatmul.mubr.f32.vlgmr.msra.gmra.mxu0 %v9266_v23  ;;  %2270 = vmatmul.mubr.f32.vlgmr.msra.gmra.mxu1 %v9266_v23 }
 0x23f   : > { %2276 = vmatprep.subr.mxu0 %v1212_v12  ;;  %2347 = vmatprep.subr.mxu1 %v1214_v33  ;;  %v1068_v12 = vld [vmem:[#allocation12 + $0x368] sm:$0xff]  ;;  %v1070_v33 = vld [vmem:[#allocation12 + $0x378] sm:$0xff] }
 0x240   : > { %2277 = vmatpush1.msra.mxu0 %v1211_v34  ;;  %2340 = vmatprep.mubr.f32.mxu0 %v9264_v22  ;;  %v1067_v34 = vld [vmem:[#allocation12 + $0x360] sm:$0xff] }
 0x241   : > { %2348 = vmatpush1.msra.mxu1 %v1213_v35  ;;  %2411 = vmatprep.mubr.f32.mxu1 %v9264_v22  ;;  %v1147_v22 = vld [vmem:[#allocation12 + $0x5e0] sm:$0xff]  ;;  %v1069_v35 = vld [vmem:[#allocation12 + $0x370] sm:$0xff] }
 0x242   : > { %2278 = vmatprep.subr.mxu0 %v1196_v36  ;;  %2349 = vmatprep.subr.mxu1 %v1198_v37  ;;  %v1052_v36 = vld [vmem:[#allocation12 + $0x2e8] sm:$0xff]  ;;  %v1054_v37 = vld [vmem:[#allocation12 + $0x2f8] sm:$0xff] }
 0x243   : > { %2279 = vmatpush1.msra.mxu0 %v1195_v38  ;;  %2350 = vmatpush1.msra.mxu1 %v1197_v39  ;;  %v1051_v38 = vld [vmem:[#allocation12 + $0x2e0] sm:$0xff]  ;;  %v1053_v39 = vld [vmem:[#allocation12 + $0x2f0] sm:$0xff] }
 0x244   : > { %2280 = vmatprep.subr.mxu0 %v1180_v42  ;;  %2351 = vmatprep.subr.mxu1 %v1182_v43  ;;  %v1036_v42 = vld [vmem:[#allocation12 + $0x268] sm:$0xff]  ;;  %v1038_v43 = vld [vmem:[#allocation12 + $0x278] sm:$0xff] }
 0x245   : > { %2281 = vmatpush1.msra.mxu0 %v1179_v44  ;;  %2352 = vmatpush1.msra.mxu1 %v1181_v47  ;;  %v1035_v44 = vld [vmem:[#allocation12 + $0x260] sm:$0xff]  ;;  %v1037_v47 = vld [vmem:[#allocation12 + $0x270] sm:$0xff] }
 0x246   : > { %2282 = vmatprep.subr.mxu0 %v1164_v48  ;;  %2353 = vmatprep.subr.mxu1 %v1166_v51  ;;  %v1020_v48 = vld [vmem:[#allocation12 + $0x1e8] sm:$0xff]  ;;  %v1022_v51 = vld [vmem:[#allocation12 + $0x1f8] sm:$0xff] }
 0x247   : > { %2283 = vmatpush1.msra.mxu0 %v1163_v52  ;;  %2354 = vmatpush1.msra.mxu1 %v1165_v55  ;;  %v1019_v52 = vld [vmem:[#allocation12 + $0x1e0] sm:$0xff]  ;;  %v1021_v55 = vld [vmem:[#allocation12 + $0x1f0] sm:$0xff] }
 0x248   : > { %2284 = vmatprep.subr.mxu0 %v1148_v56  ;;  %2355 = vmatprep.subr.mxu1 %v1150_v61  ;;  %v1004_v56 = vld [vmem:[#allocation12 + $0x168] sm:$0xff]  ;;  %v1006_v61 = vld [vmem:[#allocation12 + $0x178] sm:$0xff] }
 0x249   : > { %2285 = vmatpush1.msra.mxu0 %v1147_v22  ;;  %2356 = vmatpush1.msra.mxu1 %v1149_v63  ;;  %v1003_v22 = vld [vmem:[#allocation12 + $0x160] sm:$0xff]  ;;  %v1005_v63 = vld [vmem:[#allocation12 + $0x170] sm:$0xff] }
 0x24a   : > { %2286 = vmatprep.subr.mxu0 %v1132_v0  ;;  %2357 = vmatprep.subr.mxu1 %v1134_v7  ;;  %v988_v0 = vld [vmem:[#allocation12 + $0xe8] sm:$0xff]  ;;  %v990_v7 = vld [vmem:[#allocation12 + $0xf8] sm:$0xff] }
 0x24b   : > { %2287 = vmatpush1.msra.mxu0 %v1131_v1  ;;  %2358 = vmatpush1.msra.mxu1 %v1133_v2  ;;  %v987_v1 = vld [vmem:[#allocation12 + $0xe0] sm:$0xff]  ;;  %v989_v2 = vld [vmem:[#allocation12 + $0xf0] sm:$0xff] }
 0x24c   : > { %2288 = vmatprep.subr.mxu0 %v1116_v19  ;;  %2359 = vmatprep.subr.mxu1 %v1118_v20  ;;  %v972_v19 = vld [vmem:[#allocation12 + $0x68] sm:$0xff]  ;;  %v974_v20 = vld [vmem:[#allocation12 + $0x78] sm:$0xff] }
 0x24d   : > { %2289 = vmatpush1.msra.mxu0 %v1115_v21  ;;  %2360 = vmatpush1.msra.mxu1 %v1117_v24  ;;  %v971_v21 = vld [vmem:[#allocation12 + $0x60] sm:$0xff]  ;;  %v973_v24 = vld [vmem:[#allocation12 + $0x70] sm:$0xff] }
 0x24e   : > { %2290 = vmatprep.subr.mxu0 %v1100_v25  ;;  %2361 = vmatprep.subr.mxu1 %v1102_v26  ;;  %v1468_v25 = vld [vmem:[#allocation12 + $0xfe8] sm:$0xff]  ;;  %v1470_v26 = vld [vmem:[#allocation12 + $0xff8] sm:$0xff] }
 0x24f   : > { %2291 = vmatpush1.msra.mxu0 %v1099_v27  ;;  %2362 = vmatpush1.msra.mxu1 %v1101_v28  ;;  %v1467_v27 = vld [vmem:[#allocation12 + $0xfe0] sm:$0xff]  ;;  %v1469_v28 = vld [vmem:[#allocation12 + $0xff0] sm:$0xff] }
 0x250   : > { %2292 = vmatprep.subr.mxu0 %v1084_v29  ;;  %2363 = vmatprep.subr.mxu1 %v1086_v30  ;;  %v1452_v29 = vld [vmem:[#allocation12 + $0xf68] sm:$0xff]  ;;  %v1454_v30 = vld [vmem:[#allocation12 + $0xf78] sm:$0xff] }
 0x251   : > { %2293 = vmatpush1.msra.mxu0 %v1083_v31  ;;  %2364 = vmatpush1.msra.mxu1 %v1085_v32  ;;  %v1451_v31 = vld [vmem:[#allocation12 + $0xf60] sm:$0xff]  ;;  %v1453_v32 = vld [vmem:[#allocation12 + $0xf70] sm:$0xff] }
 0x252   : > { %2294 = vmatprep.subr.mxu0 %v1068_v12  ;;  %2365 = vmatprep.subr.mxu1 %v1070_v33  ;;  %v1436_v12 = vld [vmem:[#allocation12 + $0xee8] sm:$0xff]  ;;  %v1438_v33 = vld [vmem:[#allocation12 + $0xef8] sm:$0xff] }
 0x253   : > { %2295 = vmatpush1.msra.mxu0 %v1067_v34  ;;  %2366 = vmatpush1.msra.mxu1 %v1069_v35  ;;  %v1435_v34 = vld [vmem:[#allocation12 + $0xee0] sm:$0xff]  ;;  %v1437_v35 = vld [vmem:[#allocation12 + $0xef0] sm:$0xff] }
 0x254   : > { %2296 = vmatprep.subr.mxu0 %v1052_v36  ;;  %2367 = vmatprep.subr.mxu1 %v1054_v37  ;;  %v1420_v36 = vld [vmem:[#allocation12 + $0xe68] sm:$0xff]  ;;  %v1422_v37 = vld [vmem:[#allocation12 + $0xe78] sm:$0xff] }
 0x255   : > { %2297 = vmatpush1.msra.mxu0 %v1051_v38  ;;  %2368 = vmatpush1.msra.mxu1 %v1053_v39  ;;  %v1419_v38 = vld [vmem:[#allocation12 + $0xe60] sm:$0xff]  ;;  %v1421_v39 = vld [vmem:[#allocation12 + $0xe70] sm:$0xff] }
 0x256   : > { %2298 = vmatprep.subr.mxu0 %v1036_v42  ;;  %2369 = vmatprep.subr.mxu1 %v1038_v43  ;;  %v1404_v42 = vld [vmem:[#allocation12 + $0xde8] sm:$0xff]  ;;  %v1406_v43 = vld [vmem:[#allocation12 + $0xdf8] sm:$0xff] }
 0x257   : > { %2299 = vmatpush1.msra.mxu0 %v1035_v44  ;;  %2370 = vmatpush1.msra.mxu1 %v1037_v47  ;;  %v9282_v44 = vpop.f32.mrf.mxu0  ;;  %v9284_v47 = vpop.f32.mrf.mxu1 }
 0x258   : > { %2300 = vmatprep.subr.mxu0 %v1020_v48  ;;  %2371 = vmatprep.subr.mxu1 %v1022_v51  ;;  %v1403_v48 = vld [vmem:[#allocation12 + $0xde0] sm:$0xff]  ;;  %v1405_v51 = vld [vmem:[#allocation12 + $0xdf0] sm:$0xff] }
 0x259   : > { %2301 = vmatpush1.msra.mxu0 %v1019_v52  ;;  %2372 = vmatpush1.msra.mxu1 %v1021_v55  ;;  %v1388_v52 = vld [vmem:[#allocation12 + $0xd68] sm:$0xff]  ;;  %v1390_v55 = vld [vmem:[#allocation12 + $0xd78] sm:$0xff] }
 0x25a   : > { %2302 = vmatprep.subr.mxu0 %v1004_v56  ;;  %2373 = vmatprep.subr.mxu1 %v1006_v61  ;;  %v1387_v56 = vld [vmem:[#allocation12 + $0xd60] sm:$0xff]  ;;  %v1389_v61 = vld [vmem:[#allocation12 + $0xd70] sm:$0xff] }
 0x25b   : > { %2303 = vmatpush1.msra.mxu0 %v1003_v22  ;;  %2374 = vmatpush1.msra.mxu1 %v1005_v63  ;;  %v1372_v22 = vld [vmem:[#allocation12 + $0xce8] sm:$0xff]  ;;  %v1374_v63 = vld [vmem:[#allocation12 + $0xcf8] sm:$0xff] }
 0x25c   : > { %2304 = vmatprep.subr.mxu0 %v988_v0  ;;  %2375 = vmatprep.subr.mxu1 %v990_v7  ;;  %v9286_v0 = vpop.f32.mrf.mxu0  ;;  %v9288_v7 = vpop.f32.mrf.mxu1 }
 0x25d   : > { %2305 = vmatpush1.msra.mxu0 %v987_v1  ;;  %2376 = vmatpush1.msra.mxu1 %v989_v2  ;;  %v1371_v1 = vld [vmem:[#allocation12 + $0xce0] sm:$0xff]  ;;  %v1373_v2 = vld [vmem:[#allocation12 + $0xcf0] sm:$0xff] }
 0x25e   : > { %2306 = vmatprep.subr.mxu0 %v972_v19  ;;  %2377 = vmatprep.subr.mxu1 %v974_v20  ;;  %v1356_v19 = vld [vmem:[#allocation12 + $0xc68] sm:$0xff]  ;;  %v1358_v20 = vld [vmem:[#allocation12 + $0xc78] sm:$0xff] }
 0x25f   : > { %2307 = vmatpush1.msra.mxu0 %v971_v21  ;;  %2378 = vmatpush1.msra.mxu1 %v973_v24  ;;  %v1355_v21 = vld [vmem:[#allocation12 + $0xc60] sm:$0xff]  ;;  %v1357_v24 = vld [vmem:[#allocation12 + $0xc70] sm:$0xff] }
 0x260   : > { %2308 = vmatprep.subr.mxu0 %v1468_v25  ;;  %2379 = vmatprep.subr.mxu1 %v1470_v26  ;;  %v1340_v25 = vld [vmem:[#allocation12 + $0xbe8] sm:$0xff]  ;;  %v1342_v26 = vld [vmem:[#allocation12 + $0xbf8] sm:$0xff] }
 0x261   : > { %2309 = vmatpush2.msra.mxu0 %v1467_v27  ;;  %2380 = vmatpush2.msra.mxu1 %v1469_v28  ;;  %v9290_v27 = vpop.f32.mrf.mxu0  ;;  %v9292_v28 = vpop.f32.mrf.mxu1 }
 0x262   : > { %2310 = vmatprep.subr.mxu0 %v1452_v29  ;;  %2381 = vmatprep.subr.mxu1 %v1454_v30  ;;  %v1339_v29 = vld [vmem:[#allocation12 + $0xbe0] sm:$0xff]  ;;  %v1341_v30 = vld [vmem:[#allocation12 + $0xbf0] sm:$0xff] }
 0x263   : > { %2311 = vmatpush2.msra.mxu0 %v1451_v31  ;;  %2382 = vmatpush2.msra.mxu1 %v1453_v32  ;;  %v1324_v31 = vld [vmem:[#allocation12 + $0xb68] sm:$0xff]  ;;  %v1326_v32 = vld [vmem:[#allocation12 + $0xb78] sm:$0xff] }
 0x264   : > { %2312 = vmatprep.subr.mxu0 %v1436_v12  ;;  %2383 = vmatprep.subr.mxu1 %v1438_v33  ;;  %v1323_v12 = vld [vmem:[#allocation12 + $0xb60] sm:$0xff]  ;;  %v1325_v33 = vld [vmem:[#allocation12 + $0xb70] sm:$0xff] }
 0x265   : > { %2313 = vmatpush2.msra.mxu0 %v1435_v34  ;;  %2384 = vmatpush2.msra.mxu1 %v1437_v35  ;;  %v1308_v34 = vld [vmem:[#allocation12 + $0xae8] sm:$0xff]  ;;  %v1310_v35 = vld [vmem:[#allocation12 + $0xaf8] sm:$0xff] }
 0x266   : > { %2314 = vmatprep.subr.mxu0 %v1420_v36  ;;  %2385 = vmatprep.subr.mxu1 %v1422_v37  ;;  %v9294_v36 = vpop.f32.mrf.mxu0  ;;  %v9296_v37 = vpop.f32.mrf.mxu1 }
 0x267   : > { %2315 = vmatpush2.msra.mxu0 %v1419_v38  ;;  %2386 = vmatpush2.msra.mxu1 %v1421_v39  ;;  %v1307_v38 = vld [vmem:[#allocation12 + $0xae0] sm:$0xff]  ;;  %v1309_v39 = vld [vmem:[#allocation12 + $0xaf0] sm:$0xff] }
 0x268   : > { %2316 = vmatprep.subr.mxu0 %v1404_v42  ;;  %2387 = vmatprep.subr.mxu1 %v1406_v43  ;;  %v1292_v42 = vld [vmem:[#allocation12 + $0xa68] sm:$0xff]  ;;  %v1294_v43 = vld [vmem:[#allocation12 + $0xa78] sm:$0xff] }
 0x269   : > { %2317 = vmatpush2.msra.mxu0 %v1403_v48  ;;  %2388 = vmatpush2.msra.mxu1 %v1405_v51  ;;  %v1291_v48 = vld [vmem:[#allocation12 + $0xa60] sm:$0xff]  ;;  %v1293_v51 = vld [vmem:[#allocation12 + $0xa70] sm:$0xff] }
 0x26a   : > { %2318 = vmatprep.subr.mxu0 %v1388_v52  ;;  %2389 = vmatprep.subr.mxu1 %v1390_v55  ;;  %v1276_v52 = vld [vmem:[#allocation12 + $0x9e8] sm:$0xff]  ;;  %v1278_v55 = vld [vmem:[#allocation12 + $0x9f8] sm:$0xff] }
 0x26b   : > { %2319 = vmatpush2.msra.mxu0 %v1387_v56  ;;  %2390 = vmatpush2.msra.mxu1 %v1389_v61  ;;  %v9298_v56 = vpop.f32.mrf.mxu0  ;;  %v9300_v61 = vpop.f32.mrf.mxu1 }
 0x26c   : > { %2320 = vmatprep.subr.mxu0 %v1372_v22  ;;  %2391 = vmatprep.subr.mxu1 %v1374_v63  ;;  %v1275_v22 = vld [vmem:[#allocation12 + $0x9e0] sm:$0xff]  ;;  %v1277_v63 = vld [vmem:[#allocation12 + $0x9f0] sm:$0xff] }
 0x26d   : > { %2321 = vmatpush2.msra.mxu0 %v1371_v1  ;;  %2392 = vmatpush2.msra.mxu1 %v1373_v2  ;;  %v1260_v1 = vld [vmem:[#allocation12 + $0x968] sm:$0xff]  ;;  %v1262_v2 = vld [vmem:[#allocation12 + $0x978] sm:$0xff] }
 0x26e   : > { %2322 = vmatprep.subr.mxu0 %v1356_v19  ;;  %2393 = vmatprep.subr.mxu1 %v1358_v20  ;;  %v1259_v19 = vld [vmem:[#allocation12 + $0x960] sm:$0xff]  ;;  %v1261_v20 = vld [vmem:[#allocation12 + $0x970] sm:$0xff] }
 0x26f   : > { %2323 = vmatpush2.msra.mxu0 %v1355_v21  ;;  %2394 = vmatpush2.msra.mxu1 %v1357_v24  ;;  %v1244_v21 = vld [vmem:[#allocation12 + $0x8e8] sm:$0xff]  ;;  %v1246_v24 = vld [vmem:[#allocation12 + $0x8f8] sm:$0xff] }
 0x270   : > { %2324 = vmatprep.subr.mxu0 %v1340_v25  ;;  %2395 = vmatprep.subr.mxu1 %v1342_v26  ;;  %v9302_v25 = vpop.f32.mrf.mxu0  ;;  %v9304_v26 = vpop.f32.mrf.mxu1 }
 0x271   : > { %2325 = vmatpush2.msra.mxu0 %v1339_v29  ;;  %2396 = vmatpush2.msra.mxu1 %v1341_v30  ;;  %v1243_v29 = vld [vmem:[#allocation12 + $0x8e0] sm:$0xff]  ;;  %v1245_v30 = vld [vmem:[#allocation12 + $0x8f0] sm:$0xff] }
 0x272   : > { %2326 = vmatprep.subr.mxu0 %v1324_v31  ;;  %2397 = vmatprep.subr.mxu1 %v1326_v32  ;;  %v1228_v31 = vld [vmem:[#allocation12 + $0x868] sm:$0xff]  ;;  %v1230_v32 = vld [vmem:[#allocation12 + $0x878] sm:$0xff] }
 0x273   : > { %2327 = vmatpush2.msra.mxu0 %v1323_v12  ;;  %2398 = vmatpush2.msra.mxu1 %v1325_v33 }
 0x274   : > { %2328 = vmatprep.subr.mxu0 %v1308_v34  ;;  %2399 = vmatprep.subr.mxu1 %v1310_v35  ;;  %v1227_v34 = vld [vmem:[#allocation12 + $0x860] sm:$0xff]  ;;  %v1229_v35 = vld [vmem:[#allocation12 + $0x870] sm:$0xff] }
 0x275   : > { %2329 = vmatpush2.msra.mxu0 %v1307_v38  ;;  %2400 = vmatpush2.msra.mxu1 %v1309_v39 }
 0x276   : > { %2330 = vmatprep.subr.mxu0 %v1292_v42  ;;  %2401 = vmatprep.subr.mxu1 %v1294_v43  ;;  %v1592_v42 = vld [vmem:[#allocation13 + $0x3c8] sm:$0xff]  ;;  %v1594_v43 = vld [vmem:[#allocation13 + $0x3d8] sm:$0xff] }
 0x277   : > { %2331 = vmatpush2.msra.mxu0 %v1291_v48  ;;  %2402 = vmatpush2.msra.mxu1 %v1293_v51  ;;  %v1591_v48 = vld [vmem:[#allocation13 + $0x3c0] sm:$0xff]  ;;  %v1593_v51 = vld [vmem:[#allocation13 + $0x3d0] sm:$0xff] }
 0x278   : > { %2332 = vmatprep.subr.mxu0 %v1276_v52  ;;  %2403 = vmatprep.subr.mxu1 %v1278_v55  ;;  %v1584_v52 = vld [vmem:[#allocation13 + $0x388] sm:$0xff]  ;;  %v1585_v55 = vld [vmem:[#allocation13 + $0x390] sm:$0xff] }
 0x279   : > { %2333 = vmatpush2.msra.mxu0 %v1275_v22  ;;  %2404 = vmatpush2.msra.mxu1 %v1277_v63  ;;  %v1576_v22 = vld [vmem:[#allocation13 + $0x348] sm:$0xff]  ;;  %v1578_v63 = vld [vmem:[#allocation13 + $0x358] sm:$0xff] }
 0x27a   : > { %2334 = vmatprep.subr.mxu0 %v1260_v1  ;;  %2405 = vmatprep.subr.mxu1 %v1262_v2  ;;  %v1575_v1 = vld [vmem:[#allocation13 + $0x340] sm:$0xff]  ;;  %v1577_v2 = vld [vmem:[#allocation13 + $0x350] sm:$0xff] }
 0x27b   : > { %2335 = vmatpush2.msra.mxu0 %v1259_v19  ;;  %2406 = vmatpush2.msra.mxu1 %v1261_v20  ;;  %v1916_v12 = vpop.f32.mrf.mxu0  ;;  %v1987_v33 = vpop.f32.mrf.mxu1  ;;  %v1568_v19 = vld [vmem:[#allocation13 + $0x308] sm:$0xff]  ;;  %v1570_v20 = vld [vmem:[#allocation13 + $0x318] sm:$0xff] }
 0x27c   : > { %2336 = vmatprep.subr.mxu0 %v1244_v21  ;;  %2407 = vmatprep.subr.mxu1 %v1246_v24  ;;  %v9307_v38 = vadd.f32 %v1916_v12, %v9206_v40  ;;  %v9310_v39 = vadd.f32 %v1987_v33, %v9208_v41  ;;  %v1586_v40 = vld [vmem:[#allocation13 + $0x398] sm:$0xff]  ;;  %v1583_v41 = vld [vmem:[#allocation13 + $0x380] sm:$0xff]  ;;  %v1569_v21 = vld [vmem:[#allocation13 + $0x310] sm:$0xff] }
 0x27d   : > { %2337 = vmatpush2.msra.mxu0 %v1243_v29  ;;  %2408 = vmatpush2.msra.mxu1 %v1245_v30  ;;  %v1560_v24 = vld [vmem:[#allocation13 + $0x2c8] sm:$0xff]  ;;  %v1562_v29 = vld [vmem:[#allocation13 + $0x2d8] sm:$0xff]  ;;  %v1559_v30 = vld [vmem:[#allocation13 + $0x2c0] sm:$0xff] }
 0x27e   : > { %2338 = vmatprep.subr.mxu0 %v1228_v31  ;;  %2409 = vmatprep.subr.mxu1 %v1230_v32  ;;  %v1561_v31 = vld [vmem:[#allocation13 + $0x2d0] sm:$0xff]  ;;  %v1552_v32 = vld [vmem:[#allocation13 + $0x288] sm:$0xff]  ;;  %v1554_v12 = vld [vmem:[#allocation13 + $0x298] sm:$0xff] }
 0x27f   : > { %2339 = vmatpush2.msra.mxu0 %v1227_v34  ;;  %2410 = vmatpush2.msra.mxu1 %v1229_v35  ;;  %v1551_v33 = vld [vmem:[#allocation13 + $0x280] sm:$0xff]  ;;  %v1553_v34 = vld [vmem:[#allocation13 + $0x290] sm:$0xff]  ;;  %v1544_v35 = vld [vmem:[#allocation13 + $0x248] sm:$0xff] }
 0x280   : > { %2341 = vmatmul.mubr.f32.vlgmr.msra.gmra.mxu0 %v9266_v23  ;;  %2412 = vmatmul.mubr.f32.vlgmr.msra.gmra.mxu1 %v9266_v23  ;;  %v1567_v23 = vld [vmem:[#allocation13 + $0x300] sm:$0xff] }
 0x281   : > { %2418 = vmatprep.subr.mxu0 %v1592_v42  ;;  %2489 = vmatprep.subr.mxu1 %v1594_v43  ;;  %v1546_v42 = vld [vmem:[#allocation13 + $0x258] sm:$0xff]  ;;  %v1543_v43 = vld [vmem:[#allocation13 + $0x240] sm:$0xff] }
 0x282   : > { %2419 = vmatpush1.msra.mxu0 %v1591_v48  ;;  %2490 = vmatpush1.msra.mxu1 %v1593_v51  ;;  %v1545_v48 = vld [vmem:[#allocation13 + $0x250] sm:$0xff]  ;;  %v1536_v51 = vld [vmem:[#allocation13 + $0x208] sm:$0xff] }
 0x283   : > { %2420 = vmatprep.subr.mxu0 %v1584_v52  ;;  %2491 = vmatprep.subr.mxu1 %v1586_v40  ;;  %v1538_v52 = vld [vmem:[#allocation13 + $0x218] sm:$0xff]  ;;  %v1535_v40 = vld [vmem:[#allocation13 + $0x200] sm:$0xff] }
 0x284   : > { %2421 = vmatpush1.msra.mxu0 %v1583_v41  ;;  %2492 = vmatpush1.msra.mxu1 %v1585_v55  ;;  %v1537_v41 = vld [vmem:[#allocation13 + $0x210] sm:$0xff]  ;;  %v1528_v55 = vld [vmem:[#allocation13 + $0x1c8] sm:$0xff] }
 0x285   : > { %2422 = vmatprep.subr.mxu0 %v1576_v22  ;;  %2493 = vmatprep.subr.mxu1 %v1578_v63  ;;  %v1530_v22 = vld [vmem:[#allocation13 + $0x1d8] sm:$0xff]  ;;  %v1527_v63 = vld [vmem:[#allocation13 + $0x1c0] sm:$0xff] }
 0x286   : > { %2423 = vmatpush1.msra.mxu0 %v1575_v1  ;;  %2494 = vmatpush1.msra.mxu1 %v1577_v2  ;;  %v1529_v1 = vld [vmem:[#allocation13 + $0x1d0] sm:$0xff]  ;;  %v1520_v2 = vld [vmem:[#allocation13 + $0x188] sm:$0xff] }
 0x287   : > { %2424 = vmatprep.subr.mxu0 %v1568_v19  ;;  %2495 = vmatprep.subr.mxu1 %v1570_v20  ;;  %v1522_v19 = vld [vmem:[#allocation13 + $0x198] sm:$0xff]  ;;  %v1519_v20 = vld [vmem:[#allocation13 + $0x180] sm:$0xff] }
 0x288   : > { %2425 = vmatpush1.msra.mxu0 %v1567_v23  ;;  %2496 = vmatpush1.msra.mxu1 %v1569_v21  ;;  %v1521_v23 = vld [vmem:[#allocation13 + $0x190] sm:$0xff]  ;;  %v1512_v21 = vld [vmem:[#allocation13 + $0x148] sm:$0xff] }
 0x289   : > { %2426 = vmatprep.subr.mxu0 %v1560_v24  ;;  %2497 = vmatprep.subr.mxu1 %v1562_v29  ;;  %v1514_v24 = vld [vmem:[#allocation13 + $0x158] sm:$0xff]  ;;  %v1511_v29 = vld [vmem:[#allocation13 + $0x140] sm:$0xff] }
 0x28a   : > { %2427 = vmatpush1.msra.mxu0 %v1559_v30  ;;  %2498 = vmatpush1.msra.mxu1 %v1561_v31  ;;  %v1513_v30 = vld [vmem:[#allocation13 + $0x150] sm:$0xff]  ;;  %v1504_v31 = vld [vmem:[#allocation13 + $0x108] sm:$0xff] }
 0x28b   : > { %2428 = vmatprep.subr.mxu0 %v1552_v32  ;;  %2499 = vmatprep.subr.mxu1 %v1554_v12  ;;  %v1506_v32 = vld [vmem:[#allocation13 + $0x118] sm:$0xff]  ;;  %v1503_v12 = vld [vmem:[#allocation13 + $0x100] sm:$0xff] }
 0x28c   : > { %2429 = vmatpush1.msra.mxu0 %v1551_v33  ;;  %2500 = vmatpush1.msra.mxu1 %v1553_v34  ;;  %v1505_v33 = vld [vmem:[#allocation13 + $0x110] sm:$0xff]  ;;  %v1496_v34 = vld [vmem:[#allocation13 + $0xc8] sm:$0xff] }
 0x28d   : > { %2430 = vmatprep.subr.mxu0 %v1544_v35  ;;  %2501 = vmatprep.subr.mxu1 %v1546_v42  ;;  %v1498_v35 = vld [vmem:[#allocation13 + $0xd8] sm:$0xff]  ;;  %v1495_v42 = vld [vmem:[#allocation13 + $0xc0] sm:$0xff] }
 0x28e   : > { %2431 = vmatpush1.msra.mxu0 %v1543_v43  ;;  %2502 = vmatpush1.msra.mxu1 %v1545_v48  ;;  %v1497_v43 = vld [vmem:[#allocation13 + $0xd0] sm:$0xff]  ;;  %v1488_v48 = vld [vmem:[#allocation13 + $0x88] sm:$0xff] }
 0x28f   : > { %2432 = vmatprep.subr.mxu0 %v1536_v51  ;;  %2503 = vmatprep.subr.mxu1 %v1538_v52  ;;  %v1490_v51 = vld [vmem:[#allocation13 + $0x98] sm:$0xff]  ;;  %v1487_v52 = vld [vmem:[#allocation13 + $0x80] sm:$0xff] }
 0x290   : > { %2433 = vmatpush1.msra.mxu0 %v1535_v40  ;;  %2504 = vmatpush1.msra.mxu1 %v1537_v41  ;;  %v1489_v40 = vld [vmem:[#allocation13 + $0x90] sm:$0xff]  ;;  %v1480_v41 = vld [vmem:[#allocation13 + $0x48] sm:$0xff] }
 0x291   : > { %2434 = vmatprep.subr.mxu0 %v1528_v55  ;;  %2505 = vmatprep.subr.mxu1 %v1530_v22  ;;  %v1482_v55 = vld [vmem:[#allocation13 + $0x58] sm:$0xff]  ;;  %v1479_v22 = vld [vmem:[#allocation13 + $0x40] sm:$0xff] }
 0x292   : > { %2435 = vmatpush1.msra.mxu0 %v1527_v63  ;;  %2506 = vmatpush1.msra.mxu1 %v1529_v1  ;;  %v1481_v63 = vld [vmem:[#allocation13 + $0x50] sm:$0xff]  ;;  %v1472_v1 = vld [vmem:[#allocation13 + $0x8] sm:$0xff] }
 0x293   : > { %2436 = vmatprep.subr.mxu0 %v1520_v2  ;;  %2507 = vmatprep.subr.mxu1 %v1522_v19  ;;  %v1474_v2 = vld [vmem:[#allocation13 + $0x18] sm:$0xff]  ;;  %v1471_v19 = vld [vmem:[#allocation13] sm:$0xff] }
 0x294   : > { %2437 = vmatpush1.msra.mxu0 %v1519_v20  ;;  %2508 = vmatpush1.msra.mxu1 %v1521_v23  ;;  %v1473_v20 = vld [vmem:[#allocation13 + $0x10] sm:$0xff]  ;;  %v1720_v23 = vld [vmem:[#allocation13 + $0x7c8] sm:$0xff] }
 0x295   : > { %2438 = vmatprep.subr.mxu0 %v1512_v21  ;;  %2509 = vmatprep.subr.mxu1 %v1514_v24  ;;  %v1722_v21 = vld [vmem:[#allocation13 + $0x7d8] sm:$0xff]  ;;  %v1719_v24 = vld [vmem:[#allocation13 + $0x7c0] sm:$0xff] }
 0x296   : > { %2439 = vmatpush1.msra.mxu0 %v1511_v29  ;;  %2510 = vmatpush1.msra.mxu1 %v1513_v30  ;;  %v1721_v29 = vld [vmem:[#allocation13 + $0x7d0] sm:$0xff]  ;;  %v1712_v30 = vld [vmem:[#allocation13 + $0x788] sm:$0xff] }
 0x297   : > { %2440 = vmatprep.subr.mxu0 %v1504_v31  ;;  %2511 = vmatprep.subr.mxu1 %v1506_v32  ;;  %v1714_v31 = vld [vmem:[#allocation13 + $0x798] sm:$0xff]  ;;  %v1989_v32 = vpop.f32.mrf.mxu1 }
 0x298   : > { %2441 = vmatpush1.msra.mxu0 %v1503_v12  ;;  %2512 = vmatpush1.msra.mxu1 %v1505_v33  ;;  %v1711_v12 = vld [vmem:[#allocation13 + $0x780] sm:$0xff]  ;;  %v1713_v33 = vld [vmem:[#allocation13 + $0x790] sm:$0xff] }
 0x299   : > { %2442 = vmatprep.subr.mxu0 %v1496_v34  ;;  %2513 = vmatprep.subr.mxu1 %v1498_v35  ;;  %v1918_v34 = vpop.f32.mrf.mxu0  ;;  %v1704_v35 = vld [vmem:[#allocation13 + $0x748] sm:$0xff] }
 0x29a   : > { %2443 = vmatpush1.msra.mxu0 %v1495_v42  ;;  %2514 = vmatpush1.msra.mxu1 %v1497_v43  ;;  %v1706_v42 = vld [vmem:[#allocation13 + $0x758] sm:$0xff]  ;;  %v1703_v43 = vld [vmem:[#allocation13 + $0x740] sm:$0xff] }
 0x29b   : > { %2444 = vmatprep.subr.mxu0 %v1488_v48  ;;  %2515 = vmatprep.subr.mxu1 %v1490_v51  ;;  %v1705_v48 = vld [vmem:[#allocation13 + $0x750] sm:$0xff]  ;;  %v2780_v51 = vadd.f32 %v1989_v32, %v9212_v46  ;;  %v1687_v46 = vld [vmem:[#allocation13 + $0x6c0] sm:$0xff] }
 0x29c   : > { %2445 = vmatpush1.msra.mxu0 %v1487_v52  ;;  %2516 = vmatpush1.msra.mxu1 %v1489_v40  ;;  %v1696_v52 = vld [vmem:[#allocation13 + $0x708] sm:$0xff]  ;;  %v1698_v40 = vld [vmem:[#allocation13 + $0x718] sm:$0xff]  ;;  %v1673_v32 = vld [vmem:[#allocation13 + $0x650] sm:$0xff] }
 0x29d   : > { %2446 = vmatprep.subr.mxu0 %v1480_v41  ;;  %2517 = vmatprep.subr.mxu1 %v1482_v55  ;;  %v5931_v41 = vmul.f32 -1.442695, %v9310_v39  ;;  %v2778_v55 = vadd.f32 %v1918_v34, %v9210_v45  ;;  %v1680_v39 = vld [vmem:[#allocation13 + $0x688] sm:$0xff]  ;;  %v1663_v34 = vld [vmem:[#allocation13 + $0x600] sm:$0xff] }
 0x29e   : > { %2447 = vmatpush1.msra.mxu0 %v1479_v22  ;;  %2518 = vmatpush1.msra.mxu1 %v1481_v63  ;;  %v1695_v22 = vld [vmem:[#allocation13 + $0x700] sm:$0xff]  ;;  %v1697_v63 = vld [vmem:[#allocation13 + $0x710] sm:$0xff] }
 0x29f   : > { %2448 = vmatprep.subr.mxu0 %v1472_v1  ;;  %2519 = vmatprep.subr.mxu1 %v1474_v2  ;;  %v5929_v1 = vmul.f32 -1.442695, %v9307_v38  ;;  %v1688_v2 = vld [vmem:[#allocation13 + $0x6c8] sm:$0xff]  ;;  %6134 = vpow2.f32 %v5931_v41  ;;  %v5930_v45 = vmul.f32 -1.442695, %v2778_v55  ;;  %v1647_v41 = vld [vmem:[#allocation13 + $0x580] sm:$0xff] }
 0x2a0   : > { %2449 = vmatpush1.msra.mxu0 %v1471_v19  ;;  %2520 = vmatpush1.msra.mxu1 %v1473_v20  ;;  %v1690_v19 = vld [vmem:[#allocation13 + $0x6d8] sm:$0xff]  ;;  %v1689_v20 = vld [vmem:[#allocation13 + $0x6d0] sm:$0xff]  ;;  %v1672_v38 = vld [vmem:[#allocation13 + $0x648] sm:$0xff] }
 0x2a1   : > { %2450 = vmatprep.subr.mxu0 %v1720_v23  ;;  %2521 = vmatprep.subr.mxu1 %v1722_v21  ;;  %v5932_v23 = vmul.f32 -1.442695, %v2780_v51  ;;  %v1682_v21 = vld [vmem:[#allocation13 + $0x698] sm:$0xff]  ;;  %6136 = vpow2.f32 %v5929_v1  ;;  %v1657_v51 = vld [vmem:[#allocation13 + $0x5d0] sm:$0xff]  ;;  %v1639_v1 = vld [vmem:[#allocation13 + $0x540] sm:$0xff] }
 0x2a2   : > { %2451 = vmatpush2.msra.mxu0 %v1719_v24  ;;  %2522 = vmatpush2.msra.mxu1 %v1721_v29  ;;  %v1679_v24 = vld [vmem:[#allocation13 + $0x680] sm:$0xff]  ;;  %v1681_v29 = vld [vmem:[#allocation13 + $0x690] sm:$0xff] }
 0x2a3   : > { %2452 = vmatprep.subr.mxu0 %v1712_v30  ;;  %2523 = vmatprep.subr.mxu1 %v1714_v31  ;;  %v1674_v30 = vld [vmem:[#allocation13 + $0x658] sm:$0xff]  ;;  %v1671_v31 = vld [vmem:[#allocation13 + $0x640] sm:$0xff]  ;;  %6138 = vpow2.f32 %v5932_v23  ;;  %v1649_v55 = vld [vmem:[#allocation13 + $0x590] sm:$0xff] }
 0x2a4   : > { %2453 = vmatpush2.msra.mxu0 %v1711_v12  ;;  %2524 = vmatpush2.msra.mxu1 %v1713_v33  ;;  %v1664_v12 = vld [vmem:[#allocation13 + $0x608] sm:$0xff]  ;;  %v1666_v33 = vld [vmem:[#allocation13 + $0x618] sm:$0xff]  ;;  %6140 = vpow2.f32 %v5930_v45  ;;  %v1633_v23 = vld [vmem:[#allocation13 + $0x510] sm:$0xff] }
 0x2a5   : > { %2454 = vmatprep.subr.mxu0 %v1704_v35  ;;  %2525 = vmatprep.subr.mxu1 %v1706_v42  ;;  %v1665_v35 = vld [vmem:[#allocation13 + $0x610] sm:$0xff]  ;;  %v1656_v42 = vld [vmem:[#allocation13 + $0x5c8] sm:$0xff]  ;;  %v1626_v45 = vld [vmem:[#allocation13 + $0x4d8] sm:$0xff] }
 0x2a6   : > { %2455 = vmatpush2.msra.mxu0 %v1703_v43  ;;  %2526 = vmatpush2.msra.mxu1 %v1705_v48  ;;  %v1658_v43 = vld [vmem:[#allocation13 + $0x5d8] sm:$0xff]  ;;  %v1655_v48 = vld [vmem:[#allocation13 + $0x5c0] sm:$0xff] }
 0x2a7   : > { %2456 = vmatprep.subr.mxu0 %v1696_v52  ;;  %2527 = vmatprep.subr.mxu1 %v1698_v40  ;;  %v1648_v52 = vld [vmem:[#allocation13 + $0x588] sm:$0xff]  ;;  %v1650_v40 = vld [vmem:[#allocation13 + $0x598] sm:$0xff] }
 0x2a8   : > { %2457 = vmatpush2.msra.mxu0 %v1695_v22  ;;  %2528 = vmatpush2.msra.mxu1 %v1697_v63  ;;  %v1640_v22 = vld [vmem:[#allocation13 + $0x548] sm:$0xff]  ;;  %v1642_v63 = vld [vmem:[#allocation13 + $0x558] sm:$0xff] }
 0x2a9   : > { %2458 = vmatprep.subr.mxu0 %v1688_v2  ;;  %2529 = vmatprep.subr.mxu1 %v1690_v19  ;;  %v1641_v2 = vld [vmem:[#allocation13 + $0x550] sm:$0xff]  ;;  %v1632_v19 = vld [vmem:[#allocation13 + $0x508] sm:$0xff] }
 0x2aa   : > { %2459 = vmatpush2.msra.mxu0 %v1687_v46  ;;  %2530 = vmatpush2.msra.mxu1 %v1689_v20  ;;  %v1634_v46 = vld [vmem:[#allocation13 + $0x518] sm:$0xff]  ;;  %v1631_v20 = vld [vmem:[#allocation13 + $0x500] sm:$0xff] }
 0x2ab   : > { %2460 = vmatprep.subr.mxu0 %v1680_v39  ;;  %2531 = vmatprep.subr.mxu1 %v1682_v21  ;;  %v1624_v21 = vld [vmem:[#allocation13 + $0x4c8] sm:$0xff] }
 0x2ac   : > { %2461 = vmatpush2.msra.mxu0 %v1679_v24  ;;  %2532 = vmatpush2.msra.mxu1 %v1681_v29  ;;  %v6135_v39 = vpop.eup %6134  ;;  %v1623_v29 = vld [vmem:[#allocation13 + $0x4c0] sm:$0xff] }
 0x2ad   : > { %2462 = vmatprep.subr.mxu0 %v1672_v38  ;;  %2533 = vmatprep.subr.mxu1 %v1674_v30  ;;  %v1625_v38 = vld [vmem:[#allocation13 + $0x4d0] sm:$0xff]  ;;  %v1616_v30 = vld [vmem:[#allocation13 + $0x488] sm:$0xff] }
 0x2ae   : > { %2463 = vmatpush2.msra.mxu0 %v1671_v31  ;;  %2534 = vmatpush2.msra.mxu1 %v1673_v32  ;;  %v6137_v24 = vpop.eup %6136  ;;  %v1618_v31 = vld [vmem:[#allocation13 + $0x498] sm:$0xff] }
 0x2af   : > { %2464 = vmatprep.subr.mxu0 %v1664_v12  ;;  %2535 = vmatprep.subr.mxu1 %v1666_v33  ;;  %v2805_v12 = vadd.f32 1.0, %v6135_v39  ;;  %v1615_v33 = vld [vmem:[#allocation13 + $0x480] sm:$0xff] }
 0x2b0   : > { %2465 = vmatpush2.msra.mxu0 %v1663_v34  ;;  %2536 = vmatpush2.msra.mxu1 %v1665_v35  ;;  %v6139_v32 = vpop.eup %6138  ;;  %v1617_v34 = vld [vmem:[#allocation13 + $0x490] sm:$0xff] }
 0x2b1   : > { %2466 = vmatprep.subr.mxu0 %v1656_v42  ;;  %2537 = vmatprep.subr.mxu1 %v1658_v43  ;;  %v6141_v35 = vpop.eup %6140  ;;  %v2803_v42 = vadd.f32 1.0, %v6137_v24  ;;  %v1608_v43 = vld [vmem:[#allocation13 + $0x448] sm:$0xff]  ;;  %6142 = vrcp.f32 %v2805_v12  ;;  %v1587_v12 = vld [vmem:[#allocation13 + $0x3a0] sm:$0xff] }
 0x2b2   : > { %2467 = vmatpush2.msra.mxu0 %v1655_v48  ;;  %2538 = vmatpush2.msra.mxu1 %v1657_v51  ;;  %v1610_v48 = vld [vmem:[#allocation13 + $0x458] sm:$0xff]  ;;  %v822_v51 = vadd.f32 %v9282_v44, %v9237_v8  ;;  %v1599_v44 = vld [vmem:[#allocation13 + $0x400] sm:$0xff]  ;;  %v1596_v24 = vld [vmem:[#allocation13 + $0x3e8] sm:$0xff] }
 0x2b3   : > { %2468 = vmatprep.subr.mxu0 %v1648_v52  ;;  %2539 = vmatprep.subr.mxu1 %v1650_v40  ;;  %v911_v52 = vadd.f32 %v9284_v47, %v9242_v9  ;;  %v1607_v40 = vld [vmem:[#allocation13 + $0x440] sm:$0xff]  ;;  %v9324_v47 = vld [vmem:[#allocation5 + $0x8] sm:$0xff]  ;;  %6144 = vrcp.f32 %v2803_v42 }
 0x2b4   : > { %2469 = vmatpush2.msra.mxu0 %v1647_v41  ;;  %2540 = vmatpush2.msra.mxu1 %v1649_v55  ;;  %v1609_v41 = vld [vmem:[#allocation13 + $0x450] sm:$0xff]  ;;  %v913_v55 = vadd.f32 %v9288_v7, %v9252_v18  ;;  %v1579_v42 = vld [vmem:[#allocation13 + $0x360] sm:$0xff] }
 0x2b5   : > { %2470 = vmatprep.subr.mxu0 %v1640_v22  ;;  %2541 = vmatprep.subr.mxu1 %v1642_v63  ;;  %v2806_v22 = vadd.f32 1.0, %v6139_v32  ;;  %v1600_v63 = vld [vmem:[#allocation13 + $0x408] sm:$0xff]  ;;  %v1601_v7 = vld [vmem:[#allocation13 + $0x410] sm:$0xff]  ;;  %v1590_v32 = vld [vmem:[#allocation13 + $0x3b8] sm:$0xff] }
 0x2b6   : > { %2471 = vmatpush2.msra.mxu0 %v1639_v1  ;;  %2542 = vmatpush2.msra.mxu1 %v1641_v2  ;;  %v1602_v1 = vld [vmem:[#allocation13 + $0x418] sm:$0xff] }
 0x2b7   : > { %2472 = vmatprep.subr.mxu0 %v1632_v19  ;;  %2543 = vmatprep.subr.mxu1 %v1634_v46  ;;  %v2804_v46 = vadd.f32 1.0, %v6141_v35  ;;  %v1582_v35 = vld [vmem:[#allocation13 + $0x378] sm:$0xff] }
 0x2b8   : > { %2473 = vmatpush2.msra.mxu0 %v1631_v20  ;;  %2544 = vmatpush2.msra.mxu1 %v1633_v23 }
 0x2b9   : > { %2474 = vmatprep.subr.mxu0 %v1624_v21  ;;  %2545 = vmatprep.subr.mxu1 %v1626_v45  ;;  %v9328_v21 = vld [vmem:[#allocation5] sm:$0xff] }
 0x2ba   : > { %2475 = vmatpush2.msra.mxu0 %v1623_v29  ;;  %2546 = vmatpush2.msra.mxu1 %v1625_v38  ;;  %v1598_v29 = vld [vmem:[#allocation13 + $0x3f8] sm:$0xff]  ;;  %v1595_v38 = vld [vmem:[#allocation13 + $0x3e0] sm:$0xff] }
 0x2bb   : > { %2476 = vmatprep.subr.mxu0 %v1616_v30  ;;  %2547 = vmatprep.subr.mxu1 %v1618_v31  ;;  %v1597_v30 = vld [vmem:[#allocation13 + $0x3f0] sm:$0xff]  ;;  %v1588_v31 = vld [vmem:[#allocation13 + $0x3a8] sm:$0xff] }
 0x2bc   : > { %2477 = vmatpush2.msra.mxu0 %v1615_v33  ;;  %2548 = vmatpush2.msra.mxu1 %v1617_v34  ;;  %v2058_v2 = vpop.f32.mrf.mxu0  ;;  %v2129_v19 = vpop.f32.mrf.mxu1  ;;  %v1589_v33 = vld [vmem:[#allocation13 + $0x3b0] sm:$0xff]  ;;  %v1580_v34 = vld [vmem:[#allocation13 + $0x368] sm:$0xff] }
 0x2bd   : > { %2478 = vmatprep.subr.mxu0 %v1608_v43  ;;  %2549 = vmatprep.subr.mxu1 %v1610_v48  ;;  %v9326_v20 = vadd.f32 %v2058_v2, %v822_v51  ;;  %v2783_v23 = vadd.f32 %v2129_v19, %v911_v52  ;;  %v1581_v43 = vld [vmem:[#allocation13 + $0x370] sm:$0xff]  ;;  %v1572_v48 = vld [vmem:[#allocation13 + $0x328] sm:$0xff]  ;;  %v1574_v51 = vld [vmem:[#allocation13 + $0x338] sm:$0xff] }
 0x2be   : > { %2479 = vmatpush2.msra.mxu0 %v1607_v40  ;;  %2550 = vmatpush2.msra.mxu1 %v1609_v41  ;;  %v2131_v39 = vpop.f32.mrf.mxu1  ;;  %v1571_v52 = vld [vmem:[#allocation13 + $0x320] sm:$0xff]  ;;  %v1573_v40 = vld [vmem:[#allocation13 + $0x330] sm:$0xff]  ;;  %v1564_v41 = vld [vmem:[#allocation13 + $0x2e8] sm:$0xff] }
 0x2bf   : > { %2480 = vmatprep.subr.mxu0 %v1600_v63  ;;  %2551 = vmatprep.subr.mxu1 %v1602_v1  ;;  %6146 = vtanh.f32 %v2783_v23  ;;  %v2784_v45 = vadd.f32 %v2131_v39, %v913_v55  ;;  %v1566_v55 = vld [vmem:[#allocation13 + $0x2f8] sm:$0xff]  ;;  %v1565_v63 = vld [vmem:[#allocation13 + $0x2f0] sm:$0xff]  ;;  %v6143_v1 = vpop.eup %6142  ;;  %v1556_v2 = vld [vmem:[#allocation13 + $0x2a8] sm:$0xff] }
 0x2c0   : > { %6148 = vrcp.f32 %v2806_v22  ;;  %2481 = vmatpush2.msra.mxu0 %v1599_v44  ;;  %2482 = vmatprep.mubr.f32.mxu0 %v9324_v47  ;;  %v1563_v22 = vld [vmem:[#allocation13 + $0x2e0] sm:$0xff]  ;;  %v1558_v19 = vld [vmem:[#allocation13 + $0x2b8] sm:$0xff]  ;;  %v1557_v23 = vld [vmem:[#allocation13 + $0x2b0] sm:$0xff] }
 0x2c1   : > { %6150 = vrcp.f32 %v2804_v46  ;;  %2552 = vmatpush2.msra.mxu1 %v1601_v7  ;;  %2553 = vmatprep.mubr.f32.mxu1 %v9324_v47  ;;  %v6145_v46 = vpop.eup %6144  ;;  %v1555_v44 = vld [vmem:[#allocation13 + $0x2a0] sm:$0xff]  ;;  %v1548_v39 = vld [vmem:[#allocation13 + $0x268] sm:$0xff] }
 0x2c2   : > { %2483 = vmatmul.mubr.f32.vlgmr.msra.gmra.mxu0 %v9328_v21  ;;  %2554 = vmatmul.mubr.f32.vlgmr.msra.gmra.mxu1 %v9328_v21  ;;  %6152 = vtanh.f32 %v2784_v45  ;;  %v1550_v45 = vld [vmem:[#allocation13 + $0x278] sm:$0xff] }
 0x2c3   : > { %2560 = vmatprep.subr.mxu0 %v1596_v24  ;;  %2631 = vmatprep.subr.mxu1 %v1598_v29  ;;  %v2823_v29 = vmul.f32 %v6143_v1, %v9258_v62  ;;  %v1523_v1 = vld [vmem:[#allocation13 + $0x1a0] sm:$0xff] }
 0x2c4   : > { %2561 = vmatpush1.msra.mxu0 %v1595_v38  ;;  %2632 = vmatpush1.msra.mxu1 %v1597_v30  ;;  %v1547_v30 = vld [vmem:[#allocation13 + $0x260] sm:$0xff] }
 0x2c5   : > { %2562 = vmatprep.subr.mxu0 %v1588_v31  ;;  %2633 = vmatprep.subr.mxu1 %v1590_v32  ;;  %v1549_v31 = vld [vmem:[#allocation13 + $0x270] sm:$0xff] }
 0x2c6   : > { %2563 = vmatpush1.msra.mxu0 %v1587_v12  ;;  %2634 = vmatpush1.msra.mxu1 %v1589_v33  ;;  %v1540_v12 = vld [vmem:[#allocation13 + $0x228] sm:$0xff]  ;;  %v1542_v33 = vld [vmem:[#allocation13 + $0x238] sm:$0xff] }
 0x2c7   : > { %2564 = vmatprep.subr.mxu0 %v1580_v34  ;;  %2635 = vmatprep.subr.mxu1 %v1582_v35 }
 0x2c8   : > { %2565 = vmatpush1.msra.mxu0 %v1579_v42  ;;  %2636 = vmatpush1.msra.mxu1 %v1581_v43  ;;  %v1539_v42 = vld [vmem:[#allocation13 + $0x220] sm:$0xff]  ;;  %v1541_v43 = vld [vmem:[#allocation13 + $0x230] sm:$0xff] }
 0x2c9   : > { %2566 = vmatprep.subr.mxu0 %v1572_v48  ;;  %2637 = vmatprep.subr.mxu1 %v1574_v51  ;;  %v1532_v51 = vld [vmem:[#allocation13 + $0x1e8] sm:$0xff] }
 0x2ca   : > { %2567 = vmatpush1.msra.mxu0 %v1571_v52  ;;  %2638 = vmatpush1.msra.mxu1 %v1573_v40  ;;  %v1534_v52 = vld [vmem:[#allocation13 + $0x1f8] sm:$0xff]  ;;  %v1531_v40 = vld [vmem:[#allocation13 + $0x1e0] sm:$0xff] }
 0x2cb   : > { %2568 = vmatprep.subr.mxu0 %v1564_v41  ;;  %2639 = vmatprep.subr.mxu1 %v1566_v55  ;;  %v1533_v41 = vld [vmem:[#allocation13 + $0x1f0] sm:$0xff] }
 0x2cc   : > { %v6147_v7 = vpop.eup %6146  ;;  %2569 = vmatpush1.msra.mxu0 %v1563_v22  ;;  %2640 = vmatpush1.msra.mxu1 %v1565_v63  ;;  %v1524_v22 = vld [vmem:[#allocation13 + $0x1a8] sm:$0xff]  ;;  %v1526_v63 = vld [vmem:[#allocation13 + $0x1b8] sm:$0xff] }
 0x2cd   : > { %v6149_v24 = vpop.eup %6148  ;;  %v2825_v38 = vmul.f32 %v6147_v7, %v6145_v46  ;;  %2570 = vmatprep.subr.mxu0 %v1556_v2  ;;  %2641 = vmatprep.subr.mxu1 %v1558_v19  ;;  %v1525_v2 = vld [vmem:[#allocation13 + $0x1b0] sm:$0xff]  ;;  %v1516_v19 = vld [vmem:[#allocation13 + $0x168] sm:$0xff]  ;;  %v1518_v46 = vld [vmem:[#allocation13 + $0x178] sm:$0xff] }
 0x2ce   : > { %v6151_v32 = vpop.eup %6150  ;;  %2571 = vmatpush1.msra.mxu0 %v1555_v44  ;;  %2642 = vmatpush1.msra.mxu1 %v1557_v23  ;;  %v2824_v48 = vmul.f32 %v6149_v24, %v9261_v15  ;;  %v2060_v15 = vpop.f32.mrf.mxu0  ;;  %v824_v44 = vadd.f32 %v9286_v0, %v9247_v16  ;;  %v1515_v23 = vld [vmem:[#allocation13 + $0x160] sm:$0xff]  ;;  %v1517_v7 = vld [vmem:[#allocation13 + $0x170] sm:$0xff] }
 0x2cf   : > { %v6153_v34 = vpop.eup %6152  ;;  %v9335_v35 = vadd.f32 %v2825_v38, %v2823_v29  ;;  %2572 = vmatprep.subr.mxu0 %v1548_v39  ;;  %2643 = vmatprep.subr.mxu1 %v1550_v45  ;;  %v1508_v39 = vld [vmem:[#allocation13 + $0x128] sm:$0xff]  ;;  %v1510_v45 = vld [vmem:[#allocation13 + $0x138] sm:$0xff]  ;;  %v1507_v29 = vld [vmem:[#allocation13 + $0x120] sm:$0xff] }
 0x2d0   : > { %v2826_v62 = vmul.f32 %v6153_v34, %v6151_v32  ;;  %2573 = vmatpush1.msra.mxu0 %v1547_v30  ;;  %2644 = vmatpush1.msra.mxu1 %v1549_v31  ;;  %v2782_v24 = vadd.f32 %v2060_v15, %v824_v44  ;;  %v1509_v38 = vld [vmem:[#allocation13 + $0x130] sm:$0xff]  ;;  %v1500_v30 = vld [vmem:[#allocation13 + $0xe8] sm:$0xff]  ;;  %v1502_v31 = vld [vmem:[#allocation13 + $0xf8] sm:$0xff] }
 0x2d1   : > { %2574 = vmatprep.subr.mxu0 %v1540_v12  ;;  %2645 = vmatprep.subr.mxu1 %v1542_v33  ;;  %v1499_v0 = vld [vmem:[#allocation13 + $0xe0] sm:$0xff]  ;;  %v1501_v32 = vld [vmem:[#allocation13 + $0xf0] sm:$0xff]  ;;  %v1492_v12 = vld [vmem:[#allocation13 + $0xa8] sm:$0xff] }
 0x2d2   : > { %v9338_v55 = vadd.f32 %v2826_v62, %v2824_v48  ;;  %2575 = vmatpush1.msra.mxu0 %v1539_v42  ;;  %2646 = vmatpush1.msra.mxu1 %v1541_v43  ;;  %v1494_v33 = vld [vmem:[#allocation13 + $0xb8] sm:$0xff]  ;;  %v5934_v34 = vmul.f32 -1.442695, %v2782_v24  ;;  %v1491_v42 = vld [vmem:[#allocation13 + $0xa0] sm:$0xff]  ;;  %v1493_v43 = vld [vmem:[#allocation13 + $0xb0] sm:$0xff] }
 0x2d3   : > { %2576 = vmatprep.subr.mxu0 %v1532_v51  ;;  %2647 = vmatprep.subr.mxu1 %v1534_v52  ;;  %v1484_v48 = vld [vmem:[#allocation13 + $0x68] sm:$0xff]  ;;  %v1486_v62 = vld [vmem:[#allocation13 + $0x78] sm:$0xff]  ;;  %v1483_v51 = vld [vmem:[#allocation13 + $0x60] sm:$0xff] }
 0x2d4   : > { %2577 = vmatpush1.msra.mxu0 %v1531_v40  ;;  %2648 = vmatpush1.msra.mxu1 %v1533_v41  ;;  %v1485_v52 = vld [vmem:[#allocation13 + $0x70] sm:$0xff]  ;;  %v1476_v40 = vld [vmem:[#allocation13 + $0x28] sm:$0xff]  ;;  %v1478_v41 = vld [vmem:[#allocation13 + $0x38] sm:$0xff]  ;;  %6154 = vpow2.f32 %v5934_v34 }
 0x2d5   : > { %2578 = vmatprep.subr.mxu0 %v1524_v22  ;;  %2649 = vmatprep.subr.mxu1 %v1526_v63  ;;  %v1475_v22 = vld [vmem:[#allocation13 + $0x20] sm:$0xff]  ;;  %v1477_v63 = vld [vmem:[#allocation13 + $0x30] sm:$0xff]  ;;  %v1718_v44 = vld [vmem:[#allocation13 + $0x7b8] sm:$0xff] }
 0x2d6   : > { %2579 = vmatpush1.msra.mxu0 %v1523_v1  ;;  %2650 = vmatpush1.msra.mxu1 %v1525_v2  ;;  %v1724_v1 = vld [vmem:[#allocation13 + $0x7e8] sm:$0xff]  ;;  %v1726_v2 = vld [vmem:[#allocation13 + $0x7f8] sm:$0xff]  ;;  %v1723_v15 = vld [vmem:[#allocation13 + $0x7e0] sm:$0xff] }
 0x2d7   : > { %2580 = vmatprep.subr.mxu0 %v1516_v19  ;;  %2651 = vmatprep.subr.mxu1 %v1518_v46  ;;  %v1725_v19 = vld [vmem:[#allocation13 + $0x7f0] sm:$0xff]  ;;  %v1716_v46 = vld [vmem:[#allocation13 + $0x7a8] sm:$0xff]  ;;  %v1707_v24 = vld [vmem:[#allocation13 + $0x760] sm:$0xff] }
 0x2d8   : > { %2581 = vmatpush1.msra.mxu0 %v1515_v23  ;;  %2652 = vmatpush1.msra.mxu1 %v1517_v7  ;;  %v1715_v23 = vld [vmem:[#allocation13 + $0x7a0] sm:$0xff]  ;;  %v1717_v7 = vld [vmem:[#allocation13 + $0x7b0] sm:$0xff] }
 0x2d9   : > { %2582 = vmatprep.subr.mxu0 %v1508_v39  ;;  %2653 = vmatprep.subr.mxu1 %v1510_v45  ;;  %v1708_v39 = vld [vmem:[#allocation13 + $0x768] sm:$0xff]  ;;  %v1710_v45 = vld [vmem:[#allocation13 + $0x778] sm:$0xff]  ;;  %v1693_v34 = vld [vmem:[#allocation13 + $0x6f0] sm:$0xff] }
 0x2da   : > { %2583 = vmatpush1.msra.mxu0 %v1507_v29  ;;  %2654 = vmatpush1.msra.mxu1 %v1509_v38  ;;  %v1709_v29 = vld [vmem:[#allocation13 + $0x770] sm:$0xff]  ;;  %v1700_v38 = vld [vmem:[#allocation13 + $0x728] sm:$0xff] }
 0x2db   : > { %2584 = vmatprep.subr.mxu0 %v1500_v30  ;;  %2655 = vmatprep.subr.mxu1 %v1502_v31  ;;  %v1702_v30 = vld [vmem:[#allocation13 + $0x738] sm:$0xff]  ;;  %v1699_v31 = vld [vmem:[#allocation13 + $0x720] sm:$0xff] }
 0x2dc   : > { %2585 = vmatpush1.msra.mxu0 %v1499_v0  ;;  %2656 = vmatpush1.msra.mxu1 %v1501_v32  ;;  %v1701_v0 = vld [vmem:[#allocation13 + $0x730] sm:$0xff]  ;;  %v1692_v32 = vld [vmem:[#allocation13 + $0x6e8] sm:$0xff] }
 0x2dd   : > { %2586 = vmatprep.subr.mxu0 %v1492_v12  ;;  %2657 = vmatprep.subr.mxu1 %v1494_v33  ;;  %v1694_v12 = vld [vmem:[#allocation13 + $0x6f8] sm:$0xff]  ;;  %v1691_v33 = vld [vmem:[#allocation13 + $0x6e0] sm:$0xff] }
 0x2de   : > { %2587 = vmatpush1.msra.mxu0 %v1491_v42  ;;  %2658 = vmatpush1.msra.mxu1 %v1493_v43  ;;  %v1684_v42 = vld [vmem:[#allocation13 + $0x6a8] sm:$0xff]  ;;  %v1686_v43 = vld [vmem:[#allocation13 + $0x6b8] sm:$0xff] }
 0x2df   : > { %2588 = vmatprep.subr.mxu0 %v1484_v48  ;;  %2659 = vmatprep.subr.mxu1 %v1486_v62  ;;  %v1683_v48 = vld [vmem:[#allocation13 + $0x6a0] sm:$0xff]  ;;  %v1685_v62 = vld [vmem:[#allocation13 + $0x6b0] sm:$0xff] }
 0x2e0   : > { %2589 = vmatpush1.msra.mxu0 %v1483_v51  ;;  %2660 = vmatpush1.msra.mxu1 %v1485_v52  ;;  %v1676_v52 = vld [vmem:[#allocation13 + $0x668] sm:$0xff] }
 0x2e1   : > { %2590 = vmatprep.subr.mxu0 %v1476_v40  ;;  %2661 = vmatprep.subr.mxu1 %v1478_v41  ;;  %v6155_v51 = vpop.eup %6154  ;;  %v1678_v40 = vld [vmem:[#allocation13 + $0x678] sm:$0xff]  ;;  %v1675_v41 = vld [vmem:[#allocation13 + $0x660] sm:$0xff] }
 0x2e2   : > { %2591 = vmatpush1.msra.mxu0 %v1475_v22  ;;  %2662 = vmatpush1.msra.mxu1 %v1477_v63  ;;  %v1677_v22 = vld [vmem:[#allocation13 + $0x670] sm:$0xff]  ;;  %v1668_v63 = vld [vmem:[#allocation13 + $0x628] sm:$0xff] }
 0x2e3   : > { %2592 = vmatprep.subr.mxu0 %v1724_v1  ;;  %2663 = vmatprep.subr.mxu1 %v1726_v2  ;;  %v1670_v1 = vld [vmem:[#allocation13 + $0x638] sm:$0xff]  ;;  %v2808_v2 = vadd.f32 1.0, %v6155_v51  ;;  %v1620_v51 = vld [vmem:[#allocation13 + $0x4a8] sm:$0xff] }
 0x2e4   : > { %2593 = vmatpush2.msra.mxu0 %v1723_v15  ;;  %2664 = vmatpush2.msra.mxu1 %v1725_v19  ;;  %v1667_v15 = vld [vmem:[#allocation13 + $0x620] sm:$0xff]  ;;  %v1669_v19 = vld [vmem:[#allocation13 + $0x630] sm:$0xff] }
 0x2e5   : > { %2594 = vmatprep.subr.mxu0 %v1716_v46  ;;  %2665 = vmatprep.subr.mxu1 %v1718_v44  ;;  %v1660_v46 = vld [vmem:[#allocation13 + $0x5e8] sm:$0xff]  ;;  %v1662_v44 = vld [vmem:[#allocation13 + $0x5f8] sm:$0xff]  ;;  %6156 = vrcp.f32 %v2808_v2  ;;  %v1613_v2 = vld [vmem:[#allocation13 + $0x470] sm:$0xff] }
 0x2e6   : > { %2595 = vmatpush2.msra.mxu0 %v1715_v23  ;;  %2666 = vmatpush2.msra.mxu1 %v1717_v7  ;;  %v1659_v23 = vld [vmem:[#allocation13 + $0x5e0] sm:$0xff]  ;;  %v1661_v7 = vld [vmem:[#allocation13 + $0x5f0] sm:$0xff]  ;;  %6158 = vtanh.f32 %v9338_v55 }
 0x2e7   : > { %2596 = vmatprep.subr.mxu0 %v1708_v39  ;;  %2667 = vmatprep.subr.mxu1 %v1710_v45  ;;  %v1652_v39 = vld [vmem:[#allocation13 + $0x5a8] sm:$0xff]  ;;  %v1654_v45 = vld [vmem:[#allocation13 + $0x5b8] sm:$0xff] }
 0x2e8   : > { %2597 = vmatpush2.msra.mxu0 %v1707_v24  ;;  %2668 = vmatpush2.msra.mxu1 %v1709_v29  ;;  %v1651_v24 = vld [vmem:[#allocation13 + $0x5a0] sm:$0xff]  ;;  %v1653_v29 = vld [vmem:[#allocation13 + $0x5b0] sm:$0xff] }
 0x2e9   : > { %2598 = vmatprep.subr.mxu0 %v1700_v38  ;;  %2669 = vmatprep.subr.mxu1 %v1702_v30  ;;  %v1644_v38 = vld [vmem:[#allocation13 + $0x568] sm:$0xff]  ;;  %v1646_v30 = vld [vmem:[#allocation13 + $0x578] sm:$0xff] }
 0x2ea   : > { %2599 = vmatpush2.msra.mxu0 %v1699_v31  ;;  %2670 = vmatpush2.msra.mxu1 %v1701_v0  ;;  %v1643_v31 = vld [vmem:[#allocation13 + $0x560] sm:$0xff]  ;;  %v1645_v0 = vld [vmem:[#allocation13 + $0x570] sm:$0xff] }
 0x2eb   : > { %2600 = vmatprep.subr.mxu0 %v1692_v32  ;;  %2671 = vmatprep.subr.mxu1 %v1694_v12  ;;  %v1636_v32 = vld [vmem:[#allocation13 + $0x528] sm:$0xff]  ;;  %v1638_v12 = vld [vmem:[#allocation13 + $0x538] sm:$0xff] }
 0x2ec   : > { %2601 = vmatpush2.msra.mxu0 %v1691_v33  ;;  %2672 = vmatpush2.msra.mxu1 %v1693_v34  ;;  %v1635_v33 = vld [vmem:[#allocation13 + $0x520] sm:$0xff]  ;;  %v1637_v34 = vld [vmem:[#allocation13 + $0x530] sm:$0xff] }
 0x2ed   : > { %2602 = vmatprep.subr.mxu0 %v1684_v42  ;;  %2673 = vmatprep.subr.mxu1 %v1686_v43  ;;  %v1628_v42 = vld [vmem:[#allocation13 + $0x4e8] sm:$0xff]  ;;  %v1630_v43 = vld [vmem:[#allocation13 + $0x4f8] sm:$0xff] }
 0x2ee   : > { %2603 = vmatpush2.msra.mxu0 %v1683_v48  ;;  %2674 = vmatpush2.msra.mxu1 %v1685_v62  ;;  %v1627_v48 = vld [vmem:[#allocation13 + $0x4e0] sm:$0xff]  ;;  %v1629_v62 = vld [vmem:[#allocation13 + $0x4f0] sm:$0xff] }
 0x2ef   : > { %2604 = vmatprep.subr.mxu0 %v1676_v52  ;;  %2675 = vmatprep.subr.mxu1 %v1678_v40  ;;  %v1622_v52 = vld [vmem:[#allocation13 + $0x4b8] sm:$0xff]  ;;  %v1619_v40 = vld [vmem:[#allocation13 + $0x4a0] sm:$0xff] }
 0x2f0   : > { %2605 = vmatpush2.msra.mxu0 %v1675_v41  ;;  %2676 = vmatpush2.msra.mxu1 %v1677_v22  ;;  %v1621_v41 = vld [vmem:[#allocation13 + $0x4b0] sm:$0xff]  ;;  %v1612_v22 = vld [vmem:[#allocation13 + $0x468] sm:$0xff] }
 0x2f1   : > { %2606 = vmatprep.subr.mxu0 %v1668_v63  ;;  %2677 = vmatprep.subr.mxu1 %v1670_v1  ;;  %v1614_v63 = vld [vmem:[#allocation13 + $0x478] sm:$0xff]  ;;  %v1611_v1 = vld [vmem:[#allocation13 + $0x460] sm:$0xff] }
 0x2f2   : > { %2607 = vmatpush2.msra.mxu0 %v1667_v15  ;;  %2678 = vmatpush2.msra.mxu1 %v1669_v19  ;;  %v1604_v15 = vld [vmem:[#allocation13 + $0x428] sm:$0xff]  ;;  %v1606_v19 = vld [vmem:[#allocation13 + $0x438] sm:$0xff] }
 0x2f3   : > { %2608 = vmatprep.subr.mxu0 %v1660_v46  ;;  %2679 = vmatprep.subr.mxu1 %v1662_v44  ;;  %v1603_v46 = vld [vmem:[#allocation13 + $0x420] sm:$0xff]  ;;  %v6157_v44 = vpop.eup %6156 }
 0x2f4   : > { %2609 = vmatpush2.msra.mxu0 %v1659_v23  ;;  %2680 = vmatpush2.msra.mxu1 %v1661_v7  ;;  %v1605_v23 = vld [vmem:[#allocation13 + $0x430] sm:$0xff]  ;;  %v6159_v7 = vpop.eup %6158 }
 0x2f5   : > { %2610 = vmatprep.subr.mxu0 %v1652_v39  ;;  %2681 = vmatprep.subr.mxu1 %v1654_v45  ;;  %v9347_v39 = vmul.f32 %v6159_v7, %v6157_v44  ;;  %v6358_v45 = vld [vmem:[#allocation12 + $0x788] sm:$0xff]  ;;  %v6388_v7 = vld [vmem:[#allocation12 + $0x400] sm:$0xff] }
 0x2f6   : > { %2611 = vmatpush2.msra.mxu0 %v1651_v24  ;;  %2682 = vmatpush2.msra.mxu1 %v1653_v29  ;;  %v6359_v24 = vld [vmem:[#allocation12 + $0x798] sm:$0xff]  ;;  %v6360_v29 = vld [vmem:[#allocation12 + $0x780] sm:$0xff]  ;;  %v6386_v44 = vld [vmem:[#allocation12 + $0x408] sm:$0xff] }
 0x2f7   : > { %2612 = vmatprep.subr.mxu0 %v1644_v38  ;;  %2683 = vmatprep.subr.mxu1 %v1646_v30  ;;  %v6361_v38 = vld [vmem:[#allocation12 + $0x790] sm:$0xff]  ;;  %v6362_v30 = vld [vmem:[#allocation12 + $0x708] sm:$0xff] }
 0x2f8   : > { %2613 = vmatpush2.msra.mxu0 %v1643_v31  ;;  %2684 = vmatpush2.msra.mxu1 %v1645_v0  ;;  %v6364_v31 = vld [vmem:[#allocation12 + $0x700] sm:$0xff]  ;;  %v6366_v0 = vld [vmem:[#allocation12 + $0x688] sm:$0xff] }
 0x2f9   : > { %2614 = vmatprep.subr.mxu0 %v1636_v32  ;;  %2685 = vmatprep.subr.mxu1 %v1638_v12  ;;  %v6367_v32 = vld [vmem:[#allocation12 + $0x698] sm:$0xff]  ;;  %v6368_v12 = vld [vmem:[#allocation12 + $0x680] sm:$0xff] }
 0x2fa   : > { %2615 = vmatpush2.msra.mxu0 %v1635_v33  ;;  %2686 = vmatpush2.msra.mxu1 %v1637_v34  ;;  %v6369_v33 = vld [vmem:[#allocation12 + $0x690] sm:$0xff]  ;;  %v6370_v34 = vld [vmem:[#allocation12 + $0x608] sm:$0xff] }
 0x2fb   : > { %2616 = vmatprep.subr.mxu0 %v1628_v42  ;;  %2687 = vmatprep.subr.mxu1 %v1630_v43  ;;  %v6371_v42 = vld [vmem:[#allocation12 + $0x618] sm:$0xff]  ;;  %v6372_v43 = vld [vmem:[#allocation12 + $0x600] sm:$0xff] }
 0x2fc   : > { %2617 = vmatpush2.msra.mxu0 %v1627_v48  ;;  %2688 = vmatpush2.msra.mxu1 %v1629_v62  ;;  %v6373_v48 = vld [vmem:[#allocation12 + $0x610] sm:$0xff]  ;;  %v6374_v62 = vld [vmem:[#allocation12 + $0x588] sm:$0xff] }
 0x2fd   : > { %2618 = vmatprep.subr.mxu0 %v1620_v51  ;;  %2689 = vmatprep.subr.mxu1 %v1622_v52  ;;  %v6375_v51 = vld [vmem:[#allocation12 + $0x598] sm:$0xff]  ;;  %v6376_v52 = vld [vmem:[#allocation12 + $0x580] sm:$0xff] }
 0x2fe   : > { %2619 = vmatpush2.msra.mxu0 %v1619_v40  ;;  %2690 = vmatpush2.msra.mxu1 %v1621_v41  ;;  %v6377_v40 = vld [vmem:[#allocation12 + $0x590] sm:$0xff]  ;;  %v6378_v41 = vld [vmem:[#allocation12 + $0x508] sm:$0xff] }
 0x2ff   : > { %2620 = vmatprep.subr.mxu0 %v1612_v22  ;;  %2691 = vmatprep.subr.mxu1 %v1614_v63  ;;  %v6379_v22 = vld [vmem:[#allocation12 + $0x518] sm:$0xff]  ;;  %v6380_v63 = vld [vmem:[#allocation12 + $0x500] sm:$0xff] }
 0x300   : > { %2621 = vmatpush2.msra.mxu0 %v1611_v1  ;;  %2692 = vmatpush2.msra.mxu1 %v1613_v2  ;;  %v6381_v1 = vld [vmem:[#allocation12 + $0x510] sm:$0xff]  ;;  %v6382_v2 = vld [vmem:[#allocation12 + $0x488] sm:$0xff] }
 0x301   : > { %2622 = vmatprep.subr.mxu0 %v1604_v15  ;;  %2693 = vmatprep.subr.mxu1 %v1606_v19  ;;  %v6383_v15 = vld [vmem:[#allocation12 + $0x498] sm:$0xff]  ;;  %v6384_v19 = vld [vmem:[#allocation12 + $0x480] sm:$0xff] }
 0x302   : > { %2623 = vmatpush2.msra.mxu0 %v1603_v46  ;;  %2624 = vmatprep.mubr.f32.mxu0 %v9324_v47  ;;  %v6385_v46 = vld [vmem:[#allocation12 + $0x490] sm:$0xff] }
 0x303   : > { %2694 = vmatpush2.msra.mxu1 %v1605_v23  ;;  %2695 = vmatprep.mubr.f32.mxu1 %v9324_v47  ;;  %v6363_v47 = vld [vmem:[#allocation12 + $0x718] sm:$0xff] }
 0x304   : > { %2625 = vmatmul.mubr.f32.vlgmr.msra.gmra.mxu0 %v9328_v21  ;;  %2696 = vmatmul.mubr.f32.vlgmr.msra.gmra.mxu1 %v9328_v21  ;;  %v6365_v21 = vld [vmem:[#allocation12 + $0x710] sm:$0xff]  ;;  %v6387_v23 = vld [vmem:[#allocation12 + $0x418] sm:$0xff] }
 0x305   : > { %2833 = vmatprep.subr.mxu0 %v6358_v45  ;;  %2904 = vmatprep.subr.mxu1 %v6359_v24  ;;  %v6389_v45 = vld [vmem:[#allocation12 + $0x410] sm:$0xff]  ;;  %v6390_v24 = vld [vmem:[#allocation12 + $0x388] sm:$0xff] }
 0x306   : > { %2834 = vmatpush1.msra.mxu0 %v6360_v29  ;;  %2897 = vmatprep.mubr.f32.mxu0 %v9347_v39  ;;  %v6391_v29 = vld [vmem:[#allocation12 + $0x398] sm:$0xff] }
 0x307   : > { %2905 = vmatpush1.msra.mxu1 %v6361_v38  ;;  %2968 = vmatprep.mubr.f32.mxu1 %v9347_v39  ;;  %v6392_v38 = vld [vmem:[#allocation12 + $0x380] sm:$0xff] }
 0x308   : > { %2835 = vmatprep.subr.mxu0 %v6362_v30  ;;  %2906 = vmatprep.subr.mxu1 %v6363_v47  ;;  %v6393_v30 = vld [vmem:[#allocation12 + $0x390] sm:$0xff]  ;;  %v6394_v47 = vld [vmem:[#allocation12 + $0x308] sm:$0xff] }
 0x309   : > { %2836 = vmatpush1.msra.mxu0 %v6364_v31  ;;  %2907 = vmatpush1.msra.mxu1 %v6365_v21  ;;  %v6395_v31 = vld [vmem:[#allocation12 + $0x318] sm:$0xff]  ;;  %v6396_v21 = vld [vmem:[#allocation12 + $0x300] sm:$0xff] }
 0x30a   : > { %2837 = vmatprep.subr.mxu0 %v6366_v0  ;;  %2908 = vmatprep.subr.mxu1 %v6367_v32  ;;  %v6397_v0 = vld [vmem:[#allocation12 + $0x310] sm:$0xff]  ;;  %v6398_v32 = vld [vmem:[#allocation12 + $0x288] sm:$0xff] }
 0x30b   : > { %2838 = vmatpush1.msra.mxu0 %v6368_v12  ;;  %2909 = vmatpush1.msra.mxu1 %v6369_v33  ;;  %v6399_v12 = vld [vmem:[#allocation12 + $0x298] sm:$0xff]  ;;  %v5933_v33 = vmul.f32 -1.442695, %v9326_v20  ;;  %v6409_v20 = vld [vmem:[#allocation12 + $0x190] sm:$0xff] }
 0x30c   : > { %2839 = vmatprep.subr.mxu0 %v6370_v34  ;;  %2910 = vmatprep.subr.mxu1 %v6371_v42  ;;  %v6400_v34 = vld [vmem:[#allocation12 + $0x280] sm:$0xff]  ;;  %v6401_v42 = vld [vmem:[#allocation12 + $0x290] sm:$0xff] }
 0x30d   : > { %2840 = vmatpush1.msra.mxu0 %v6372_v43  ;;  %2911 = vmatpush1.msra.mxu1 %v6373_v48  ;;  %v6402_v43 = vld [vmem:[#allocation12 + $0x208] sm:$0xff]  ;;  %v6403_v48 = vld [vmem:[#allocation12 + $0x218] sm:$0xff]  ;;  %6160 = vpow2.f32 %v5933_v33 }
 0x30e   : > { %2841 = vmatprep.subr.mxu0 %v6374_v62  ;;  %2912 = vmatprep.subr.mxu1 %v6375_v51  ;;  %v6404_v62 = vld [vmem:[#allocation12 + $0x200] sm:$0xff]  ;;  %v6405_v51 = vld [vmem:[#allocation12 + $0x210] sm:$0xff]  ;;  %v6431_v33 = vld [vmem:[#allocation12 + $0xe98] sm:$0xff] }
 0x30f   : > { %2842 = vmatpush1.msra.mxu0 %v6376_v52  ;;  %2913 = vmatpush1.msra.mxu1 %v6377_v40  ;;  %v6406_v52 = vld [vmem:[#allocation12 + $0x188] sm:$0xff]  ;;  %v6407_v40 = vld [vmem:[#allocation12 + $0x198] sm:$0xff] }
 0x310   : > { %2843 = vmatprep.subr.mxu0 %v6378_v41  ;;  %2914 = vmatprep.subr.mxu1 %v6379_v22  ;;  %v6408_v41 = vld [vmem:[#allocation12 + $0x180] sm:$0xff]  ;;  %v6410_v22 = vld [vmem:[#allocation12 + $0x108] sm:$0xff] }
 0x311   : > { %2844 = vmatpush1.msra.mxu0 %v6380_v63  ;;  %2915 = vmatpush1.msra.mxu1 %v6381_v1  ;;  %v6411_v63 = vld [vmem:[#allocation12 + $0x118] sm:$0xff]  ;;  %v6412_v1 = vld [vmem:[#allocation12 + $0x100] sm:$0xff] }
 0x312   : > { %2845 = vmatprep.subr.mxu0 %v6382_v2  ;;  %2916 = vmatprep.subr.mxu1 %v6383_v15  ;;  %v6413_v2 = vld [vmem:[#allocation12 + $0x110] sm:$0xff]  ;;  %v6414_v15 = vld [vmem:[#allocation12 + $0x88] sm:$0xff] }
 0x313   : > { %2846 = vmatpush1.msra.mxu0 %v6384_v19  ;;  %2917 = vmatpush1.msra.mxu1 %v6385_v46  ;;  %v6415_v19 = vld [vmem:[#allocation12 + $0x98] sm:$0xff]  ;;  %v6416_v46 = vld [vmem:[#allocation12 + $0x80] sm:$0xff] }
 0x314   : > { %2847 = vmatprep.subr.mxu0 %v6386_v44  ;;  %2918 = vmatprep.subr.mxu1 %v6387_v23  ;;  %v6417_v44 = vld [vmem:[#allocation12 + $0x90] sm:$0xff]  ;;  %v6418_v23 = vld [vmem:[#allocation12 + $0x8] sm:$0xff] }
 0x315   : > { %2848 = vmatpush1.msra.mxu0 %v6388_v7  ;;  %2919 = vmatpush1.msra.mxu1 %v6389_v45  ;;  %v6419_v7 = vld [vmem:[#allocation12 + $0x18] sm:$0xff]  ;;  %v6420_v45 = vld [vmem:[#allocation12] sm:$0xff] }
 0x316   : > { %2849 = vmatprep.subr.mxu0 %v6390_v24  ;;  %2920 = vmatprep.subr.mxu1 %v6391_v29  ;;  %v6421_v24 = vld [vmem:[#allocation12 + $0x10] sm:$0xff]  ;;  %v6422_v29 = vld [vmem:[#allocation12 + $0xf88] sm:$0xff] }
 0x317   : > { %2850 = vmatpush1.msra.mxu0 %v6392_v38  ;;  %2921 = vmatpush1.msra.mxu1 %v6393_v30  ;;  %v6423_v38 = vld [vmem:[#allocation12 + $0xf98] sm:$0xff]  ;;  %v6424_v30 = vld [vmem:[#allocation12 + $0xf80] sm:$0xff] }
 0x318   : > { %2851 = vmatprep.subr.mxu0 %v6394_v47  ;;  %2922 = vmatprep.subr.mxu1 %v6395_v31  ;;  %v6425_v47 = vld [vmem:[#allocation12 + $0xf90] sm:$0xff]  ;;  %v6426_v31 = vld [vmem:[#allocation12 + $0xf08] sm:$0xff] }
 0x319   : > { %2852 = vmatpush1.msra.mxu0 %v6396_v21  ;;  %2923 = vmatpush1.msra.mxu1 %v6397_v0  ;;  %v6427_v21 = vld [vmem:[#allocation12 + $0xf18] sm:$0xff]  ;;  %v6428_v0 = vld [vmem:[#allocation12 + $0xf00] sm:$0xff] }
 0x31a   : > { %2853 = vmatprep.subr.mxu0 %v6398_v32  ;;  %2924 = vmatprep.subr.mxu1 %v6399_v12  ;;  %v6429_v32 = vld [vmem:[#allocation12 + $0xf10] sm:$0xff]  ;;  %v6430_v12 = vld [vmem:[#allocation12 + $0xe88] sm:$0xff] }
 0x31b   : > { %2854 = vmatpush1.msra.mxu0 %v6400_v34  ;;  %2925 = vmatpush1.msra.mxu1 %v6401_v42  ;;  %v6432_v34 = vld [vmem:[#allocation12 + $0xe80] sm:$0xff]  ;;  %v6433_v42 = vld [vmem:[#allocation12 + $0xe90] sm:$0xff] }
 0x31c   : > { %2855 = vmatprep.subr.mxu0 %v6402_v43  ;;  %2926 = vmatprep.subr.mxu1 %v6403_v48  ;;  %v6161_v43 = vpop.eup %6160  ;;  %v6434_v48 = vld [vmem:[#allocation12 + $0xe08] sm:$0xff] }
 0x31d   : > { %2856 = vmatpush1.msra.mxu0 %v6404_v62  ;;  %2927 = vmatpush1.msra.mxu1 %v6405_v51  ;;  %v6435_v62 = vld [vmem:[#allocation12 + $0xe18] sm:$0xff]  ;;  %v6436_v51 = vld [vmem:[#allocation12 + $0xe00] sm:$0xff] }
 0x31e   : > { %2857 = vmatprep.subr.mxu0 %v6406_v52  ;;  %2928 = vmatprep.subr.mxu1 %v6407_v40  ;;  %v6437_v52 = vld [vmem:[#allocation12 + $0xe10] sm:$0xff]  ;;  %v6438_v40 = vld [vmem:[#allocation12 + $0xd88] sm:$0xff] }
 0x31f   : > { %2858 = vmatpush1.msra.mxu0 %v6408_v41  ;;  %2929 = vmatpush1.msra.mxu1 %v6409_v20  ;;  %v6439_v41 = vld [vmem:[#allocation12 + $0xd98] sm:$0xff]  ;;  %v2807_v20 = vadd.f32 1.0, %v6161_v43  ;;  %v6464_v43 = vld [vmem:[#allocation12 + $0xa80] sm:$0xff] }
 0x320   : > { %2859 = vmatprep.subr.mxu0 %v6410_v22  ;;  %2930 = vmatprep.subr.mxu1 %v6411_v63  ;;  %v6440_v22 = vld [vmem:[#allocation12 + $0xd80] sm:$0xff]  ;;  %v6441_v63 = vld [vmem:[#allocation12 + $0xd90] sm:$0xff] }
 0x321   : > { %2860 = vmatpush1.msra.mxu0 %v6412_v1  ;;  %2931 = vmatpush1.msra.mxu1 %v6413_v2  ;;  %v6442_v1 = vld [vmem:[#allocation12 + $0xd08] sm:$0xff]  ;;  %v6443_v2 = vld [vmem:[#allocation12 + $0xd18] sm:$0xff]  ;;  %6162 = vrcp.f32 %v2807_v20 }
 0x322   : > { %2861 = vmatprep.subr.mxu0 %v6414_v15  ;;  %2932 = vmatprep.subr.mxu1 %v6415_v19  ;;  %v6444_v15 = vld [vmem:[#allocation12 + $0xd00] sm:$0xff]  ;;  %v6445_v19 = vld [vmem:[#allocation12 + $0xd10] sm:$0xff]  ;;  %6164 = vtanh.f32 %v9335_v35  ;;  %v6471_v20 = vld [vmem:[#allocation12 + $0x998] sm:$0xff] }
 0x323   : > { %2862 = vmatpush1.msra.mxu0 %v6416_v46  ;;  %2933 = vmatpush1.msra.mxu1 %v6417_v44  ;;  %v6446_v46 = vld [vmem:[#allocation12 + $0xc88] sm:$0xff]  ;;  %v6447_v44 = vld [vmem:[#allocation12 + $0xc98] sm:$0xff] }
 0x324   : > { %2863 = vmatprep.subr.mxu0 %v6418_v23  ;;  %2934 = vmatprep.subr.mxu1 %v6419_v7  ;;  %v6448_v23 = vld [vmem:[#allocation12 + $0xc80] sm:$0xff]  ;;  %v6449_v7 = vld [vmem:[#allocation12 + $0xc90] sm:$0xff] }
 0x325   : > { %2864 = vmatpush1.msra.mxu0 %v6420_v45  ;;  %2935 = vmatpush1.msra.mxu1 %v6421_v24  ;;  %v6450_v45 = vld [vmem:[#allocation12 + $0xc08] sm:$0xff]  ;;  %v6451_v24 = vld [vmem:[#allocation12 + $0xc18] sm:$0xff] }
 0x326   : > { %2865 = vmatprep.subr.mxu0 %v6422_v29  ;;  %2936 = vmatprep.subr.mxu1 %v6423_v38  ;;  %v6452_v29 = vld [vmem:[#allocation12 + $0xc00] sm:$0xff]  ;;  %v6453_v38 = vld [vmem:[#allocation12 + $0xc10] sm:$0xff] }
 0x327   : > { %2866 = vmatpush2.msra.mxu0 %v6424_v30  ;;  %2937 = vmatpush2.msra.mxu1 %v6425_v47  ;;  %v6454_v30 = vld [vmem:[#allocation12 + $0xb88] sm:$0xff]  ;;  %v6455_v47 = vld [vmem:[#allocation12 + $0xb98] sm:$0xff] }
 0x328   : > { %2867 = vmatprep.subr.mxu0 %v6426_v31  ;;  %2938 = vmatprep.subr.mxu1 %v6427_v21  ;;  %v6456_v31 = vld [vmem:[#allocation12 + $0xb80] sm:$0xff]  ;;  %v6457_v21 = vld [vmem:[#allocation12 + $0xb90] sm:$0xff] }
 0x329   : > { %2868 = vmatpush2.msra.mxu0 %v6428_v0  ;;  %2939 = vmatpush2.msra.mxu1 %v6429_v32  ;;  %v6458_v0 = vld [vmem:[#allocation12 + $0xb08] sm:$0xff]  ;;  %v6459_v32 = vld [vmem:[#allocation12 + $0xb18] sm:$0xff] }
 0x32a   : > { %2869 = vmatprep.subr.mxu0 %v6430_v12  ;;  %2940 = vmatprep.subr.mxu1 %v6431_v33  ;;  %v6460_v12 = vld [vmem:[#allocation12 + $0xb00] sm:$0xff]  ;;  %v6461_v33 = vld [vmem:[#allocation12 + $0xb10] sm:$0xff] }
 0x32b   : > { %2870 = vmatpush2.msra.mxu0 %v6432_v34  ;;  %2941 = vmatpush2.msra.mxu1 %v6433_v42  ;;  %v6462_v34 = vld [vmem:[#allocation12 + $0xa88] sm:$0xff]  ;;  %v6463_v42 = vld [vmem:[#allocation12 + $0xa98] sm:$0xff] }
 0x32c   : > { %2871 = vmatprep.subr.mxu0 %v6434_v48  ;;  %2942 = vmatprep.subr.mxu1 %v6435_v62  ;;  %v6465_v48 = vld [vmem:[#allocation12 + $0xa90] sm:$0xff]  ;;  %v6466_v62 = vld [vmem:[#allocation12 + $0xa08] sm:$0xff] }
 0x32d   : > { %2872 = vmatpush2.msra.mxu0 %v6436_v51  ;;  %2943 = vmatpush2.msra.mxu1 %v6437_v52  ;;  %v6467_v51 = vld [vmem:[#allocation12 + $0xa18] sm:$0xff]  ;;  %v6468_v52 = vld [vmem:[#allocation12 + $0xa00] sm:$0xff] }
 0x32e   : > { %2873 = vmatprep.subr.mxu0 %v6438_v40  ;;  %2944 = vmatprep.subr.mxu1 %v6439_v41  ;;  %v6469_v40 = vld [vmem:[#allocation12 + $0xa10] sm:$0xff]  ;;  %v6470_v41 = vld [vmem:[#allocation12 + $0x988] sm:$0xff] }
 0x32f   : > { %2874 = vmatpush2.msra.mxu0 %v6440_v22  ;;  %2945 = vmatpush2.msra.mxu1 %v6441_v63  ;;  %v6472_v22 = vld [vmem:[#allocation12 + $0x980] sm:$0xff]  ;;  %v6473_v63 = vld [vmem:[#allocation12 + $0x990] sm:$0xff] }
 0x330   : > { %2875 = vmatprep.subr.mxu0 %v6442_v1  ;;  %2946 = vmatprep.subr.mxu1 %v6443_v2  ;;  %v6163_v1 = vpop.eup %6162  ;;  %v6474_v2 = vld [vmem:[#allocation12 + $0x908] sm:$0xff] }
 0x331   : > { %2876 = vmatpush2.msra.mxu0 %v6444_v15  ;;  %2947 = vmatpush2.msra.mxu1 %v6445_v19  ;;  %v6475_v15 = vld [vmem:[#allocation12 + $0x918] sm:$0xff]  ;;  %v6165_v19 = vpop.eup %6164 }
 0x332   : > { %2877 = vmatprep.subr.mxu0 %v6446_v46  ;;  %2948 = vmatprep.subr.mxu1 %v6447_v44  ;;  %v6476_v46 = vld [vmem:[#allocation12 + $0x900] sm:$0xff]  ;;  %v6477_v44 = vld [vmem:[#allocation12 + $0x910] sm:$0xff] }
 0x333   : > { %2878 = vmatpush2.msra.mxu0 %v6448_v23  ;;  %2949 = vmatpush2.msra.mxu1 %v6449_v7  ;;  %v6478_v23 = vld [vmem:[#allocation12 + $0x888] sm:$0xff]  ;;  %v6479_v7 = vld [vmem:[#allocation12 + $0x898] sm:$0xff] }
 0x334   : > { %2879 = vmatprep.subr.mxu0 %v6450_v45  ;;  %2950 = vmatprep.subr.mxu1 %v6451_v24  ;;  %v6480_v45 = vld [vmem:[#allocation12 + $0x880] sm:$0xff]  ;;  %v6481_v24 = vld [vmem:[#allocation12 + $0x890] sm:$0xff] }
 0x335   : > { %2880 = vmatpush2.msra.mxu0 %v6452_v29  ;;  %2951 = vmatpush2.msra.mxu1 %v6453_v38  ;;  %v6482_v29 = vld [vmem:[#allocation12 + $0x808] sm:$0xff]  ;;  %v6483_v38 = vld [vmem:[#allocation12 + $0x818] sm:$0xff] }
 0x336   : > { %2881 = vmatprep.subr.mxu0 %v6454_v30  ;;  %2952 = vmatprep.subr.mxu1 %v6455_v47  ;;  %v9353_v30 = vmul.f32 %v6165_v19, %v6163_v1  ;;  %v6484_v47 = vld [vmem:[#allocation12 + $0x800] sm:$0xff]  ;;  %v6503_v1 = vld [vmem:[#allocation12 + $0x5b8] sm:$0xff]  ;;  %v6506_v19 = vld [vmem:[#allocation12 + $0x528] sm:$0xff] }
 0x337   : > { %2882 = vmatpush2.msra.mxu0 %v6456_v31  ;;  %2953 = vmatpush2.msra.mxu1 %v6457_v21  ;;  %v6485_v31 = vld [vmem:[#allocation12 + $0x810] sm:$0xff]  ;;  %v6486_v21 = vld [vmem:[#allocation12 + $0x7a8] sm:$0xff] }
 0x338   : > { %2883 = vmatprep.subr.mxu0 %v6458_v0  ;;  %2954 = vmatprep.subr.mxu1 %v6459_v32  ;;  %v6487_v0 = vld [vmem:[#allocation12 + $0x7b8] sm:$0xff]  ;;  %v6488_v32 = vld [vmem:[#allocation12 + $0x7a0] sm:$0xff] }
 0x339   : > { %2884 = vmatpush2.msra.mxu0 %v6460_v12  ;;  %2955 = vmatpush2.msra.mxu1 %v6461_v33  ;;  %v6489_v12 = vld [vmem:[#allocation12 + $0x7b0] sm:$0xff]  ;;  %v6490_v33 = vld [vmem:[#allocation12 + $0x728] sm:$0xff] }
 0x33a   : > { %2885 = vmatprep.subr.mxu0 %v6462_v34  ;;  %2956 = vmatprep.subr.mxu1 %v6463_v42  ;;  %v6491_v34 = vld [vmem:[#allocation12 + $0x738] sm:$0xff]  ;;  %v6492_v42 = vld [vmem:[#allocation12 + $0x720] sm:$0xff] }
 0x33b   : > { %2886 = vmatpush2.msra.mxu0 %v6464_v43  ;;  %2957 = vmatpush2.msra.mxu1 %v6465_v48  ;;  %v6493_v43 = vld [vmem:[#allocation12 + $0x730] sm:$0xff]  ;;  %v6494_v48 = vld [vmem:[#allocation12 + $0x6a8] sm:$0xff] }
 0x33c   : > { %2887 = vmatprep.subr.mxu0 %v6466_v62  ;;  %2958 = vmatprep.subr.mxu1 %v6467_v51  ;;  %v6495_v62 = vld [vmem:[#allocation12 + $0x6b8] sm:$0xff]  ;;  %v6496_v51 = vld [vmem:[#allocation12 + $0x6a0] sm:$0xff] }
 0x33d   : > { %2888 = vmatpush2.msra.mxu0 %v6468_v52  ;;  %2959 = vmatpush2.msra.mxu1 %v6469_v40  ;;  %v6497_v52 = vld [vmem:[#allocation12 + $0x6b0] sm:$0xff]  ;;  %v6498_v40 = vld [vmem:[#allocation12 + $0x628] sm:$0xff] }
 0x33e   : > { %2889 = vmatprep.subr.mxu0 %v6470_v41  ;;  %2960 = vmatprep.subr.mxu1 %v6471_v20  ;;  %v6499_v41 = vld [vmem:[#allocation12 + $0x638] sm:$0xff]  ;;  %v6500_v20 = vld [vmem:[#allocation12 + $0x620] sm:$0xff] }
 0x33f   : > { %2890 = vmatpush2.msra.mxu0 %v6472_v22  ;;  %2961 = vmatpush2.msra.mxu1 %v6473_v63  ;;  %v6501_v22 = vld [vmem:[#allocation12 + $0x630] sm:$0xff]  ;;  %v6502_v63 = vld [vmem:[#allocation12 + $0x5a8] sm:$0xff] }
 0x340   : > { %2891 = vmatprep.subr.mxu0 %v6474_v2  ;;  %2962 = vmatprep.subr.mxu1 %v6475_v15  ;;  %v6504_v2 = vld [vmem:[#allocation12 + $0x5a0] sm:$0xff]  ;;  %v6505_v15 = vld [vmem:[#allocation12 + $0x5b0] sm:$0xff] }
 0x341   : > { %2892 = vmatpush2.msra.mxu0 %v6476_v46  ;;  %2963 = vmatpush2.msra.mxu1 %v6477_v44  ;;  %v6507_v46 = vld [vmem:[#allocation12 + $0x538] sm:$0xff]  ;;  %v6508_v44 = vld [vmem:[#allocation12 + $0x520] sm:$0xff] }
 0x342   : > { %2893 = vmatprep.subr.mxu0 %v6478_v23  ;;  %2964 = vmatprep.subr.mxu1 %v6479_v7  ;;  %v6509_v23 = vld [vmem:[#allocation12 + $0x530] sm:$0xff]  ;;  %v6510_v7 = vld [vmem:[#allocation12 + $0x4a8] sm:$0xff] }
 0x343   : > { %2894 = vmatpush2.msra.mxu0 %v6480_v45  ;;  %2965 = vmatpush2.msra.mxu1 %v6481_v24  ;;  %v6511_v45 = vld [vmem:[#allocation12 + $0x4b8] sm:$0xff]  ;;  %v6512_v24 = vld [vmem:[#allocation12 + $0x4a0] sm:$0xff] }
 0x344   : > { %2895 = vmatprep.subr.mxu0 %v6482_v29  ;;  %2966 = vmatprep.subr.mxu1 %v6483_v38  ;;  %v6513_v29 = vld [vmem:[#allocation12 + $0x4b0] sm:$0xff]  ;;  %v6514_v38 = vld [vmem:[#allocation12 + $0x428] sm:$0xff] }
 0x345   : > { %2896 = vmatpush2.msra.mxu0 %v6484_v47  ;;  %2967 = vmatpush2.msra.mxu1 %v6485_v31  ;;  %v6515_v47 = vld [vmem:[#allocation12 + $0x438] sm:$0xff]  ;;  %v6516_v31 = vld [vmem:[#allocation12 + $0x420] sm:$0xff] }
 0x346   : > { %2898 = vmatmul.mubr.f32.vlgmr.msra.gmra.mxu0 %v9353_v30  ;;  %2969 = vmatmul.mubr.f32.vlgmr.msra.gmra.mxu1 %v9353_v30 }
 0x347   : > { %2975 = vmatprep.subr.mxu0 %v6486_v21  ;;  %3046 = vmatprep.subr.mxu1 %v6487_v0  ;;  %v6517_v21 = vld [vmem:[#allocation12 + $0x430] sm:$0xff]  ;;  %v6518_v0 = vld [vmem:[#allocation12 + $0x3a8] sm:$0xff] }
 0x348   : > { %2976 = vmatpush1.msra.mxu0 %v6488_v32  ;;  %3039 = vmatprep.mubr.f32.mxu0 %v9347_v39  ;;  %v6519_v32 = vld [vmem:[#allocation12 + $0x3b8] sm:$0xff] }
 0x349   : > { %3047 = vmatpush1.msra.mxu1 %v6489_v12  ;;  %3110 = vmatprep.mubr.f32.mxu1 %v9347_v39  ;;  %v6520_v12 = vld [vmem:[#allocation12 + $0x3a0] sm:$0xff] }
 0x34a   : > { %2977 = vmatprep.subr.mxu0 %v6490_v33  ;;  %3048 = vmatprep.subr.mxu1 %v6491_v34  ;;  %v6521_v33 = vld [vmem:[#allocation12 + $0x3b0] sm:$0xff]  ;;  %v6522_v34 = vld [vmem:[#allocation12 + $0x328] sm:$0xff] }
 0x34b   : > { %2978 = vmatpush1.msra.mxu0 %v6492_v42  ;;  %3049 = vmatpush1.msra.mxu1 %v6493_v43  ;;  %v6523_v42 = vld [vmem:[#allocation12 + $0x338] sm:$0xff]  ;;  %v6524_v43 = vld [vmem:[#allocation12 + $0x320] sm:$0xff] }
 0x34c   : > { %2979 = vmatprep.subr.mxu0 %v6494_v48  ;;  %3050 = vmatprep.subr.mxu1 %v6495_v62  ;;  %v6525_v48 = vld [vmem:[#allocation12 + $0x330] sm:$0xff]  ;;  %v6526_v62 = vld [vmem:[#allocation12 + $0x2a8] sm:$0xff] }
 0x34d   : > { %2980 = vmatpush1.msra.mxu0 %v6496_v51  ;;  %3051 = vmatpush1.msra.mxu1 %v6497_v52  ;;  %v6527_v51 = vld [vmem:[#allocation12 + $0x2b8] sm:$0xff]  ;;  %v6528_v52 = vld [vmem:[#allocation12 + $0x2a0] sm:$0xff] }
 0x34e   : > { %2981 = vmatprep.subr.mxu0 %v6498_v40  ;;  %3052 = vmatprep.subr.mxu1 %v6499_v41  ;;  %v6529_v40 = vld [vmem:[#allocation12 + $0x2b0] sm:$0xff]  ;;  %v6530_v41 = vld [vmem:[#allocation12 + $0x228] sm:$0xff] }
 0x34f   : > { %2982 = vmatpush1.msra.mxu0 %v6500_v20  ;;  %3053 = vmatpush1.msra.mxu1 %v6501_v22  ;;  %v6531_v20 = vld [vmem:[#allocation12 + $0x238] sm:$0xff]  ;;  %v6532_v22 = vld [vmem:[#allocation12 + $0x220] sm:$0xff] }
 0x350   : > { %2983 = vmatprep.subr.mxu0 %v6502_v63  ;;  %3054 = vmatprep.subr.mxu1 %v6503_v1  ;;  %v6533_v63 = vld [vmem:[#allocation12 + $0x230] sm:$0xff]  ;;  %v6534_v1 = vld [vmem:[#allocation12 + $0x1a8] sm:$0xff] }
 0x351   : > { %2984 = vmatpush1.msra.mxu0 %v6504_v2  ;;  %3055 = vmatpush1.msra.mxu1 %v6505_v15  ;;  %v6535_v2 = vld [vmem:[#allocation12 + $0x1b8] sm:$0xff]  ;;  %v6536_v15 = vld [vmem:[#allocation12 + $0x1a0] sm:$0xff] }
 0x352   : > { %2985 = vmatprep.subr.mxu0 %v6506_v19  ;;  %3056 = vmatprep.subr.mxu1 %v6507_v46  ;;  %v6537_v19 = vld [vmem:[#allocation12 + $0x1b0] sm:$0xff]  ;;  %v6538_v46 = vld [vmem:[#allocation12 + $0x128] sm:$0xff] }
 0x353   : > { %2986 = vmatpush1.msra.mxu0 %v6508_v44  ;;  %3057 = vmatpush1.msra.mxu1 %v6509_v23  ;;  %v6539_v44 = vld [vmem:[#allocation12 + $0x138] sm:$0xff]  ;;  %v6540_v23 = vld [vmem:[#allocation12 + $0x120] sm:$0xff] }
 0x354   : > { %2987 = vmatprep.subr.mxu0 %v6510_v7  ;;  %3058 = vmatprep.subr.mxu1 %v6511_v45  ;;  %v6541_v7 = vld [vmem:[#allocation12 + $0x130] sm:$0xff]  ;;  %v6542_v45 = vld [vmem:[#allocation12 + $0xa8] sm:$0xff] }
 0x355   : > { %2988 = vmatpush1.msra.mxu0 %v6512_v24  ;;  %3059 = vmatpush1.msra.mxu1 %v6513_v29  ;;  %v6543_v24 = vld [vmem:[#allocation12 + $0xb8] sm:$0xff]  ;;  %v6544_v29 = vld [vmem:[#allocation12 + $0xa0] sm:$0xff] }
 0x356   : > { %2989 = vmatprep.subr.mxu0 %v6514_v38  ;;  %3060 = vmatprep.subr.mxu1 %v6515_v47  ;;  %v6545_v38 = vld [vmem:[#allocation12 + $0xb0] sm:$0xff]  ;;  %v6546_v47 = vld [vmem:[#allocation12 + $0x28] sm:$0xff] }
 0x357   : > { %2990 = vmatpush1.msra.mxu0 %v6516_v31  ;;  %3061 = vmatpush1.msra.mxu1 %v6517_v21  ;;  %v6547_v31 = vld [vmem:[#allocation12 + $0x38] sm:$0xff]  ;;  %v6548_v21 = vld [vmem:[#allocation12 + $0x20] sm:$0xff] }
 0x358   : > { %2991 = vmatprep.subr.mxu0 %v6518_v0  ;;  %3062 = vmatprep.subr.mxu1 %v6519_v32  ;;  %v6549_v0 = vld [vmem:[#allocation12 + $0x30] sm:$0xff]  ;;  %v6550_v32 = vld [vmem:[#allocation12 + $0xfa8] sm:$0xff] }
 0x359   : > { %2992 = vmatpush1.msra.mxu0 %v6520_v12  ;;  %3063 = vmatpush1.msra.mxu1 %v6521_v33  ;;  %v6551_v12 = vld [vmem:[#allocation12 + $0xfb8] sm:$0xff]  ;;  %v6552_v33 = vld [vmem:[#allocation12 + $0xfa0] sm:$0xff] }
 0x35a   : > { %2993 = vmatprep.subr.mxu0 %v6522_v34  ;;  %3064 = vmatprep.subr.mxu1 %v6523_v42  ;;  %v6553_v34 = vld [vmem:[#allocation12 + $0xfb0] sm:$0xff]  ;;  %v6554_v42 = vld [vmem:[#allocation12 + $0xf28] sm:$0xff] }
 0x35b   : > { %2994 = vmatpush1.msra.mxu0 %v6524_v43  ;;  %3065 = vmatpush1.msra.mxu1 %v6525_v48  ;;  %v6555_v43 = vld [vmem:[#allocation12 + $0xf38] sm:$0xff]  ;;  %v6556_v48 = vld [vmem:[#allocation12 + $0xf20] sm:$0xff] }
 0x35c   : > { %2995 = vmatprep.subr.mxu0 %v6526_v62  ;;  %3066 = vmatprep.subr.mxu1 %v6527_v51  ;;  %v6557_v62 = vld [vmem:[#allocation12 + $0xf30] sm:$0xff]  ;;  %v6558_v51 = vld [vmem:[#allocation12 + $0xea8] sm:$0xff] }
 0x35d   : > { %2996 = vmatpush1.msra.mxu0 %v6528_v52  ;;  %3067 = vmatpush1.msra.mxu1 %v6529_v40  ;;  %v6559_v52 = vld [vmem:[#allocation12 + $0xeb8] sm:$0xff]  ;;  %v6560_v40 = vld [vmem:[#allocation12 + $0xea0] sm:$0xff] }
 0x35e   : > { %2997 = vmatprep.subr.mxu0 %v6530_v41  ;;  %3068 = vmatprep.subr.mxu1 %v6531_v20  ;;  %v6561_v41 = vld [vmem:[#allocation12 + $0xeb0] sm:$0xff]  ;;  %v6562_v20 = vld [vmem:[#allocation12 + $0xe28] sm:$0xff] }
 0x35f   : > { %2998 = vmatpush1.msra.mxu0 %v6532_v22  ;;  %3069 = vmatpush1.msra.mxu1 %v6533_v63  ;;  %v6563_v22 = vld [vmem:[#allocation12 + $0xe38] sm:$0xff]  ;;  %v6564_v63 = vld [vmem:[#allocation12 + $0xe20] sm:$0xff] }
 0x360   : > { %2999 = vmatprep.subr.mxu0 %v6534_v1  ;;  %3070 = vmatprep.subr.mxu1 %v6535_v2  ;;  %v6565_v1 = vld [vmem:[#allocation12 + $0xe30] sm:$0xff]  ;;  %v6566_v2 = vld [vmem:[#allocation12 + $0xda8] sm:$0xff] }
 0x361   : > { %3000 = vmatpush1.msra.mxu0 %v6536_v15  ;;  %3071 = vmatpush1.msra.mxu1 %v6537_v19  ;;  %v6567_v15 = vld [vmem:[#allocation12 + $0xdb8] sm:$0xff]  ;;  %v6568_v19 = vld [vmem:[#allocation12 + $0xda0] sm:$0xff] }
 0x362   : > { %3001 = vmatprep.subr.mxu0 %v6538_v46  ;;  %3072 = vmatprep.subr.mxu1 %v6539_v44  ;;  %v6569_v46 = vld [vmem:[#allocation12 + $0xdb0] sm:$0xff]  ;;  %v6570_v44 = vld [vmem:[#allocation12 + $0xd28] sm:$0xff] }
 0x363   : > { %3002 = vmatpush1.msra.mxu0 %v6540_v23  ;;  %3073 = vmatpush1.msra.mxu1 %v6541_v7  ;;  %v6571_v23 = vld [vmem:[#allocation12 + $0xd38] sm:$0xff]  ;;  %v6572_v7 = vld [vmem:[#allocation12 + $0xd20] sm:$0xff] }
 0x364   : > { %3003 = vmatprep.subr.mxu0 %v6542_v45  ;;  %3074 = vmatprep.subr.mxu1 %v6543_v24  ;;  %v6573_v45 = vld [vmem:[#allocation12 + $0xd30] sm:$0xff]  ;;  %v6574_v24 = vld [vmem:[#allocation12 + $0xca8] sm:$0xff] }
 0x365   : > { %3004 = vmatpush1.msra.mxu0 %v6544_v29  ;;  %3075 = vmatpush1.msra.mxu1 %v6545_v38  ;;  %v6575_v29 = vld [vmem:[#allocation12 + $0xcb8] sm:$0xff]  ;;  %v6576_v38 = vld [vmem:[#allocation12 + $0xca0] sm:$0xff] }
 0x366   : > { %3005 = vmatprep.subr.mxu0 %v6546_v47  ;;  %3076 = vmatprep.subr.mxu1 %v6547_v31  ;;  %v6577_v47 = vld [vmem:[#allocation12 + $0xcb0] sm:$0xff]  ;;  %v6578_v31 = vld [vmem:[#allocation12 + $0xc28] sm:$0xff] }
 0x367   : > { %3006 = vmatpush1.msra.mxu0 %v6548_v21  ;;  %3077 = vmatpush1.msra.mxu1 %v6549_v0  ;;  %v6579_v21 = vld [vmem:[#allocation12 + $0xc38] sm:$0xff]  ;;  %v6580_v0 = vld [vmem:[#allocation12 + $0xc20] sm:$0xff] }
 0x368   : > { %3007 = vmatprep.subr.mxu0 %v6550_v32  ;;  %3078 = vmatprep.subr.mxu1 %v6551_v12  ;;  %v6581_v32 = vld [vmem:[#allocation12 + $0xc30] sm:$0xff]  ;;  %v6582_v12 = vld [vmem:[#allocation12 + $0xba8] sm:$0xff] }
 0x369   : > { %3008 = vmatpush2.msra.mxu0 %v6552_v33  ;;  %3079 = vmatpush2.msra.mxu1 %v6553_v34  ;;  %v6583_v33 = vld [vmem:[#allocation12 + $0xbb8] sm:$0xff]  ;;  %v6584_v34 = vld [vmem:[#allocation12 + $0xba0] sm:$0xff] }
 0x36a   : > { %3009 = vmatprep.subr.mxu0 %v6554_v42  ;;  %3080 = vmatprep.subr.mxu1 %v6555_v43  ;;  %v6585_v42 = vld [vmem:[#allocation12 + $0xbb0] sm:$0xff]  ;;  %v6586_v43 = vld [vmem:[#allocation12 + $0xb28] sm:$0xff] }
 0x36b   : > { %3010 = vmatpush2.msra.mxu0 %v6556_v48  ;;  %3081 = vmatpush2.msra.mxu1 %v6557_v62  ;;  %v6587_v48 = vld [vmem:[#allocation12 + $0xb38] sm:$0xff]  ;;  %v6588_v62 = vld [vmem:[#allocation12 + $0xb20] sm:$0xff] }
 0x36c   : > { %3011 = vmatprep.subr.mxu0 %v6558_v51  ;;  %3082 = vmatprep.subr.mxu1 %v6559_v52  ;;  %v6589_v51 = vld [vmem:[#allocation12 + $0xb30] sm:$0xff]  ;;  %v6590_v52 = vld [vmem:[#allocation12 + $0xaa8] sm:$0xff] }
 0x36d   : > { %3012 = vmatpush2.msra.mxu0 %v6560_v40  ;;  %3083 = vmatpush2.msra.mxu1 %v6561_v41  ;;  %v6591_v40 = vld [vmem:[#allocation12 + $0xab8] sm:$0xff]  ;;  %v6592_v41 = vld [vmem:[#allocation12 + $0xaa0] sm:$0xff] }
 0x36e   : > { %3013 = vmatprep.subr.mxu0 %v6562_v20  ;;  %3084 = vmatprep.subr.mxu1 %v6563_v22  ;;  %v6593_v20 = vld [vmem:[#allocation12 + $0xab0] sm:$0xff]  ;;  %v6594_v22 = vld [vmem:[#allocation12 + $0xa28] sm:$0xff] }
 0x36f   : > { %3014 = vmatpush2.msra.mxu0 %v6564_v63  ;;  %3085 = vmatpush2.msra.mxu1 %v6565_v1  ;;  %v6595_v63 = vld [vmem:[#allocation12 + $0xa38] sm:$0xff]  ;;  %v6596_v1 = vld [vmem:[#allocation12 + $0xa20] sm:$0xff] }
 0x370   : > { %3015 = vmatprep.subr.mxu0 %v6566_v2  ;;  %3086 = vmatprep.subr.mxu1 %v6567_v15  ;;  %v6597_v2 = vld [vmem:[#allocation12 + $0xa30] sm:$0xff]  ;;  %v6598_v15 = vld [vmem:[#allocation12 + $0x9a8] sm:$0xff] }
 0x371   : > { %3016 = vmatpush2.msra.mxu0 %v6568_v19  ;;  %3087 = vmatpush2.msra.mxu1 %v6569_v46  ;;  %v6599_v19 = vld [vmem:[#allocation12 + $0x9b8] sm:$0xff]  ;;  %v6600_v46 = vld [vmem:[#allocation12 + $0x9a0] sm:$0xff] }
 0x372   : > { %3017 = vmatprep.subr.mxu0 %v6570_v44  ;;  %3088 = vmatprep.subr.mxu1 %v6571_v23  ;;  %v6601_v44 = vld [vmem:[#allocation12 + $0x9b0] sm:$0xff]  ;;  %v6602_v23 = vld [vmem:[#allocation12 + $0x928] sm:$0xff] }
 0x373   : > { %3018 = vmatpush2.msra.mxu0 %v6572_v7  ;;  %3089 = vmatpush2.msra.mxu1 %v6573_v45  ;;  %v6603_v7 = vld [vmem:[#allocation12 + $0x938] sm:$0xff]  ;;  %v6604_v45 = vld [vmem:[#allocation12 + $0x920] sm:$0xff] }
 0x374   : > { %3019 = vmatprep.subr.mxu0 %v6574_v24  ;;  %3090 = vmatprep.subr.mxu1 %v6575_v29  ;;  %v6605_v24 = vld [vmem:[#allocation12 + $0x930] sm:$0xff]  ;;  %v6606_v29 = vld [vmem:[#allocation12 + $0x8a8] sm:$0xff] }
 0x375   : > { %3020 = vmatpush2.msra.mxu0 %v6576_v38  ;;  %3091 = vmatpush2.msra.mxu1 %v6577_v47  ;;  %v6607_v38 = vld [vmem:[#allocation12 + $0x8b8] sm:$0xff]  ;;  %v6608_v47 = vld [vmem:[#allocation12 + $0x8a0] sm:$0xff] }
 0x376   : > { %3021 = vmatprep.subr.mxu0 %v6578_v31  ;;  %3092 = vmatprep.subr.mxu1 %v6579_v21  ;;  %v6609_v31 = vld [vmem:[#allocation12 + $0x8b0] sm:$0xff]  ;;  %v6610_v21 = vld [vmem:[#allocation12 + $0x828] sm:$0xff] }
 0x377   : > { %3022 = vmatpush2.msra.mxu0 %v6580_v0  ;;  %3093 = vmatpush2.msra.mxu1 %v6581_v32  ;;  %v6611_v0 = vld [vmem:[#allocation12 + $0x838] sm:$0xff]  ;;  %v6612_v32 = vld [vmem:[#allocation12 + $0x820] sm:$0xff] }
 0x378   : > { %3023 = vmatprep.subr.mxu0 %v6582_v12  ;;  %3094 = vmatprep.subr.mxu1 %v6583_v33  ;;  %v6613_v12 = vld [vmem:[#allocation12 + $0x830] sm:$0xff]  ;;  %v6614_v33 = vld [vmem:[#allocation12 + $0x7c8] sm:$0xff] }
 0x379   : > { %3024 = vmatpush2.msra.mxu0 %v6584_v34  ;;  %3095 = vmatpush2.msra.mxu1 %v6585_v42  ;;  %v6615_v34 = vld [vmem:[#allocation12 + $0x7d8] sm:$0xff]  ;;  %v6616_v42 = vld [vmem:[#allocation12 + $0x7c0] sm:$0xff] }
 0x37a   : > { %3025 = vmatprep.subr.mxu0 %v6586_v43  ;;  %3096 = vmatprep.subr.mxu1 %v6587_v48  ;;  %v6617_v43 = vld [vmem:[#allocation12 + $0x7d0] sm:$0xff]  ;;  %v6618_v48 = vld [vmem:[#allocation12 + $0x748] sm:$0xff] }
 0x37b   : > { %3026 = vmatpush2.msra.mxu0 %v6588_v62  ;;  %3097 = vmatpush2.msra.mxu1 %v6589_v51  ;;  %v6619_v62 = vld [vmem:[#allocation12 + $0x758] sm:$0xff]  ;;  %v6620_v51 = vld [vmem:[#allocation12 + $0x740] sm:$0xff] }
 0x37c   : > { %3027 = vmatprep.subr.mxu0 %v6590_v52  ;;  %3098 = vmatprep.subr.mxu1 %v6591_v40  ;;  %v6621_v52 = vld [vmem:[#allocation12 + $0x750] sm:$0xff]  ;;  %v6622_v40 = vld [vmem:[#allocation12 + $0x6c8] sm:$0xff] }
 0x37d   : > { %3028 = vmatpush2.msra.mxu0 %v6592_v41  ;;  %3099 = vmatpush2.msra.mxu1 %v6593_v20  ;;  %v6623_v41 = vld [vmem:[#allocation12 + $0x6d8] sm:$0xff]  ;;  %v6624_v20 = vld [vmem:[#allocation12 + $0x6c0] sm:$0xff] }
 0x37e   : > { %3029 = vmatprep.subr.mxu0 %v6594_v22  ;;  %3100 = vmatprep.subr.mxu1 %v6595_v63  ;;  %v6625_v22 = vld [vmem:[#allocation12 + $0x6d0] sm:$0xff]  ;;  %v6626_v63 = vld [vmem:[#allocation12 + $0x648] sm:$0xff] }
 0x37f   : > { %3030 = vmatpush2.msra.mxu0 %v6596_v1  ;;  %3101 = vmatpush2.msra.mxu1 %v6597_v2  ;;  %v6627_v1 = vld [vmem:[#allocation12 + $0x658] sm:$0xff]  ;;  %v6628_v2 = vld [vmem:[#allocation12 + $0x640] sm:$0xff] }
 0x380   : > { %3031 = vmatprep.subr.mxu0 %v6598_v15  ;;  %3102 = vmatprep.subr.mxu1 %v6599_v19  ;;  %v6629_v15 = vld [vmem:[#allocation12 + $0x650] sm:$0xff]  ;;  %v6630_v19 = vld [vmem:[#allocation12 + $0x5c8] sm:$0xff] }
 0x381   : > { %3032 = vmatpush2.msra.mxu0 %v6600_v46  ;;  %3103 = vmatpush2.msra.mxu1 %v6601_v44  ;;  %v6631_v46 = vld [vmem:[#allocation12 + $0x5d8] sm:$0xff]  ;;  %v6632_v44 = vld [vmem:[#allocation12 + $0x5c0] sm:$0xff] }
 0x382   : > { %3033 = vmatprep.subr.mxu0 %v6602_v23  ;;  %3104 = vmatprep.subr.mxu1 %v6603_v7  ;;  %v6633_v23 = vld [vmem:[#allocation12 + $0x5d0] sm:$0xff]  ;;  %v6634_v7 = vld [vmem:[#allocation12 + $0x548] sm:$0xff] }
 0x383   : > { %3034 = vmatpush2.msra.mxu0 %v6604_v45  ;;  %3105 = vmatpush2.msra.mxu1 %v6605_v24  ;;  %v6635_v45 = vld [vmem:[#allocation12 + $0x558] sm:$0xff]  ;;  %v6636_v24 = vld [vmem:[#allocation12 + $0x540] sm:$0xff] }
 0x384   : > { %3035 = vmatprep.subr.mxu0 %v6606_v29  ;;  %3106 = vmatprep.subr.mxu1 %v6607_v38  ;;  %v6637_v29 = vld [vmem:[#allocation12 + $0x550] sm:$0xff]  ;;  %v6638_v38 = vld [vmem:[#allocation12 + $0x4c8] sm:$0xff] }
 0x385   : > { %3036 = vmatpush2.msra.mxu0 %v6608_v47  ;;  %3107 = vmatpush2.msra.mxu1 %v6609_v31  ;;  %v6639_v47 = vld [vmem:[#allocation12 + $0x4d8] sm:$0xff]  ;;  %v6640_v31 = vld [vmem:[#allocation12 + $0x4c0] sm:$0xff] }
 0x386   : > { %3037 = vmatprep.subr.mxu0 %v6610_v21  ;;  %3108 = vmatprep.subr.mxu1 %v6611_v0  ;;  %v6641_v21 = vld [vmem:[#allocation12 + $0x4d0] sm:$0xff]  ;;  %v9363_v0 = vpop.f32.mrf.mxu1 }
 0x387   : > { %3038 = vmatpush2.msra.mxu0 %v6612_v32  ;;  %3109 = vmatpush2.msra.mxu1 %v6613_v12  ;;  %v6642_v32 = vld [vmem:[#allocation12 + $0x448] sm:$0xff]  ;;  %v6643_v12 = vld [vmem:[#allocation12 + $0x458] sm:$0xff] }
 0x388   : > { %3040 = vmatmul.mubr.f32.vlgmr.msra.gmra.mxu0 %v9353_v30  ;;  %3111 = vmatmul.mubr.f32.vlgmr.msra.gmra.mxu1 %v9353_v30 }
 0x389   : > { %3117 = vmatprep.subr.mxu0 %v6614_v33  ;;  %3188 = vmatprep.subr.mxu1 %v6615_v34  ;;  %v9365_v33 = vpop.f32.mrf.mxu0  ;;  %v6644_v34 = vld [vmem:[#allocation12 + $0x440] sm:$0xff] }
 0x38a   : > { %3118 = vmatpush1.msra.mxu0 %v6616_v42  ;;  %3181 = vmatprep.mubr.f32.mxu0 %v9347_v39  ;;  %v6645_v42 = vld [vmem:[#allocation12 + $0x450] sm:$0xff] }
 0x38b   : > { %3189 = vmatpush1.msra.mxu1 %v6617_v43  ;;  %3252 = vmatprep.mubr.f32.mxu1 %v9347_v39  ;;  %v6646_v43 = vld [vmem:[#allocation12 + $0x3c8] sm:$0xff] }
 0x38c   : > { %3119 = vmatprep.subr.mxu0 %v6618_v48  ;;  %3190 = vmatprep.subr.mxu1 %v6619_v62  ;;  %v6647_v48 = vld [vmem:[#allocation12 + $0x3d8] sm:$0xff]  ;;  %v6648_v62 = vld [vmem:[#allocation12 + $0x3c0] sm:$0xff] }
 0x38d   : > { %3120 = vmatpush1.msra.mxu0 %v6620_v51  ;;  %3191 = vmatpush1.msra.mxu1 %v6621_v52  ;;  %v6649_v51 = vld [vmem:[#allocation12 + $0x3d0] sm:$0xff]  ;;  %v9367_v52 = vpop.f32.mrf.mxu1 }
 0x38e   : > { %3121 = vmatprep.subr.mxu0 %v6622_v40  ;;  %3192 = vmatprep.subr.mxu1 %v6623_v41  ;;  %v6650_v40 = vld [vmem:[#allocation12 + $0x348] sm:$0xff]  ;;  %v6651_v41 = vld [vmem:[#allocation12 + $0x358] sm:$0xff] }
 0x38f   : > { %3122 = vmatpush1.msra.mxu0 %v6624_v20  ;;  %3193 = vmatpush1.msra.mxu1 %v6625_v22  ;;  %v9369_v20 = vpop.f32.mrf.mxu0  ;;  %v6652_v22 = vld [vmem:[#allocation12 + $0x340] sm:$0xff] }
 0x390   : > { %3123 = vmatprep.subr.mxu0 %v6626_v63  ;;  %3194 = vmatprep.subr.mxu1 %v6627_v1  ;;  %v6653_v63 = vld [vmem:[#allocation12 + $0x350] sm:$0xff]  ;;  %v9371_v1 = vpop.f32.mrf.mxu1 }
 0x391   : > { %3124 = vmatpush1.msra.mxu0 %v6628_v2  ;;  %3195 = vmatpush1.msra.mxu1 %v6629_v15  ;;  %v6654_v2 = vld [vmem:[#allocation12 + $0x2c8] sm:$0xff]  ;;  %v6655_v15 = vld [vmem:[#allocation12 + $0x2d8] sm:$0xff] }
 0x392   : > { %3125 = vmatprep.subr.mxu0 %v6630_v19  ;;  %3196 = vmatprep.subr.mxu1 %v6631_v46  ;;  %v9373_v19 = vpop.f32.mrf.mxu0  ;;  %v6656_v46 = vld [vmem:[#allocation12 + $0x2c0] sm:$0xff] }
 0x393   : > { %3126 = vmatpush1.msra.mxu0 %v6632_v44  ;;  %3197 = vmatpush1.msra.mxu1 %v6633_v23  ;;  %v6657_v44 = vld [vmem:[#allocation12 + $0x2d0] sm:$0xff]  ;;  %v6658_v23 = vld [vmem:[#allocation12 + $0x248] sm:$0xff] }
 0x394   : > { %3127 = vmatprep.subr.mxu0 %v6634_v7  ;;  %3198 = vmatprep.subr.mxu1 %v6635_v45  ;;  %v6659_v7 = vld [vmem:[#allocation12 + $0x258] sm:$0xff]  ;;  %v6660_v45 = vld [vmem:[#allocation12 + $0x240] sm:$0xff] }
 0x395   : > { %3128 = vmatpush1.msra.mxu0 %v6636_v24  ;;  %3199 = vmatpush1.msra.mxu1 %v6637_v29  ;;  %v6661_v24 = vld [vmem:[#allocation12 + $0x250] sm:$0xff]  ;;  %v9375_v29 = vpop.f32.mrf.mxu1 }
 0x396   : > { %3129 = vmatprep.subr.mxu0 %v6638_v38  ;;  %3200 = vmatprep.subr.mxu1 %v6639_v47  ;;  %v6662_v38 = vld [vmem:[#allocation12 + $0x1c8] sm:$0xff]  ;;  %v6663_v47 = vld [vmem:[#allocation12 + $0x1d8] sm:$0xff] }
 0x397   : > { %3130 = vmatpush1.msra.mxu0 %v6640_v31  ;;  %3201 = vmatpush1.msra.mxu1 %v6641_v21  ;;  %v9377_v31 = vpop.f32.mrf.mxu0  ;;  %v6664_v21 = vld [vmem:[#allocation12 + $0x1c0] sm:$0xff] }
 0x398   : > { %3131 = vmatprep.subr.mxu0 %v6642_v32  ;;  %3202 = vmatprep.subr.mxu1 %v6643_v12  ;;  %v6665_v32 = vld [vmem:[#allocation12 + $0x1d0] sm:$0xff]  ;;  %v9379_v12 = vld [vmem:[#allocation16] sm:$0xff] }
 0x399   : > { %3132 = vmatpush1.msra.mxu0 %v6644_v34  ;;  %3203 = vmatpush1.msra.mxu1 %v6645_v42  ;;  %v2555_v34 = vpop.f32.mrf.mxu1  ;;  %v6666_v42 = vld [vmem:[#allocation12 + $0x148] sm:$0xff] }
 0x39a   : > { %3133 = vmatprep.subr.mxu0 %v6646_v43  ;;  %3204 = vmatprep.subr.mxu1 %v6647_v48  ;;  %v6667_v43 = vld [vmem:[#allocation12 + $0x158] sm:$0xff]  ;;  %v2484_v48 = vpop.f32.mrf.mxu0 }
 0x39b   : > { %3134 = vmatpush1.msra.mxu0 %v6648_v62  ;;  %3205 = vmatpush1.msra.mxu1 %v6649_v51  ;;  %v6668_v62 = vld [vmem:[#allocation12 + $0x140] sm:$0xff]  ;;  %v6669_v51 = vld [vmem:[#allocation12 + $0x150] sm:$0xff] }
 0x39c   : > { %3135 = vmatprep.subr.mxu0 %v6650_v40  ;;  %3206 = vmatprep.subr.mxu1 %v6651_v41  ;;  %v6670_v40 = vld [vmem:[#allocation12 + $0xc8] sm:$0xff]  ;;  %v6671_v41 = vld [vmem:[#allocation12 + $0xd8] sm:$0xff] }
 0x39d   : > { %3136 = vmatpush1.msra.mxu0 %v6652_v22  ;;  %3207 = vmatpush1.msra.mxu1 %v6653_v63  ;;  %v9384_v22 = vrot.slane %v9379_v12, %v541_v13  ;;  %v2704_v63 = vadd.f32 %v2555_v34, %v9363_v0  ;;  %v6677_v13 = vld [vmem:[#allocation12 + $0x50] sm:$0xff]  ;;  %v6678_v0 = vld [vmem:[#allocation12 + $0xfc8] sm:$0xff]  ;;  %v6684_v34 = vld [vmem:[#allocation12 + $0xf40] sm:$0xff] }
 0x39e   : > { %3137 = vmatprep.subr.mxu0 %v6654_v2  ;;  %3208 = vmatprep.subr.mxu1 %v6655_v15  ;;  %v6672_v2 = vld [vmem:[#allocation12 + $0xc0] sm:$0xff]  ;;  %v6673_v15 = vld [vmem:[#allocation12 + $0xd0] sm:$0xff] }
 0x39f   : > { %3138 = vmatpush1.msra.mxu0 %v6656_v46  ;;  %3209 = vmatpush1.msra.mxu1 %v6657_v44  ;;  %v9390_v46 = vrot.slane %v9379_v12, %v533_v11  ;;  %v2702_v44 = vadd.f32 %v2484_v48, %v9365_v33  ;;  %v6681_v11 = vld [vmem:[#allocation12 + $0xfd0] sm:$0xff]  ;;  %v6687_v48 = vld [vmem:[#allocation12 + $0xed8] sm:$0xff] }
 0x3a0   : > { %3139 = vmatprep.subr.mxu0 %v6658_v23  ;;  %3210 = vmatprep.subr.mxu1 %v6659_v7  ;;  %v6674_v23 = vld [vmem:[#allocation12 + $0x48] sm:$0xff]  ;;  %v6675_v7 = vld [vmem:[#allocation12 + $0x58] sm:$0xff] }
 0x3a1   : > { %3140 = vmatpush1.msra.mxu0 %v6660_v45  ;;  %3211 = vmatpush1.msra.mxu1 %v6661_v24  ;;  %v6676_v45 = vld [vmem:[#allocation12 + $0x40] sm:$0xff]  ;;  %v6679_v24 = vld [vmem:[#allocation12 + $0xfd8] sm:$0xff]  ;;  %v2710_v33 = vadd.f32 %v2702_v44, %v9390_v46  ;;  %v6693_v44 = vld [vmem:[#allocation12 + $0xe50] sm:$0xff] }
 0x3a2   : > { %3141 = vmatprep.subr.mxu0 %v6662_v38  ;;  %3212 = vmatprep.subr.mxu1 %v6663_v47  ;;  %v2712_v38 = vadd.f32 %v2704_v63, %v9384_v22  ;;  %v6680_v47 = vld [vmem:[#allocation12 + $0xfc0] sm:$0xff]  ;;  %v6690_v63 = vld [vmem:[#allocation12 + $0xe48] sm:$0xff] }
 0x3a3   : > { %3142 = vmatpush1.msra.mxu0 %v6664_v21  ;;  %3213 = vmatpush1.msra.mxu1 %v6665_v32  ;;  %v6682_v21 = vld [vmem:[#allocation12 + $0xf48] sm:$0xff]  ;;  %v6683_v32 = vld [vmem:[#allocation12 + $0xf58] sm:$0xff] }
 0x3a4   : > { %3143 = vmatprep.subr.mxu0 %v6666_v42  ;;  %3214 = vmatprep.subr.mxu1 %v6667_v43  ;;  %v6685_v42 = vld [vmem:[#allocation12 + $0xf50] sm:$0xff]  ;;  %v6686_v43 = vld [vmem:[#allocation12 + $0xec8] sm:$0xff] }
 0x3a5   : > { %3144 = vmatpush1.msra.mxu0 %v6668_v62  ;;  %3215 = vmatpush1.msra.mxu1 %v6669_v51  ;;  %v5925_v62 = vmul.f32 -1.442695, %v2712_v38  ;;  %v6688_v51 = vld [vmem:[#allocation12 + $0xec0] sm:$0xff] }
 0x3a6   : > { %3145 = vmatprep.subr.mxu0 %v6670_v40  ;;  %3216 = vmatprep.subr.mxu1 %v6671_v41  ;;  %v6689_v40 = vld [vmem:[#allocation12 + $0xed0] sm:$0xff]  ;;  %v5923_v41 = vmul.f32 -1.442695, %v2710_v33  ;;  %v6700_v38 = vld [vmem:[#allocation12 + $0xd40] sm:$0xff]  ;;  %v6703_v33 = vld [vmem:[#allocation12 + $0xcd8] sm:$0xff] }
 0x3a7   : > { %3146 = vmatpush1.msra.mxu0 %v6672_v2  ;;  %3217 = vmatpush1.msra.mxu1 %v6673_v15  ;;  %v6691_v2 = vld [vmem:[#allocation12 + $0xe58] sm:$0xff]  ;;  %v6692_v15 = vld [vmem:[#allocation12 + $0xe40] sm:$0xff]  ;;  %6166 = vpow2.f32 %v5925_v62  ;;  %v6710_v62 = vld [vmem:[#allocation12 + $0xbc8] sm:$0xff] }
 0x3a8   : > { %3147 = vmatprep.subr.mxu0 %v6674_v23  ;;  %3218 = vmatprep.subr.mxu1 %v6675_v7  ;;  %v6694_v23 = vld [vmem:[#allocation12 + $0xdc8] sm:$0xff]  ;;  %v6695_v7 = vld [vmem:[#allocation12 + $0xdd8] sm:$0xff]  ;;  %6168 = vpow2.f32 %v5923_v41  ;;  %v6713_v41 = vld [vmem:[#allocation12 + $0xbd0] sm:$0xff] }
 0x3a9   : > { %3148 = vmatpush1.msra.mxu0 %v6676_v45  ;;  %3219 = vmatpush1.msra.mxu1 %v6677_v13  ;;  %v6696_v45 = vld [vmem:[#allocation12 + $0xdc0] sm:$0xff]  ;;  %v6697_v13 = vld [vmem:[#allocation12 + $0xdd0] sm:$0xff] }
 0x3aa   : > { %3149 = vmatprep.subr.mxu0 %v6678_v0  ;;  %3220 = vmatprep.subr.mxu1 %v6679_v24  ;;  %v6698_v0 = vld [vmem:[#allocation12 + $0xd48] sm:$0xff]  ;;  %v6699_v24 = vld [vmem:[#allocation12 + $0xd58] sm:$0xff] }
 0x3ab   : > { %3150 = vmatpush2.msra.mxu0 %v6680_v47  ;;  %3221 = vmatpush2.msra.mxu1 %v6681_v11  ;;  %v6701_v47 = vld [vmem:[#allocation12 + $0xd50] sm:$0xff]  ;;  %v6702_v11 = vld [vmem:[#allocation12 + $0xcc8] sm:$0xff] }
 0x3ac   : > { %3151 = vmatprep.subr.mxu0 %v6682_v21  ;;  %3222 = vmatprep.subr.mxu1 %v6683_v32  ;;  %v6704_v21 = vld [vmem:[#allocation12 + $0xcc0] sm:$0xff]  ;;  %v6705_v32 = vld [vmem:[#allocation12 + $0xcd0] sm:$0xff] }
 0x3ad   : > { %3152 = vmatpush2.msra.mxu0 %v6684_v34  ;;  %3223 = vmatpush2.msra.mxu1 %v6685_v42  ;;  %v6706_v34 = vld [vmem:[#allocation12 + $0xc48] sm:$0xff]  ;;  %v6707_v42 = vld [vmem:[#allocation12 + $0xc58] sm:$0xff] }
 0x3ae   : > { %3153 = vmatprep.subr.mxu0 %v6686_v43  ;;  %3224 = vmatprep.subr.mxu1 %v6687_v48  ;;  %v6708_v43 = vld [vmem:[#allocation12 + $0xc40] sm:$0xff]  ;;  %v6709_v48 = vld [vmem:[#allocation12 + $0xc50] sm:$0xff] }
 0x3af   : > { %3154 = vmatpush2.msra.mxu0 %v6688_v51  ;;  %3225 = vmatpush2.msra.mxu1 %v6689_v40  ;;  %v6711_v51 = vld [vmem:[#allocation12 + $0xbd8] sm:$0xff]  ;;  %v6712_v40 = vld [vmem:[#allocation12 + $0xbc0] sm:$0xff] }
 0x3b0   : > { %3155 = vmatprep.subr.mxu0 %v6690_v63  ;;  %3226 = vmatprep.subr.mxu1 %v6691_v2  ;;  %v6714_v63 = vld [vmem:[#allocation12 + $0xb48] sm:$0xff]  ;;  %v6715_v2 = vld [vmem:[#allocation12 + $0xb58] sm:$0xff] }
 0x3b1   : > { %3156 = vmatpush2.msra.mxu0 %v6692_v15  ;;  %3227 = vmatpush2.msra.mxu1 %v6693_v44  ;;  %v6716_v15 = vld [vmem:[#allocation12 + $0xb40] sm:$0xff]  ;;  %v6717_v44 = vld [vmem:[#allocation12 + $0xb50] sm:$0xff] }
 0x3b2   : > { %3157 = vmatprep.subr.mxu0 %v6694_v23  ;;  %3228 = vmatprep.subr.mxu1 %v6695_v7  ;;  %v6718_v23 = vld [vmem:[#allocation12 + $0xac8] sm:$0xff]  ;;  %v6719_v7 = vld [vmem:[#allocation12 + $0xad8] sm:$0xff] }
 0x3b3   : > { %3158 = vmatpush2.msra.mxu0 %v6696_v45  ;;  %3229 = vmatpush2.msra.mxu1 %v6697_v13  ;;  %v6720_v45 = vld [vmem:[#allocation12 + $0xac0] sm:$0xff]  ;;  %v6721_v13 = vld [vmem:[#allocation12 + $0xad0] sm:$0xff] }
 0x3b4   : > { %3159 = vmatprep.subr.mxu0 %v6698_v0  ;;  %3230 = vmatprep.subr.mxu1 %v6699_v24  ;;  %v6167_v0 = vpop.eup %6166  ;;  %v6722_v24 = vld [vmem:[#allocation12 + $0xa48] sm:$0xff] }
 0x3b5   : > { %3160 = vmatpush2.msra.mxu0 %v6700_v38  ;;  %3231 = vmatpush2.msra.mxu1 %v6701_v47  ;;  %v6723_v38 = vld [vmem:[#allocation12 + $0xa58] sm:$0xff]  ;;  %v6169_v47 = vpop.eup %6168 }
 0x3b6   : > { %3161 = vmatprep.subr.mxu0 %v6702_v11  ;;  %3232 = vmatprep.subr.mxu1 %v6703_v33  ;;  %v6724_v11 = vld [vmem:[#allocation12 + $0xa40] sm:$0xff]  ;;  %v6725_v33 = vld [vmem:[#allocation12 + $0xa50] sm:$0xff] }
 0x3b7   : > { %3162 = vmatpush2.msra.mxu0 %v6704_v21  ;;  %3233 = vmatpush2.msra.mxu1 %v6705_v32  ;;  %v2486_v21 = vpop.f32.mrf.mxu0  ;;  %v2557_v32 = vpop.f32.mrf.mxu1 }
 0x3b8   : > { %3163 = vmatprep.subr.mxu0 %v6706_v34  ;;  %3234 = vmatprep.subr.mxu1 %v6707_v42  ;;  %v6726_v34 = vld [vmem:[#allocation12 + $0x9c8] sm:$0xff]  ;;  %v6727_v42 = vld [vmem:[#allocation12 + $0x9d8] sm:$0xff] }
 0x3b9   : > { %3164 = vmatpush2.msra.mxu0 %v6708_v43  ;;  %3235 = vmatpush2.msra.mxu1 %v6709_v48  ;;  %v2738_v43 = vadd.f32 1.0, %v6167_v0  ;;  %v6728_v48 = vld [vmem:[#allocation12 + $0x9c0] sm:$0xff]  ;;  %v6734_v0 = vld [vmem:[#allocation12 + $0x8c8] sm:$0xff] }
 0x3ba   : > { %3165 = vmatprep.subr.mxu0 %v6710_v62  ;;  %3236 = vmatprep.subr.mxu1 %v6711_v51  ;;  %v6729_v62 = vld [vmem:[#allocation12 + $0x9d0] sm:$0xff]  ;;  %v9398_v51 = vrot.slane %v9379_v12, %v557_v60 }
 0x3bb   : > { %3166 = vmatpush2.msra.mxu0 %v6712_v40  ;;  %3237 = vmatpush2.msra.mxu1 %v6713_v41  ;;  %v2736_v40 = vadd.f32 1.0, %v6169_v47  ;;  %v6730_v41 = vld [vmem:[#allocation12 + $0x948] sm:$0xff]  ;;  %6170 = vrcp.f32 %v2738_v43  ;;  %v6739_v47 = vld [vmem:[#allocation12 + $0x858] sm:$0xff]  ;;  %v6745_v43 = vld [vmem:[#allocation12 + $0x7f0] sm:$0xff] }
 0x3bc   : > { %3167 = vmatprep.subr.mxu0 %v6714_v63  ;;  %3238 = vmatprep.subr.mxu1 %v6715_v2  ;;  %v6731_v63 = vld [vmem:[#allocation12 + $0x958] sm:$0xff] }
 0x3bd   : > { %3168 = vmatpush2.msra.mxu0 %v6716_v15  ;;  %3239 = vmatpush2.msra.mxu1 %v6717_v44  ;;  %v9403_v15 = vrot.slane %v9379_v12, %v537_v14  ;;  %v2703_v44 = vadd.f32 %v2486_v21, %v9369_v20  ;;  %v6736_v14 = vld [vmem:[#allocation12 + $0x8c0] sm:$0xff]  ;;  %v6737_v20 = vld [vmem:[#allocation12 + $0x8d0] sm:$0xff]  ;;  %6172 = vrcp.f32 %v2736_v40  ;;  %v6742_v21 = vld [vmem:[#allocation12 + $0x7e8] sm:$0xff] }
 0x3be   : > { %3169 = vmatprep.subr.mxu0 %v6718_v23  ;;  %3240 = vmatprep.subr.mxu1 %v6719_v7  ;;  %v6732_v23 = vld [vmem:[#allocation12 + $0x940] sm:$0xff]  ;;  %v6733_v7 = vld [vmem:[#allocation12 + $0x950] sm:$0xff]  ;;  %v6747_v40 = vld [vmem:[#allocation12 + $0x778] sm:$0xff] }
 0x3bf   : > { %3170 = vmatpush2.msra.mxu0 %v6720_v45  ;;  %3241 = vmatpush2.msra.mxu1 %v6721_v13  ;;  %v9410_v45 = vrot.slane %v9379_v12, %v545_v17  ;;  %v2705_v13 = vadd.f32 %v2557_v32, %v9367_v52  ;;  %v2711_v17 = vadd.f32 %v2703_v44, %v9403_v15  ;;  %v6741_v52 = vld [vmem:[#allocation12 + $0x850] sm:$0xff]  ;;  %v6743_v32 = vld [vmem:[#allocation12 + $0x7f8] sm:$0xff] }
 0x3c0   : > { %3171 = vmatprep.subr.mxu0 %v6722_v24  ;;  %3242 = vmatprep.subr.mxu1 %v6723_v38  ;;  %v6735_v24 = vld [vmem:[#allocation12 + $0x8d8] sm:$0xff] }
 0x3c1   : > { %3172 = vmatpush2.msra.mxu0 %v6724_v11  ;;  %3243 = vmatpush2.msra.mxu1 %v6725_v33  ;;  %v6740_v11 = vld [vmem:[#allocation12 + $0x840] sm:$0xff]  ;;  %v2713_v33 = vadd.f32 %v2705_v13, %v9410_v45  ;;  %v6751_v44 = vld [vmem:[#allocation12 + $0x6f8] sm:$0xff] }
 0x3c2   : > { %3173 = vmatprep.subr.mxu0 %v6726_v34  ;;  %3244 = vmatprep.subr.mxu1 %v6727_v42  ;;  %v6744_v34 = vld [vmem:[#allocation12 + $0x7e0] sm:$0xff]  ;;  %v5924_v42 = vmul.f32 -1.442695, %v2711_v17 }
 0x3c3   : > { %3174 = vmatpush2.msra.mxu0 %v6728_v48  ;;  %3245 = vmatpush2.msra.mxu1 %v6729_v62  ;;  %v5926_v48 = vmul.f32 -1.442695, %v2713_v33  ;;  %v6746_v62 = vld [vmem:[#allocation12 + $0x768] sm:$0xff]  ;;  %v6756_v13 = vld [vmem:[#allocation12 + $0x660] sm:$0xff] }
 0x3c4   : > { %3175 = vmatprep.subr.mxu0 %v6730_v41  ;;  %3246 = vmatprep.subr.mxu1 %v6731_v63  ;;  %v2697_v2 = vpop.f32.mrf.mxu1  ;;  %v6748_v41 = vld [vmem:[#allocation12 + $0x760] sm:$0xff]  ;;  %v6749_v63 = vld [vmem:[#allocation12 + $0x770] sm:$0xff]  ;;  %v6762_v33 = vld [vmem:[#allocation12 + $0x568] sm:$0xff] }
 0x3c5   : > { %3176 = vmatpush2.msra.mxu0 %v6732_v23  ;;  %3247 = vmatpush2.msra.mxu1 %v6733_v7  ;;  %v2708_v60 = vadd.f32 %v2697_v2, %v9371_v1  ;;  %v6738_v1 = vld [vmem:[#allocation12 + $0x848] sm:$0xff]  ;;  %v6752_v23 = vld [vmem:[#allocation12 + $0x6e0] sm:$0xff]  ;;  %v6753_v7 = vld [vmem:[#allocation12 + $0x6f0] sm:$0xff] }
 0x3c6   : > { %3177 = vmatprep.subr.mxu0 %v6734_v0  ;;  %3248 = vmatprep.subr.mxu1 %v6735_v24  ;;  %v6750_v2 = vld [vmem:[#allocation12 + $0x6e8] sm:$0xff]  ;;  %v6757_v0 = vld [vmem:[#allocation12 + $0x670] sm:$0xff]  ;;  %v6760_v17 = vld [vmem:[#allocation12 + $0x5e0] sm:$0xff] }
 0x3c7   : > { %3178 = vmatpush2.msra.mxu0 %v6736_v14  ;;  %3249 = vmatpush2.msra.mxu1 %v6737_v20  ;;  %v2716_v38 = vadd.f32 %v2708_v60, %v9398_v51  ;;  %v6755_v60 = vld [vmem:[#allocation12 + $0x678] sm:$0xff]  ;;  %v9420_v14 = vpop.f32.mrf.mxu0  ;;  %v1781_v20 = vld [vmem:[#allocation6] sm:$0xff] }
 0x3c8   : > { %3179 = vmatprep.subr.mxu0 %v6738_v1  ;;  %3250 = vmatprep.subr.mxu1 %v6739_v47  ;;  %v6171_v24 = vpop.eup %6170  ;;  %v6759_v1 = vld [vmem:[#allocation12 + $0x5f8] sm:$0xff] }
 0x3c9   : > { %3180 = vmatpush2.msra.mxu0 %v6740_v11  ;;  %3251 = vmatpush2.msra.mxu1 %v6741_v52  ;;  %6174 = vtanh.f32 %v2716_v38  ;;  %v6758_v38 = vld [vmem:[#allocation12 + $0x5e8] sm:$0xff]  ;;  %v6761_v11 = vld [vmem:[#allocation12 + $0x5f0] sm:$0xff] }
 0x3ca   : > { %3182 = vmatmul.mubr.f32.vlgmr.msra.gmra.mxu0 %v9353_v30  ;;  %3253 = vmatmul.mubr.f32.vlgmr.msra.gmra.mxu1 %v9353_v30  ;;  %6176 = vpow2.f32 %v5924_v42  ;;  %v6173_v47 = vpop.eup %6172  ;;  %v6764_v42 = vld [vmem:[#allocation12 + $0x560] sm:$0xff] }
 0x3cb   : > { %3259 = vmatprep.subr.mxu0 %v6742_v21  ;;  %3330 = vmatprep.subr.mxu1 %v6743_v32  ;;  %6178 = vpow2.f32 %v5926_v48  ;;  %v6763_v21 = vld [vmem:[#allocation12 + $0x578] sm:$0xff]  ;;  %v2756_v32 = vmul.f32 %v6171_v24, %v1781_v20  ;;  %v2628_v48 = vpop.f32.mrf.mxu0  ;;  %v9433_v24 = vrot.slane %v9379_v12, %v561_v6  ;;  %v6780_v6 = vld [vmem:[#allocation12 + $0x360] sm:$0xff] }
 0x3cc   : > { %3260 = vmatpush1.msra.mxu0 %v6744_v34  ;;  %3323 = vmatprep.mubr.f32.mxu0 %v9347_v39 }
 0x3cd   : > { %3331 = vmatpush1.msra.mxu1 %v6745_v43  ;;  %3394 = vmatprep.mubr.f32.mxu1 %v9347_v39  ;;  %v6754_v39 = vld [vmem:[#allocation12 + $0x668] sm:$0xff]  ;;  %v6765_v43 = vld [vmem:[#allocation12 + $0x570] sm:$0xff] }
 0x3ce   : > { %3261 = vmatprep.subr.mxu0 %v6746_v62  ;;  %3332 = vmatprep.subr.mxu1 %v6747_v40  ;;  %v6766_v62 = vld [vmem:[#allocation12 + $0x4e8] sm:$0xff]  ;;  %v6767_v40 = vld [vmem:[#allocation12 + $0x4f8] sm:$0xff] }
 0x3cf   : > { %3262 = vmatpush1.msra.mxu0 %v6748_v41  ;;  %3333 = vmatpush1.msra.mxu1 %v6749_v63  ;;  %v2699_v63 = vpop.f32.mrf.mxu1 }
 0x3d0   : > { %3263 = vmatprep.subr.mxu0 %v6750_v2  ;;  %3334 = vmatprep.subr.mxu1 %v6751_v44  ;;  %v6768_v2 = vld [vmem:[#allocation12 + $0x4e0] sm:$0xff]  ;;  %v6769_v44 = vld [vmem:[#allocation12 + $0x4f0] sm:$0xff]  ;;  %v2709_v20 = vadd.f32 %v2699_v63, %v9375_v29  ;;  %v6787_v63 = vld [vmem:[#allocation12 + $0x278] sm:$0xff] }
 0x3d1   : > { %3264 = vmatpush1.msra.mxu0 %v6752_v23  ;;  %3335 = vmatpush1.msra.mxu1 %v6753_v7  ;;  %v6770_v23 = vld [vmem:[#allocation12 + $0x468] sm:$0xff]  ;;  %v6771_v7 = vld [vmem:[#allocation12 + $0x478] sm:$0xff] }
 0x3d2   : > { %3265 = vmatprep.subr.mxu0 %v6754_v39  ;;  %3336 = vmatprep.subr.mxu1 %v6755_v60  ;;  %v9427_v39 = vrot.slane %v9379_v12, %v553_v5  ;;  %v2707_v60 = vadd.f32 %v2628_v48, %v9377_v31  ;;  %v6777_v5 = vld [vmem:[#allocation12 + $0x3f0] sm:$0xff]  ;;  %v2717_v29 = vadd.f32 %v2709_v20, %v9433_v24  ;;  %v6794_v20 = vld [vmem:[#allocation12 + $0x168] sm:$0xff] }
 0x3d3   : > { %3266 = vmatpush1.msra.mxu0 %v6756_v13  ;;  %3337 = vmatpush1.msra.mxu1 %v6757_v0  ;;  %v6772_v13 = vld [vmem:[#allocation12 + $0x460] sm:$0xff]  ;;  %v6773_v0 = vld [vmem:[#allocation12 + $0x470] sm:$0xff] }
 0x3d4   : > { %3267 = vmatprep.subr.mxu0 %v6758_v38  ;;  %3338 = vmatprep.subr.mxu1 %v6759_v1  ;;  %v6774_v38 = vld [vmem:[#allocation12 + $0x3e8] sm:$0xff]  ;;  %v6775_v1 = vld [vmem:[#allocation12 + $0x3f8] sm:$0xff]  ;;  %v6785_v48 = vld [vmem:[#allocation12 + $0x2f0] sm:$0xff]  ;;  %6180 = vtanh.f32 %v2717_v29 }
 0x3d5   : > { %3268 = vmatpush1.msra.mxu0 %v6760_v17  ;;  %3339 = vmatpush1.msra.mxu1 %v6761_v11  ;;  %v6778_v17 = vld [vmem:[#allocation12 + $0x368] sm:$0xff]  ;;  %v6779_v11 = vld [vmem:[#allocation12 + $0x378] sm:$0xff] }
 0x3d6   : > { %v6175_v52 = vpop.eup %6174  ;;  %3269 = vmatprep.subr.mxu0 %v6762_v33  ;;  %3340 = vmatprep.subr.mxu1 %v6763_v21  ;;  %v2715_v33 = vadd.f32 %v2707_v60, %v9427_v39  ;;  %v6781_v21 = vld [vmem:[#allocation12 + $0x370] sm:$0xff]  ;;  %v6791_v60 = vld [vmem:[#allocation12 + $0x1f8] sm:$0xff]  ;;  %v6806_v29 = vld [vmem:[#allocation12 + $0xfe8] sm:$0xff] }
 0x3d7   : > { %v2758_v34 = vmul.f32 %v6175_v52, %v6173_v47  ;;  %3270 = vmatpush1.msra.mxu0 %v6764_v42  ;;  %3341 = vmatpush1.msra.mxu1 %v6765_v43  ;;  %v6776_v47 = vld [vmem:[#allocation12 + $0x3e0] sm:$0xff]  ;;  %v6177_v31 = vpop.eup %6176 }
 0x3d8   : > { %3271 = vmatprep.subr.mxu0 %v6766_v62  ;;  %3342 = vmatprep.subr.mxu1 %v6767_v40  ;;  %v6179_v52 = vpop.eup %6178  ;;  %v2737_v42 = vadd.f32 1.0, %v6177_v31  ;;  %v6784_v43 = vld [vmem:[#allocation12 + $0x2e0] sm:$0xff]  ;;  %v6786_v40 = vld [vmem:[#allocation12 + $0x268] sm:$0xff]  ;;  %v6799_v31 = vld [vmem:[#allocation12 + $0xf8] sm:$0xff] }
 0x3d9   : > { %v9422_v41 = vadd.f32 %v2758_v34, %v2756_v32  ;;  %3272 = vmatpush1.msra.mxu0 %v6768_v2  ;;  %3343 = vmatpush1.msra.mxu1 %v6769_v44  ;;  %v6782_v32 = vld [vmem:[#allocation12 + $0x2e8] sm:$0xff]  ;;  %v6783_v34 = vld [vmem:[#allocation12 + $0x2f8] sm:$0xff]  ;;  %v2739_v62 = vadd.f32 1.0, %v6179_v52  ;;  %v5928_v2 = vmul.f32 -1.442695, %v2715_v33  ;;  %v6788_v44 = vld [vmem:[#allocation12 + $0x260] sm:$0xff] }
 0x3da   : > { %3273 = vmatprep.subr.mxu0 %v6770_v23  ;;  %3344 = vmatprep.subr.mxu1 %v6771_v7  ;;  %v6789_v23 = vld [vmem:[#allocation12 + $0x270] sm:$0xff]  ;;  %v6790_v7 = vld [vmem:[#allocation12 + $0x1e8] sm:$0xff]  ;;  %6182 = vrcp.f32 %v2737_v42  ;;  %v6803_v33 = vld [vmem:[#allocation12 + $0x78] sm:$0xff] }
 0x3db   : > { %3274 = vmatpush1.msra.mxu0 %v6772_v13  ;;  %3345 = vmatpush1.msra.mxu1 %v6773_v0  ;;  %v6792_v13 = vld [vmem:[#allocation12 + $0x1e0] sm:$0xff]  ;;  %v6793_v0 = vld [vmem:[#allocation12 + $0x1f0] sm:$0xff]  ;;  %6184 = vrcp.f32 %v2739_v62  ;;  %v6802_v52 = vld [vmem:[#allocation12 + $0x68] sm:$0xff] }
 0x3dc   : > { %3275 = vmatprep.subr.mxu0 %v6774_v38  ;;  %3346 = vmatprep.subr.mxu1 %v6775_v1  ;;  %v6795_v38 = vld [vmem:[#allocation12 + $0x178] sm:$0xff]  ;;  %6186 = vpow2.f32 %v5928_v2  ;;  %v6796_v1 = vld [vmem:[#allocation12 + $0x160] sm:$0xff]  ;;  %v6809_v42 = vld [vmem:[#allocation12 + $0xff0] sm:$0xff] }
 0x3dd   : > { %3276 = vmatpush1.msra.mxu0 %v6776_v47  ;;  %3347 = vmatpush1.msra.mxu1 %v6777_v5  ;;  %v6797_v47 = vld [vmem:[#allocation12 + $0x170] sm:$0xff]  ;;  %v6798_v5 = vld [vmem:[#allocation12 + $0xe8] sm:$0xff]  ;;  %v6812_v62 = vld [vmem:[#allocation12 + $0xf60] sm:$0xff] }
 0x3de   : > { %3277 = vmatprep.subr.mxu0 %v6778_v17  ;;  %3348 = vmatprep.subr.mxu1 %v6779_v11  ;;  %v6800_v17 = vld [vmem:[#allocation12 + $0xe0] sm:$0xff]  ;;  %v6801_v11 = vld [vmem:[#allocation12 + $0xf0] sm:$0xff]  ;;  %v6815_v2 = vld [vmem:[#allocation12 + $0xef8] sm:$0xff] }
 0x3df   : > { %3278 = vmatpush1.msra.mxu0 %v6780_v6  ;;  %3349 = vmatpush1.msra.mxu1 %v6781_v21  ;;  %v6804_v6 = vld [vmem:[#allocation12 + $0x60] sm:$0xff]  ;;  %v6805_v21 = vld [vmem:[#allocation12 + $0x70] sm:$0xff] }
 0x3e0   : > { %3279 = vmatprep.subr.mxu0 %v6782_v32  ;;  %3350 = vmatprep.subr.mxu1 %v6783_v34  ;;  %v6807_v32 = vld [vmem:[#allocation12 + $0xff8] sm:$0xff]  ;;  %v6808_v34 = vld [vmem:[#allocation12 + $0xfe0] sm:$0xff] }
 0x3e1   : > { %3280 = vmatpush1.msra.mxu0 %v6784_v43  ;;  %3351 = vmatpush1.msra.mxu1 %v6785_v48  ;;  %v6810_v43 = vld [vmem:[#allocation12 + $0xf68] sm:$0xff]  ;;  %v6811_v48 = vld [vmem:[#allocation12 + $0xf78] sm:$0xff] }
 0x3e2   : > { %3281 = vmatprep.subr.mxu0 %v6786_v40  ;;  %3352 = vmatprep.subr.mxu1 %v6787_v63  ;;  %v6813_v40 = vld [vmem:[#allocation12 + $0xf70] sm:$0xff]  ;;  %v6814_v63 = vld [vmem:[#allocation12 + $0xee8] sm:$0xff] }
 0x3e3   : > { %3282 = vmatpush1.msra.mxu0 %v6788_v44  ;;  %3353 = vmatpush1.msra.mxu1 %v6789_v23  ;;  %v6181_v44 = vpop.eup %6180  ;;  %v6816_v23 = vld [vmem:[#allocation12 + $0xee0] sm:$0xff] }
 0x3e4   : > { %3283 = vmatprep.subr.mxu0 %v6790_v7  ;;  %3354 = vmatprep.subr.mxu1 %v6791_v60  ;;  %v6817_v7 = vld [vmem:[#allocation12 + $0xef0] sm:$0xff] }
 0x3e5   : > { %3284 = vmatpush1.msra.mxu0 %v6792_v13  ;;  %3355 = vmatpush1.msra.mxu1 %v6793_v0  ;;  %v6818_v13 = vld [vmem:[#allocation12 + $0xe68] sm:$0xff]  ;;  %v6819_v0 = vld [vmem:[#allocation12 + $0xe78] sm:$0xff] }
 0x3e6   : > { %3285 = vmatprep.subr.mxu0 %v6794_v20  ;;  %3356 = vmatprep.subr.mxu1 %v6795_v38  ;;  %v1782_v38 = vld [vmem:[#allocation6 + $0x8] sm:$0xff] }
 0x3e7   : > { %3286 = vmatpush1.msra.mxu0 %v6796_v1  ;;  %3357 = vmatpush1.msra.mxu1 %v6797_v47  ;;  %v6183_v60 = vpop.eup %6182  ;;  %v6820_v1 = vld [vmem:[#allocation12 + $0xe60] sm:$0xff]  ;;  %v6821_v47 = vld [vmem:[#allocation12 + $0xe70] sm:$0xff] }
 0x3e8   : > { %3287 = vmatprep.subr.mxu0 %v6798_v5  ;;  %3358 = vmatprep.subr.mxu1 %v6799_v31  ;;  %v6185_v20 = vpop.eup %6184  ;;  %v2759_v31 = vmul.f32 %v6183_v60, %v6181_v44  ;;  %v6835_v44 = vld [vmem:[#allocation12 + $0xc78] sm:$0xff]  ;;  %v6838_v60 = vld [vmem:[#allocation12 + $0xbe8] sm:$0xff] }
 0x3e9   : > { %3288 = vmatpush1.msra.mxu0 %v6800_v17  ;;  %3359 = vmatpush1.msra.mxu1 %v6801_v11  ;;  %v6187_v5 = vpop.eup %6186  ;;  %v6822_v17 = vld [vmem:[#allocation12 + $0xde8] sm:$0xff]  ;;  %v6823_v11 = vld [vmem:[#allocation12 + $0xdf8] sm:$0xff] }
 0x3ea   : > { %3289 = vmatprep.subr.mxu0 %v6802_v52  ;;  %3360 = vmatprep.subr.mxu1 %v6803_v33  ;;  %v6824_v52 = vld [vmem:[#allocation12 + $0xde0] sm:$0xff]  ;;  %v6825_v33 = vld [vmem:[#allocation12 + $0xdf0] sm:$0xff] }
 0x3eb   : > { %3290 = vmatpush1.msra.mxu0 %v6804_v6  ;;  %3361 = vmatpush1.msra.mxu1 %v6805_v21  ;;  %v2757_v6 = vmul.f32 %v6185_v20, %v1782_v38  ;;  %v6826_v21 = vld [vmem:[#allocation12 + $0xd68] sm:$0xff]  ;;  %v6841_v20 = vld [vmem:[#allocation12 + $0xbf0] sm:$0xff] }
 0x3ec   : > { %3291 = vmatprep.subr.mxu0 %v6806_v29  ;;  %3362 = vmatprep.subr.mxu1 %v6807_v32  ;;  %v6827_v29 = vld [vmem:[#allocation12 + $0xd78] sm:$0xff]  ;;  %v2741_v32 = vadd.f32 1.0, %v6187_v5  ;;  %v6842_v38 = vld [vmem:[#allocation12 + $0xb68] sm:$0xff]  ;;  %v6845_v5 = vld [vmem:[#allocation12 + $0xb70] sm:$0xff] }
 0x3ed   : > { %3292 = vmatpush2.msra.mxu0 %v6808_v34  ;;  %3363 = vmatpush2.msra.mxu1 %v6809_v42  ;;  %v6828_v34 = vld [vmem:[#allocation12 + $0xd60] sm:$0xff]  ;;  %v6829_v42 = vld [vmem:[#allocation12 + $0xd70] sm:$0xff] }
 0x3ee   : > { %3293 = vmatprep.subr.mxu0 %v6810_v43  ;;  %3364 = vmatprep.subr.mxu1 %v6811_v48  ;;  %v9438_v43 = vadd.f32 %v2759_v31, %v2757_v6  ;;  %v6830_v48 = vld [vmem:[#allocation12 + $0xce8] sm:$0xff]  ;;  %6188 = vrcp.f32 %v2741_v32  ;;  %v6851_v6 = vld [vmem:[#allocation12 + $0xa78] sm:$0xff] }
 0x3ef   : > { %3294 = vmatpush2.msra.mxu0 %v6812_v62  ;;  %3365 = vmatpush2.msra.mxu1 %v6813_v40  ;;  %v6831_v62 = vld [vmem:[#allocation12 + $0xcf8] sm:$0xff]  ;;  %v6832_v40 = vld [vmem:[#allocation12 + $0xce0] sm:$0xff]  ;;  %v6846_v31 = vld [vmem:[#allocation12 + $0xae8] sm:$0xff] }
 0x3f0   : > { %3295 = vmatprep.subr.mxu0 %v6814_v63  ;;  %3366 = vmatprep.subr.mxu1 %v6815_v2  ;;  %v6833_v63 = vld [vmem:[#allocation12 + $0xcf0] sm:$0xff]  ;;  %v6834_v2 = vld [vmem:[#allocation12 + $0xc68] sm:$0xff]  ;;  %6190 = vtanh.f32 %v9438_v43 }
 0x3f1   : > { %3296 = vmatpush2.msra.mxu0 %v6816_v23  ;;  %3367 = vmatpush2.msra.mxu1 %v6817_v7  ;;  %v6836_v23 = vld [vmem:[#allocation12 + $0xc60] sm:$0xff]  ;;  %v6837_v7 = vld [vmem:[#allocation12 + $0xc70] sm:$0xff]  ;;  %v6854_v32 = vld [vmem:[#allocation12 + $0x9e8] sm:$0xff] }
 0x3f2   : > { %3297 = vmatprep.subr.mxu0 %v6818_v13  ;;  %3368 = vmatprep.subr.mxu1 %v6819_v0  ;;  %v6839_v13 = vld [vmem:[#allocation12 + $0xbf8] sm:$0xff]  ;;  %v6840_v0 = vld [vmem:[#allocation12 + $0xbe0] sm:$0xff] }
 0x3f3   : > { %3298 = vmatpush2.msra.mxu0 %v6820_v1  ;;  %3369 = vmatpush2.msra.mxu1 %v6821_v47  ;;  %v6843_v1 = vld [vmem:[#allocation12 + $0xb78] sm:$0xff]  ;;  %v6844_v47 = vld [vmem:[#allocation12 + $0xb60] sm:$0xff] }
 0x3f4   : > { %3299 = vmatprep.subr.mxu0 %v6822_v17  ;;  %3370 = vmatprep.subr.mxu1 %v6823_v11  ;;  %v6847_v17 = vld [vmem:[#allocation12 + $0xaf8] sm:$0xff]  ;;  %v6848_v11 = vld [vmem:[#allocation12 + $0xae0] sm:$0xff] }
 0x3f5   : > { %3300 = vmatpush2.msra.mxu0 %v6824_v52  ;;  %3371 = vmatpush2.msra.mxu1 %v6825_v33  ;;  %v6849_v52 = vld [vmem:[#allocation12 + $0xaf0] sm:$0xff]  ;;  %v6850_v33 = vld [vmem:[#allocation12 + $0xa68] sm:$0xff] }
 0x3f6   : > { %3301 = vmatprep.subr.mxu0 %v6826_v21  ;;  %3372 = vmatprep.subr.mxu1 %v6827_v29  ;;  %v6852_v21 = vld [vmem:[#allocation12 + $0xa60] sm:$0xff]  ;;  %v6853_v29 = vld [vmem:[#allocation12 + $0xa70] sm:$0xff] }
 0x3f7   : > { %3302 = vmatpush2.msra.mxu0 %v6828_v34  ;;  %3373 = vmatpush2.msra.mxu1 %v6829_v42  ;;  %v6855_v34 = vld [vmem:[#allocation12 + $0x9f8] sm:$0xff]  ;;  %v6856_v42 = vld [vmem:[#allocation12 + $0x9e0] sm:$0xff] }
 0x3f8   : > { %3303 = vmatprep.subr.mxu0 %v6830_v48  ;;  %3374 = vmatprep.subr.mxu1 %v6831_v62  ;;  %v6857_v48 = vld [vmem:[#allocation12 + $0x9f0] sm:$0xff]  ;;  %v6858_v62 = vld [vmem:[#allocation12 + $0x968] sm:$0xff] }
 0x3f9   : > { %3304 = vmatpush2.msra.mxu0 %v6832_v40  ;;  %3375 = vmatpush2.msra.mxu1 %v6833_v63  ;;  %v6859_v40 = vld [vmem:[#allocation12 + $0x978] sm:$0xff] }
 0x3fa   : > { %3305 = vmatprep.subr.mxu0 %v6834_v2  ;;  %3376 = vmatprep.subr.mxu1 %v6835_v44  ;;  %v6860_v44 = vld [vmem:[#allocation12 + $0x960] sm:$0xff] }
 0x3fb   : > { %3306 = vmatpush2.msra.mxu0 %v6836_v23  ;;  %3377 = vmatpush2.msra.mxu1 %v6837_v7  ;;  %v6861_v23 = vld [vmem:[#allocation12 + $0x970] sm:$0xff] }
 0x3fc   : > { %3307 = vmatprep.subr.mxu0 %v6838_v60  ;;  %3378 = vmatprep.subr.mxu1 %v6839_v13  ;;  %v6189_v13 = vpop.eup %6188 }
 0x3fd   : > { %3308 = vmatpush2.msra.mxu0 %v6840_v0  ;;  %3379 = vmatpush2.msra.mxu1 %v6841_v20  ;;  %v6862_v0 = vld [vmem:[#allocation12 + $0x8e8] sm:$0xff]  ;;  %v6863_v20 = vld [vmem:[#allocation12 + $0x8f8] sm:$0xff] }
 0x3fe   : > { %3309 = vmatprep.subr.mxu0 %v6842_v38  ;;  %3380 = vmatprep.subr.mxu1 %v6843_v1  ;;  %v6191_v38 = vpop.eup %6190  ;;  %v6864_v1 = vld [vmem:[#allocation12 + $0x8e0] sm:$0xff] }
 0x3ff   : > { %3310 = vmatpush2.msra.mxu0 %v6844_v47  ;;  %3381 = vmatpush2.msra.mxu1 %v6845_v5  ;;  %v6865_v47 = vld [vmem:[#allocation12 + $0x8f0] sm:$0xff]  ;;  %v6866_v5 = vld [vmem:[#allocation12 + $0x868] sm:$0xff] }
 0x400   : > { %3311 = vmatprep.subr.mxu0 %v6846_v31  ;;  %3382 = vmatprep.subr.mxu1 %v6847_v17  ;;  %v6867_v31 = vld [vmem:[#allocation12 + $0x878] sm:$0xff]  ;;  %v6868_v17 = vld [vmem:[#allocation12 + $0x860] sm:$0xff] }
 0x401   : > { %3312 = vmatpush2.msra.mxu0 %v6848_v11  ;;  %3383 = vmatpush2.msra.mxu1 %v6849_v52  ;;  %v6870_v11 = vld [vmem:[#allocation13 + $0x3c8] sm:$0xff]  ;;  %v6871_v52 = vld [vmem:[#allocation13 + $0x3d8] sm:$0xff] }
 0x402   : > { %3313 = vmatprep.subr.mxu0 %v6850_v33  ;;  %3384 = vmatprep.subr.mxu1 %v6851_v6  ;;  %v6872_v33 = vld [vmem:[#allocation13 + $0x3c0] sm:$0xff]  ;;  %v6873_v6 = vld [vmem:[#allocation13 + $0x3d0] sm:$0xff] }
 0x403   : > { %3314 = vmatpush2.msra.mxu0 %v6852_v21  ;;  %3385 = vmatpush2.msra.mxu1 %v6853_v29  ;;  %v6874_v21 = vld [vmem:[#allocation13 + $0x388] sm:$0xff]  ;;  %v6875_v29 = vld [vmem:[#allocation13 + $0x398] sm:$0xff] }
 0x404   : > { %3315 = vmatprep.subr.mxu0 %v6854_v32  ;;  %3386 = vmatprep.subr.mxu1 %v6855_v34  ;;  %v6876_v32 = vld [vmem:[#allocation13 + $0x380] sm:$0xff]  ;;  %v6878_v34 = vld [vmem:[#allocation13 + $0x348] sm:$0xff] }
 0x405   : > { %3316 = vmatpush2.msra.mxu0 %v6856_v42  ;;  %3387 = vmatpush2.msra.mxu1 %v6857_v48  ;;  %v6879_v42 = vld [vmem:[#allocation13 + $0x358] sm:$0xff]  ;;  %v6880_v48 = vld [vmem:[#allocation13 + $0x340] sm:$0xff] }
 0x406   : > { %3317 = vmatprep.subr.mxu0 %v6858_v62  ;;  %3388 = vmatprep.subr.mxu1 %v6859_v40  ;;  %v2899_v63 = vpop.f32.mrf.mxu0  ;;  %v2970_v2 = vpop.f32.mrf.mxu1  ;;  %v6881_v62 = vld [vmem:[#allocation13 + $0x350] sm:$0xff]  ;;  %v6882_v40 = vld [vmem:[#allocation13 + $0x308] sm:$0xff] }
 0x407   : > { %3318 = vmatpush2.msra.mxu0 %v6860_v44  ;;  %3389 = vmatpush2.msra.mxu1 %v6861_v23  ;;  %v9442_v7 = vadd.f32 %v2899_v63, %v9214_v49  ;;  %v9445_v60 = vadd.f32 %v2970_v2, %v9216_v50  ;;  %v6869_v49 = vld [vmem:[#allocation12 + $0x870] sm:$0xff]  ;;  %v9449_v50 = vmul.f32 %v6191_v38, %v6189_v13  ;;  %v6883_v63 = vld [vmem:[#allocation13 + $0x318] sm:$0xff]  ;;  %v6884_v2 = vld [vmem:[#allocation13 + $0x300] sm:$0xff] }
 0x408   : > { %3319 = vmatprep.subr.mxu0 %v6862_v0  ;;  %3390 = vmatprep.subr.mxu1 %v6863_v20  ;;  %v6885_v44 = vld [vmem:[#allocation13 + $0x310] sm:$0xff]  ;;  %v6886_v23 = vld [vmem:[#allocation13 + $0x2c8] sm:$0xff]  ;;  %v6887_v13 = vld [vmem:[#allocation13 + $0x2d8] sm:$0xff] }
 0x409   : > { %3320 = vmatpush2.msra.mxu0 %v6864_v1  ;;  %3391 = vmatpush2.msra.mxu1 %v6865_v47  ;;  %v6888_v0 = vld [vmem:[#allocation13 + $0x2c0] sm:$0xff]  ;;  %v6889_v20 = vld [vmem:[#allocation13 + $0x2d0] sm:$0xff]  ;;  %v6890_v38 = vld [vmem:[#allocation13 + $0x288] sm:$0xff] }
 0x40a   : > { %3321 = vmatprep.subr.mxu0 %v6866_v5  ;;  %3392 = vmatprep.subr.mxu1 %v6867_v31  ;;  %v6891_v1 = vld [vmem:[#allocation13 + $0x298] sm:$0xff]  ;;  %v6892_v47 = vld [vmem:[#allocation13 + $0x280] sm:$0xff]  ;;  %v6893_v5 = vld [vmem:[#allocation13 + $0x290] sm:$0xff] }
 0x40b   : > { %3322 = vmatpush2.msra.mxu0 %v6868_v17  ;;  %3393 = vmatpush2.msra.mxu1 %v6869_v49  ;;  %v6894_v31 = vld [vmem:[#allocation13 + $0x248] sm:$0xff]  ;;  %v6895_v17 = vld [vmem:[#allocation13 + $0x258] sm:$0xff]  ;;  %v9456_v49 = vrot.slane %v9379_v12, %v549_v59  ;;  %v6904_v12 = vld [vmem:[#allocation13 + $0x1c0] sm:$0xff] }
 0x40c   : > { %3324 = vmatmul.mubr.f32.vlgmr.msra.gmra.mxu0 %v9353_v30  ;;  %3395 = vmatmul.mubr.f32.vlgmr.msra.gmra.mxu1 %v9353_v30  ;;  %v6877_v30 = vld [vmem:[#allocation13 + $0x390] sm:$0xff] }
 0x40d   : > { %3401 = vmatprep.subr.mxu0 %v6870_v11  ;;  %3472 = vmatprep.subr.mxu1 %v6871_v52  ;;  %v2706_v11 = vadd.f32 %v9420_v14, %v9373_v19  ;;  %v6896_v52 = vld [vmem:[#allocation13 + $0x240] sm:$0xff]  ;;  %v6905_v19 = vld [vmem:[#allocation13 + $0x1d0] sm:$0xff]  ;;  %v6906_v14 = vld [vmem:[#allocation13 + $0x188] sm:$0xff] }
 0x40e   : > { %3402 = vmatpush1.msra.mxu0 %v6872_v33  ;;  %3465 = vmatprep.mubr.f32.mxu0 %v9449_v50  ;;  %v6897_v33 = vld [vmem:[#allocation13 + $0x250] sm:$0xff] }
 0x40f   : > { %3473 = vmatpush1.msra.mxu1 %v6873_v6  ;;  %3536 = vmatprep.mubr.f32.mxu1 %v9449_v50  ;;  %v6898_v6 = vld [vmem:[#allocation13 + $0x208] sm:$0xff]  ;;  %v2714_v59 = vadd.f32 %v2706_v11, %v9456_v49  ;;  %v6924_v11 = vld [vmem:[#allocation13 + $0x80] sm:$0xff] }
 0x410   : > { %3403 = vmatprep.subr.mxu0 %v6874_v21  ;;  %3474 = vmatprep.subr.mxu1 %v6875_v29  ;;  %v6899_v21 = vld [vmem:[#allocation13 + $0x218] sm:$0xff]  ;;  %v6900_v29 = vld [vmem:[#allocation13 + $0x200] sm:$0xff] }
 0x411   : > { %3404 = vmatpush1.msra.mxu0 %v6876_v32  ;;  %3475 = vmatpush1.msra.mxu1 %v6877_v30  ;;  %v6901_v32 = vld [vmem:[#allocation13 + $0x210] sm:$0xff]  ;;  %v6902_v30 = vld [vmem:[#allocation13 + $0x1c8] sm:$0xff] }
 0x412   : > { %3405 = vmatprep.subr.mxu0 %v6878_v34  ;;  %3476 = vmatprep.subr.mxu1 %v6879_v42  ;;  %v6907_v34 = vld [vmem:[#allocation13 + $0x198] sm:$0xff]  ;;  %v6908_v42 = vld [vmem:[#allocation13 + $0x180] sm:$0xff] }
 0x413   : > { %3406 = vmatpush1.msra.mxu0 %v6880_v48  ;;  %3477 = vmatpush1.msra.mxu1 %v6881_v62  ;;  %v6909_v48 = vld [vmem:[#allocation13 + $0x190] sm:$0xff]  ;;  %v6910_v62 = vld [vmem:[#allocation13 + $0x148] sm:$0xff] }
 0x414   : > { %3407 = vmatprep.subr.mxu0 %v6882_v40  ;;  %3478 = vmatprep.subr.mxu1 %v6883_v63  ;;  %v6911_v40 = vld [vmem:[#allocation13 + $0x158] sm:$0xff]  ;;  %v5927_v63 = vmul.f32 -1.442695, %v2714_v59  ;;  %v6932_v59 = vld [vmem:[#allocation13] sm:$0xff] }
 0x415   : > { %3408 = vmatpush1.msra.mxu0 %v6884_v2  ;;  %3479 = vmatpush1.msra.mxu1 %v6885_v44  ;;  %v6912_v2 = vld [vmem:[#allocation13 + $0x140] sm:$0xff]  ;;  %v6913_v44 = vld [vmem:[#allocation13 + $0x150] sm:$0xff] }
 0x416   : > { %3409 = vmatprep.subr.mxu0 %v6886_v23  ;;  %3480 = vmatprep.subr.mxu1 %v6887_v13  ;;  %v6914_v23 = vld [vmem:[#allocation13 + $0x108] sm:$0xff]  ;;  %v6915_v13 = vld [vmem:[#allocation13 + $0x118] sm:$0xff]  ;;  %6192 = vpow2.f32 %v5927_v63 }
 0x417   : > { %3410 = vmatpush1.msra.mxu0 %v6888_v0  ;;  %3481 = vmatpush1.msra.mxu1 %v6889_v20  ;;  %v6916_v0 = vld [vmem:[#allocation13 + $0x100] sm:$0xff]  ;;  %v6917_v20 = vld [vmem:[#allocation13 + $0x110] sm:$0xff]  ;;  %v6939_v63 = vld [vmem:[#allocation13 + $0x798] sm:$0xff] }
 0x418   : > { %3411 = vmatprep.subr.mxu0 %v6890_v38  ;;  %3482 = vmatprep.subr.mxu1 %v6891_v1  ;;  %v6918_v38 = vld [vmem:[#allocation13 + $0xc8] sm:$0xff]  ;;  %v6919_v1 = vld [vmem:[#allocation13 + $0xd8] sm:$0xff] }
 0x419   : > { %3412 = vmatpush1.msra.mxu0 %v6892_v47  ;;  %3483 = vmatpush1.msra.mxu1 %v6893_v5  ;;  %v6920_v47 = vld [vmem:[#allocation13 + $0xc0] sm:$0xff]  ;;  %v6921_v5 = vld [vmem:[#allocation13 + $0xd0] sm:$0xff] }
 0x41a   : > { %3413 = vmatprep.subr.mxu0 %v6894_v31  ;;  %3484 = vmatprep.subr.mxu1 %v6895_v17  ;;  %v6922_v31 = vld [vmem:[#allocation13 + $0x88] sm:$0xff]  ;;  %v6923_v17 = vld [vmem:[#allocation13 + $0x98] sm:$0xff] }
 0x41b   : > { %3414 = vmatpush1.msra.mxu0 %v6896_v52  ;;  %3485 = vmatpush1.msra.mxu1 %v6897_v33  ;;  %v6925_v52 = vld [vmem:[#allocation13 + $0x90] sm:$0xff]  ;;  %v6926_v33 = vld [vmem:[#allocation13 + $0x48] sm:$0xff] }
 0x41c   : > { %3415 = vmatprep.subr.mxu0 %v6898_v6  ;;  %3486 = vmatprep.subr.mxu1 %v6899_v21  ;;  %v6927_v6 = vld [vmem:[#allocation13 + $0x58] sm:$0xff]  ;;  %v6928_v21 = vld [vmem:[#allocation13 + $0x40] sm:$0xff] }
 0x41d   : > { %3416 = vmatpush1.msra.mxu0 %v6900_v29  ;;  %3487 = vmatpush1.msra.mxu1 %v6901_v32  ;;  %v6929_v29 = vld [vmem:[#allocation13 + $0x50] sm:$0xff]  ;;  %v6930_v32 = vld [vmem:[#allocation13 + $0x8] sm:$0xff] }
 0x41e   : > { %3417 = vmatprep.subr.mxu0 %v6902_v30  ;;  %3488 = vmatprep.subr.mxu1 %v6903_v10  ;;  %v6931_v30 = vld [vmem:[#allocation13 + $0x18] sm:$0xff]  ;;  %v2972_v10 = vpop.f32.mrf.mxu1 }
 0x41f   : > { %3418 = vmatpush1.msra.mxu0 %v6904_v12  ;;  %3489 = vmatpush1.msra.mxu1 %v6905_v19  ;;  %v6933_v12 = vld [vmem:[#allocation13 + $0x10] sm:$0xff]  ;;  %v2901_v19 = vpop.f32.mrf.mxu0 }
 0x420   : > { %3419 = vmatprep.subr.mxu0 %v6906_v14  ;;  %3490 = vmatprep.subr.mxu1 %v6907_v34  ;;  %v6934_v14 = vld [vmem:[#allocation13 + $0x7c8] sm:$0xff]  ;;  %v6935_v34 = vld [vmem:[#allocation13 + $0x7d8] sm:$0xff] }
 0x421   : > { %3420 = vmatpush1.msra.mxu0 %v6908_v42  ;;  %3491 = vmatpush1.msra.mxu1 %v6909_v48  ;;  %v6936_v42 = vld [vmem:[#allocation13 + $0x7c0] sm:$0xff]  ;;  %v6937_v48 = vld [vmem:[#allocation13 + $0x7d0] sm:$0xff] }
 0x422   : > { %3421 = vmatprep.subr.mxu0 %v6910_v62  ;;  %3492 = vmatprep.subr.mxu1 %v6911_v40  ;;  %v3763_v62 = vadd.f32 %v2972_v10, %v9220_v54  ;;  %v6938_v40 = vld [vmem:[#allocation13 + $0x788] sm:$0xff]  ;;  %v6945_v54 = vld [vmem:[#allocation13 + $0x750] sm:$0xff] }
 0x423   : > { %3422 = vmatpush1.msra.mxu0 %v6912_v2  ;;  %3493 = vmatpush1.msra.mxu1 %v6913_v44  ;;  %v5943_v2 = vmul.f32 -1.442695, %v9445_v60  ;;  %v3761_v44 = vadd.f32 %v2901_v19, %v9218_v53  ;;  %v6947_v60 = vld [vmem:[#allocation13 + $0x718] sm:$0xff]  ;;  %v6957_v10 = vld [vmem:[#allocation13 + $0x690] sm:$0xff]  ;;  %v6960_v19 = vld [vmem:[#allocation13 + $0x640] sm:$0xff] }
 0x424   : > { %3423 = vmatprep.subr.mxu0 %v6914_v23  ;;  %3494 = vmatprep.subr.mxu1 %v6915_v13  ;;  %v6940_v23 = vld [vmem:[#allocation13 + $0x780] sm:$0xff]  ;;  %v6941_v13 = vld [vmem:[#allocation13 + $0x790] sm:$0xff] }
 0x425   : > { %3424 = vmatpush1.msra.mxu0 %v6916_v0  ;;  %3495 = vmatpush1.msra.mxu1 %v6917_v20  ;;  %v5941_v0 = vmul.f32 -1.442695, %v9442_v7  ;;  %v6942_v20 = vld [vmem:[#allocation13 + $0x748] sm:$0xff]  ;;  %6194 = vpow2.f32 %v5943_v2  ;;  %v5942_v53 = vmul.f32 -1.442695, %v3761_v44  ;;  %v6968_v2 = vld [vmem:[#allocation13 + $0x5c0] sm:$0xff] }
 0x426   : > { %3425 = vmatprep.subr.mxu0 %v6918_v38  ;;  %3496 = vmatprep.subr.mxu1 %v6919_v1  ;;  %v6943_v38 = vld [vmem:[#allocation13 + $0x758] sm:$0xff]  ;;  %v6944_v1 = vld [vmem:[#allocation13 + $0x740] sm:$0xff]  ;;  %v6950_v7 = vld [vmem:[#allocation13 + $0x6c8] sm:$0xff] }
 0x427   : > { %3426 = vmatpush1.msra.mxu0 %v6920_v47  ;;  %3497 = vmatpush1.msra.mxu1 %v6921_v5  ;;  %v6193_v47 = vpop.eup %6192  ;;  %v5944_v5 = vmul.f32 -1.442695, %v3763_v62  ;;  %6196 = vpow2.f32 %v5941_v0  ;;  %v6965_v62 = vld [vmem:[#allocation13 + $0x610] sm:$0xff]  ;;  %v6972_v0 = vld [vmem:[#allocation13 + $0x580] sm:$0xff] }
 0x428   : > { %3427 = vmatprep.subr.mxu0 %v6922_v31  ;;  %3498 = vmatprep.subr.mxu1 %v6923_v17  ;;  %v6946_v31 = vld [vmem:[#allocation13 + $0x708] sm:$0xff]  ;;  %v6948_v17 = vld [vmem:[#allocation13 + $0x700] sm:$0xff]  ;;  %v6969_v44 = vld [vmem:[#allocation13 + $0x5d0] sm:$0xff] }
 0x429   : > { %3428 = vmatpush1.msra.mxu0 %v6924_v11  ;;  %3499 = vmatpush1.msra.mxu1 %v6925_v52  ;;  %v6949_v11 = vld [vmem:[#allocation13 + $0x710] sm:$0xff]  ;;  %v6951_v52 = vld [vmem:[#allocation13 + $0x6d8] sm:$0xff]  ;;  %6198 = vpow2.f32 %v5944_v5  ;;  %v6976_v5 = vld [vmem:[#allocation13 + $0x540] sm:$0xff] }
 0x42a   : > { %3429 = vmatprep.subr.mxu0 %v6926_v33  ;;  %3500 = vmatprep.subr.mxu1 %v6927_v6  ;;  %v2740_v33 = vadd.f32 1.0, %v6193_v47  ;;  %v6952_v6 = vld [vmem:[#allocation13 + $0x6c0] sm:$0xff]  ;;  %6200 = vpow2.f32 %v5942_v53  ;;  %v6979_v53 = vld [vmem:[#allocation13 + $0x518] sm:$0xff] }
 0x42b   : > { %3430 = vmatpush1.msra.mxu0 %v6928_v21  ;;  %3501 = vmatpush1.msra.mxu1 %v6929_v29  ;;  %v6953_v21 = vld [vmem:[#allocation13 + $0x6d0] sm:$0xff]  ;;  %v6954_v29 = vld [vmem:[#allocation13 + $0x688] sm:$0xff] }
 0x42c   : > { %3431 = vmatprep.subr.mxu0 %v6930_v32  ;;  %3502 = vmatprep.subr.mxu1 %v6931_v30  ;;  %v6955_v32 = vld [vmem:[#allocation13 + $0x698] sm:$0xff]  ;;  %v6956_v30 = vld [vmem:[#allocation13 + $0x680] sm:$0xff]  ;;  %6202 = vrcp.f32 %v2740_v33 }
 0x42d   : > { %3432 = vmatpush1.msra.mxu0 %v6932_v59  ;;  %3503 = vmatpush1.msra.mxu1 %v6933_v12  ;;  %v6958_v59 = vld [vmem:[#allocation13 + $0x648] sm:$0xff]  ;;  %v6959_v12 = vld [vmem:[#allocation13 + $0x658] sm:$0xff]  ;;  %6204 = vtanh.f32 %v9422_v41 }
 0x42e   : > { %3433 = vmatprep.subr.mxu0 %v6934_v14  ;;  %3504 = vmatprep.subr.mxu1 %v6935_v34  ;;  %v6961_v14 = vld [vmem:[#allocation13 + $0x650] sm:$0xff]  ;;  %v6962_v34 = vld [vmem:[#allocation13 + $0x608] sm:$0xff] }
 0x42f   : > { %3434 = vmatpush2.msra.mxu0 %v6936_v42  ;;  %3505 = vmatpush2.msra.mxu1 %v6937_v48  ;;  %v6963_v42 = vld [vmem:[#allocation13 + $0x618] sm:$0xff]  ;;  %v6964_v48 = vld [vmem:[#allocation13 + $0x600] sm:$0xff] }
 0x430   : > { %3435 = vmatprep.subr.mxu0 %v6938_v40  ;;  %3506 = vmatprep.subr.mxu1 %v6939_v63  ;;  %v6966_v40 = vld [vmem:[#allocation13 + $0x5c8] sm:$0xff]  ;;  %v6967_v63 = vld [vmem:[#allocation13 + $0x5d8] sm:$0xff] }
 0x431   : > { %3436 = vmatpush2.msra.mxu0 %v6940_v23  ;;  %3507 = vmatpush2.msra.mxu1 %v6941_v13  ;;  %v6970_v23 = vld [vmem:[#allocation13 + $0x588] sm:$0xff]  ;;  %v6971_v13 = vld [vmem:[#allocation13 + $0x598] sm:$0xff] }
 0x432   : > { %3437 = vmatprep.subr.mxu0 %v6942_v20  ;;  %3508 = vmatprep.subr.mxu1 %v6943_v38  ;;  %v6973_v20 = vld [vmem:[#allocation13 + $0x590] sm:$0xff]  ;;  %v6195_v38 = vpop.eup %6194 }
 0x433   : > { %3438 = vmatpush2.msra.mxu0 %v6944_v1  ;;  %3509 = vmatpush2.msra.mxu1 %v6945_v54  ;;  %v6974_v1 = vld [vmem:[#allocation13 + $0x548] sm:$0xff]  ;;  %v6975_v54 = vld [vmem:[#allocation13 + $0x558] sm:$0xff] }
 0x434   : > { %3439 = vmatprep.subr.mxu0 %v6946_v31  ;;  %3510 = vmatprep.subr.mxu1 %v6947_v60  ;;  %v6197_v47 = vpop.eup %6196  ;;  %v6977_v31 = vld [vmem:[#allocation13 + $0x550] sm:$0xff]  ;;  %v6978_v60 = vld [vmem:[#allocation13 + $0x508] sm:$0xff] }
 0x435   : > { %3440 = vmatpush2.msra.mxu0 %v6948_v17  ;;  %3511 = vmatpush2.msra.mxu1 %v6949_v11  ;;  %v3788_v11 = vadd.f32 1.0, %v6195_v38 }
 0x436   : > { %3441 = vmatprep.subr.mxu0 %v6950_v7  ;;  %3512 = vmatprep.subr.mxu1 %v6951_v52  ;;  %v6199_v17 = vpop.eup %6198  ;;  %v6980_v7 = vld [vmem:[#allocation13 + $0x500] sm:$0xff]  ;;  %v6981_v52 = vld [vmem:[#allocation13 + $0x510] sm:$0xff] }
 0x437   : > { %3442 = vmatpush2.msra.mxu0 %v6952_v6  ;;  %3513 = vmatpush2.msra.mxu1 %v6953_v21  ;;  %v6201_v33 = vpop.eup %6200  ;;  %v3786_v6 = vadd.f32 1.0, %v6197_v47  ;;  %v6982_v21 = vld [vmem:[#allocation13 + $0x4c8] sm:$0xff]  ;;  %6206 = vrcp.f32 %v3788_v11  ;;  %v7001_v11 = vld [vmem:[#allocation13 + $0x3f0] sm:$0xff] }
 0x438   : > { %3443 = vmatprep.subr.mxu0 %v6954_v29  ;;  %3514 = vmatprep.subr.mxu1 %v6955_v32  ;;  %v6983_v29 = vld [vmem:[#allocation13 + $0x4d8] sm:$0xff]  ;;  %v828_v32 = vadd.f32 %v9290_v27, %v9237_v8  ;;  %v3787_v27 = vadd.f32 1.0, %v6201_v33  ;;  %v7004_v33 = vld [vmem:[#allocation13 + $0x3a0] sm:$0xff] }
 0x439   : > { %3444 = vmatpush2.msra.mxu0 %v6956_v30  ;;  %3515 = vmatpush2.msra.mxu1 %v6957_v10  ;;  %v917_v30 = vadd.f32 %v9292_v28, %v9242_v9  ;;  %v6984_v10 = vld [vmem:[#allocation13 + $0x4c0] sm:$0xff]  ;;  %v6989_v28 = vld [vmem:[#allocation13 + $0x490] sm:$0xff]  ;;  %6208 = vrcp.f32 %v3786_v6 }
 0x43a   : > { %3445 = vmatprep.subr.mxu0 %v6958_v59  ;;  %3516 = vmatprep.subr.mxu1 %v6959_v12  ;;  %v6985_v59 = vld [vmem:[#allocation13 + $0x4d0] sm:$0xff]  ;;  %v6203_v12 = vpop.eup %6202 }
 0x43b   : > { %3446 = vmatpush2.msra.mxu0 %v6960_v19  ;;  %3517 = vmatpush2.msra.mxu1 %v6961_v14  ;;  %v919_v19 = vadd.f32 %v9296_v37, %v9252_v18  ;;  %v3789_v14 = vadd.f32 1.0, %v6199_v17  ;;  %v6991_v37 = vld [vmem:[#allocation13 + $0x458] sm:$0xff]  ;;  %v7000_v17 = vld [vmem:[#allocation13 + $0x3e0] sm:$0xff]  ;;  %v7005_v6 = vld [vmem:[#allocation13 + $0x3b0] sm:$0xff] }
 0x43c   : > { %3447 = vmatprep.subr.mxu0 %v6962_v34  ;;  %3518 = vmatprep.subr.mxu1 %v6963_v42  ;;  %v6986_v34 = vld [vmem:[#allocation13 + $0x488] sm:$0xff]  ;;  %v6987_v42 = vld [vmem:[#allocation13 + $0x498] sm:$0xff] }
 0x43d   : > { %3448 = vmatpush2.msra.mxu0 %v6964_v48  ;;  %3519 = vmatpush2.msra.mxu1 %v6965_v62 }
 0x43e   : > { %3449 = vmatprep.subr.mxu0 %v6966_v40  ;;  %3520 = vmatprep.subr.mxu1 %v6967_v63  ;;  %v6205_v40 = vpop.eup %6204  ;;  %v6988_v63 = vld [vmem:[#allocation13 + $0x480] sm:$0xff] }
 0x43f   : > { %3450 = vmatpush2.msra.mxu0 %v6968_v2  ;;  %3521 = vmatpush2.msra.mxu1 %v6969_v44  ;;  %v9474_v47 = vmul.f32 %v6205_v40, %v6203_v12 }
 0x440   : > { %3451 = vmatprep.subr.mxu0 %v6970_v23  ;;  %3522 = vmatprep.subr.mxu1 %v6971_v13  ;;  %v6990_v23 = vld [vmem:[#allocation13 + $0x448] sm:$0xff] }
 0x441   : > { %3452 = vmatpush2.msra.mxu0 %v6972_v0  ;;  %3523 = vmatpush2.msra.mxu1 %v6973_v20  ;;  %v6992_v0 = vld [vmem:[#allocation13 + $0x440] sm:$0xff]  ;;  %v6993_v20 = vld [vmem:[#allocation13 + $0x450] sm:$0xff] }
 0x442   : > { %3453 = vmatprep.subr.mxu0 %v6974_v1  ;;  %3524 = vmatprep.subr.mxu1 %v6975_v54  ;;  %v6994_v1 = vld [vmem:[#allocation13 + $0x408] sm:$0xff]  ;;  %v6995_v54 = vld [vmem:[#allocation13 + $0x418] sm:$0xff] }
 0x443   : > { %3454 = vmatpush2.msra.mxu0 %v6976_v5  ;;  %3525 = vmatpush2.msra.mxu1 %v6977_v31  ;;  %v6996_v5 = vld [vmem:[#allocation13 + $0x400] sm:$0xff]  ;;  %v6997_v31 = vld [vmem:[#allocation13 + $0x410] sm:$0xff] }
 0x444   : > { %3455 = vmatprep.subr.mxu0 %v6978_v60  ;;  %3526 = vmatprep.subr.mxu1 %v6979_v53  ;;  %v6998_v60 = vld [vmem:[#allocation13 + $0x3e8] sm:$0xff]  ;;  %v6999_v53 = vld [vmem:[#allocation13 + $0x3f8] sm:$0xff] }
 0x445   : > { %3456 = vmatpush2.msra.mxu0 %v6980_v7  ;;  %3527 = vmatpush2.msra.mxu1 %v6981_v52  ;;  %v7002_v7 = vld [vmem:[#allocation13 + $0x3a8] sm:$0xff]  ;;  %v7003_v52 = vld [vmem:[#allocation13 + $0x3b8] sm:$0xff] }
 0x446   : > { %3457 = vmatprep.subr.mxu0 %v6982_v21  ;;  %3528 = vmatprep.subr.mxu1 %v6983_v29  ;;  %v7006_v21 = vld [vmem:[#allocation13 + $0x368] sm:$0xff]  ;;  %v7007_v29 = vld [vmem:[#allocation13 + $0x378] sm:$0xff] }
 0x447   : > { %3458 = vmatpush2.msra.mxu0 %v6984_v10  ;;  %3529 = vmatpush2.msra.mxu1 %v6985_v59  ;;  %v6207_v10 = vpop.eup %6206  ;;  %v7010_v59 = vld [vmem:[#allocation13 + $0x328] sm:$0xff] }
 0x448   : > { %3459 = vmatprep.subr.mxu0 %v6986_v34  ;;  %3530 = vmatprep.subr.mxu1 %v6987_v42  ;;  %v3041_v48 = vpop.f32.mrf.mxu0  ;;  %v3112_v62 = vpop.f32.mrf.mxu1  ;;  %v7014_v42 = vld [vmem:[#allocation13 + $0x2e8] sm:$0xff]  ;;  %v3806_v40 = vmul.f32 %v6207_v10, %v9335_v35  ;;  %v7035_v10 = vld [vmem:[#allocation13 + $0x1b8] sm:$0xff] }
 0x449   : > { %3460 = vmatpush2.msra.mxu0 %v6988_v63  ;;  %3531 = vmatpush2.msra.mxu1 %v6989_v28  ;;  %v9472_v2 = vadd.f32 %v3041_v48, %v828_v32  ;;  %v3766_v44 = vadd.f32 %v3112_v62, %v917_v30  ;;  %v7008_v32 = vld [vmem:[#allocation13 + $0x360] sm:$0xff]  ;;  %v7009_v30 = vld [vmem:[#allocation13 + $0x370] sm:$0xff]  ;;  %v6209_v12 = vpop.eup %6208  ;;  %v7015_v48 = vld [vmem:[#allocation13 + $0x2f8] sm:$0xff] }
 0x44a   : > { %3461 = vmatprep.subr.mxu0 %v6990_v23  ;;  %3532 = vmatprep.subr.mxu1 %v6991_v37  ;;  %v3114_v13 = vpop.f32.mrf.mxu1  ;;  %v7016_v63 = vld [vmem:[#allocation13 + $0x2e0] sm:$0xff]  ;;  %v7017_v28 = vld [vmem:[#allocation13 + $0x2f0] sm:$0xff]  ;;  %v7018_v23 = vld [vmem:[#allocation13 + $0x2a8] sm:$0xff] }
 0x44b   : > { %3462 = vmatpush2.msra.mxu0 %v6992_v0  ;;  %3533 = vmatpush2.msra.mxu1 %v6993_v20  ;;  %6210 = vtanh.f32 %v3766_v44  ;;  %v3767_v38 = vadd.f32 %v3114_v13, %v919_v19  ;;  %v7012_v19 = vld [vmem:[#allocation13 + $0x320] sm:$0xff]  ;;  %v7019_v37 = vld [vmem:[#allocation13 + $0x2b8] sm:$0xff] }
 0x44c   : > { %6212 = vrcp.f32 %v3789_v14  ;;  %3463 = vmatprep.subr.mxu0 %v6994_v1  ;;  %3534 = vmatprep.subr.mxu1 %v6995_v54  ;;  %v7013_v14 = vld [vmem:[#allocation13 + $0x330] sm:$0xff]  ;;  %v7020_v20 = vld [vmem:[#allocation13 + $0x2a0] sm:$0xff]  ;;  %v7022_v54 = vld [vmem:[#allocation13 + $0x268] sm:$0xff] }
 0x44d   : > { %6214 = vrcp.f32 %v3787_v27  ;;  %3464 = vmatpush2.msra.mxu0 %v6996_v5  ;;  %3535 = vmatpush2.msra.mxu1 %v6997_v31  ;;  %v7023_v5 = vld [vmem:[#allocation13 + $0x278] sm:$0xff]  ;;  %v7024_v31 = vld [vmem:[#allocation13 + $0x260] sm:$0xff] }
 0x44e   : > { %3466 = vmatmul.mubr.f32.vlgmr.msra.gmra.mxu0 %v9474_v47  ;;  %3537 = vmatmul.mubr.f32.vlgmr.msra.gmra.mxu1 %v9474_v47  ;;  %6216 = vtanh.f32 %v3767_v38  ;;  %v7021_v38 = vld [vmem:[#allocation13 + $0x2b0] sm:$0xff] }
 0x44f   : > { %3543 = vmatprep.subr.mxu0 %v6998_v60  ;;  %3614 = vmatprep.subr.mxu1 %v6999_v53  ;;  %v7025_v60 = vld [vmem:[#allocation13 + $0x270] sm:$0xff] }
 0x450   : > { %3544 = vmatpush1.msra.mxu0 %v7000_v17  ;;  %3607 = vmatprep.mubr.f32.mxu0 %v9449_v50  ;;  %v7026_v17 = vld [vmem:[#allocation13 + $0x228] sm:$0xff] }
 0x451   : > { %3615 = vmatpush1.msra.mxu1 %v7001_v11  ;;  %3678 = vmatprep.mubr.f32.mxu1 %v9449_v50  ;;  %v7011_v50 = vld [vmem:[#allocation13 + $0x338] sm:$0xff] }
 0x452   : > { %3545 = vmatprep.subr.mxu0 %v7002_v7  ;;  %3616 = vmatprep.subr.mxu1 %v7003_v52  ;;  %v7027_v11 = vld [vmem:[#allocation13 + $0x238] sm:$0xff]  ;;  %v7028_v7 = vld [vmem:[#allocation13 + $0x220] sm:$0xff]  ;;  %v7029_v52 = vld [vmem:[#allocation13 + $0x230] sm:$0xff] }
 0x453   : > { %3546 = vmatpush1.msra.mxu0 %v7004_v33  ;;  %3617 = vmatpush1.msra.mxu1 %v7005_v6  ;;  %v7030_v33 = vld [vmem:[#allocation13 + $0x1e8] sm:$0xff]  ;;  %v7031_v6 = vld [vmem:[#allocation13 + $0x1f8] sm:$0xff] }
 0x454   : > { %3547 = vmatprep.subr.mxu0 %v7006_v21  ;;  %3618 = vmatprep.subr.mxu1 %v7007_v29  ;;  %v830_v21 = vadd.f32 %v9294_v36, %v9247_v16  ;;  %v7032_v29 = vld [vmem:[#allocation13 + $0x1e0] sm:$0xff]  ;;  %v7041_v36 = vld [vmem:[#allocation13 + $0x170] sm:$0xff] }
 0x455   : > { %3548 = vmatpush1.msra.mxu0 %v7008_v32  ;;  %3619 = vmatpush1.msra.mxu1 %v7009_v30  ;;  %v7033_v32 = vld [vmem:[#allocation13 + $0x1f0] sm:$0xff]  ;;  %v7034_v30 = vld [vmem:[#allocation13 + $0x1a8] sm:$0xff] }
 0x456   : > { %3549 = vmatprep.subr.mxu0 %v7010_v59  ;;  %3620 = vmatprep.subr.mxu1 %v7011_v50  ;;  %v7036_v50 = vld [vmem:[#allocation13 + $0x1a0] sm:$0xff] }
 0x457   : > { %3550 = vmatpush1.msra.mxu0 %v7012_v19  ;;  %3621 = vmatpush1.msra.mxu1 %v7013_v14  ;;  %v7038_v19 = vld [vmem:[#allocation13 + $0x168] sm:$0xff]  ;;  %v7039_v14 = vld [vmem:[#allocation13 + $0x178] sm:$0xff] }
 0x458   : > { %v6211_v34 = vpop.eup %6210  ;;  %3551 = vmatprep.subr.mxu0 %v7014_v42  ;;  %3622 = vmatprep.subr.mxu1 %v7015_v48  ;;  %v7042_v42 = vld [vmem:[#allocation13 + $0x128] sm:$0xff]  ;;  %v7043_v48 = vld [vmem:[#allocation13 + $0x138] sm:$0xff] }
 0x459   : > { %v6213_v62 = vpop.eup %6212  ;;  %v3808_v27 = vmul.f32 %v6211_v34, %v6209_v12  ;;  %3552 = vmatpush1.msra.mxu0 %v7016_v63  ;;  %3623 = vmatpush1.msra.mxu1 %v7017_v28  ;;  %v7037_v12 = vld [vmem:[#allocation13 + $0x1b0] sm:$0xff]  ;;  %v7040_v34 = vld [vmem:[#allocation13 + $0x160] sm:$0xff]  ;;  %v7046_v63 = vld [vmem:[#allocation13 + $0xe8] sm:$0xff] }
 0x45a   : > { %v6215_v44 = vpop.eup %6214  ;;  %3553 = vmatprep.subr.mxu0 %v7018_v23  ;;  %3624 = vmatprep.subr.mxu1 %v7019_v37  ;;  %v3807_v1 = vmul.f32 %v6213_v62, %v9338_v55  ;;  %v3043_v55 = vpop.f32.mrf.mxu0  ;;  %v7047_v28 = vld [vmem:[#allocation13 + $0xf8] sm:$0xff]  ;;  %v7049_v23 = vld [vmem:[#allocation13 + $0xf0] sm:$0xff]  ;;  %v7050_v37 = vld [vmem:[#allocation13 + $0xa8] sm:$0xff] }
 0x45b   : > { %v6217_v13 = vpop.eup %6216  ;;  %v9481_v0 = vadd.f32 %v3808_v27, %v3806_v40  ;;  %3554 = vmatpush1.msra.mxu0 %v7020_v20  ;;  %3625 = vmatpush1.msra.mxu1 %v7021_v38  ;;  %v3765_v59 = vadd.f32 %v3043_v55, %v830_v21  ;;  %v7044_v40 = vld [vmem:[#allocation13 + $0x120] sm:$0xff]  ;;  %v7045_v27 = vld [vmem:[#allocation13 + $0x130] sm:$0xff]  ;;  %v7067_v21 = vld [vmem:[#allocation13 + $0x7b8] sm:$0xff] }
 0x45c   : > { %v3809_v35 = vmul.f32 %v6217_v13, %v6215_v44  ;;  %3555 = vmatprep.subr.mxu0 %v7022_v54  ;;  %3626 = vmatprep.subr.mxu1 %v7023_v5  ;;  %v7048_v44 = vld [vmem:[#allocation13 + $0xe0] sm:$0xff]  ;;  %v7051_v13 = vld [vmem:[#allocation13 + $0xb8] sm:$0xff]  ;;  %v7053_v38 = vld [vmem:[#allocation13 + $0xb0] sm:$0xff] }
 0x45d   : > { %3556 = vmatpush1.msra.mxu0 %v7024_v31  ;;  %3627 = vmatpush1.msra.mxu1 %v7025_v60  ;;  %v5946_v62 = vmul.f32 -1.442695, %v3765_v59  ;;  %v7052_v20 = vld [vmem:[#allocation13 + $0xa0] sm:$0xff]  ;;  %v7057_v5 = vld [vmem:[#allocation13 + $0x70] sm:$0xff]  ;;  %v7058_v31 = vld [vmem:[#allocation13 + $0x28] sm:$0xff] }
 0x45e   : > { %v9484_v53 = vadd.f32 %v3809_v35, %v3807_v1  ;;  %3557 = vmatprep.subr.mxu0 %v7026_v17  ;;  %3628 = vmatprep.subr.mxu1 %v7027_v11  ;;  %v7054_v1 = vld [vmem:[#allocation13 + $0x68] sm:$0xff]  ;;  %v7055_v35 = vld [vmem:[#allocation13 + $0x78] sm:$0xff]  ;;  %v7056_v54 = vld [vmem:[#allocation13 + $0x60] sm:$0xff] }
 0x45f   : > { %3558 = vmatpush1.msra.mxu0 %v7028_v7  ;;  %3629 = vmatpush1.msra.mxu1 %v7029_v52  ;;  %6218 = vpow2.f32 %v5946_v62  ;;  %v7059_v60 = vld [vmem:[#allocation13 + $0x38] sm:$0xff]  ;;  %v7060_v17 = vld [vmem:[#allocation13 + $0x20] sm:$0xff]  ;;  %v7061_v11 = vld [vmem:[#allocation13 + $0x30] sm:$0xff] }
 0x460   : > { %3559 = vmatprep.subr.mxu0 %v7030_v33  ;;  %3630 = vmatprep.subr.mxu1 %v7031_v6  ;;  %v7062_v7 = vld [vmem:[#allocation13 + $0x7e8] sm:$0xff]  ;;  %v7063_v52 = vld [vmem:[#allocation13 + $0x7f8] sm:$0xff]  ;;  %v7064_v55 = vld [vmem:[#allocation13 + $0x7e0] sm:$0xff] }
 0x461   : > { %3560 = vmatpush1.msra.mxu0 %v7032_v29  ;;  %3631 = vmatpush1.msra.mxu1 %v7033_v32  ;;  %v7065_v33 = vld [vmem:[#allocation13 + $0x7f0] sm:$0xff]  ;;  %v7066_v6 = vld [vmem:[#allocation13 + $0x7a8] sm:$0xff]  ;;  %v7068_v29 = vld [vmem:[#allocation13 + $0x7a0] sm:$0xff] }
 0x462   : > { %3561 = vmatprep.subr.mxu0 %v7034_v30  ;;  %3632 = vmatprep.subr.mxu1 %v7035_v10  ;;  %v7069_v32 = vld [vmem:[#allocation13 + $0x7b0] sm:$0xff]  ;;  %v7070_v30 = vld [vmem:[#allocation13 + $0x768] sm:$0xff]  ;;  %v7071_v10 = vld [vmem:[#allocation13 + $0x778] sm:$0xff] }
 0x463   : > { %3562 = vmatpush1.msra.mxu0 %v7036_v50  ;;  %3633 = vmatpush1.msra.mxu1 %v7037_v12  ;;  %v7072_v59 = vld [vmem:[#allocation13 + $0x760] sm:$0xff]  ;;  %v7073_v50 = vld [vmem:[#allocation13 + $0x770] sm:$0xff]  ;;  %v7074_v12 = vld [vmem:[#allocation13 + $0x728] sm:$0xff] }
 0x464   : > { %3563 = vmatprep.subr.mxu0 %v7038_v19  ;;  %3634 = vmatprep.subr.mxu1 %v7039_v14  ;;  %v7075_v19 = vld [vmem:[#allocation13 + $0x738] sm:$0xff]  ;;  %v7076_v14 = vld [vmem:[#allocation13 + $0x720] sm:$0xff] }
 0x465   : > { %3564 = vmatpush1.msra.mxu0 %v7040_v34  ;;  %3635 = vmatpush1.msra.mxu1 %v7041_v36  ;;  %v7077_v34 = vld [vmem:[#allocation13 + $0x730] sm:$0xff]  ;;  %v7080_v62 = vld [vmem:[#allocation13 + $0x6e0] sm:$0xff] }
 0x466   : > { %3565 = vmatprep.subr.mxu0 %v7042_v42  ;;  %3636 = vmatprep.subr.mxu1 %v7043_v48  ;;  %v7078_v42 = vld [vmem:[#allocation13 + $0x6e8] sm:$0xff]  ;;  %v7079_v48 = vld [vmem:[#allocation13 + $0x6f8] sm:$0xff] }
 0x467   : > { %3566 = vmatpush1.msra.mxu0 %v7044_v40  ;;  %3637 = vmatpush1.msra.mxu1 %v7045_v27  ;;  %v7081_v40 = vld [vmem:[#allocation13 + $0x6f0] sm:$0xff]  ;;  %v7082_v27 = vld [vmem:[#allocation13 + $0x6a8] sm:$0xff] }
 0x468   : > { %3567 = vmatprep.subr.mxu0 %v7046_v63  ;;  %3638 = vmatprep.subr.mxu1 %v7047_v28  ;;  %v7083_v63 = vld [vmem:[#allocation13 + $0x6b8] sm:$0xff] }
 0x469   : > { %3568 = vmatpush1.msra.mxu0 %v7048_v44  ;;  %3639 = vmatpush1.msra.mxu1 %v7049_v23  ;;  %v7084_v44 = vld [vmem:[#allocation13 + $0x6a0] sm:$0xff]  ;;  %v7085_v23 = vld [vmem:[#allocation13 + $0x6b0] sm:$0xff] }
 0x46a   : > { %3569 = vmatprep.subr.mxu0 %v7050_v37  ;;  %3640 = vmatprep.subr.mxu1 %v7051_v13  ;;  %v7086_v37 = vld [vmem:[#allocation13 + $0x668] sm:$0xff]  ;;  %v7087_v13 = vld [vmem:[#allocation13 + $0x678] sm:$0xff] }
 0x46b   : > { %3570 = vmatpush1.msra.mxu0 %v7052_v20  ;;  %3641 = vmatpush1.msra.mxu1 %v7053_v38  ;;  %v7088_v20 = vld [vmem:[#allocation13 + $0x660] sm:$0xff]  ;;  %v7089_v38 = vld [vmem:[#allocation13 + $0x670] sm:$0xff] }
 0x46c   : > { %3571 = vmatprep.subr.mxu0 %v7054_v1  ;;  %3642 = vmatprep.subr.mxu1 %v7055_v35  ;;  %v6219_v36 = vpop.eup %6218  ;;  %v7090_v1 = vld [vmem:[#allocation13 + $0x628] sm:$0xff]  ;;  %v7091_v35 = vld [vmem:[#allocation13 + $0x638] sm:$0xff] }
 0x46d   : > { %3572 = vmatpush1.msra.mxu0 %v7056_v54  ;;  %3643 = vmatpush1.msra.mxu1 %v7057_v5  ;;  %v3791_v28 = vadd.f32 1.0, %v6219_v36  ;;  %v7092_v54 = vld [vmem:[#allocation13 + $0x620] sm:$0xff]  ;;  %v7093_v5 = vld [vmem:[#allocation13 + $0x630] sm:$0xff]  ;;  %v7114_v36 = vld [vmem:[#allocation13 + $0x4a8] sm:$0xff] }
 0x46e   : > { %3573 = vmatprep.subr.mxu0 %v7058_v31  ;;  %3644 = vmatprep.subr.mxu1 %v7059_v60  ;;  %v7094_v31 = vld [vmem:[#allocation13 + $0x5e8] sm:$0xff]  ;;  %v7095_v60 = vld [vmem:[#allocation13 + $0x5f8] sm:$0xff] }
 0x46f   : > { %3574 = vmatpush1.msra.mxu0 %v7060_v17  ;;  %3645 = vmatpush1.msra.mxu1 %v7061_v11  ;;  %6220 = vrcp.f32 %v3791_v28  ;;  %v7096_v17 = vld [vmem:[#allocation13 + $0x5e0] sm:$0xff]  ;;  %v7097_v11 = vld [vmem:[#allocation13 + $0x5f0] sm:$0xff] }
 0x470   : > { %3575 = vmatprep.subr.mxu0 %v7062_v7  ;;  %3646 = vmatprep.subr.mxu1 %v7063_v52  ;;  %6222 = vtanh.f32 %v9484_v53  ;;  %v7098_v7 = vld [vmem:[#allocation13 + $0x5a8] sm:$0xff]  ;;  %v7099_v52 = vld [vmem:[#allocation13 + $0x5b8] sm:$0xff] }
 0x471   : > { %3576 = vmatpush2.msra.mxu0 %v7064_v55  ;;  %3647 = vmatpush2.msra.mxu1 %v7065_v33  ;;  %v7100_v55 = vld [vmem:[#allocation13 + $0x5a0] sm:$0xff]  ;;  %v7101_v33 = vld [vmem:[#allocation13 + $0x5b0] sm:$0xff] }
 0x472   : > { %3577 = vmatprep.subr.mxu0 %v7066_v6  ;;  %3648 = vmatprep.subr.mxu1 %v7067_v21  ;;  %v7102_v6 = vld [vmem:[#allocation13 + $0x568] sm:$0xff]  ;;  %v7103_v21 = vld [vmem:[#allocation13 + $0x578] sm:$0xff] }
 0x473   : > { %3578 = vmatpush2.msra.mxu0 %v7068_v29  ;;  %3649 = vmatpush2.msra.mxu1 %v7069_v32  ;;  %v7104_v29 = vld [vmem:[#allocation13 + $0x560] sm:$0xff]  ;;  %v7105_v32 = vld [vmem:[#allocation13 + $0x570] sm:$0xff] }
 0x474   : > { %3579 = vmatprep.subr.mxu0 %v7070_v30  ;;  %3650 = vmatprep.subr.mxu1 %v7071_v10  ;;  %v7106_v30 = vld [vmem:[#allocation13 + $0x528] sm:$0xff]  ;;  %v7107_v10 = vld [vmem:[#allocation13 + $0x538] sm:$0xff] }
 0x475   : > { %3580 = vmatpush2.msra.mxu0 %v7072_v59  ;;  %3651 = vmatpush2.msra.mxu1 %v7073_v50  ;;  %v7108_v59 = vld [vmem:[#allocation13 + $0x520] sm:$0xff]  ;;  %v7109_v50 = vld [vmem:[#allocation13 + $0x530] sm:$0xff] }
 0x476   : > { %3581 = vmatprep.subr.mxu0 %v7074_v12  ;;  %3652 = vmatprep.subr.mxu1 %v7075_v19  ;;  %v7110_v12 = vld [vmem:[#allocation13 + $0x4e8] sm:$0xff]  ;;  %v7111_v19 = vld [vmem:[#allocation13 + $0x4f8] sm:$0xff] }
 0x477   : > { %3582 = vmatpush2.msra.mxu0 %v7076_v14  ;;  %3653 = vmatpush2.msra.mxu1 %v7077_v34  ;;  %v7112_v14 = vld [vmem:[#allocation13 + $0x4e0] sm:$0xff]  ;;  %v7113_v34 = vld [vmem:[#allocation13 + $0x4f0] sm:$0xff] }
 0x478   : > { %3583 = vmatprep.subr.mxu0 %v7078_v42  ;;  %3654 = vmatprep.subr.mxu1 %v7079_v48  ;;  %v7115_v42 = vld [vmem:[#allocation13 + $0x4b8] sm:$0xff]  ;;  %v7116_v48 = vld [vmem:[#allocation13 + $0x4a0] sm:$0xff] }
 0x479   : > { %3584 = vmatpush2.msra.mxu0 %v7080_v62  ;;  %3655 = vmatpush2.msra.mxu1 %v7081_v40  ;;  %v7117_v62 = vld [vmem:[#allocation13 + $0x4b0] sm:$0xff] }
 0x47a   : > { %3585 = vmatprep.subr.mxu0 %v7082_v27  ;;  %3656 = vmatprep.subr.mxu1 %v7083_v63  ;;  %v7118_v27 = vld [vmem:[#allocation13 + $0x468] sm:$0xff]  ;;  %v7119_v63 = vld [vmem:[#allocation13 + $0x478] sm:$0xff] }
 0x47b   : > { %3586 = vmatpush2.msra.mxu0 %v7084_v44  ;;  %3657 = vmatpush2.msra.mxu1 %v7085_v23  ;;  %v7120_v44 = vld [vmem:[#allocation13 + $0x460] sm:$0xff]  ;;  %v7121_v23 = vld [vmem:[#allocation13 + $0x470] sm:$0xff] }
 0x47c   : > { %3587 = vmatprep.subr.mxu0 %v7086_v37  ;;  %3658 = vmatprep.subr.mxu1 %v7087_v13  ;;  %v6221_v40 = vpop.eup %6220  ;;  %v7122_v37 = vld [vmem:[#allocation13 + $0x428] sm:$0xff]  ;;  %v7123_v13 = vld [vmem:[#allocation13 + $0x438] sm:$0xff] }
 0x47d   : > { %3588 = vmatpush2.msra.mxu0 %v7088_v20  ;;  %3659 = vmatpush2.msra.mxu1 %v7089_v38  ;;  %v6223_v28 = vpop.eup %6222  ;;  %v7124_v20 = vld [vmem:[#allocation13 + $0x420] sm:$0xff]  ;;  %v7125_v38 = vld [vmem:[#allocation13 + $0x430] sm:$0xff] }
 0x47e   : > { %3589 = vmatprep.subr.mxu0 %v7090_v1  ;;  %3660 = vmatprep.subr.mxu1 %v7091_v35  ;;  %v9491_v1 = vmul.f32 %v6223_v28, %v6221_v40  ;;  %v7126_v35 = vld [vmem:[#allocation12 + $0x788] sm:$0xff]  ;;  %v7157_v28 = vld [vmem:[#allocation12 + $0x410] sm:$0xff] }
 0x47f   : > { %3590 = vmatpush2.msra.mxu0 %v7092_v54  ;;  %3661 = vmatpush2.msra.mxu1 %v7093_v5  ;;  %v7127_v54 = vld [vmem:[#allocation12 + $0x798] sm:$0xff]  ;;  %v7128_v5 = vld [vmem:[#allocation12 + $0x780] sm:$0xff]  ;;  %v7154_v40 = vld [vmem:[#allocation12 + $0x408] sm:$0xff] }
 0x480   : > { %3591 = vmatprep.subr.mxu0 %v7094_v31  ;;  %3662 = vmatprep.subr.mxu1 %v7095_v60  ;;  %v7129_v31 = vld [vmem:[#allocation12 + $0x790] sm:$0xff]  ;;  %v7130_v60 = vld [vmem:[#allocation12 + $0x708] sm:$0xff] }
 0x481   : > { %3592 = vmatpush2.msra.mxu0 %v7096_v17  ;;  %3663 = vmatpush2.msra.mxu1 %v7097_v11  ;;  %v7131_v17 = vld [vmem:[#allocation12 + $0x718] sm:$0xff]  ;;  %v7132_v11 = vld [vmem:[#allocation12 + $0x700] sm:$0xff] }
 0x482   : > { %3593 = vmatprep.subr.mxu0 %v7098_v7  ;;  %3664 = vmatprep.subr.mxu1 %v7099_v52  ;;  %v7134_v7 = vld [vmem:[#allocation12 + $0x688] sm:$0xff]  ;;  %v7135_v52 = vld [vmem:[#allocation12 + $0x698] sm:$0xff] }
 0x483   : > { %3594 = vmatpush2.msra.mxu0 %v7100_v55  ;;  %3665 = vmatpush2.msra.mxu1 %v7101_v33  ;;  %v7136_v55 = vld [vmem:[#allocation12 + $0x680] sm:$0xff]  ;;  %v7137_v33 = vld [vmem:[#allocation12 + $0x690] sm:$0xff] }
 0x484   : > { %3595 = vmatprep.subr.mxu0 %v7102_v6  ;;  %3666 = vmatprep.subr.mxu1 %v7103_v21  ;;  %v7138_v6 = vld [vmem:[#allocation12 + $0x608] sm:$0xff]  ;;  %v7139_v21 = vld [vmem:[#allocation12 + $0x618] sm:$0xff] }
 0x485   : > { %3596 = vmatpush2.msra.mxu0 %v7104_v29  ;;  %3667 = vmatpush2.msra.mxu1 %v7105_v32  ;;  %v7140_v29 = vld [vmem:[#allocation12 + $0x600] sm:$0xff]  ;;  %v7141_v32 = vld [vmem:[#allocation12 + $0x610] sm:$0xff] }
 0x486   : > { %3597 = vmatprep.subr.mxu0 %v7106_v30  ;;  %3668 = vmatprep.subr.mxu1 %v7107_v10  ;;  %v7142_v30 = vld [vmem:[#allocation12 + $0x588] sm:$0xff]  ;;  %v7143_v10 = vld [vmem:[#allocation12 + $0x598] sm:$0xff] }
 0x487   : > { %3598 = vmatpush2.msra.mxu0 %v7108_v59  ;;  %3669 = vmatpush2.msra.mxu1 %v7109_v50  ;;  %v7144_v59 = vld [vmem:[#allocation12 + $0x580] sm:$0xff]  ;;  %v7145_v50 = vld [vmem:[#allocation12 + $0x590] sm:$0xff] }
 0x488   : > { %3599 = vmatprep.subr.mxu0 %v7110_v12  ;;  %3670 = vmatprep.subr.mxu1 %v7111_v19  ;;  %v7146_v12 = vld [vmem:[#allocation12 + $0x508] sm:$0xff]  ;;  %v7147_v19 = vld [vmem:[#allocation12 + $0x518] sm:$0xff] }
 0x489   : > { %3600 = vmatpush2.msra.mxu0 %v7112_v14  ;;  %3671 = vmatpush2.msra.mxu1 %v7113_v34  ;;  %v7148_v14 = vld [vmem:[#allocation12 + $0x500] sm:$0xff]  ;;  %v7149_v34 = vld [vmem:[#allocation12 + $0x510] sm:$0xff] }
 0x48a   : > { %3601 = vmatprep.subr.mxu0 %v7114_v36  ;;  %3672 = vmatprep.subr.mxu1 %v7115_v42  ;;  %v7150_v36 = vld [vmem:[#allocation12 + $0x488] sm:$0xff]  ;;  %v7151_v42 = vld [vmem:[#allocation12 + $0x498] sm:$0xff] }
 0x48b   : > { %3602 = vmatpush2.msra.mxu0 %v7116_v48  ;;  %3673 = vmatpush2.msra.mxu1 %v7117_v62  ;;  %v7152_v48 = vld [vmem:[#allocation12 + $0x480] sm:$0xff]  ;;  %v7153_v62 = vld [vmem:[#allocation12 + $0x490] sm:$0xff] }
 0x48c   : > { %3603 = vmatprep.subr.mxu0 %v7118_v27  ;;  %3674 = vmatprep.subr.mxu1 %v7119_v63  ;;  %v7155_v27 = vld [vmem:[#allocation12 + $0x418] sm:$0xff]  ;;  %v7156_v63 = vld [vmem:[#allocation12 + $0x400] sm:$0xff] }
 0x48d   : > { %3604 = vmatpush2.msra.mxu0 %v7120_v44  ;;  %3675 = vmatpush2.msra.mxu1 %v7121_v23  ;;  %v7158_v44 = vld [vmem:[#allocation12 + $0x388] sm:$0xff]  ;;  %v7159_v23 = vld [vmem:[#allocation12 + $0x398] sm:$0xff] }
 0x48e   : > { %3605 = vmatprep.subr.mxu0 %v7122_v37  ;;  %3676 = vmatprep.subr.mxu1 %v7123_v13  ;;  %v7160_v37 = vld [vmem:[#allocation12 + $0x380] sm:$0xff]  ;;  %v7161_v13 = vld [vmem:[#allocation12 + $0x390] sm:$0xff] }
 0x48f   : > { %3606 = vmatpush2.msra.mxu0 %v7124_v20  ;;  %3677 = vmatpush2.msra.mxu1 %v7125_v38  ;;  %v7162_v20 = vld [vmem:[#allocation12 + $0x308] sm:$0xff]  ;;  %v7163_v38 = vld [vmem:[#allocation12 + $0x318] sm:$0xff] }
 0x490   : > { %3608 = vmatmul.mubr.f32.vlgmr.msra.gmra.mxu0 %v9474_v47  ;;  %3679 = vmatmul.mubr.f32.vlgmr.msra.gmra.mxu1 %v9474_v47  ;;  %v7133_v47 = vld [vmem:[#allocation12 + $0x710] sm:$0xff] }
 0x491   : > { %3816 = vmatprep.subr.mxu0 %v7126_v35  ;;  %3887 = vmatprep.subr.mxu1 %v7127_v54  ;;  %v7164_v35 = vld [vmem:[#allocation12 + $0x300] sm:$0xff]  ;;  %v7165_v54 = vld [vmem:[#allocation12 + $0x310] sm:$0xff] }
 0x492   : > { %3817 = vmatpush1.msra.mxu0 %v7128_v5  ;;  %3880 = vmatprep.mubr.f32.mxu0 %v9491_v1  ;;  %v7166_v5 = vld [vmem:[#allocation12 + $0x288] sm:$0xff] }
 0x493   : > { %3888 = vmatpush1.msra.mxu1 %v7129_v31  ;;  %3951 = vmatprep.mubr.f32.mxu1 %v9491_v1  ;;  %v7167_v31 = vld [vmem:[#allocation12 + $0x298] sm:$0xff] }
 0x494   : > { %3818 = vmatprep.subr.mxu0 %v7130_v60  ;;  %3889 = vmatprep.subr.mxu1 %v7131_v17  ;;  %v5945_v60 = vmul.f32 -1.442695, %v9472_v2  ;;  %v7168_v17 = vld [vmem:[#allocation12 + $0x280] sm:$0xff]  ;;  %v7177_v2 = vld [vmem:[#allocation12 + $0x190] sm:$0xff] }
 0x495   : > { %3819 = vmatpush1.msra.mxu0 %v7132_v11  ;;  %3890 = vmatpush1.msra.mxu1 %v7133_v47  ;;  %v7169_v11 = vld [vmem:[#allocation12 + $0x290] sm:$0xff]  ;;  %v7170_v47 = vld [vmem:[#allocation12 + $0x208] sm:$0xff] }
 0x496   : > { %3820 = vmatprep.subr.mxu0 %v7134_v7  ;;  %3891 = vmatprep.subr.mxu1 %v7135_v52  ;;  %v7171_v7 = vld [vmem:[#allocation12 + $0x218] sm:$0xff]  ;;  %v7172_v52 = vld [vmem:[#allocation12 + $0x200] sm:$0xff]  ;;  %6224 = vpow2.f32 %v5945_v60  ;;  %v7205_v60 = vld [vmem:[#allocation12 + $0xe10] sm:$0xff] }
 0x497   : > { %3821 = vmatpush1.msra.mxu0 %v7136_v55  ;;  %3892 = vmatpush1.msra.mxu1 %v7137_v33  ;;  %v7173_v55 = vld [vmem:[#allocation12 + $0x210] sm:$0xff]  ;;  %v7174_v33 = vld [vmem:[#allocation12 + $0x188] sm:$0xff] }
 0x498   : > { %3822 = vmatprep.subr.mxu0 %v7138_v6  ;;  %3893 = vmatprep.subr.mxu1 %v7139_v21  ;;  %v7175_v6 = vld [vmem:[#allocation12 + $0x198] sm:$0xff]  ;;  %v7176_v21 = vld [vmem:[#allocation12 + $0x180] sm:$0xff] }
 0x499   : > { %3823 = vmatpush1.msra.mxu0 %v7140_v29  ;;  %3894 = vmatpush1.msra.mxu1 %v7141_v32  ;;  %v7178_v29 = vld [vmem:[#allocation12 + $0x108] sm:$0xff]  ;;  %v7179_v32 = vld [vmem:[#allocation12 + $0x118] sm:$0xff] }
 0x49a   : > { %3824 = vmatprep.subr.mxu0 %v7142_v30  ;;  %3895 = vmatprep.subr.mxu1 %v7143_v10  ;;  %v7180_v30 = vld [vmem:[#allocation12 + $0x100] sm:$0xff]  ;;  %v7181_v10 = vld [vmem:[#allocation12 + $0x110] sm:$0xff] }
 0x49b   : > { %3825 = vmatpush1.msra.mxu0 %v7144_v59  ;;  %3896 = vmatpush1.msra.mxu1 %v7145_v50  ;;  %v7182_v59 = vld [vmem:[#allocation12 + $0x88] sm:$0xff]  ;;  %v7183_v50 = vld [vmem:[#allocation12 + $0x98] sm:$0xff] }
 0x49c   : > { %3826 = vmatprep.subr.mxu0 %v7146_v12  ;;  %3897 = vmatprep.subr.mxu1 %v7147_v19  ;;  %v7184_v12 = vld [vmem:[#allocation12 + $0x80] sm:$0xff]  ;;  %v7185_v19 = vld [vmem:[#allocation12 + $0x90] sm:$0xff] }
 0x49d   : > { %3827 = vmatpush1.msra.mxu0 %v7148_v14  ;;  %3898 = vmatpush1.msra.mxu1 %v7149_v34  ;;  %v7186_v14 = vld [vmem:[#allocation12 + $0x8] sm:$0xff]  ;;  %v7187_v34 = vld [vmem:[#allocation12 + $0x18] sm:$0xff] }
 0x49e   : > { %3828 = vmatprep.subr.mxu0 %v7150_v36  ;;  %3899 = vmatprep.subr.mxu1 %v7151_v42  ;;  %v7188_v36 = vld [vmem:[#allocation12] sm:$0xff]  ;;  %v7189_v42 = vld [vmem:[#allocation12 + $0x10] sm:$0xff] }
 0x49f   : > { %3829 = vmatpush1.msra.mxu0 %v7152_v48  ;;  %3900 = vmatpush1.msra.mxu1 %v7153_v62  ;;  %v7190_v48 = vld [vmem:[#allocation12 + $0xf88] sm:$0xff]  ;;  %v7191_v62 = vld [vmem:[#allocation12 + $0xf98] sm:$0xff] }
 0x4a0   : > { %3830 = vmatprep.subr.mxu0 %v7154_v40  ;;  %3901 = vmatprep.subr.mxu1 %v7155_v27  ;;  %v7192_v40 = vld [vmem:[#allocation12 + $0xf80] sm:$0xff]  ;;  %v7193_v27 = vld [vmem:[#allocation12 + $0xf90] sm:$0xff] }
 0x4a1   : > { %3831 = vmatpush1.msra.mxu0 %v7156_v63  ;;  %3902 = vmatpush1.msra.mxu1 %v7157_v28  ;;  %v7194_v63 = vld [vmem:[#allocation12 + $0xf08] sm:$0xff]  ;;  %v7195_v28 = vld [vmem:[#allocation12 + $0xf18] sm:$0xff] }
 0x4a2   : > { %3832 = vmatprep.subr.mxu0 %v7158_v44  ;;  %3903 = vmatprep.subr.mxu1 %v7159_v23  ;;  %v7196_v44 = vld [vmem:[#allocation12 + $0xf00] sm:$0xff]  ;;  %v7197_v23 = vld [vmem:[#allocation12 + $0xf10] sm:$0xff] }
 0x4a3   : > { %3833 = vmatpush1.msra.mxu0 %v7160_v37  ;;  %3904 = vmatpush1.msra.mxu1 %v7161_v13  ;;  %v7198_v37 = vld [vmem:[#allocation12 + $0xe88] sm:$0xff]  ;;  %v7199_v13 = vld [vmem:[#allocation12 + $0xe98] sm:$0xff] }
 0x4a4   : > { %3834 = vmatprep.subr.mxu0 %v7162_v20  ;;  %3905 = vmatprep.subr.mxu1 %v7163_v38  ;;  %v7200_v20 = vld [vmem:[#allocation12 + $0xe80] sm:$0xff]  ;;  %v7201_v38 = vld [vmem:[#allocation12 + $0xe90] sm:$0xff] }
 0x4a5   : > { %3835 = vmatpush1.msra.mxu0 %v7164_v35  ;;  %3906 = vmatpush1.msra.mxu1 %v7165_v54  ;;  %v6225_v35 = vpop.eup %6224  ;;  %v7202_v54 = vld [vmem:[#allocation12 + $0xe08] sm:$0xff] }
 0x4a6   : > { %3836 = vmatprep.subr.mxu0 %v7166_v5  ;;  %3907 = vmatprep.subr.mxu1 %v7167_v31  ;;  %v7203_v5 = vld [vmem:[#allocation12 + $0xe18] sm:$0xff]  ;;  %v7204_v31 = vld [vmem:[#allocation12 + $0xe00] sm:$0xff] }
 0x4a7   : > { %3837 = vmatpush1.msra.mxu0 %v7168_v17  ;;  %3908 = vmatpush1.msra.mxu1 %v7169_v11  ;;  %v7206_v17 = vld [vmem:[#allocation12 + $0xd88] sm:$0xff]  ;;  %v7207_v11 = vld [vmem:[#allocation12 + $0xd98] sm:$0xff] }
 0x4a8   : > { %3838 = vmatprep.subr.mxu0 %v7170_v47  ;;  %3909 = vmatprep.subr.mxu1 %v7171_v7  ;;  %v3790_v47 = vadd.f32 1.0, %v6225_v35  ;;  %v7208_v7 = vld [vmem:[#allocation12 + $0xd80] sm:$0xff]  ;;  %v7239_v35 = vld [vmem:[#allocation12 + $0x998] sm:$0xff] }
 0x4a9   : > { %3839 = vmatpush1.msra.mxu0 %v7172_v52  ;;  %3910 = vmatpush1.msra.mxu1 %v7173_v55  ;;  %v7209_v52 = vld [vmem:[#allocation12 + $0xd90] sm:$0xff]  ;;  %v7210_v55 = vld [vmem:[#allocation12 + $0xd08] sm:$0xff] }
 0x4aa   : > { %3840 = vmatprep.subr.mxu0 %v7174_v33  ;;  %3911 = vmatprep.subr.mxu1 %v7175_v6  ;;  %v7211_v33 = vld [vmem:[#allocation12 + $0xd18] sm:$0xff]  ;;  %v7212_v6 = vld [vmem:[#allocation12 + $0xd00] sm:$0xff]  ;;  %6226 = vrcp.f32 %v3790_v47 }
 0x4ab   : > { %3841 = vmatpush1.msra.mxu0 %v7176_v21  ;;  %3912 = vmatpush1.msra.mxu1 %v7177_v2  ;;  %v7213_v21 = vld [vmem:[#allocation12 + $0xd10] sm:$0xff]  ;;  %v7214_v2 = vld [vmem:[#allocation12 + $0xc88] sm:$0xff]  ;;  %6228 = vtanh.f32 %v9481_v0  ;;  %v7244_v47 = vld [vmem:[#allocation12 + $0x900] sm:$0xff] }
 0x4ac   : > { %3842 = vmatprep.subr.mxu0 %v7178_v29  ;;  %3913 = vmatprep.subr.mxu1 %v7179_v32  ;;  %v7215_v29 = vld [vmem:[#allocation12 + $0xc98] sm:$0xff]  ;;  %v7216_v32 = vld [vmem:[#allocation12 + $0xc80] sm:$0xff] }
 0x4ad   : > { %3843 = vmatpush1.msra.mxu0 %v7180_v30  ;;  %3914 = vmatpush1.msra.mxu1 %v7181_v10  ;;  %v7217_v30 = vld [vmem:[#allocation12 + $0xc90] sm:$0xff]  ;;  %v7218_v10 = vld [vmem:[#allocation12 + $0xc08] sm:$0xff] }
 0x4ae   : > { %3844 = vmatprep.subr.mxu0 %v7182_v59  ;;  %3915 = vmatprep.subr.mxu1 %v7183_v50  ;;  %v7219_v59 = vld [vmem:[#allocation12 + $0xc18] sm:$0xff]  ;;  %v7220_v50 = vld [vmem:[#allocation12 + $0xc00] sm:$0xff] }
 0x4af   : > { %3845 = vmatpush1.msra.mxu0 %v7184_v12  ;;  %3916 = vmatpush1.msra.mxu1 %v7185_v19  ;;  %v7221_v12 = vld [vmem:[#allocation12 + $0xc10] sm:$0xff]  ;;  %v7222_v19 = vld [vmem:[#allocation12 + $0xb88] sm:$0xff] }
 0x4b0   : > { %3846 = vmatprep.subr.mxu0 %v7186_v14  ;;  %3917 = vmatprep.subr.mxu1 %v7187_v34  ;;  %v7223_v14 = vld [vmem:[#allocation12 + $0xb98] sm:$0xff]  ;;  %v7224_v34 = vld [vmem:[#allocation12 + $0xb80] sm:$0xff] }
 0x4b1   : > { %3847 = vmatpush1.msra.mxu0 %v7188_v36  ;;  %3918 = vmatpush1.msra.mxu1 %v7189_v42  ;;  %v7225_v36 = vld [vmem:[#allocation12 + $0xb90] sm:$0xff]  ;;  %v7226_v42 = vld [vmem:[#allocation12 + $0xb08] sm:$0xff] }
 0x4b2   : > { %3848 = vmatprep.subr.mxu0 %v7190_v48  ;;  %3919 = vmatprep.subr.mxu1 %v7191_v62  ;;  %v7227_v48 = vld [vmem:[#allocation12 + $0xb18] sm:$0xff]  ;;  %v7228_v62 = vld [vmem:[#allocation12 + $0xb00] sm:$0xff] }
 0x4b3   : > { %3849 = vmatpush2.msra.mxu0 %v7192_v40  ;;  %3920 = vmatpush2.msra.mxu1 %v7193_v27  ;;  %v7229_v40 = vld [vmem:[#allocation12 + $0xb10] sm:$0xff]  ;;  %v7230_v27 = vld [vmem:[#allocation12 + $0xa88] sm:$0xff] }
 0x4b4   : > { %3850 = vmatprep.subr.mxu0 %v7194_v63  ;;  %3921 = vmatprep.subr.mxu1 %v7195_v28  ;;  %v7231_v63 = vld [vmem:[#allocation12 + $0xa98] sm:$0xff]  ;;  %v7232_v28 = vld [vmem:[#allocation12 + $0xa80] sm:$0xff] }
 0x4b5   : > { %3851 = vmatpush2.msra.mxu0 %v7196_v44  ;;  %3922 = vmatpush2.msra.mxu1 %v7197_v23  ;;  %v7233_v44 = vld [vmem:[#allocation12 + $0xa90] sm:$0xff]  ;;  %v7234_v23 = vld [vmem:[#allocation12 + $0xa08] sm:$0xff] }
 0x4b6   : > { %3852 = vmatprep.subr.mxu0 %v7198_v37  ;;  %3923 = vmatprep.subr.mxu1 %v7199_v13  ;;  %v7235_v37 = vld [vmem:[#allocation12 + $0xa18] sm:$0xff]  ;;  %v7236_v13 = vld [vmem:[#allocation12 + $0xa00] sm:$0xff] }
 0x4b7   : > { %3853 = vmatpush2.msra.mxu0 %v7200_v20  ;;  %3924 = vmatpush2.msra.mxu1 %v7201_v38  ;;  %v7237_v20 = vld [vmem:[#allocation12 + $0xa10] sm:$0xff]  ;;  %v7238_v38 = vld [vmem:[#allocation12 + $0x988] sm:$0xff] }
 0x4b8   : > { %3854 = vmatprep.subr.mxu0 %v7202_v54  ;;  %3925 = vmatprep.subr.mxu1 %v7203_v5  ;;  %v7240_v54 = vld [vmem:[#allocation12 + $0x980] sm:$0xff]  ;;  %v7241_v5 = vld [vmem:[#allocation12 + $0x990] sm:$0xff] }
 0x4b9   : > { %3855 = vmatpush2.msra.mxu0 %v7204_v31  ;;  %3926 = vmatpush2.msra.mxu1 %v7205_v60  ;;  %v6227_v31 = vpop.eup %6226  ;;  %v7242_v60 = vld [vmem:[#allocation12 + $0x908] sm:$0xff] }
 0x4ba   : > { %3856 = vmatprep.subr.mxu0 %v7206_v17  ;;  %3927 = vmatprep.subr.mxu1 %v7207_v11  ;;  %v7243_v17 = vld [vmem:[#allocation12 + $0x918] sm:$0xff]  ;;  %v6229_v11 = vpop.eup %6228 }
 0x4bb   : > { %3857 = vmatpush2.msra.mxu0 %v7208_v7  ;;  %3928 = vmatpush2.msra.mxu1 %v7209_v52  ;;  %v7245_v7 = vld [vmem:[#allocation12 + $0x910] sm:$0xff]  ;;  %v7246_v52 = vld [vmem:[#allocation12 + $0x888] sm:$0xff] }
 0x4bc   : > { %3858 = vmatprep.subr.mxu0 %v7210_v55  ;;  %3929 = vmatprep.subr.mxu1 %v7211_v33  ;;  %v7247_v55 = vld [vmem:[#allocation12 + $0x898] sm:$0xff]  ;;  %v7248_v33 = vld [vmem:[#allocation12 + $0x880] sm:$0xff] }
 0x4bd   : > { %3859 = vmatpush2.msra.mxu0 %v7212_v6  ;;  %3930 = vmatpush2.msra.mxu1 %v7213_v21  ;;  %v7249_v6 = vld [vmem:[#allocation12 + $0x890] sm:$0xff]  ;;  %v7250_v21 = vld [vmem:[#allocation12 + $0x808] sm:$0xff] }
 0x4be   : > { %3860 = vmatprep.subr.mxu0 %v7214_v2  ;;  %3931 = vmatprep.subr.mxu1 %v7215_v29  ;;  %v7251_v2 = vld [vmem:[#allocation12 + $0x818] sm:$0xff]  ;;  %v9497_v29 = vmul.f32 %v6229_v11, %v6227_v31  ;;  %v7278_v31 = vld [vmem:[#allocation12 + $0x4a8] sm:$0xff]  ;;  %v7281_v11 = vld [vmem:[#allocation12 + $0x4b0] sm:$0xff] }
 0x4bf   : > { %3861 = vmatpush2.msra.mxu0 %v7216_v32  ;;  %3932 = vmatpush2.msra.mxu1 %v7217_v30  ;;  %v7252_v32 = vld [vmem:[#allocation12 + $0x800] sm:$0xff]  ;;  %v7253_v30 = vld [vmem:[#allocation12 + $0x810] sm:$0xff] }
 0x4c0   : > { %3862 = vmatprep.subr.mxu0 %v7218_v10  ;;  %3933 = vmatprep.subr.mxu1 %v7219_v59  ;;  %v7254_v10 = vld [vmem:[#allocation12 + $0x7a8] sm:$0xff]  ;;  %v7255_v59 = vld [vmem:[#allocation12 + $0x7b8] sm:$0xff] }
 0x4c1   : > { %3863 = vmatpush2.msra.mxu0 %v7220_v50  ;;  %3934 = vmatpush2.msra.mxu1 %v7221_v12  ;;  %v7256_v50 = vld [vmem:[#allocation12 + $0x7a0] sm:$0xff]  ;;  %v7257_v12 = vld [vmem:[#allocation12 + $0x7b0] sm:$0xff] }
 0x4c2   : > { %3864 = vmatprep.subr.mxu0 %v7222_v19  ;;  %3935 = vmatprep.subr.mxu1 %v7223_v14  ;;  %v7258_v19 = vld [vmem:[#allocation12 + $0x728] sm:$0xff]  ;;  %v7259_v14 = vld [vmem:[#allocation12 + $0x738] sm:$0xff] }
 0x4c3   : > { %3865 = vmatpush2.msra.mxu0 %v7224_v34  ;;  %3936 = vmatpush2.msra.mxu1 %v7225_v36  ;;  %v7260_v34 = vld [vmem:[#allocation12 + $0x720] sm:$0xff]  ;;  %v7261_v36 = vld [vmem:[#allocation12 + $0x730] sm:$0xff] }
 0x4c4   : > { %3866 = vmatprep.subr.mxu0 %v7226_v42  ;;  %3937 = vmatprep.subr.mxu1 %v7227_v48  ;;  %v7262_v42 = vld [vmem:[#allocation12 + $0x6a8] sm:$0xff]  ;;  %v7263_v48 = vld [vmem:[#allocation12 + $0x6b8] sm:$0xff] }
 0x4c5   : > { %3867 = vmatpush2.msra.mxu0 %v7228_v62  ;;  %3938 = vmatpush2.msra.mxu1 %v7229_v40  ;;  %v7264_v62 = vld [vmem:[#allocation12 + $0x6a0] sm:$0xff]  ;;  %v7265_v40 = vld [vmem:[#allocation12 + $0x6b0] sm:$0xff] }
 0x4c6   : > { %3868 = vmatprep.subr.mxu0 %v7230_v27  ;;  %3939 = vmatprep.subr.mxu1 %v7231_v63  ;;  %v7266_v27 = vld [vmem:[#allocation12 + $0x628] sm:$0xff]  ;;  %v7267_v63 = vld [vmem:[#allocation12 + $0x638] sm:$0xff] }
 0x4c7   : > { %3869 = vmatpush2.msra.mxu0 %v7232_v28  ;;  %3940 = vmatpush2.msra.mxu1 %v7233_v44  ;;  %v7268_v28 = vld [vmem:[#allocation12 + $0x620] sm:$0xff]  ;;  %v7269_v44 = vld [vmem:[#allocation12 + $0x630] sm:$0xff] }
 0x4c8   : > { %3870 = vmatprep.subr.mxu0 %v7234_v23  ;;  %3941 = vmatprep.subr.mxu1 %v7235_v37  ;;  %v7270_v23 = vld [vmem:[#allocation12 + $0x5a8] sm:$0xff]  ;;  %v7271_v37 = vld [vmem:[#allocation12 + $0x5b8] sm:$0xff] }
 0x4c9   : > { %3871 = vmatpush2.msra.mxu0 %v7236_v13  ;;  %3942 = vmatpush2.msra.mxu1 %v7237_v20  ;;  %v7272_v13 = vld [vmem:[#allocation12 + $0x5a0] sm:$0xff]  ;;  %v7273_v20 = vld [vmem:[#allocation12 + $0x5b0] sm:$0xff] }
 0x4ca   : > { %3872 = vmatprep.subr.mxu0 %v7238_v38  ;;  %3943 = vmatprep.subr.mxu1 %v7239_v35  ;;  %v7274_v38 = vld [vmem:[#allocation12 + $0x528] sm:$0xff]  ;;  %v7275_v35 = vld [vmem:[#allocation12 + $0x538] sm:$0xff] }
 0x4cb   : > { %3873 = vmatpush2.msra.mxu0 %v7240_v54  ;;  %3944 = vmatpush2.msra.mxu1 %v7241_v5  ;;  %v7276_v54 = vld [vmem:[#allocation12 + $0x520] sm:$0xff]  ;;  %v7277_v5 = vld [vmem:[#allocation12 + $0x530] sm:$0xff] }
 0x4cc   : > { %3874 = vmatprep.subr.mxu0 %v7242_v60  ;;  %3945 = vmatprep.subr.mxu1 %v7243_v17  ;;  %v7279_v60 = vld [vmem:[#allocation12 + $0x4b8] sm:$0xff]  ;;  %v7280_v17 = vld [vmem:[#allocation12 + $0x4a0] sm:$0xff] }
 0x4cd   : > { %3875 = vmatpush2.msra.mxu0 %v7244_v47  ;;  %3946 = vmatpush2.msra.mxu1 %v7245_v7  ;;  %v7282_v47 = vld [vmem:[#allocation12 + $0x428] sm:$0xff]  ;;  %v7283_v7 = vld [vmem:[#allocation12 + $0x438] sm:$0xff] }
 0x4ce   : > { %3876 = vmatprep.subr.mxu0 %v7246_v52  ;;  %3947 = vmatprep.subr.mxu1 %v7247_v55  ;;  %v7284_v52 = vld [vmem:[#allocation12 + $0x420] sm:$0xff]  ;;  %v7285_v55 = vld [vmem:[#allocation12 + $0x430] sm:$0xff] }
 0x4cf   : > { %3877 = vmatpush2.msra.mxu0 %v7248_v33  ;;  %3948 = vmatpush2.msra.mxu1 %v7249_v6  ;;  %v7286_v33 = vld [vmem:[#allocation12 + $0x3a8] sm:$0xff]  ;;  %v7287_v6 = vld [vmem:[#allocation12 + $0x3b8] sm:$0xff] }
 0x4d0   : > { %3878 = vmatprep.subr.mxu0 %v7250_v21  ;;  %3949 = vmatprep.subr.mxu1 %v7251_v2  ;;  %v7288_v21 = vld [vmem:[#allocation12 + $0x3a0] sm:$0xff]  ;;  %v7289_v2 = vld [vmem:[#allocation12 + $0x3b0] sm:$0xff] }
 0x4d1   : > { %3879 = vmatpush2.msra.mxu0 %v7252_v32  ;;  %3950 = vmatpush2.msra.mxu1 %v7253_v30  ;;  %v7290_v32 = vld [vmem:[#allocation12 + $0x328] sm:$0xff]  ;;  %v7291_v30 = vld [vmem:[#allocation12 + $0x338] sm:$0xff] }
 0x4d2   : > { %3881 = vmatmul.mubr.f32.vlgmr.msra.gmra.mxu0 %v9497_v29  ;;  %3952 = vmatmul.mubr.f32.vlgmr.msra.gmra.mxu1 %v9497_v29 }
 0x4d3   : > { %3958 = vmatprep.subr.mxu0 %v7254_v10  ;;  %4029 = vmatprep.subr.mxu1 %v7255_v59  ;;  %v7292_v10 = vld [vmem:[#allocation12 + $0x320] sm:$0xff]  ;;  %v7293_v59 = vld [vmem:[#allocation12 + $0x330] sm:$0xff] }
 0x4d4   : > { %3959 = vmatpush1.msra.mxu0 %v7256_v50  ;;  %4022 = vmatprep.mubr.f32.mxu0 %v9491_v1  ;;  %v7294_v50 = vld [vmem:[#allocation12 + $0x2a8] sm:$0xff] }
 0x4d5   : > { %4030 = vmatpush1.msra.mxu1 %v7257_v12  ;;  %4093 = vmatprep.mubr.f32.mxu1 %v9491_v1  ;;  %v7295_v12 = vld [vmem:[#allocation12 + $0x2b8] sm:$0xff] }
 0x4d6   : > { %3960 = vmatprep.subr.mxu0 %v7258_v19  ;;  %4031 = vmatprep.subr.mxu1 %v7259_v14  ;;  %v7296_v19 = vld [vmem:[#allocation12 + $0x2a0] sm:$0xff]  ;;  %v7297_v14 = vld [vmem:[#allocation12 + $0x2b0] sm:$0xff] }
 0x4d7   : > { %3961 = vmatpush1.msra.mxu0 %v7260_v34  ;;  %4032 = vmatpush1.msra.mxu1 %v7261_v36  ;;  %v7298_v34 = vld [vmem:[#allocation12 + $0x228] sm:$0xff]  ;;  %v7299_v36 = vld [vmem:[#allocation12 + $0x238] sm:$0xff] }
 0x4d8   : > { %3962 = vmatprep.subr.mxu0 %v7262_v42  ;;  %4033 = vmatprep.subr.mxu1 %v7263_v48  ;;  %v7300_v42 = vld [vmem:[#allocation12 + $0x220] sm:$0xff]  ;;  %v7301_v48 = vld [vmem:[#allocation12 + $0x230] sm:$0xff] }
 0x4d9   : > { %3963 = vmatpush1.msra.mxu0 %v7264_v62  ;;  %4034 = vmatpush1.msra.mxu1 %v7265_v40  ;;  %v7302_v62 = vld [vmem:[#allocation12 + $0x1a8] sm:$0xff]  ;;  %v7303_v40 = vld [vmem:[#allocation12 + $0x1b8] sm:$0xff] }
 0x4da   : > { %3964 = vmatprep.subr.mxu0 %v7266_v27  ;;  %4035 = vmatprep.subr.mxu1 %v7267_v63  ;;  %v7304_v27 = vld [vmem:[#allocation12 + $0x1a0] sm:$0xff]  ;;  %v7305_v63 = vld [vmem:[#allocation12 + $0x1b0] sm:$0xff] }
 0x4db   : > { %3965 = vmatpush1.msra.mxu0 %v7268_v28  ;;  %4036 = vmatpush1.msra.mxu1 %v7269_v44  ;;  %v7306_v28 = vld [vmem:[#allocation12 + $0x128] sm:$0xff]  ;;  %v7307_v44 = vld [vmem:[#allocation12 + $0x138] sm:$0xff] }
 0x4dc   : > { %3966 = vmatprep.subr.mxu0 %v7270_v23  ;;  %4037 = vmatprep.subr.mxu1 %v7271_v37  ;;  %v7308_v23 = vld [vmem:[#allocation12 + $0x120] sm:$0xff]  ;;  %v7309_v37 = vld [vmem:[#allocation12 + $0x130] sm:$0xff] }
 0x4dd   : > { %3967 = vmatpush1.msra.mxu0 %v7272_v13  ;;  %4038 = vmatpush1.msra.mxu1 %v7273_v20  ;;  %v7310_v13 = vld [vmem:[#allocation12 + $0xa8] sm:$0xff]  ;;  %v7311_v20 = vld [vmem:[#allocation12 + $0xb8] sm:$0xff] }
 0x4de   : > { %3968 = vmatprep.subr.mxu0 %v7274_v38  ;;  %4039 = vmatprep.subr.mxu1 %v7275_v35  ;;  %v7312_v38 = vld [vmem:[#allocation12 + $0xa0] sm:$0xff]  ;;  %v7313_v35 = vld [vmem:[#allocation12 + $0xb0] sm:$0xff] }
 0x4df   : > { %3969 = vmatpush1.msra.mxu0 %v7276_v54  ;;  %4040 = vmatpush1.msra.mxu1 %v7277_v5  ;;  %v7314_v54 = vld [vmem:[#allocation12 + $0x28] sm:$0xff]  ;;  %v7315_v5 = vld [vmem:[#allocation12 + $0x38] sm:$0xff] }
 0x4e0   : > { %3970 = vmatprep.subr.mxu0 %v7278_v31  ;;  %4041 = vmatprep.subr.mxu1 %v7279_v60  ;;  %v7316_v31 = vld [vmem:[#allocation12 + $0x20] sm:$0xff]  ;;  %v7317_v60 = vld [vmem:[#allocation12 + $0x30] sm:$0xff] }
 0x4e1   : > { %3971 = vmatpush1.msra.mxu0 %v7280_v17  ;;  %4042 = vmatpush1.msra.mxu1 %v7281_v11  ;;  %v7318_v17 = vld [vmem:[#allocation12 + $0xfa8] sm:$0xff]  ;;  %v7319_v11 = vld [vmem:[#allocation12 + $0xfb8] sm:$0xff] }
 0x4e2   : > { %3972 = vmatprep.subr.mxu0 %v7282_v47  ;;  %4043 = vmatprep.subr.mxu1 %v7283_v7  ;;  %v7320_v47 = vld [vmem:[#allocation12 + $0xfa0] sm:$0xff]  ;;  %v7321_v7 = vld [vmem:[#allocation12 + $0xfb0] sm:$0xff] }
 0x4e3   : > { %3973 = vmatpush1.msra.mxu0 %v7284_v52  ;;  %4044 = vmatpush1.msra.mxu1 %v7285_v55  ;;  %v7322_v52 = vld [vmem:[#allocation12 + $0xf28] sm:$0xff]  ;;  %v7323_v55 = vld [vmem:[#allocation12 + $0xf38] sm:$0xff] }
 0x4e4   : > { %3974 = vmatprep.subr.mxu0 %v7286_v33  ;;  %4045 = vmatprep.subr.mxu1 %v7287_v6  ;;  %v7324_v33 = vld [vmem:[#allocation12 + $0xf20] sm:$0xff]  ;;  %v7325_v6 = vld [vmem:[#allocation12 + $0xf30] sm:$0xff] }
 0x4e5   : > { %3975 = vmatpush1.msra.mxu0 %v7288_v21  ;;  %4046 = vmatpush1.msra.mxu1 %v7289_v2  ;;  %v7326_v21 = vld [vmem:[#allocation12 + $0xea8] sm:$0xff]  ;;  %v7327_v2 = vld [vmem:[#allocation12 + $0xeb8] sm:$0xff] }
 0x4e6   : > { %3976 = vmatprep.subr.mxu0 %v7290_v32  ;;  %4047 = vmatprep.subr.mxu1 %v7291_v30  ;;  %v7328_v32 = vld [vmem:[#allocation12 + $0xea0] sm:$0xff]  ;;  %v7329_v30 = vld [vmem:[#allocation12 + $0xeb0] sm:$0xff] }
 0x4e7   : > { %3977 = vmatpush1.msra.mxu0 %v7292_v10  ;;  %4048 = vmatpush1.msra.mxu1 %v7293_v59  ;;  %v7330_v10 = vld [vmem:[#allocation12 + $0xe28] sm:$0xff]  ;;  %v7331_v59 = vld [vmem:[#allocation12 + $0xe38] sm:$0xff] }
 0x4e8   : > { %3978 = vmatprep.subr.mxu0 %v7294_v50  ;;  %4049 = vmatprep.subr.mxu1 %v7295_v12  ;;  %v7332_v50 = vld [vmem:[#allocation12 + $0xe20] sm:$0xff]  ;;  %v7333_v12 = vld [vmem:[#allocation12 + $0xe30] sm:$0xff] }
 0x4e9   : > { %3979 = vmatpush1.msra.mxu0 %v7296_v19  ;;  %4050 = vmatpush1.msra.mxu1 %v7297_v14  ;;  %v7334_v19 = vld [vmem:[#allocation12 + $0xda8] sm:$0xff]  ;;  %v7335_v14 = vld [vmem:[#allocation12 + $0xdb8] sm:$0xff] }
 0x4ea   : > { %3980 = vmatprep.subr.mxu0 %v7298_v34  ;;  %4051 = vmatprep.subr.mxu1 %v7299_v36  ;;  %v7336_v34 = vld [vmem:[#allocation12 + $0xda0] sm:$0xff]  ;;  %v7337_v36 = vld [vmem:[#allocation12 + $0xdb0] sm:$0xff] }
 0x4eb   : > { %3981 = vmatpush1.msra.mxu0 %v7300_v42  ;;  %4052 = vmatpush1.msra.mxu1 %v7301_v48  ;;  %v7338_v42 = vld [vmem:[#allocation12 + $0xd28] sm:$0xff]  ;;  %v7339_v48 = vld [vmem:[#allocation12 + $0xd38] sm:$0xff] }
 0x4ec   : > { %3982 = vmatprep.subr.mxu0 %v7302_v62  ;;  %4053 = vmatprep.subr.mxu1 %v7303_v40  ;;  %v7340_v62 = vld [vmem:[#allocation12 + $0xd20] sm:$0xff]  ;;  %v7341_v40 = vld [vmem:[#allocation12 + $0xd30] sm:$0xff] }
 0x4ed   : > { %3983 = vmatpush1.msra.mxu0 %v7304_v27  ;;  %4054 = vmatpush1.msra.mxu1 %v7305_v63  ;;  %v7342_v27 = vld [vmem:[#allocation12 + $0xca8] sm:$0xff]  ;;  %v7343_v63 = vld [vmem:[#allocation12 + $0xcb8] sm:$0xff] }
 0x4ee   : > { %3984 = vmatprep.subr.mxu0 %v7306_v28  ;;  %4055 = vmatprep.subr.mxu1 %v7307_v44  ;;  %v7344_v28 = vld [vmem:[#allocation12 + $0xca0] sm:$0xff]  ;;  %v7345_v44 = vld [vmem:[#allocation12 + $0xcb0] sm:$0xff] }
 0x4ef   : > { %3985 = vmatpush1.msra.mxu0 %v7308_v23  ;;  %4056 = vmatpush1.msra.mxu1 %v7309_v37  ;;  %v7346_v23 = vld [vmem:[#allocation12 + $0xc28] sm:$0xff]  ;;  %v7347_v37 = vld [vmem:[#allocation12 + $0xc38] sm:$0xff] }
 0x4f0   : > { %3986 = vmatprep.subr.mxu0 %v7310_v13  ;;  %4057 = vmatprep.subr.mxu1 %v7311_v20  ;;  %v7348_v13 = vld [vmem:[#allocation12 + $0xc20] sm:$0xff]  ;;  %v7349_v20 = vld [vmem:[#allocation12 + $0xc30] sm:$0xff] }
 0x4f1   : > { %3987 = vmatpush1.msra.mxu0 %v7312_v38  ;;  %4058 = vmatpush1.msra.mxu1 %v7313_v35  ;;  %v7350_v38 = vld [vmem:[#allocation12 + $0xba8] sm:$0xff]  ;;  %v7351_v35 = vld [vmem:[#allocation12 + $0xbb8] sm:$0xff] }
 0x4f2   : > { %3988 = vmatprep.subr.mxu0 %v7314_v54  ;;  %4059 = vmatprep.subr.mxu1 %v7315_v5  ;;  %v7352_v54 = vld [vmem:[#allocation12 + $0xba0] sm:$0xff]  ;;  %v7353_v5 = vld [vmem:[#allocation12 + $0xbb0] sm:$0xff] }
 0x4f3   : > { %3989 = vmatpush1.msra.mxu0 %v7316_v31  ;;  %4060 = vmatpush1.msra.mxu1 %v7317_v60  ;;  %v7354_v31 = vld [vmem:[#allocation12 + $0xb28] sm:$0xff]  ;;  %v7355_v60 = vld [vmem:[#allocation12 + $0xb38] sm:$0xff] }
 0x4f4   : > { %3990 = vmatprep.subr.mxu0 %v7318_v17  ;;  %4061 = vmatprep.subr.mxu1 %v7319_v11  ;;  %v7356_v17 = vld [vmem:[#allocation12 + $0xb20] sm:$0xff]  ;;  %v7357_v11 = vld [vmem:[#allocation12 + $0xb30] sm:$0xff] }
 0x4f5   : > { %3991 = vmatpush2.msra.mxu0 %v7320_v47  ;;  %4062 = vmatpush2.msra.mxu1 %v7321_v7  ;;  %v7358_v47 = vld [vmem:[#allocation12 + $0xaa8] sm:$0xff]  ;;  %v7359_v7 = vld [vmem:[#allocation12 + $0xab8] sm:$0xff] }
 0x4f6   : > { %3992 = vmatprep.subr.mxu0 %v7322_v52  ;;  %4063 = vmatprep.subr.mxu1 %v7323_v55  ;;  %v7360_v52 = vld [vmem:[#allocation12 + $0xaa0] sm:$0xff]  ;;  %v7361_v55 = vld [vmem:[#allocation12 + $0xab0] sm:$0xff] }
 0x4f7   : > { %3993 = vmatpush2.msra.mxu0 %v7324_v33  ;;  %4064 = vmatpush2.msra.mxu1 %v7325_v6  ;;  %v7362_v33 = vld [vmem:[#allocation12 + $0xa28] sm:$0xff]  ;;  %v7363_v6 = vld [vmem:[#allocation12 + $0xa38] sm:$0xff] }
 0x4f8   : > { %3994 = vmatprep.subr.mxu0 %v7326_v21  ;;  %4065 = vmatprep.subr.mxu1 %v7327_v2  ;;  %v7364_v21 = vld [vmem:[#allocation12 + $0xa20] sm:$0xff]  ;;  %v7365_v2 = vld [vmem:[#allocation12 + $0xa30] sm:$0xff] }
 0x4f9   : > { %3995 = vmatpush2.msra.mxu0 %v7328_v32  ;;  %4066 = vmatpush2.msra.mxu1 %v7329_v30  ;;  %v7366_v32 = vld [vmem:[#allocation12 + $0x9a8] sm:$0xff]  ;;  %v7367_v30 = vld [vmem:[#allocation12 + $0x9b8] sm:$0xff] }
 0x4fa   : > { %3996 = vmatprep.subr.mxu0 %v7330_v10  ;;  %4067 = vmatprep.subr.mxu1 %v7331_v59  ;;  %v7368_v10 = vld [vmem:[#allocation12 + $0x9a0] sm:$0xff]  ;;  %v7369_v59 = vld [vmem:[#allocation12 + $0x9b0] sm:$0xff] }
 0x4fb   : > { %3997 = vmatpush2.msra.mxu0 %v7332_v50  ;;  %4068 = vmatpush2.msra.mxu1 %v7333_v12  ;;  %v7370_v50 = vld [vmem:[#allocation12 + $0x928] sm:$0xff]  ;;  %v7371_v12 = vld [vmem:[#allocation12 + $0x938] sm:$0xff] }
 0x4fc   : > { %3998 = vmatprep.subr.mxu0 %v7334_v19  ;;  %4069 = vmatprep.subr.mxu1 %v7335_v14  ;;  %v7372_v19 = vld [vmem:[#allocation12 + $0x920] sm:$0xff]  ;;  %v7373_v14 = vld [vmem:[#allocation12 + $0x930] sm:$0xff] }
 0x4fd   : > { %3999 = vmatpush2.msra.mxu0 %v7336_v34  ;;  %4070 = vmatpush2.msra.mxu1 %v7337_v36  ;;  %v7374_v34 = vld [vmem:[#allocation12 + $0x8a8] sm:$0xff]  ;;  %v7375_v36 = vld [vmem:[#allocation12 + $0x8b8] sm:$0xff] }
 0x4fe   : > { %4000 = vmatprep.subr.mxu0 %v7338_v42  ;;  %4071 = vmatprep.subr.mxu1 %v7339_v48  ;;  %v7376_v42 = vld [vmem:[#allocation12 + $0x8a0] sm:$0xff]  ;;  %v7377_v48 = vld [vmem:[#allocation12 + $0x8b0] sm:$0xff] }
 0x4ff   : > { %4001 = vmatpush2.msra.mxu0 %v7340_v62  ;;  %4072 = vmatpush2.msra.mxu1 %v7341_v40  ;;  %v7378_v62 = vld [vmem:[#allocation12 + $0x828] sm:$0xff]  ;;  %v7379_v40 = vld [vmem:[#allocation12 + $0x838] sm:$0xff] }
 0x500   : > { %4002 = vmatprep.subr.mxu0 %v7342_v27  ;;  %4073 = vmatprep.subr.mxu1 %v7343_v63  ;;  %v7380_v27 = vld [vmem:[#allocation12 + $0x820] sm:$0xff]  ;;  %v7381_v63 = vld [vmem:[#allocation12 + $0x830] sm:$0xff] }
 0x501   : > { %4003 = vmatpush2.msra.mxu0 %v7344_v28  ;;  %4074 = vmatpush2.msra.mxu1 %v7345_v44  ;;  %v7382_v28 = vld [vmem:[#allocation12 + $0x7c8] sm:$0xff]  ;;  %v7383_v44 = vld [vmem:[#allocation12 + $0x7d8] sm:$0xff] }
 0x502   : > { %4004 = vmatprep.subr.mxu0 %v7346_v23  ;;  %4075 = vmatprep.subr.mxu1 %v7347_v37  ;;  %v7384_v23 = vld [vmem:[#allocation12 + $0x7c0] sm:$0xff]  ;;  %v7385_v37 = vld [vmem:[#allocation12 + $0x7d0] sm:$0xff] }
 0x503   : > { %4005 = vmatpush2.msra.mxu0 %v7348_v13  ;;  %4076 = vmatpush2.msra.mxu1 %v7349_v20  ;;  %v7386_v13 = vld [vmem:[#allocation12 + $0x748] sm:$0xff]  ;;  %v7387_v20 = vld [vmem:[#allocation12 + $0x758] sm:$0xff] }
 0x504   : > { %4006 = vmatprep.subr.mxu0 %v7350_v38  ;;  %4077 = vmatprep.subr.mxu1 %v7351_v35  ;;  %v7388_v38 = vld [vmem:[#allocation12 + $0x740] sm:$0xff]  ;;  %v7389_v35 = vld [vmem:[#allocation12 + $0x750] sm:$0xff] }
 0x505   : > { %4007 = vmatpush2.msra.mxu0 %v7352_v54  ;;  %4078 = vmatpush2.msra.mxu1 %v7353_v5  ;;  %v7390_v54 = vld [vmem:[#allocation12 + $0x6c8] sm:$0xff]  ;;  %v7391_v5 = vld [vmem:[#allocation12 + $0x6d8] sm:$0xff] }
 0x506   : > { %4008 = vmatprep.subr.mxu0 %v7354_v31  ;;  %4079 = vmatprep.subr.mxu1 %v7355_v60  ;;  %v7392_v31 = vld [vmem:[#allocation12 + $0x6c0] sm:$0xff]  ;;  %v7393_v60 = vld [vmem:[#allocation12 + $0x6d0] sm:$0xff] }
 0x507   : > { %4009 = vmatpush2.msra.mxu0 %v7356_v17  ;;  %4080 = vmatpush2.msra.mxu1 %v7357_v11  ;;  %v7394_v17 = vld [vmem:[#allocation12 + $0x648] sm:$0xff]  ;;  %v7395_v11 = vld [vmem:[#allocation12 + $0x658] sm:$0xff] }
 0x508   : > { %4010 = vmatprep.subr.mxu0 %v7358_v47  ;;  %4081 = vmatprep.subr.mxu1 %v7359_v7  ;;  %v7396_v47 = vld [vmem:[#allocation12 + $0x640] sm:$0xff]  ;;  %v7397_v7 = vld [vmem:[#allocation12 + $0x650] sm:$0xff] }
 0x509   : > { %4011 = vmatpush2.msra.mxu0 %v7360_v52  ;;  %4082 = vmatpush2.msra.mxu1 %v7361_v55  ;;  %v7398_v52 = vld [vmem:[#allocation12 + $0x5c8] sm:$0xff]  ;;  %v7399_v55 = vld [vmem:[#allocation12 + $0x5d8] sm:$0xff] }
 0x50a   : > { %4012 = vmatprep.subr.mxu0 %v7362_v33  ;;  %4083 = vmatprep.subr.mxu1 %v7363_v6  ;;  %v7400_v33 = vld [vmem:[#allocation12 + $0x5c0] sm:$0xff]  ;;  %v7401_v6 = vld [vmem:[#allocation12 + $0x5d0] sm:$0xff] }
 0x50b   : > { %4013 = vmatpush2.msra.mxu0 %v7364_v21  ;;  %4084 = vmatpush2.msra.mxu1 %v7365_v2  ;;  %v7402_v21 = vld [vmem:[#allocation12 + $0x548] sm:$0xff]  ;;  %v7403_v2 = vld [vmem:[#allocation12 + $0x558] sm:$0xff] }
 0x50c   : > { %4014 = vmatprep.subr.mxu0 %v7366_v32  ;;  %4085 = vmatprep.subr.mxu1 %v7367_v30  ;;  %v7404_v32 = vld [vmem:[#allocation12 + $0x540] sm:$0xff]  ;;  %v7405_v30 = vld [vmem:[#allocation12 + $0x550] sm:$0xff] }
 0x50d   : > { %4015 = vmatpush2.msra.mxu0 %v7368_v10  ;;  %4086 = vmatpush2.msra.mxu1 %v7369_v59  ;;  %v7406_v10 = vld [vmem:[#allocation12 + $0x4c8] sm:$0xff]  ;;  %v7407_v59 = vld [vmem:[#allocation12 + $0x4d8] sm:$0xff] }
 0x50e   : > { %4016 = vmatprep.subr.mxu0 %v7370_v50  ;;  %4087 = vmatprep.subr.mxu1 %v7371_v12  ;;  %v7408_v50 = vld [vmem:[#allocation12 + $0x4c0] sm:$0xff]  ;;  %v7409_v12 = vld [vmem:[#allocation12 + $0x4d0] sm:$0xff] }
 0x50f   : > { %4017 = vmatpush2.msra.mxu0 %v7372_v19  ;;  %4088 = vmatpush2.msra.mxu1 %v7373_v14  ;;  %v9507_v19 = vpop.f32.mrf.mxu1  ;;  %v7410_v14 = vld [vmem:[#allocation12 + $0x448] sm:$0xff] }
 0x510   : > { %4018 = vmatprep.subr.mxu0 %v7374_v34  ;;  %4089 = vmatprep.subr.mxu1 %v7375_v36  ;;  %v7411_v34 = vld [vmem:[#allocation12 + $0x458] sm:$0xff]  ;;  %v9509_v36 = vpop.f32.mrf.mxu0 }
 0x511   : > { %4019 = vmatpush2.msra.mxu0 %v7376_v42  ;;  %4090 = vmatpush2.msra.mxu1 %v7377_v48  ;;  %v7412_v42 = vld [vmem:[#allocation12 + $0x440] sm:$0xff]  ;;  %v7413_v48 = vld [vmem:[#allocation12 + $0x450] sm:$0xff] }
 0x512   : > { %4020 = vmatprep.subr.mxu0 %v7378_v62  ;;  %4091 = vmatprep.subr.mxu1 %v7379_v40  ;;  %v7414_v62 = vld [vmem:[#allocation12 + $0x3c8] sm:$0xff]  ;;  %v7415_v40 = vld [vmem:[#allocation12 + $0x3d8] sm:$0xff] }
 0x513   : > { %4021 = vmatpush2.msra.mxu0 %v7380_v27  ;;  %4092 = vmatpush2.msra.mxu1 %v7381_v63  ;;  %v7416_v27 = vld [vmem:[#allocation12 + $0x3c0] sm:$0xff]  ;;  %v7417_v63 = vld [vmem:[#allocation12 + $0x3d0] sm:$0xff] }
 0x514   : > { %4023 = vmatmul.mubr.f32.vlgmr.msra.gmra.mxu0 %v9497_v29  ;;  %4094 = vmatmul.mubr.f32.vlgmr.msra.gmra.mxu1 %v9497_v29 }
 0x515   : > { %4100 = vmatprep.subr.mxu0 %v7382_v28  ;;  %4171 = vmatprep.subr.mxu1 %v7383_v44  ;;  %v9511_v28 = vpop.f32.mrf.mxu1  ;;  %v7418_v44 = vld [vmem:[#allocation12 + $0x348] sm:$0xff] }
 0x516   : > { %4101 = vmatpush1.msra.mxu0 %v7384_v23  ;;  %4164 = vmatprep.mubr.f32.mxu0 %v9491_v1  ;;  %v7419_v23 = vld [vmem:[#allocation12 + $0x358] sm:$0xff] }
 0x517   : > { %4172 = vmatpush1.msra.mxu1 %v7385_v37  ;;  %4235 = vmatprep.mubr.f32.mxu1 %v9491_v1  ;;  %v9513_v37 = vpop.f32.mrf.mxu0 }
 0x518   : > { %4102 = vmatprep.subr.mxu0 %v7386_v13  ;;  %4173 = vmatprep.subr.mxu1 %v7387_v20  ;;  %v7420_v13 = vld [vmem:[#allocation12 + $0x340] sm:$0xff]  ;;  %v7421_v20 = vld [vmem:[#allocation12 + $0x350] sm:$0xff] }
 0x519   : > { %4103 = vmatpush1.msra.mxu0 %v7388_v38  ;;  %4174 = vmatpush1.msra.mxu1 %v7389_v35  ;;  %v9515_v38 = vpop.f32.mrf.mxu1  ;;  %v7422_v35 = vld [vmem:[#allocation12 + $0x2c8] sm:$0xff] }
 0x51a   : > { %4104 = vmatprep.subr.mxu0 %v7390_v54  ;;  %4175 = vmatprep.subr.mxu1 %v7391_v5  ;;  %v7423_v54 = vld [vmem:[#allocation12 + $0x2d8] sm:$0xff]  ;;  %v9517_v5 = vpop.f32.mrf.mxu0 }
 0x51b   : > { %4105 = vmatpush1.msra.mxu0 %v7392_v31  ;;  %4176 = vmatpush1.msra.mxu1 %v7393_v60  ;;  %v7424_v31 = vld [vmem:[#allocation12 + $0x2c0] sm:$0xff]  ;;  %v7425_v60 = vld [vmem:[#allocation12 + $0x2d0] sm:$0xff] }
 0x51c   : > { %4106 = vmatprep.subr.mxu0 %v7394_v17  ;;  %4177 = vmatprep.subr.mxu1 %v7395_v11  ;;  %v7426_v17 = vld [vmem:[#allocation12 + $0x248] sm:$0xff]  ;;  %v7427_v11 = vld [vmem:[#allocation12 + $0x258] sm:$0xff] }
 0x51d   : > { %4107 = vmatpush1.msra.mxu0 %v7396_v47  ;;  %4178 = vmatpush1.msra.mxu1 %v7397_v7  ;;  %v7428_v47 = vld [vmem:[#allocation12 + $0x240] sm:$0xff]  ;;  %v7429_v7 = vld [vmem:[#allocation12 + $0x250] sm:$0xff] }
 0x51e   : > { %4108 = vmatprep.subr.mxu0 %v7398_v52  ;;  %4179 = vmatprep.subr.mxu1 %v7399_v55  ;;  %v9519_v52 = vpop.f32.mrf.mxu1  ;;  %v7430_v55 = vld [vmem:[#allocation12 + $0x1c8] sm:$0xff] }
 0x51f   : > { %4109 = vmatpush1.msra.mxu0 %v7400_v33  ;;  %4180 = vmatpush1.msra.mxu1 %v7401_v6  ;;  %v7431_v33 = vld [vmem:[#allocation12 + $0x1d8] sm:$0xff]  ;;  %v9521_v6 = vpop.f32.mrf.mxu0 }
 0x520   : > { %4110 = vmatprep.subr.mxu0 %v7402_v21  ;;  %4181 = vmatprep.subr.mxu1 %v7403_v2  ;;  %v7432_v21 = vld [vmem:[#allocation12 + $0x1c0] sm:$0xff]  ;;  %v7433_v2 = vld [vmem:[#allocation12 + $0x1d0] sm:$0xff] }
 0x521   : > { %4111 = vmatpush1.msra.mxu0 %v7404_v32  ;;  %4182 = vmatpush1.msra.mxu1 %v7405_v30  ;;  %v3538_v32 = vpop.f32.mrf.mxu1  ;;  %v7434_v30 = vld [vmem:[#allocation12 + $0x148] sm:$0xff] }
 0x522   : > { %4112 = vmatprep.subr.mxu0 %v7406_v10  ;;  %4183 = vmatprep.subr.mxu1 %v7407_v59  ;;  %v7435_v10 = vld [vmem:[#allocation12 + $0x158] sm:$0xff]  ;;  %v3467_v59 = vpop.f32.mrf.mxu0 }
 0x523   : > { %4113 = vmatpush1.msra.mxu0 %v7408_v50  ;;  %4184 = vmatpush1.msra.mxu1 %v7409_v12  ;;  %v7436_v50 = vld [vmem:[#allocation12 + $0x140] sm:$0xff]  ;;  %v7437_v12 = vld [vmem:[#allocation12 + $0x150] sm:$0xff] }
 0x524   : > { %4114 = vmatprep.subr.mxu0 %v7410_v14  ;;  %4185 = vmatprep.subr.mxu1 %v7411_v34  ;;  %v7438_v14 = vld [vmem:[#allocation12 + $0xc8] sm:$0xff]  ;;  %v7439_v34 = vld [vmem:[#allocation12 + $0xd8] sm:$0xff] }
 0x525   : > { %4115 = vmatpush1.msra.mxu0 %v7412_v42  ;;  %4186 = vmatpush1.msra.mxu1 %v7413_v48  ;;  %v3687_v42 = vadd.f32 %v3538_v32, %v9507_v19  ;;  %v7440_v48 = vld [vmem:[#allocation12 + $0xc0] sm:$0xff]  ;;  %v7458_v32 = vld [vmem:[#allocation12 + $0xe48] sm:$0xff] }
 0x526   : > { %4116 = vmatprep.subr.mxu0 %v7414_v62  ;;  %4187 = vmatprep.subr.mxu1 %v7415_v40  ;;  %v7441_v62 = vld [vmem:[#allocation12 + $0xd0] sm:$0xff]  ;;  %v3685_v40 = vadd.f32 %v3467_v59, %v9509_v36 }
 0x527   : > { %4117 = vmatpush1.msra.mxu0 %v7416_v27  ;;  %4188 = vmatpush1.msra.mxu1 %v7417_v63  ;;  %v7442_v27 = vld [vmem:[#allocation12 + $0x48] sm:$0xff]  ;;  %v7443_v63 = vld [vmem:[#allocation12 + $0x58] sm:$0xff]  ;;  %v3695_v19 = vadd.f32 %v3687_v42, %v9384_v22  ;;  %v7461_v59 = vld [vmem:[#allocation12 + $0xe50] sm:$0xff] }
 0x528   : > { %4118 = vmatprep.subr.mxu0 %v7418_v44  ;;  %4189 = vmatprep.subr.mxu1 %v7419_v23  ;;  %v7444_v44 = vld [vmem:[#allocation12 + $0x40] sm:$0xff]  ;;  %v7445_v23 = vld [vmem:[#allocation12 + $0x50] sm:$0xff]  ;;  %v3693_v36 = vadd.f32 %v3685_v40, %v9390_v46  ;;  %v7466_v42 = vld [vmem:[#allocation12 + $0xd48] sm:$0xff] }
 0x529   : > { %4119 = vmatpush1.msra.mxu0 %v7420_v13  ;;  %4190 = vmatpush1.msra.mxu1 %v7421_v20  ;;  %v7446_v13 = vld [vmem:[#allocation12 + $0xfc8] sm:$0xff]  ;;  %v7447_v20 = vld [vmem:[#allocation12 + $0xfd8] sm:$0xff]  ;;  %v7469_v40 = vld [vmem:[#allocation12 + $0xd50] sm:$0xff] }
 0x52a   : > { %4120 = vmatprep.subr.mxu0 %v7422_v35  ;;  %4191 = vmatprep.subr.mxu1 %v7423_v54  ;;  %v7448_v35 = vld [vmem:[#allocation12 + $0xfc0] sm:$0xff]  ;;  %v7449_v54 = vld [vmem:[#allocation12 + $0xfd0] sm:$0xff] }
 0x52b   : > { %4121 = vmatpush1.msra.mxu0 %v7424_v31  ;;  %4192 = vmatpush1.msra.mxu1 %v7425_v60  ;;  %v7450_v31 = vld [vmem:[#allocation12 + $0xf48] sm:$0xff]  ;;  %v7451_v60 = vld [vmem:[#allocation12 + $0xf58] sm:$0xff] }
 0x52c   : > { %4122 = vmatprep.subr.mxu0 %v7426_v17  ;;  %4193 = vmatprep.subr.mxu1 %v7427_v11  ;;  %v7452_v17 = vld [vmem:[#allocation12 + $0xf40] sm:$0xff]  ;;  %v7453_v11 = vld [vmem:[#allocation12 + $0xf50] sm:$0xff] }
 0x52d   : > { %4123 = vmatpush1.msra.mxu0 %v7428_v47  ;;  %4194 = vmatpush1.msra.mxu1 %v7429_v7  ;;  %v7454_v47 = vld [vmem:[#allocation12 + $0xec8] sm:$0xff]  ;;  %v7455_v7 = vld [vmem:[#allocation12 + $0xed8] sm:$0xff] }
 0x52e   : > { %4124 = vmatprep.subr.mxu0 %v7430_v55  ;;  %4195 = vmatprep.subr.mxu1 %v7431_v33  ;;  %v5937_v55 = vmul.f32 -1.442695, %v3695_v19  ;;  %v7456_v33 = vld [vmem:[#allocation12 + $0xec0] sm:$0xff] }
 0x52f   : > { %4125 = vmatpush1.msra.mxu0 %v7432_v21  ;;  %4196 = vmatpush1.msra.mxu1 %v7433_v2  ;;  %v7457_v21 = vld [vmem:[#allocation12 + $0xed0] sm:$0xff]  ;;  %v5935_v2 = vmul.f32 -1.442695, %v3693_v36  ;;  %v7476_v19 = vld [vmem:[#allocation12 + $0xc40] sm:$0xff]  ;;  %v7479_v36 = vld [vmem:[#allocation12 + $0xbd8] sm:$0xff] }
 0x530   : > { %4126 = vmatprep.subr.mxu0 %v7434_v30  ;;  %4197 = vmatprep.subr.mxu1 %v7435_v10  ;;  %v7459_v30 = vld [vmem:[#allocation12 + $0xe58] sm:$0xff]  ;;  %v7460_v10 = vld [vmem:[#allocation12 + $0xe40] sm:$0xff]  ;;  %6230 = vpow2.f32 %v5937_v55  ;;  %v7486_v55 = vld [vmem:[#allocation12 + $0xac8] sm:$0xff] }
 0x531   : > { %4127 = vmatpush1.msra.mxu0 %v7436_v50  ;;  %4198 = vmatpush1.msra.mxu1 %v7437_v12  ;;  %v7462_v50 = vld [vmem:[#allocation12 + $0xdc8] sm:$0xff]  ;;  %v7463_v12 = vld [vmem:[#allocation12 + $0xdd8] sm:$0xff]  ;;  %6232 = vpow2.f32 %v5935_v2  ;;  %v7489_v2 = vld [vmem:[#allocation12 + $0xad0] sm:$0xff] }
 0x532   : > { %4128 = vmatprep.subr.mxu0 %v7438_v14  ;;  %4199 = vmatprep.subr.mxu1 %v7439_v34  ;;  %v7464_v14 = vld [vmem:[#allocation12 + $0xdc0] sm:$0xff]  ;;  %v7465_v34 = vld [vmem:[#allocation12 + $0xdd0] sm:$0xff] }
 0x533   : > { %4129 = vmatpush1.msra.mxu0 %v7440_v48  ;;  %4200 = vmatpush1.msra.mxu1 %v7441_v62  ;;  %v7467_v48 = vld [vmem:[#allocation12 + $0xd58] sm:$0xff]  ;;  %v7468_v62 = vld [vmem:[#allocation12 + $0xd40] sm:$0xff] }
 0x534   : > { %4130 = vmatprep.subr.mxu0 %v7442_v27  ;;  %4201 = vmatprep.subr.mxu1 %v7443_v63  ;;  %v7470_v27 = vld [vmem:[#allocation12 + $0xcc8] sm:$0xff]  ;;  %v7471_v63 = vld [vmem:[#allocation12 + $0xcd8] sm:$0xff] }
 0x535   : > { %4131 = vmatpush1.msra.mxu0 %v7444_v44  ;;  %4202 = vmatpush1.msra.mxu1 %v7445_v23  ;;  %v7472_v44 = vld [vmem:[#allocation12 + $0xcc0] sm:$0xff]  ;;  %v7473_v23 = vld [vmem:[#allocation12 + $0xcd0] sm:$0xff] }
 0x536   : > { %4132 = vmatprep.subr.mxu0 %v7446_v13  ;;  %4203 = vmatprep.subr.mxu1 %v7447_v20  ;;  %v7474_v13 = vld [vmem:[#allocation12 + $0xc48] sm:$0xff]  ;;  %v7475_v20 = vld [vmem:[#allocation12 + $0xc58] sm:$0xff] }
 0x537   : > { %4133 = vmatpush2.msra.mxu0 %v7448_v35  ;;  %4204 = vmatpush2.msra.mxu1 %v7449_v54  ;;  %v7477_v35 = vld [vmem:[#allocation12 + $0xc50] sm:$0xff]  ;;  %v7478_v54 = vld [vmem:[#allocation12 + $0xbc8] sm:$0xff] }
 0x538   : > { %4134 = vmatprep.subr.mxu0 %v7450_v31  ;;  %4205 = vmatprep.subr.mxu1 %v7451_v60  ;;  %v7480_v31 = vld [vmem:[#allocation12 + $0xbc0] sm:$0xff]  ;;  %v7481_v60 = vld [vmem:[#allocation12 + $0xbd0] sm:$0xff] }
 0x539   : > { %4135 = vmatpush2.msra.mxu0 %v7452_v17  ;;  %4206 = vmatpush2.msra.mxu1 %v7453_v11  ;;  %v7482_v17 = vld [vmem:[#allocation12 + $0xb48] sm:$0xff]  ;;  %v7483_v11 = vld [vmem:[#allocation12 + $0xb58] sm:$0xff] }
 0x53a   : > { %4136 = vmatprep.subr.mxu0 %v7454_v47  ;;  %4207 = vmatprep.subr.mxu1 %v7455_v7  ;;  %v7484_v47 = vld [vmem:[#allocation12 + $0xb40] sm:$0xff]  ;;  %v7485_v7 = vld [vmem:[#allocation12 + $0xb50] sm:$0xff] }
 0x53b   : > { %4137 = vmatpush2.msra.mxu0 %v7456_v33  ;;  %4208 = vmatpush2.msra.mxu1 %v7457_v21  ;;  %v7487_v33 = vld [vmem:[#allocation12 + $0xad8] sm:$0xff]  ;;  %v7488_v21 = vld [vmem:[#allocation12 + $0xac0] sm:$0xff] }
 0x53c   : > { %4138 = vmatprep.subr.mxu0 %v7458_v32  ;;  %4209 = vmatprep.subr.mxu1 %v7459_v30  ;;  %v7490_v30 = vld [vmem:[#allocation12 + $0xa48] sm:$0xff] }
 0x53d   : > { %4139 = vmatpush2.msra.mxu0 %v7460_v10  ;;  %4210 = vmatpush2.msra.mxu1 %v7461_v59  ;;  %v6231_v32 = vpop.eup %6230  ;;  %v7491_v10 = vld [vmem:[#allocation12 + $0xa58] sm:$0xff] }
 0x53e   : > { %4140 = vmatprep.subr.mxu0 %v7462_v50  ;;  %4211 = vmatprep.subr.mxu1 %v7463_v12  ;;  %v6233_v59 = vpop.eup %6232  ;;  %v7492_v50 = vld [vmem:[#allocation12 + $0xa40] sm:$0xff]  ;;  %v7493_v12 = vld [vmem:[#allocation12 + $0xa50] sm:$0xff] }
 0x53f   : > { %4141 = vmatpush2.msra.mxu0 %v7464_v14  ;;  %4212 = vmatpush2.msra.mxu1 %v7465_v34  ;;  %v3469_v14 = vpop.f32.mrf.mxu0  ;;  %v3540_v34 = vpop.f32.mrf.mxu1 }
 0x540   : > { %4142 = vmatprep.subr.mxu0 %v7466_v42  ;;  %4213 = vmatprep.subr.mxu1 %v7467_v48  ;;  %v7494_v42 = vld [vmem:[#allocation12 + $0x9c8] sm:$0xff]  ;;  %v7495_v48 = vld [vmem:[#allocation12 + $0x9d8] sm:$0xff] }
 0x541   : > { %4143 = vmatpush2.msra.mxu0 %v7468_v62  ;;  %4214 = vmatpush2.msra.mxu1 %v7469_v40  ;;  %v3721_v62 = vadd.f32 1.0, %v6231_v32  ;;  %v7496_v40 = vld [vmem:[#allocation12 + $0x9c0] sm:$0xff] }
 0x542   : > { %4144 = vmatprep.subr.mxu0 %v7470_v27  ;;  %4215 = vmatprep.subr.mxu1 %v7471_v63  ;;  %v7497_v27 = vld [vmem:[#allocation12 + $0x9d0] sm:$0xff]  ;;  %v3719_v63 = vadd.f32 1.0, %v6233_v59  ;;  %v7512_v32 = vld [vmem:[#allocation12 + $0x7e0] sm:$0xff] }
 0x543   : > { %4145 = vmatpush2.msra.mxu0 %v7472_v44  ;;  %4216 = vmatpush2.msra.mxu1 %v7473_v23  ;;  %v7498_v44 = vld [vmem:[#allocation12 + $0x948] sm:$0xff]  ;;  %v7499_v23 = vld [vmem:[#allocation12 + $0x958] sm:$0xff]  ;;  %6234 = vrcp.f32 %v3721_v62  ;;  %v7520_v62 = vld [vmem:[#allocation12 + $0x6e0] sm:$0xff] }
 0x544   : > { %4146 = vmatprep.subr.mxu0 %v7474_v13  ;;  %4217 = vmatprep.subr.mxu1 %v7475_v20  ;;  %v3686_v20 = vadd.f32 %v3469_v14, %v9513_v37  ;;  %6236 = vrcp.f32 %v3719_v63  ;;  %v7506_v37 = vld [vmem:[#allocation12 + $0x848] sm:$0xff]  ;;  %v7516_v14 = vld [vmem:[#allocation12 + $0x760] sm:$0xff] }
 0x545   : > { %4147 = vmatpush2.msra.mxu0 %v7476_v19  ;;  %4218 = vmatpush2.msra.mxu1 %v7477_v35  ;;  %v7500_v19 = vld [vmem:[#allocation12 + $0x940] sm:$0xff]  ;;  %v7501_v35 = vld [vmem:[#allocation12 + $0x950] sm:$0xff] }
 0x546   : > { %4148 = vmatprep.subr.mxu0 %v7478_v54  ;;  %4219 = vmatprep.subr.mxu1 %v7479_v36  ;;  %v3688_v36 = vadd.f32 %v3540_v34, %v9511_v28  ;;  %v7509_v28 = vld [vmem:[#allocation12 + $0x850] sm:$0xff]  ;;  %v7524_v63 = vld [vmem:[#allocation12 + $0x660] sm:$0xff] }
 0x547   : > { %4149 = vmatpush2.msra.mxu0 %v7480_v31  ;;  %4220 = vmatpush2.msra.mxu1 %v7481_v60  ;;  %v7502_v31 = vld [vmem:[#allocation12 + $0x8c8] sm:$0xff]  ;;  %v7503_v60 = vld [vmem:[#allocation12 + $0x8d8] sm:$0xff]  ;;  %v7517_v34 = vld [vmem:[#allocation12 + $0x770] sm:$0xff] }
 0x548   : > { %4150 = vmatprep.subr.mxu0 %v7482_v17  ;;  %4221 = vmatprep.subr.mxu1 %v7483_v11  ;;  %v7504_v17 = vld [vmem:[#allocation12 + $0x8c0] sm:$0xff]  ;;  %v7505_v11 = vld [vmem:[#allocation12 + $0x8d0] sm:$0xff] }
 0x549   : > { %4151 = vmatpush2.msra.mxu0 %v7484_v47  ;;  %4222 = vmatpush2.msra.mxu1 %v7485_v7  ;;  %v7507_v7 = vld [vmem:[#allocation12 + $0x858] sm:$0xff] }
 0x54a   : > { %4152 = vmatprep.subr.mxu0 %v7486_v55  ;;  %4223 = vmatprep.subr.mxu1 %v7487_v33  ;;  %v7508_v55 = vld [vmem:[#allocation12 + $0x840] sm:$0xff]  ;;  %v3696_v33 = vadd.f32 %v3688_v36, %v9410_v45  ;;  %v7529_v36 = vld [vmem:[#allocation12 + $0x5f0] sm:$0xff] }
 0x54b   : > { %4153 = vmatpush2.msra.mxu0 %v7488_v21  ;;  %4224 = vmatpush2.msra.mxu1 %v7489_v2  ;;  %v7510_v21 = vld [vmem:[#allocation12 + $0x7e8] sm:$0xff]  ;;  %v7511_v2 = vld [vmem:[#allocation12 + $0x7f8] sm:$0xff] }
 0x54c   : > { %4154 = vmatprep.subr.mxu0 %v7490_v30  ;;  %4225 = vmatprep.subr.mxu1 %v7491_v10  ;;  %v7513_v10 = vld [vmem:[#allocation12 + $0x7f0] sm:$0xff]  ;;  %v5938_v59 = vmul.f32 -1.442695, %v3696_v33 }
 0x54d   : > { %4155 = vmatpush2.msra.mxu0 %v7492_v50  ;;  %4226 = vmatpush2.msra.mxu1 %v7493_v12  ;;  %v7514_v50 = vld [vmem:[#allocation12 + $0x768] sm:$0xff]  ;;  %v7515_v12 = vld [vmem:[#allocation12 + $0x778] sm:$0xff] }
 0x54e   : > { %4156 = vmatprep.subr.mxu0 %v7494_v42  ;;  %4227 = vmatprep.subr.mxu1 %v7495_v48  ;;  %v7518_v42 = vld [vmem:[#allocation12 + $0x6e8] sm:$0xff]  ;;  %v7519_v48 = vld [vmem:[#allocation12 + $0x6f8] sm:$0xff] }
 0x54f   : > { %4157 = vmatpush2.msra.mxu0 %v7496_v40  ;;  %4228 = vmatpush2.msra.mxu1 %v7497_v27  ;;  %v7521_v40 = vld [vmem:[#allocation12 + $0x6f0] sm:$0xff]  ;;  %v7523_v27 = vld [vmem:[#allocation12 + $0x678] sm:$0xff] }
 0x550   : > { %4158 = vmatprep.subr.mxu0 %v7498_v44  ;;  %4229 = vmatprep.subr.mxu1 %v7499_v23  ;;  %v3680_v13 = vpop.f32.mrf.mxu1  ;;  %v7525_v44 = vld [vmem:[#allocation12 + $0x670] sm:$0xff]  ;;  %v6235_v23 = vpop.eup %6234 }
 0x551   : > { %4159 = vmatpush2.msra.mxu0 %v7500_v19  ;;  %4230 = vmatpush2.msra.mxu1 %v7501_v35  ;;  %v3691_v54 = vadd.f32 %v3680_v13, %v9515_v38  ;;  %v3694_v38 = vadd.f32 %v3686_v20, %v9403_v15  ;;  %v9537_v13 = vpop.f32.mrf.mxu0  ;;  %v7526_v20 = vld [vmem:[#allocation12 + $0x5e8] sm:$0xff]  ;;  %v7527_v19 = vld [vmem:[#allocation12 + $0x5f8] sm:$0xff]  ;;  %v6237_v35 = vpop.eup %6236 }
 0x552   : > { %4160 = vmatprep.subr.mxu0 %v7502_v31  ;;  %4231 = vmatprep.subr.mxu1 %v7503_v60  ;;  %v7530_v60 = vld [vmem:[#allocation12 + $0x568] sm:$0xff] }
 0x553   : > { %4161 = vmatpush2.msra.mxu0 %v7504_v17  ;;  %4232 = vmatpush2.msra.mxu1 %v7505_v11  ;;  %v3699_v47 = vadd.f32 %v3691_v54, %v9398_v51  ;;  %v5936_v30 = vmul.f32 -1.442695, %v3694_v38  ;;  %v7528_v54 = vld [vmem:[#allocation12 + $0x5e0] sm:$0xff]  ;;  %v7531_v17 = vld [vmem:[#allocation12 + $0x578] sm:$0xff]  ;;  %v3739_v11 = vmul.f32 %v6235_v23, %v9422_v41  ;;  %v3611_v38 = vpop.f32.mrf.mxu0  ;;  %v7550_v23 = vld [vmem:[#allocation12 + $0x2e8] sm:$0xff] }
 0x554   : > { %4162 = vmatprep.subr.mxu0 %v7506_v37  ;;  %4233 = vmatprep.subr.mxu1 %v7507_v7  ;;  %v7532_v37 = vld [vmem:[#allocation12 + $0x560] sm:$0xff]  ;;  %v7533_v7 = vld [vmem:[#allocation12 + $0x570] sm:$0xff]  ;;  %v7539_v41 = vld [vmem:[#allocation12 + $0x478] sm:$0xff] }
 0x555   : > { %4163 = vmatpush2.msra.mxu0 %v7508_v55  ;;  %4234 = vmatpush2.msra.mxu1 %v7509_v28  ;;  %6238 = vtanh.f32 %v3699_v47  ;;  %v7534_v55 = vld [vmem:[#allocation12 + $0x4e8] sm:$0xff]  ;;  %v7535_v28 = vld [vmem:[#allocation12 + $0x4f8] sm:$0xff] }
 0x556   : > { %4165 = vmatmul.mubr.f32.vlgmr.msra.gmra.mxu0 %v9497_v29  ;;  %4236 = vmatmul.mubr.f32.vlgmr.msra.gmra.mxu1 %v9497_v29  ;;  %6240 = vpow2.f32 %v5936_v30  ;;  %v7538_v30 = vld [vmem:[#allocation12 + $0x468] sm:$0xff] }
 0x557   : > { %4242 = vmatprep.subr.mxu0 %v7510_v21  ;;  %4313 = vmatprep.subr.mxu1 %v7511_v2  ;;  %6242 = vpow2.f32 %v5938_v59  ;;  %v3682_v21 = vpop.f32.mrf.mxu1  ;;  %v7536_v2 = vld [vmem:[#allocation12 + $0x4e0] sm:$0xff] }
 0x558   : > { %4243 = vmatpush1.msra.mxu0 %v7512_v32  ;;  %4306 = vmatprep.mubr.f32.mxu0 %v9491_v1  ;;  %v7537_v32 = vld [vmem:[#allocation12 + $0x4f0] sm:$0xff]  ;;  %v7540_v59 = vld [vmem:[#allocation12 + $0x460] sm:$0xff] }
 0x559   : > { %4314 = vmatpush1.msra.mxu1 %v7513_v10  ;;  %4377 = vmatprep.mubr.f32.mxu1 %v9491_v1  ;;  %v7522_v1 = vld [vmem:[#allocation12 + $0x668] sm:$0xff]  ;;  %v3690_v10 = vadd.f32 %v3611_v38, %v9521_v6  ;;  %v7560_v38 = vld [vmem:[#allocation12 + $0x1e0] sm:$0xff] }
 0x55a   : > { %4244 = vmatprep.subr.mxu0 %v7514_v50  ;;  %4315 = vmatprep.subr.mxu1 %v7515_v12  ;;  %v7541_v50 = vld [vmem:[#allocation12 + $0x470] sm:$0xff]  ;;  %v3692_v12 = vadd.f32 %v3682_v21, %v9519_v52  ;;  %v7563_v21 = vld [vmem:[#allocation12 + $0x178] sm:$0xff] }
 0x55b   : > { %4245 = vmatpush1.msra.mxu0 %v7516_v14  ;;  %4316 = vmatpush1.msra.mxu1 %v7517_v34  ;;  %v7542_v14 = vld [vmem:[#allocation12 + $0x3e8] sm:$0xff]  ;;  %v7543_v34 = vld [vmem:[#allocation12 + $0x3f8] sm:$0xff] }
 0x55c   : > { %4246 = vmatprep.subr.mxu0 %v7518_v42  ;;  %4317 = vmatprep.subr.mxu1 %v7519_v48  ;;  %v7544_v42 = vld [vmem:[#allocation12 + $0x3e0] sm:$0xff]  ;;  %v7545_v48 = vld [vmem:[#allocation12 + $0x3f0] sm:$0xff]  ;;  %v3700_v52 = vadd.f32 %v3692_v12, %v9433_v24  ;;  %v7571_v12 = vld [vmem:[#allocation12 + $0x78] sm:$0xff] }
 0x55d   : > { %4247 = vmatpush1.msra.mxu0 %v7520_v62  ;;  %4318 = vmatpush1.msra.mxu1 %v7521_v40  ;;  %v7546_v40 = vld [vmem:[#allocation12 + $0x368] sm:$0xff] }
 0x55e   : > { %4248 = vmatprep.subr.mxu0 %v7522_v1  ;;  %4319 = vmatprep.subr.mxu1 %v7523_v27  ;;  %v7547_v1 = vld [vmem:[#allocation12 + $0x378] sm:$0xff]  ;;  %v3698_v27 = vadd.f32 %v3690_v10, %v9427_v39  ;;  %6244 = vtanh.f32 %v3700_v52  ;;  %v7568_v10 = vld [vmem:[#allocation12 + $0xe0] sm:$0xff] }
 0x55f   : > { %4249 = vmatpush1.msra.mxu0 %v7524_v63  ;;  %4320 = vmatpush1.msra.mxu1 %v7525_v44  ;;  %v7548_v63 = vld [vmem:[#allocation12 + $0x360] sm:$0xff]  ;;  %v7549_v44 = vld [vmem:[#allocation12 + $0x370] sm:$0xff]  ;;  %v7583_v52 = vld [vmem:[#allocation12 + $0xef8] sm:$0xff] }
 0x560   : > { %4250 = vmatprep.subr.mxu0 %v7526_v20  ;;  %4321 = vmatprep.subr.mxu1 %v7527_v19  ;;  %v7551_v20 = vld [vmem:[#allocation12 + $0x2f8] sm:$0xff] }
 0x561   : > { %4251 = vmatpush1.msra.mxu0 %v7528_v54  ;;  %4322 = vmatpush1.msra.mxu1 %v7529_v36  ;;  %v7553_v54 = vld [vmem:[#allocation12 + $0x2f0] sm:$0xff] }
 0x562   : > { %v6239_v31 = vpop.eup %6238  ;;  %4252 = vmatprep.subr.mxu0 %v7530_v60  ;;  %4323 = vmatprep.subr.mxu1 %v7531_v17  ;;  %v7555_v60 = vld [vmem:[#allocation12 + $0x278] sm:$0xff]  ;;  %v5940_v17 = vmul.f32 -1.442695, %v3698_v27  ;;  %v7580_v27 = vld [vmem:[#allocation12 + $0xf60] sm:$0xff] }
 0x563   : > { %v3741_v47 = vmul.f32 %v6239_v31, %v6237_v35  ;;  %4253 = vmatpush1.msra.mxu0 %v7532_v37  ;;  %4324 = vmatpush1.msra.mxu1 %v7533_v7  ;;  %v6241_v62 = vpop.eup %6240  ;;  %v7552_v35 = vld [vmem:[#allocation12 + $0x2e0] sm:$0xff]  ;;  %v7554_v31 = vld [vmem:[#allocation12 + $0x268] sm:$0xff]  ;;  %v7559_v7 = vld [vmem:[#allocation12 + $0x1f8] sm:$0xff] }
 0x564   : > { %4254 = vmatprep.subr.mxu0 %v7534_v55  ;;  %4325 = vmatprep.subr.mxu1 %v7535_v28  ;;  %v6243_v6 = vpop.eup %6242  ;;  %v3720_v19 = vadd.f32 1.0, %v6241_v62  ;;  %v7558_v37 = vld [vmem:[#allocation12 + $0x1e8] sm:$0xff]  ;;  %v7561_v55 = vld [vmem:[#allocation12 + $0x1f0] sm:$0xff]  ;;  %v7576_v62 = vld [vmem:[#allocation12 + $0xfe0] sm:$0xff] }
 0x565   : > { %v9540_v33 = vadd.f32 %v3741_v47, %v3739_v11  ;;  %4255 = vmatpush1.msra.mxu0 %v7536_v2  ;;  %4326 = vmatpush1.msra.mxu1 %v7537_v32  ;;  %v3722_v36 = vadd.f32 1.0, %v6243_v6  ;;  %v7556_v11 = vld [vmem:[#allocation12 + $0x260] sm:$0xff]  ;;  %v7557_v47 = vld [vmem:[#allocation12 + $0x270] sm:$0xff]  ;;  %v7562_v28 = vld [vmem:[#allocation12 + $0x168] sm:$0xff] }
 0x566   : > { %4256 = vmatprep.subr.mxu0 %v7538_v30  ;;  %4327 = vmatprep.subr.mxu1 %v7539_v41  ;;  %6246 = vrcp.f32 %v3720_v19  ;;  %v7564_v2 = vld [vmem:[#allocation12 + $0x160] sm:$0xff]  ;;  %v7565_v32 = vld [vmem:[#allocation12 + $0x170] sm:$0xff]  ;;  %v7566_v30 = vld [vmem:[#allocation12 + $0xe8] sm:$0xff] }
 0x567   : > { %4257 = vmatpush1.msra.mxu0 %v7540_v59  ;;  %4328 = vmatpush1.msra.mxu1 %v7541_v50  ;;  %6248 = vrcp.f32 %v3722_v36  ;;  %v7567_v41 = vld [vmem:[#allocation12 + $0xf8] sm:$0xff]  ;;  %v7569_v59 = vld [vmem:[#allocation12 + $0xf0] sm:$0xff]  ;;  %v7570_v50 = vld [vmem:[#allocation12 + $0x68] sm:$0xff] }
 0x568   : > { %4258 = vmatprep.subr.mxu0 %v7542_v14  ;;  %4329 = vmatprep.subr.mxu1 %v7543_v34  ;;  %6250 = vpow2.f32 %v5940_v17  ;;  %v7572_v14 = vld [vmem:[#allocation12 + $0x60] sm:$0xff]  ;;  %v7573_v34 = vld [vmem:[#allocation12 + $0x70] sm:$0xff]  ;;  %v7579_v6 = vld [vmem:[#allocation12 + $0xf78] sm:$0xff] }
 0x569   : > { %4259 = vmatpush1.msra.mxu0 %v7544_v42  ;;  %4330 = vmatpush1.msra.mxu1 %v7545_v48  ;;  %v7574_v42 = vld [vmem:[#allocation12 + $0xfe8] sm:$0xff]  ;;  %v7575_v48 = vld [vmem:[#allocation12 + $0xff8] sm:$0xff]  ;;  %v7585_v19 = vld [vmem:[#allocation12 + $0xef0] sm:$0xff] }
 0x56a   : > { %4260 = vmatprep.subr.mxu0 %v7546_v40  ;;  %4331 = vmatprep.subr.mxu1 %v7547_v1  ;;  %v7577_v40 = vld [vmem:[#allocation12 + $0xff0] sm:$0xff]  ;;  %v7578_v1 = vld [vmem:[#allocation12 + $0xf68] sm:$0xff]  ;;  %v7587_v36 = vld [vmem:[#allocation12 + $0xe78] sm:$0xff] }
 0x56b   : > { %4261 = vmatpush1.msra.mxu0 %v7548_v63  ;;  %4332 = vmatpush1.msra.mxu1 %v7549_v44  ;;  %v7581_v63 = vld [vmem:[#allocation12 + $0xf70] sm:$0xff]  ;;  %v7582_v44 = vld [vmem:[#allocation12 + $0xee8] sm:$0xff] }
 0x56c   : > { %4262 = vmatprep.subr.mxu0 %v7550_v23  ;;  %4333 = vmatprep.subr.mxu1 %v7551_v20  ;;  %v6245_v23 = vpop.eup %6244  ;;  %v7584_v20 = vld [vmem:[#allocation12 + $0xee0] sm:$0xff]  ;;  %v7589_v17 = vld [vmem:[#allocation12 + $0xe70] sm:$0xff] }
 0x56d   : > { %4263 = vmatpush1.msra.mxu0 %v7552_v35  ;;  %4334 = vmatpush1.msra.mxu1 %v7553_v54  ;;  %v7586_v54 = vld [vmem:[#allocation12 + $0xe68] sm:$0xff] }
 0x56e   : > { %4264 = vmatprep.subr.mxu0 %v7554_v31  ;;  %4335 = vmatprep.subr.mxu1 %v7555_v60  ;;  %v7588_v60 = vld [vmem:[#allocation12 + $0xe60] sm:$0xff] }
 0x56f   : > { %4265 = vmatpush1.msra.mxu0 %v7556_v11  ;;  %4336 = vmatpush1.msra.mxu1 %v7557_v47 }
 0x570   : > { %4266 = vmatprep.subr.mxu0 %v7558_v37  ;;  %4337 = vmatprep.subr.mxu1 %v7559_v7  ;;  %v7590_v37 = vld [vmem:[#allocation12 + $0xde8] sm:$0xff]  ;;  %v7591_v7 = vld [vmem:[#allocation12 + $0xdf8] sm:$0xff] }
 0x571   : > { %4267 = vmatpush1.msra.mxu0 %v7560_v38  ;;  %4338 = vmatpush1.msra.mxu1 %v7561_v55  ;;  %v7592_v38 = vld [vmem:[#allocation12 + $0xde0] sm:$0xff]  ;;  %v7593_v55 = vld [vmem:[#allocation12 + $0xdf0] sm:$0xff] }
 0x572   : > { %4268 = vmatprep.subr.mxu0 %v7562_v28  ;;  %4339 = vmatprep.subr.mxu1 %v7563_v21  ;;  %v7594_v21 = vld [vmem:[#allocation12 + $0xd68] sm:$0xff] }
 0x573   : > { %4269 = vmatpush1.msra.mxu0 %v7564_v2  ;;  %4340 = vmatpush1.msra.mxu1 %v7565_v32  ;;  %v6247_v35 = vpop.eup %6246  ;;  %v7595_v2 = vld [vmem:[#allocation12 + $0xd78] sm:$0xff] }
 0x574   : > { %4270 = vmatprep.subr.mxu0 %v7566_v30  ;;  %4341 = vmatprep.subr.mxu1 %v7567_v41  ;;  %v6249_v31 = vpop.eup %6248  ;;  %v3742_v47 = vmul.f32 %v6247_v35, %v6245_v23  ;;  %v7596_v30 = vld [vmem:[#allocation12 + $0xd60] sm:$0xff]  ;;  %v7597_v41 = vld [vmem:[#allocation12 + $0xd70] sm:$0xff]  ;;  %v7614_v23 = vld [vmem:[#allocation12 + $0xae8] sm:$0xff] }
 0x575   : > { %4271 = vmatpush1.msra.mxu0 %v7568_v10  ;;  %4342 = vmatpush1.msra.mxu1 %v7569_v59  ;;  %v6251_v11 = vpop.eup %6250  ;;  %v3740_v28 = vmul.f32 %v6249_v31, %v9438_v43  ;;  %v7598_v59 = vld [vmem:[#allocation12 + $0xce8] sm:$0xff]  ;;  %v7617_v35 = vld [vmem:[#allocation12 + $0xaf0] sm:$0xff]  ;;  %v7620_v31 = vld [vmem:[#allocation12 + $0xa60] sm:$0xff] }
 0x576   : > { %4272 = vmatprep.subr.mxu0 %v7570_v50  ;;  %4343 = vmatprep.subr.mxu1 %v7571_v12  ;;  %v3724_v32 = vadd.f32 1.0, %v6251_v11  ;;  %v7599_v50 = vld [vmem:[#allocation12 + $0xcf8] sm:$0xff]  ;;  %v7600_v12 = vld [vmem:[#allocation12 + $0xce0] sm:$0xff]  ;;  %v7602_v43 = vld [vmem:[#allocation12 + $0xc68] sm:$0xff] }
 0x577   : > { %4273 = vmatpush1.msra.mxu0 %v7572_v14  ;;  %4344 = vmatpush1.msra.mxu1 %v7573_v34  ;;  %v9547_v10 = vadd.f32 %v3742_v47, %v3740_v28  ;;  %v7601_v14 = vld [vmem:[#allocation12 + $0xcf0] sm:$0xff]  ;;  %v7603_v34 = vld [vmem:[#allocation12 + $0xc78] sm:$0xff]  ;;  %v7624_v47 = vld [vmem:[#allocation12 + $0x9e0] sm:$0xff] }
 0x578   : > { %4274 = vmatprep.subr.mxu0 %v7574_v42  ;;  %4345 = vmatprep.subr.mxu1 %v7575_v48  ;;  %6252 = vrcp.f32 %v3724_v32  ;;  %v7604_v42 = vld [vmem:[#allocation12 + $0xc60] sm:$0xff]  ;;  %v7605_v48 = vld [vmem:[#allocation12 + $0xc70] sm:$0xff]  ;;  %v7623_v11 = vld [vmem:[#allocation12 + $0x9f8] sm:$0xff] }
 0x579   : > { %4275 = vmatpush2.msra.mxu0 %v7576_v62  ;;  %4346 = vmatpush2.msra.mxu1 %v7577_v40  ;;  %6254 = vtanh.f32 %v9547_v10  ;;  %v7606_v62 = vld [vmem:[#allocation12 + $0xbe8] sm:$0xff]  ;;  %v7607_v40 = vld [vmem:[#allocation12 + $0xbf8] sm:$0xff]  ;;  %v7629_v28 = vld [vmem:[#allocation12 + $0x970] sm:$0xff] }
 0x57a   : > { %4276 = vmatprep.subr.mxu0 %v7578_v1  ;;  %4347 = vmatprep.subr.mxu1 %v7579_v6  ;;  %v7608_v1 = vld [vmem:[#allocation12 + $0xbe0] sm:$0xff]  ;;  %v7609_v6 = vld [vmem:[#allocation12 + $0xbf0] sm:$0xff]  ;;  %v7631_v32 = vld [vmem:[#allocation12 + $0x8f8] sm:$0xff] }
 0x57b   : > { %4277 = vmatpush2.msra.mxu0 %v7580_v27  ;;  %4348 = vmatpush2.msra.mxu1 %v7581_v63  ;;  %v7610_v27 = vld [vmem:[#allocation12 + $0xb68] sm:$0xff]  ;;  %v7611_v63 = vld [vmem:[#allocation12 + $0xb78] sm:$0xff] }
 0x57c   : > { %4278 = vmatprep.subr.mxu0 %v7582_v44  ;;  %4349 = vmatprep.subr.mxu1 %v7583_v52  ;;  %v7612_v44 = vld [vmem:[#allocation12 + $0xb60] sm:$0xff]  ;;  %v7613_v52 = vld [vmem:[#allocation12 + $0xb70] sm:$0xff] }
 0x57d   : > { %4279 = vmatpush2.msra.mxu0 %v7584_v20  ;;  %4350 = vmatpush2.msra.mxu1 %v7585_v19  ;;  %v7615_v20 = vld [vmem:[#allocation12 + $0xaf8] sm:$0xff]  ;;  %v7616_v19 = vld [vmem:[#allocation12 + $0xae0] sm:$0xff] }
 0x57e   : > { %4280 = vmatprep.subr.mxu0 %v7586_v54  ;;  %4351 = vmatprep.subr.mxu1 %v7587_v36  ;;  %v7618_v54 = vld [vmem:[#allocation12 + $0xa68] sm:$0xff]  ;;  %v7619_v36 = vld [vmem:[#allocation12 + $0xa78] sm:$0xff] }
 0x57f   : > { %4281 = vmatpush2.msra.mxu0 %v7588_v60  ;;  %4352 = vmatpush2.msra.mxu1 %v7589_v17  ;;  %v7621_v60 = vld [vmem:[#allocation12 + $0xa70] sm:$0xff]  ;;  %v7622_v17 = vld [vmem:[#allocation12 + $0x9e8] sm:$0xff] }
 0x580   : > { %4282 = vmatprep.subr.mxu0 %v7590_v37  ;;  %4353 = vmatprep.subr.mxu1 %v7591_v7  ;;  %v7625_v37 = vld [vmem:[#allocation12 + $0x9f0] sm:$0xff]  ;;  %v7626_v7 = vld [vmem:[#allocation12 + $0x968] sm:$0xff] }
 0x581   : > { %4283 = vmatpush2.msra.mxu0 %v7592_v38  ;;  %4354 = vmatpush2.msra.mxu1 %v7593_v55  ;;  %v7627_v38 = vld [vmem:[#allocation12 + $0x978] sm:$0xff]  ;;  %v7628_v55 = vld [vmem:[#allocation12 + $0x960] sm:$0xff] }
 0x582   : > { %4284 = vmatprep.subr.mxu0 %v7594_v21  ;;  %4355 = vmatprep.subr.mxu1 %v7595_v2  ;;  %v7630_v2 = vld [vmem:[#allocation12 + $0x8e8] sm:$0xff] }
 0x583   : > { %4285 = vmatpush2.msra.mxu0 %v7596_v30  ;;  %4356 = vmatpush2.msra.mxu1 %v7597_v41  ;;  %v7632_v41 = vld [vmem:[#allocation12 + $0x8e0] sm:$0xff] }
 0x584   : > { %4286 = vmatprep.subr.mxu0 %v7598_v59  ;;  %4357 = vmatprep.subr.mxu1 %v7599_v50  ;;  %v7633_v59 = vld [vmem:[#allocation12 + $0x8f0] sm:$0xff]  ;;  %v7634_v50 = vld [vmem:[#allocation12 + $0x868] sm:$0xff] }
 0x585   : > { %4287 = vmatpush2.msra.mxu0 %v7600_v12  ;;  %4358 = vmatpush2.msra.mxu1 %v7601_v14  ;;  %v6253_v21 = vpop.eup %6252  ;;  %v7635_v12 = vld [vmem:[#allocation12 + $0x878] sm:$0xff]  ;;  %v7636_v14 = vld [vmem:[#allocation12 + $0x860] sm:$0xff] }
 0x586   : > { %4288 = vmatprep.subr.mxu0 %v7602_v43  ;;  %4359 = vmatprep.subr.mxu1 %v7603_v34  ;;  %v6255_v30 = vpop.eup %6254  ;;  %v7637_v43 = vld [vmem:[#allocation12 + $0x870] sm:$0xff] }
 0x587   : > { %4289 = vmatpush2.msra.mxu0 %v7604_v42  ;;  %4360 = vmatpush2.msra.mxu1 %v7605_v48  ;;  %v9552_v34 = vmul.f32 %v6255_v30, %v6253_v21  ;;  %v7638_v42 = vld [vmem:[#allocation13 + $0x3c8] sm:$0xff]  ;;  %v7639_v48 = vld [vmem:[#allocation13 + $0x3d8] sm:$0xff]  ;;  %v7664_v21 = vld [vmem:[#allocation13 + $0x240] sm:$0xff] }
 0x588   : > { %4290 = vmatprep.subr.mxu0 %v7606_v62  ;;  %4361 = vmatprep.subr.mxu1 %v7607_v40  ;;  %v7640_v62 = vld [vmem:[#allocation13 + $0x3c0] sm:$0xff]  ;;  %v7641_v40 = vld [vmem:[#allocation13 + $0x3d0] sm:$0xff]  ;;  %v7667_v30 = vld [vmem:[#allocation13 + $0x218] sm:$0xff] }
 0x589   : > { %4291 = vmatpush2.msra.mxu0 %v7608_v1  ;;  %4362 = vmatpush2.msra.mxu1 %v7609_v6  ;;  %v7642_v1 = vld [vmem:[#allocation13 + $0x388] sm:$0xff]  ;;  %v7643_v6 = vld [vmem:[#allocation13 + $0x398] sm:$0xff] }
 0x58a   : > { %4292 = vmatprep.subr.mxu0 %v7610_v27  ;;  %4363 = vmatprep.subr.mxu1 %v7611_v63  ;;  %v7644_v27 = vld [vmem:[#allocation13 + $0x380] sm:$0xff]  ;;  %v7646_v63 = vld [vmem:[#allocation13 + $0x348] sm:$0xff] }
 0x58b   : > { %4293 = vmatpush2.msra.mxu0 %v7612_v44  ;;  %4364 = vmatpush2.msra.mxu1 %v7613_v52  ;;  %v7647_v44 = vld [vmem:[#allocation13 + $0x358] sm:$0xff]  ;;  %v7648_v52 = vld [vmem:[#allocation13 + $0x340] sm:$0xff] }
 0x58c   : > { %4294 = vmatprep.subr.mxu0 %v7614_v23  ;;  %4365 = vmatprep.subr.mxu1 %v7615_v20  ;;  %v7649_v23 = vld [vmem:[#allocation13 + $0x350] sm:$0xff]  ;;  %v7650_v20 = vld [vmem:[#allocation13 + $0x308] sm:$0xff] }
 0x58d   : > { %4295 = vmatpush2.msra.mxu0 %v7616_v19  ;;  %4366 = vmatpush2.msra.mxu1 %v7617_v35  ;;  %v7651_v19 = vld [vmem:[#allocation13 + $0x318] sm:$0xff]  ;;  %v7652_v35 = vld [vmem:[#allocation13 + $0x300] sm:$0xff] }
 0x58e   : > { %4296 = vmatprep.subr.mxu0 %v7618_v54  ;;  %4367 = vmatprep.subr.mxu1 %v7619_v36  ;;  %v7653_v54 = vld [vmem:[#allocation13 + $0x310] sm:$0xff]  ;;  %v7654_v36 = vld [vmem:[#allocation13 + $0x2c8] sm:$0xff] }
 0x58f   : > { %4297 = vmatpush2.msra.mxu0 %v7620_v31  ;;  %4368 = vmatpush2.msra.mxu1 %v7621_v60  ;;  %v7655_v31 = vld [vmem:[#allocation13 + $0x2d8] sm:$0xff]  ;;  %v7656_v60 = vld [vmem:[#allocation13 + $0x2c0] sm:$0xff] }
 0x590   : > { %4298 = vmatprep.subr.mxu0 %v7622_v17  ;;  %4369 = vmatprep.subr.mxu1 %v7623_v11  ;;  %v7657_v17 = vld [vmem:[#allocation13 + $0x2d0] sm:$0xff]  ;;  %v7658_v11 = vld [vmem:[#allocation13 + $0x288] sm:$0xff] }
 0x591   : > { %4299 = vmatpush2.msra.mxu0 %v7624_v47  ;;  %4370 = vmatpush2.msra.mxu1 %v7625_v37  ;;  %v7659_v47 = vld [vmem:[#allocation13 + $0x298] sm:$0xff]  ;;  %v7660_v37 = vld [vmem:[#allocation13 + $0x280] sm:$0xff] }
 0x592   : > { %4300 = vmatprep.subr.mxu0 %v7626_v7  ;;  %4371 = vmatprep.subr.mxu1 %v7627_v38  ;;  %v7661_v7 = vld [vmem:[#allocation13 + $0x290] sm:$0xff]  ;;  %v7662_v38 = vld [vmem:[#allocation13 + $0x248] sm:$0xff] }
 0x593   : > { %4301 = vmatpush2.msra.mxu0 %v7628_v55  ;;  %4372 = vmatpush2.msra.mxu1 %v7629_v28  ;;  %v7663_v55 = vld [vmem:[#allocation13 + $0x258] sm:$0xff]  ;;  %v3689_v28 = vadd.f32 %v9537_v13, %v9517_v5  ;;  %v7673_v5 = vld [vmem:[#allocation13 + $0x1d0] sm:$0xff]  ;;  %v7674_v13 = vld [vmem:[#allocation13 + $0x188] sm:$0xff] }
 0x594   : > { %4302 = vmatprep.subr.mxu0 %v7630_v2  ;;  %4373 = vmatprep.subr.mxu1 %v7631_v32  ;;  %v7665_v2 = vld [vmem:[#allocation13 + $0x250] sm:$0xff]  ;;  %v7666_v32 = vld [vmem:[#allocation13 + $0x208] sm:$0xff] }
 0x595   : > { %4303 = vmatpush2.msra.mxu0 %v7632_v41  ;;  %4374 = vmatpush2.msra.mxu1 %v7633_v59  ;;  %v7668_v41 = vld [vmem:[#allocation13 + $0x200] sm:$0xff]  ;;  %v7669_v59 = vld [vmem:[#allocation13 + $0x210] sm:$0xff] }
 0x596   : > { %4304 = vmatprep.subr.mxu0 %v7634_v50  ;;  %4375 = vmatprep.subr.mxu1 %v7635_v12  ;;  %v7670_v50 = vld [vmem:[#allocation13 + $0x1c8] sm:$0xff]  ;;  %v7671_v12 = vld [vmem:[#allocation13 + $0x1d8] sm:$0xff] }
 0x597   : > { %4305 = vmatpush2.msra.mxu0 %v7636_v14  ;;  %4376 = vmatpush2.msra.mxu1 %v7637_v43  ;;  %v3697_v14 = vadd.f32 %v3689_v28, %v9456_v49  ;;  %v7672_v43 = vld [vmem:[#allocation13 + $0x1c0] sm:$0xff]  ;;  %v7697_v28 = vld [vmem:[#allocation13 + $0x50] sm:$0xff] }
 0x598   : > { %4307 = vmatmul.mubr.f32.vlgmr.msra.gmra.mxu0 %v9497_v29  ;;  %4378 = vmatmul.mubr.f32.vlgmr.msra.gmra.mxu1 %v9497_v29  ;;  %v7645_v29 = vld [vmem:[#allocation13 + $0x390] sm:$0xff] }
 0x599   : > { %4384 = vmatprep.subr.mxu0 %v7638_v42  ;;  %4455 = vmatprep.subr.mxu1 %v7639_v48  ;;  %v7675_v42 = vld [vmem:[#allocation13 + $0x198] sm:$0xff]  ;;  %v7676_v48 = vld [vmem:[#allocation13 + $0x180] sm:$0xff] }
 0x59a   : > { %4385 = vmatpush1.msra.mxu0 %v7640_v62  ;;  %4448 = vmatprep.mubr.f32.mxu0 %v9552_v34  ;;  %v7677_v62 = vld [vmem:[#allocation13 + $0x190] sm:$0xff] }
 0x59b   : > { %4456 = vmatpush1.msra.mxu1 %v7641_v40  ;;  %4519 = vmatprep.mubr.f32.mxu1 %v9552_v34  ;;  %v7678_v40 = vld [vmem:[#allocation13 + $0x148] sm:$0xff] }
 0x59c   : > { %4386 = vmatprep.subr.mxu0 %v7642_v1  ;;  %4457 = vmatprep.subr.mxu1 %v7643_v6  ;;  %v7679_v1 = vld [vmem:[#allocation13 + $0x158] sm:$0xff]  ;;  %v5939_v6 = vmul.f32 -1.442695, %v3697_v14  ;;  %v7702_v14 = vld [vmem:[#allocation13 + $0x7c8] sm:$0xff] }
 0x59d   : > { %4387 = vmatpush1.msra.mxu0 %v7644_v27  ;;  %4458 = vmatpush1.msra.mxu1 %v7645_v29  ;;  %v7680_v27 = vld [vmem:[#allocation13 + $0x140] sm:$0xff]  ;;  %v7681_v29 = vld [vmem:[#allocation13 + $0x150] sm:$0xff] }
 0x59e   : > { %4388 = vmatprep.subr.mxu0 %v7646_v63  ;;  %4459 = vmatprep.subr.mxu1 %v7647_v44  ;;  %v7682_v63 = vld [vmem:[#allocation13 + $0x108] sm:$0xff]  ;;  %v7683_v44 = vld [vmem:[#allocation13 + $0x118] sm:$0xff]  ;;  %6256 = vpow2.f32 %v5939_v6 }
 0x59f   : > { %4389 = vmatpush1.msra.mxu0 %v7648_v52  ;;  %4460 = vmatpush1.msra.mxu1 %v7649_v23  ;;  %v7684_v52 = vld [vmem:[#allocation13 + $0x100] sm:$0xff]  ;;  %v7685_v23 = vld [vmem:[#allocation13 + $0x110] sm:$0xff]  ;;  %v7710_v6 = vld [vmem:[#allocation13 + $0x748] sm:$0xff] }
 0x5a0   : > { %4390 = vmatprep.subr.mxu0 %v7650_v20  ;;  %4461 = vmatprep.subr.mxu1 %v7651_v19  ;;  %v7686_v20 = vld [vmem:[#allocation13 + $0xc8] sm:$0xff]  ;;  %v7687_v19 = vld [vmem:[#allocation13 + $0xd8] sm:$0xff] }
 0x5a1   : > { %4391 = vmatpush1.msra.mxu0 %v7652_v35  ;;  %4462 = vmatpush1.msra.mxu1 %v7653_v54  ;;  %v3882_v35 = vpop.f32.mrf.mxu0  ;;  %v7688_v54 = vld [vmem:[#allocation13 + $0xc0] sm:$0xff] }
 0x5a2   : > { %4392 = vmatprep.subr.mxu0 %v7654_v36  ;;  %4463 = vmatprep.subr.mxu1 %v7655_v31  ;;  %v7689_v36 = vld [vmem:[#allocation13 + $0xd0] sm:$0xff]  ;;  %v7690_v31 = vld [vmem:[#allocation13 + $0x88] sm:$0xff] }
 0x5a3   : > { %4393 = vmatpush1.msra.mxu0 %v7656_v60  ;;  %4464 = vmatpush1.msra.mxu1 %v7657_v17  ;;  %v7691_v60 = vld [vmem:[#allocation13 + $0x98] sm:$0xff]  ;;  %v3953_v17 = vpop.f32.mrf.mxu1 }
 0x5a4   : > { %4394 = vmatprep.subr.mxu0 %v7658_v11  ;;  %4465 = vmatprep.subr.mxu1 %v7659_v47  ;;  %v7692_v11 = vld [vmem:[#allocation13 + $0x80] sm:$0xff]  ;;  %v7693_v47 = vld [vmem:[#allocation13 + $0x90] sm:$0xff] }
 0x5a5   : > { %4395 = vmatpush1.msra.mxu0 %v7660_v37  ;;  %4466 = vmatpush1.msra.mxu1 %v7661_v7  ;;  %v7694_v37 = vld [vmem:[#allocation13 + $0x48] sm:$0xff]  ;;  %v7695_v7 = vld [vmem:[#allocation13 + $0x58] sm:$0xff] }
 0x5a6   : > { %4396 = vmatprep.subr.mxu0 %v7662_v38  ;;  %4467 = vmatprep.subr.mxu1 %v7663_v55  ;;  %v3884_v38 = vpop.f32.mrf.mxu0  ;;  %v7696_v55 = vld [vmem:[#allocation13 + $0x40] sm:$0xff] }
 0x5a7   : > { %4397 = vmatpush1.msra.mxu0 %v7664_v21  ;;  %4468 = vmatpush1.msra.mxu1 %v7665_v2  ;;  %v4743_v21 = vadd.f32 %v3882_v35, %v9222_v57  ;;  %v7698_v2 = vld [vmem:[#allocation13 + $0x8] sm:$0xff]  ;;  %v7705_v57 = vld [vmem:[#allocation13 + $0x7d0] sm:$0xff] }
 0x5a8   : > { %4398 = vmatprep.subr.mxu0 %v7666_v32  ;;  %4469 = vmatprep.subr.mxu1 %v7667_v30  ;;  %v7699_v32 = vld [vmem:[#allocation13 + $0x18] sm:$0xff]  ;;  %v4745_v30 = vadd.f32 %v3953_v17, %v9224_v58  ;;  %v7718_v35 = vld [vmem:[#allocation13 + $0x6c8] sm:$0xff] }
 0x5a9   : > { %4399 = vmatpush1.msra.mxu0 %v7668_v41  ;;  %4470 = vmatpush1.msra.mxu1 %v7669_v59  ;;  %v3955_v41 = vpop.f32.mrf.mxu1  ;;  %v7700_v59 = vld [vmem:[#allocation13] sm:$0xff]  ;;  %v7707_v58 = vld [vmem:[#allocation13 + $0x798] sm:$0xff]  ;;  %v7722_v17 = vld [vmem:[#allocation13 + $0x688] sm:$0xff] }
 0x5aa   : > { %4400 = vmatprep.subr.mxu0 %v7670_v50  ;;  %4471 = vmatprep.subr.mxu1 %v7671_v12  ;;  %v7701_v50 = vld [vmem:[#allocation13 + $0x10] sm:$0xff]  ;;  %v4744_v12 = vadd.f32 %v3884_v38, %v9228_v3  ;;  %v7727_v38 = vld [vmem:[#allocation13 + $0x658] sm:$0xff] }
 0x5ab   : > { %4401 = vmatpush1.msra.mxu0 %v7672_v43  ;;  %4472 = vmatpush1.msra.mxu1 %v7673_v5  ;;  %v7703_v43 = vld [vmem:[#allocation13 + $0x7d8] sm:$0xff]  ;;  %v7704_v5 = vld [vmem:[#allocation13 + $0x7c0] sm:$0xff] }
 0x5ac   : > { %4402 = vmatprep.subr.mxu0 %v7674_v13  ;;  %4473 = vmatprep.subr.mxu1 %v7675_v42  ;;  %v5953_v13 = vmul.f32 -1.442695, %v4743_v21  ;;  %v4746_v42 = vadd.f32 %v3955_v41, %v9230_v4  ;;  %v5954_v3 = vmul.f32 -1.442695, %v4744_v12  ;;  %v7730_v21 = vld [vmem:[#allocation13 + $0x608] sm:$0xff]  ;;  %v7737_v12 = vld [vmem:[#allocation13 + $0x5d0] sm:$0xff] }
 0x5ad   : > { %4403 = vmatpush1.msra.mxu0 %v7676_v48  ;;  %4474 = vmatpush1.msra.mxu1 %v7677_v62  ;;  %v7706_v48 = vld [vmem:[#allocation13 + $0x788] sm:$0xff]  ;;  %v5955_v62 = vmul.f32 -1.442695, %v4745_v30  ;;  %v7733_v30 = vld [vmem:[#allocation13 + $0x610] sm:$0xff] }
 0x5ae   : > { %4404 = vmatprep.subr.mxu0 %v7678_v40  ;;  %4475 = vmatprep.subr.mxu1 %v7679_v1  ;;  %v7708_v40 = vld [vmem:[#allocation13 + $0x780] sm:$0xff]  ;;  %v7709_v1 = vld [vmem:[#allocation13 + $0x790] sm:$0xff]  ;;  %6258 = vpow2.f32 %v5953_v13  ;;  %v5956_v4 = vmul.f32 -1.442695, %v4746_v42  ;;  %v7734_v41 = vld [vmem:[#allocation13 + $0x5c8] sm:$0xff] }
 0x5af   : > { %4405 = vmatpush1.msra.mxu0 %v7680_v27  ;;  %4476 = vmatpush1.msra.mxu1 %v7681_v29  ;;  %v7711_v27 = vld [vmem:[#allocation13 + $0x758] sm:$0xff]  ;;  %v7712_v29 = vld [vmem:[#allocation13 + $0x740] sm:$0xff]  ;;  %6260 = vpow2.f32 %v5955_v62  ;;  %v7741_v13 = vld [vmem:[#allocation13 + $0x590] sm:$0xff] }
 0x5b0   : > { %4406 = vmatprep.subr.mxu0 %v7682_v63  ;;  %4477 = vmatprep.subr.mxu1 %v7683_v44  ;;  %v7713_v63 = vld [vmem:[#allocation13 + $0x750] sm:$0xff]  ;;  %v6257_v44 = vpop.eup %6256  ;;  %6262 = vpow2.f32 %v5954_v3 }
 0x5b1   : > { %4407 = vmatpush1.msra.mxu0 %v7684_v52  ;;  %4478 = vmatpush1.msra.mxu1 %v7685_v23  ;;  %v7714_v52 = vld [vmem:[#allocation13 + $0x708] sm:$0xff]  ;;  %v7715_v23 = vld [vmem:[#allocation13 + $0x718] sm:$0xff]  ;;  %6264 = vpow2.f32 %v5956_v4  ;;  %v7749_v4 = vld [vmem:[#allocation13 + $0x510] sm:$0xff] }
 0x5b2   : > { %4408 = vmatprep.subr.mxu0 %v7686_v20  ;;  %4479 = vmatprep.subr.mxu1 %v7687_v19  ;;  %v7716_v20 = vld [vmem:[#allocation13 + $0x700] sm:$0xff]  ;;  %v7717_v19 = vld [vmem:[#allocation13 + $0x710] sm:$0xff] }
 0x5b3   : > { %4409 = vmatpush1.msra.mxu0 %v7688_v54  ;;  %4480 = vmatpush1.msra.mxu1 %v7689_v36  ;;  %v7719_v54 = vld [vmem:[#allocation13 + $0x6d8] sm:$0xff]  ;;  %v3723_v36 = vadd.f32 1.0, %v6257_v44  ;;  %v7748_v44 = vld [vmem:[#allocation13 + $0x500] sm:$0xff] }
 0x5b4   : > { %4410 = vmatprep.subr.mxu0 %v7690_v31  ;;  %4481 = vmatprep.subr.mxu1 %v7691_v60  ;;  %v7720_v31 = vld [vmem:[#allocation13 + $0x6c0] sm:$0xff]  ;;  %v7721_v60 = vld [vmem:[#allocation13 + $0x6d0] sm:$0xff] }
 0x5b5   : > { %4411 = vmatpush1.msra.mxu0 %v7692_v11  ;;  %4482 = vmatpush1.msra.mxu1 %v7693_v47  ;;  %v7723_v11 = vld [vmem:[#allocation13 + $0x698] sm:$0xff]  ;;  %v7724_v47 = vld [vmem:[#allocation13 + $0x680] sm:$0xff]  ;;  %6266 = vrcp.f32 %v3723_v36  ;;  %v7753_v36 = vld [vmem:[#allocation13 + $0x4d0] sm:$0xff] }
 0x5b6   : > { %4412 = vmatprep.subr.mxu0 %v7694_v37  ;;  %4483 = vmatprep.subr.mxu1 %v7695_v7  ;;  %v7725_v37 = vld [vmem:[#allocation13 + $0x690] sm:$0xff]  ;;  %v7726_v7 = vld [vmem:[#allocation13 + $0x648] sm:$0xff]  ;;  %6268 = vtanh.f32 %v9540_v33 }
 0x5b7   : > { %4413 = vmatpush1.msra.mxu0 %v7696_v55  ;;  %4484 = vmatpush1.msra.mxu1 %v7697_v28  ;;  %v7728_v55 = vld [vmem:[#allocation13 + $0x640] sm:$0xff]  ;;  %v7729_v28 = vld [vmem:[#allocation13 + $0x650] sm:$0xff] }
 0x5b8   : > { %4414 = vmatprep.subr.mxu0 %v7698_v2  ;;  %4485 = vmatprep.subr.mxu1 %v7699_v32  ;;  %v7731_v2 = vld [vmem:[#allocation13 + $0x618] sm:$0xff]  ;;  %v7732_v32 = vld [vmem:[#allocation13 + $0x600] sm:$0xff] }
 0x5b9   : > { %4415 = vmatpush1.msra.mxu0 %v7700_v59  ;;  %4486 = vmatpush1.msra.mxu1 %v7701_v50  ;;  %v7735_v59 = vld [vmem:[#allocation13 + $0x5d8] sm:$0xff]  ;;  %v7736_v50 = vld [vmem:[#allocation13 + $0x5c0] sm:$0xff] }
 0x5ba   : > { %4416 = vmatprep.subr.mxu0 %v7702_v14  ;;  %4487 = vmatprep.subr.mxu1 %v7703_v43  ;;  %v7738_v14 = vld [vmem:[#allocation13 + $0x588] sm:$0xff]  ;;  %v7739_v43 = vld [vmem:[#allocation13 + $0x598] sm:$0xff] }
 0x5bb   : > { %4417 = vmatpush2.msra.mxu0 %v7704_v5  ;;  %4488 = vmatpush2.msra.mxu1 %v7705_v57  ;;  %v6259_v5 = vpop.eup %6258  ;;  %v7740_v57 = vld [vmem:[#allocation13 + $0x580] sm:$0xff] }
 0x5bc   : > { %4418 = vmatprep.subr.mxu0 %v7706_v48  ;;  %4489 = vmatprep.subr.mxu1 %v7707_v58  ;;  %v6261_v42 = vpop.eup %6260  ;;  %v7742_v48 = vld [vmem:[#allocation13 + $0x548] sm:$0xff]  ;;  %v7743_v58 = vld [vmem:[#allocation13 + $0x558] sm:$0xff]  ;;  %v4769_v3 = vadd.f32 1.0, %v6259_v5  ;;  %v7768_v5 = vld [vmem:[#allocation13 + $0x3e0] sm:$0xff] }
 0x5bd   : > { %4419 = vmatpush2.msra.mxu0 %v7708_v40  ;;  %4490 = vmatpush2.msra.mxu1 %v7709_v1  ;;  %v6263_v62 = vpop.eup %6262  ;;  %v7744_v40 = vld [vmem:[#allocation13 + $0x540] sm:$0xff]  ;;  %v7745_v1 = vld [vmem:[#allocation13 + $0x550] sm:$0xff] }
 0x5be   : > { %4420 = vmatprep.subr.mxu0 %v7710_v6  ;;  %4491 = vmatprep.subr.mxu1 %v7711_v27  ;;  %v7746_v6 = vld [vmem:[#allocation13 + $0x508] sm:$0xff]  ;;  %v7747_v27 = vld [vmem:[#allocation13 + $0x518] sm:$0xff]  ;;  %6270 = vrcp.f32 %v4769_v3  ;;  %v7776_v3 = vld [vmem:[#allocation13 + $0x360] sm:$0xff] }
 0x5bf   : > { %4421 = vmatpush2.msra.mxu0 %v7712_v29  ;;  %4492 = vmatpush2.msra.mxu1 %v7713_v63  ;;  %v6265_v29 = vpop.eup %6264  ;;  %v4771_v63 = vadd.f32 1.0, %v6261_v42  ;;  %v7771_v42 = vld [vmem:[#allocation13 + $0x3b8] sm:$0xff] }
 0x5c0   : > { %4422 = vmatprep.subr.mxu0 %v7714_v52  ;;  %4493 = vmatprep.subr.mxu1 %v7715_v23  ;;  %v4770_v52 = vadd.f32 1.0, %v6263_v62  ;;  %v7750_v23 = vld [vmem:[#allocation13 + $0x4c8] sm:$0xff] }
 0x5c1   : > { %4423 = vmatpush2.msra.mxu0 %v7716_v20  ;;  %4494 = vmatpush2.msra.mxu1 %v7717_v19  ;;  %v7751_v20 = vld [vmem:[#allocation13 + $0x4d8] sm:$0xff]  ;;  %v834_v19 = vadd.f32 %v9298_v56, %v9237_v8  ;;  %v925_v8 = vadd.f32 %v9304_v26, %v9252_v18  ;;  %6272 = vrcp.f32 %v4771_v63  ;;  %v7756_v56 = vld [vmem:[#allocation13 + $0x480] sm:$0xff]  ;;  %v7762_v26 = vld [vmem:[#allocation13 + $0x408] sm:$0xff] }
 0x5c2   : > { %4424 = vmatprep.subr.mxu0 %v7718_v35  ;;  %4495 = vmatprep.subr.mxu1 %v7719_v54  ;;  %v923_v35 = vadd.f32 %v9300_v61, %v9242_v9  ;;  %v7752_v54 = vld [vmem:[#allocation13 + $0x4c0] sm:$0xff]  ;;  %v7757_v9 = vld [vmem:[#allocation13 + $0x490] sm:$0xff]  ;;  %6274 = vrcp.f32 %v4770_v52  ;;  %v7774_v62 = vld [vmem:[#allocation13 + $0x368] sm:$0xff] }
 0x5c3   : > { %4425 = vmatpush2.msra.mxu0 %v7720_v31  ;;  %4496 = vmatpush2.msra.mxu1 %v7721_v60  ;;  %v6267_v31 = vpop.eup %6266  ;;  %v4772_v60 = vadd.f32 1.0, %v6265_v29  ;;  %v7778_v29 = vld [vmem:[#allocation13 + $0x328] sm:$0xff] }
 0x5c4   : > { %4426 = vmatprep.subr.mxu0 %v7722_v17  ;;  %4497 = vmatprep.subr.mxu1 %v7723_v11  ;;  %v7754_v17 = vld [vmem:[#allocation13 + $0x488] sm:$0xff]  ;;  %v7755_v11 = vld [vmem:[#allocation13 + $0x498] sm:$0xff] }
 0x5c5   : > { %4427 = vmatpush2.msra.mxu0 %v7724_v47  ;;  %4498 = vmatpush2.msra.mxu1 %v7725_v37 }
 0x5c6   : > { %4428 = vmatprep.subr.mxu0 %v7726_v7  ;;  %4499 = vmatprep.subr.mxu1 %v7727_v38  ;;  %v6269_v7 = vpop.eup %6268 }
 0x5c7   : > { %4429 = vmatpush2.msra.mxu0 %v7728_v55  ;;  %4500 = vmatpush2.msra.mxu1 %v7729_v28  ;;  %v7758_v55 = vld [vmem:[#allocation13 + $0x448] sm:$0xff]  ;;  %v7759_v28 = vld [vmem:[#allocation13 + $0x458] sm:$0xff] }
 0x5c8   : > { %4430 = vmatprep.subr.mxu0 %v7730_v21  ;;  %4501 = vmatprep.subr.mxu1 %v7731_v2  ;;  %v7760_v2 = vld [vmem:[#allocation13 + $0x440] sm:$0xff] }
 0x5c9   : > { %4431 = vmatpush2.msra.mxu0 %v7732_v32  ;;  %4502 = vmatpush2.msra.mxu1 %v7733_v30  ;;  %v7761_v32 = vld [vmem:[#allocation13 + $0x450] sm:$0xff] }
 0x5ca   : > { %4432 = vmatprep.subr.mxu0 %v7734_v41  ;;  %4503 = vmatprep.subr.mxu1 %v7735_v59  ;;  %v7763_v41 = vld [vmem:[#allocation13 + $0x418] sm:$0xff]  ;;  %v9570_v59 = vmul.f32 %v6269_v7, %v6267_v31  ;;  %v7785_v31 = vld [vmem:[#allocation13 + $0x2f0] sm:$0xff] }
 0x5cb   : > { %4433 = vmatpush2.msra.mxu0 %v7736_v50  ;;  %4504 = vmatpush2.msra.mxu1 %v7737_v12  ;;  %v7764_v50 = vld [vmem:[#allocation13 + $0x400] sm:$0xff]  ;;  %v7765_v12 = vld [vmem:[#allocation13 + $0x410] sm:$0xff] }
 0x5cc   : > { %4434 = vmatprep.subr.mxu0 %v7738_v14  ;;  %4505 = vmatprep.subr.mxu1 %v7739_v43  ;;  %v7766_v14 = vld [vmem:[#allocation13 + $0x3e8] sm:$0xff]  ;;  %v7767_v43 = vld [vmem:[#allocation13 + $0x3f8] sm:$0xff] }
 0x5cd   : > { %4435 = vmatpush2.msra.mxu0 %v7740_v57  ;;  %4506 = vmatpush2.msra.mxu1 %v7741_v13  ;;  %v7769_v57 = vld [vmem:[#allocation13 + $0x3f0] sm:$0xff]  ;;  %v7770_v13 = vld [vmem:[#allocation13 + $0x3a8] sm:$0xff] }
 0x5ce   : > { %4436 = vmatprep.subr.mxu0 %v7742_v48  ;;  %4507 = vmatprep.subr.mxu1 %v7743_v58  ;;  %v7772_v48 = vld [vmem:[#allocation13 + $0x3a0] sm:$0xff]  ;;  %v7773_v58 = vld [vmem:[#allocation13 + $0x3b0] sm:$0xff] }
 0x5cf   : > { %4437 = vmatpush2.msra.mxu0 %v7744_v40  ;;  %4508 = vmatpush2.msra.mxu1 %v7745_v1  ;;  %v7775_v40 = vld [vmem:[#allocation13 + $0x378] sm:$0xff]  ;;  %v6271_v1 = vpop.eup %6270 }
 0x5d0   : > { %4438 = vmatprep.subr.mxu0 %v7746_v6  ;;  %4509 = vmatprep.subr.mxu1 %v7747_v27  ;;  %v7777_v6 = vld [vmem:[#allocation13 + $0x370] sm:$0xff]  ;;  %v6273_v27 = vpop.eup %6272 }
 0x5d1   : > { %4439 = vmatpush2.msra.mxu0 %v7748_v44  ;;  %4510 = vmatpush2.msra.mxu1 %v7749_v4  ;;  %v6275_v63 = vpop.eup %6274  ;;  %v7780_v44 = vld [vmem:[#allocation13 + $0x320] sm:$0xff]  ;;  %v7781_v4 = vld [vmem:[#allocation13 + $0x330] sm:$0xff] }
 0x5d2   : > { %4440 = vmatprep.subr.mxu0 %v7750_v23  ;;  %4511 = vmatprep.subr.mxu1 %v7751_v20  ;;  %v7782_v23 = vld [vmem:[#allocation13 + $0x2e8] sm:$0xff]  ;;  %v7783_v20 = vld [vmem:[#allocation13 + $0x2f8] sm:$0xff] }
 0x5d3   : > { %4441 = vmatpush2.msra.mxu0 %v7752_v54  ;;  %4512 = vmatpush2.msra.mxu1 %v7753_v36  ;;  %v7784_v36 = vld [vmem:[#allocation13 + $0x2e0] sm:$0xff] }
 0x5d4   : > { %4442 = vmatprep.subr.mxu0 %v7754_v17  ;;  %4513 = vmatprep.subr.mxu1 %v7755_v11  ;;  %v4024_v47 = vpop.f32.mrf.mxu0  ;;  %v4095_v37 = vpop.f32.mrf.mxu1  ;;  %v7786_v17 = vld [vmem:[#allocation13 + $0x2a8] sm:$0xff]  ;;  %v7787_v11 = vld [vmem:[#allocation13 + $0x2b8] sm:$0xff] }
 0x5d5   : > { %4443 = vmatpush2.msra.mxu0 %v7756_v56  ;;  %4514 = vmatpush2.msra.mxu1 %v7757_v9  ;;  %v4747_v61 = vadd.f32 %v4024_v47, %v834_v19  ;;  %v4749_v38 = vadd.f32 %v4095_v37, %v923_v35  ;;  %v4789_v35 = vmul.f32 %v6273_v27, %v9481_v0  ;;  %v7789_v56 = vld [vmem:[#allocation13 + $0x2b0] sm:$0xff]  ;;  %v7814_v27 = vld [vmem:[#allocation13 + $0xe8] sm:$0xff] }
 0x5d6   : > { %4444 = vmatprep.subr.mxu0 %v7758_v55  ;;  %4515 = vmatprep.subr.mxu1 %v7759_v28  ;;  %v4097_v21 = vpop.f32.mrf.mxu1  ;;  %v7792_v55 = vld [vmem:[#allocation13 + $0x260] sm:$0xff]  ;;  %v7793_v28 = vld [vmem:[#allocation13 + $0x270] sm:$0xff] }
 0x5d7   : > { %4445 = vmatpush2.msra.mxu0 %v7760_v2  ;;  %4516 = vmatpush2.msra.mxu1 %v7761_v32  ;;  %v5957_v30 = vmul.f32 -1.442695, %v4747_v61  ;;  %6276 = vtanh.f32 %v4749_v38  ;;  %v4750_v18 = vadd.f32 %v4097_v21, %v925_v8  ;;  %v7788_v8 = vld [vmem:[#allocation13 + $0x2a0] sm:$0xff]  ;;  %v7790_v61 = vld [vmem:[#allocation13 + $0x268] sm:$0xff]  ;;  %v7791_v38 = vld [vmem:[#allocation13 + $0x278] sm:$0xff] }
 0x5d8   : > { %6278 = vrcp.f32 %v4772_v60  ;;  %4446 = vmatprep.subr.mxu0 %v7762_v26  ;;  %4517 = vmatprep.subr.mxu1 %v7763_v41  ;;  %v7794_v2 = vld [vmem:[#allocation13 + $0x228] sm:$0xff]  ;;  %v7795_v32 = vld [vmem:[#allocation13 + $0x238] sm:$0xff] }
 0x5d9   : > { %4447 = vmatpush2.msra.mxu0 %v7764_v50  ;;  %4518 = vmatpush2.msra.mxu1 %v7765_v12  ;;  %6280 = vpow2.f32 %v5957_v30  ;;  %v7797_v30 = vld [vmem:[#allocation13 + $0x230] sm:$0xff]  ;;  %v7798_v26 = vld [vmem:[#allocation13 + $0x1e8] sm:$0xff]  ;;  %v7799_v41 = vld [vmem:[#allocation13 + $0x1f8] sm:$0xff]  ;;  %v836_v50 = vadd.f32 %v9302_v25, %v9247_v16 }
 0x5da   : > { %4449 = vmatmul.mubr.f32.vlgmr.msra.gmra.mxu0 %v9570_v59  ;;  %4520 = vmatmul.mubr.f32.vlgmr.msra.gmra.mxu1 %v9570_v59  ;;  %6282 = vtanh.f32 %v4750_v18  ;;  %v4026_v18 = vpop.f32.mrf.mxu0  ;;  %v7800_v12 = vld [vmem:[#allocation13 + $0x1e0] sm:$0xff]  ;;  %v7809_v16 = vld [vmem:[#allocation13 + $0x170] sm:$0xff]  ;;  %v7810_v25 = vld [vmem:[#allocation13 + $0x128] sm:$0xff] }
 0x5db   : > { %4526 = vmatprep.subr.mxu0 %v7766_v14  ;;  %4597 = vmatprep.subr.mxu1 %v7767_v43  ;;  %v7801_v14 = vld [vmem:[#allocation13 + $0x1f0] sm:$0xff]  ;;  %v7802_v43 = vld [vmem:[#allocation13 + $0x1a8] sm:$0xff] }
 0x5dc   : > { %4527 = vmatpush1.msra.mxu0 %v7768_v5  ;;  %4590 = vmatprep.mubr.f32.mxu0 %v9552_v34  ;;  %v7803_v5 = vld [vmem:[#allocation13 + $0x1b8] sm:$0xff] }
 0x5dd   : > { %4598 = vmatpush1.msra.mxu1 %v7769_v57  ;;  %4661 = vmatprep.mubr.f32.mxu1 %v9552_v34  ;;  %v7779_v34 = vld [vmem:[#allocation13 + $0x338] sm:$0xff]  ;;  %v4748_v57 = vadd.f32 %v4026_v18, %v836_v50  ;;  %v7842_v18 = vld [vmem:[#allocation13 + $0x728] sm:$0xff]  ;;  %v7845_v50 = vld [vmem:[#allocation13 + $0x730] sm:$0xff] }
 0x5de   : > { %4528 = vmatprep.subr.mxu0 %v7770_v13  ;;  %4599 = vmatprep.subr.mxu1 %v7771_v42  ;;  %v7804_v13 = vld [vmem:[#allocation13 + $0x1a0] sm:$0xff]  ;;  %v7805_v42 = vld [vmem:[#allocation13 + $0x1b0] sm:$0xff] }
 0x5df   : > { %4529 = vmatpush1.msra.mxu0 %v7772_v48  ;;  %4600 = vmatpush1.msra.mxu1 %v7773_v58  ;;  %v7806_v48 = vld [vmem:[#allocation13 + $0x168] sm:$0xff]  ;;  %v7807_v58 = vld [vmem:[#allocation13 + $0x178] sm:$0xff] }
 0x5e0   : > { %4530 = vmatprep.subr.mxu0 %v7774_v62  ;;  %4601 = vmatprep.subr.mxu1 %v7775_v40  ;;  %v7808_v62 = vld [vmem:[#allocation13 + $0x160] sm:$0xff]  ;;  %v7811_v40 = vld [vmem:[#allocation13 + $0x138] sm:$0xff] }
 0x5e1   : > { %4531 = vmatpush1.msra.mxu0 %v7776_v3  ;;  %4602 = vmatpush1.msra.mxu1 %v7777_v6  ;;  %v7812_v3 = vld [vmem:[#allocation13 + $0x120] sm:$0xff]  ;;  %v7813_v6 = vld [vmem:[#allocation13 + $0x130] sm:$0xff] }
 0x5e2   : > { %4532 = vmatprep.subr.mxu0 %v7778_v29  ;;  %4603 = vmatprep.subr.mxu1 %v7779_v34  ;;  %v7815_v29 = vld [vmem:[#allocation13 + $0xf8] sm:$0xff]  ;;  %v7816_v34 = vld [vmem:[#allocation13 + $0xe0] sm:$0xff] }
 0x5e3   : > { %4533 = vmatpush1.msra.mxu0 %v7780_v44  ;;  %4604 = vmatpush1.msra.mxu1 %v7781_v4  ;;  %v7818_v4 = vld [vmem:[#allocation13 + $0xa8] sm:$0xff] }
 0x5e4   : > { %v6277_v52 = vpop.eup %6276  ;;  %4534 = vmatprep.subr.mxu0 %v7782_v23  ;;  %4605 = vmatprep.subr.mxu1 %v7783_v20  ;;  %v7820_v20 = vld [vmem:[#allocation13 + $0xa0] sm:$0xff] }
 0x5e5   : > { %v6279_v19 = vpop.eup %6278  ;;  %v4791_v54 = vmul.f32 %v6277_v52, %v6271_v1  ;;  %4535 = vmatpush1.msra.mxu0 %v7784_v36  ;;  %4606 = vmatpush1.msra.mxu1 %v7785_v31  ;;  %v5958_v1 = vmul.f32 -1.442695, %v4748_v57  ;;  %v7819_v52 = vld [vmem:[#allocation13 + $0xb8] sm:$0xff]  ;;  %v7824_v31 = vld [vmem:[#allocation13 + $0x60] sm:$0xff]  ;;  %v7849_v57 = vld [vmem:[#allocation13 + $0x6f0] sm:$0xff] }
 0x5e6   : > { %v6281_v60 = vpop.eup %6280  ;;  %4536 = vmatprep.subr.mxu0 %v7786_v17  ;;  %4607 = vmatprep.subr.mxu1 %v7787_v11  ;;  %v4790_v0 = vmul.f32 %v6279_v19, %v9484_v53  ;;  %v7796_v53 = vld [vmem:[#allocation13 + $0x220] sm:$0xff]  ;;  %v7821_v19 = vld [vmem:[#allocation13 + $0xb0] sm:$0xff]  ;;  %v7826_v17 = vld [vmem:[#allocation13 + $0x28] sm:$0xff] }
 0x5e7   : > { %v6283_v47 = vpop.eup %6282  ;;  %v4773_v37 = vadd.f32 1.0, %v6281_v60  ;;  %v9577_v7 = vadd.f32 %v4791_v54, %v4789_v35  ;;  %4537 = vmatpush1.msra.mxu0 %v7788_v8  ;;  %4608 = vmatpush1.msra.mxu1 %v7789_v56  ;;  %v7822_v35 = vld [vmem:[#allocation13 + $0x68] sm:$0xff]  ;;  %v7823_v54 = vld [vmem:[#allocation13 + $0x78] sm:$0xff]  ;;  %v7825_v60 = vld [vmem:[#allocation13 + $0x70] sm:$0xff] }
 0x5e8   : > { %v4792_v9 = vmul.f32 %v6283_v47, %v6275_v63  ;;  %4538 = vmatprep.subr.mxu0 %v7790_v61  ;;  %4609 = vmatprep.subr.mxu1 %v7791_v38  ;;  %v7817_v63 = vld [vmem:[#allocation13 + $0xf0] sm:$0xff]  ;;  %v7827_v11 = vld [vmem:[#allocation13 + $0x38] sm:$0xff]  ;;  %v7828_v47 = vld [vmem:[#allocation13 + $0x20] sm:$0xff] }
 0x5e9   : > { %6284 = vrcp.f32 %v4773_v37  ;;  %5723 = vst [vmem:[#allocation4] sm:$0xff] %v9577_v7  ;;  %4539 = vmatpush1.msra.mxu0 %v7792_v55  ;;  %4610 = vmatpush1.msra.mxu1 %v7793_v28  ;;  %v7829_v37 = vld [vmem:[#allocation13 + $0x30] sm:$0xff]  ;;  %v7830_v8 = vld [vmem:[#allocation13 + $0x7e8] sm:$0xff]  ;;  %v7831_v56 = vld [vmem:[#allocation13 + $0x7f8] sm:$0xff] }
 0x5ea   : > { %6286 = vtanh.f32 %v9577_v7  ;;  %v9582_v21 = vadd.f32 %v4792_v9, %v4790_v0  ;;  %4540 = vmatprep.subr.mxu0 %v7794_v2  ;;  %4611 = vmatprep.subr.mxu1 %v7795_v32  ;;  %v7832_v0 = vld [vmem:[#allocation13 + $0x7e0] sm:$0xff]  ;;  %v7833_v9 = vld [vmem:[#allocation13 + $0x7f0] sm:$0xff]  ;;  %v7834_v61 = vld [vmem:[#allocation13 + $0x7a8] sm:$0xff] }
 0x5eb   : > { %4541 = vmatpush1.msra.mxu0 %v7796_v53  ;;  %4612 = vmatpush1.msra.mxu1 %v7797_v30  ;;  %6288 = vpow2.f32 %v5958_v1  ;;  %v7835_v38 = vld [vmem:[#allocation13 + $0x7b8] sm:$0xff]  ;;  %v7836_v55 = vld [vmem:[#allocation13 + $0x7a0] sm:$0xff]  ;;  %v7837_v28 = vld [vmem:[#allocation13 + $0x7b0] sm:$0xff] }
 0x5ec   : > { %5724 = vst [vmem:[#allocation4 + $0x8] sm:$0xff] %v9582_v21  ;;  %4542 = vmatprep.subr.mxu0 %v7798_v26  ;;  %4613 = vmatprep.subr.mxu1 %v7799_v41  ;;  %v7838_v2 = vld [vmem:[#allocation13 + $0x768] sm:$0xff]  ;;  %v7839_v32 = vld [vmem:[#allocation13 + $0x778] sm:$0xff]  ;;  %v7840_v53 = vld [vmem:[#allocation13 + $0x760] sm:$0xff] }
 0x5ed   : > { %4543 = vmatpush1.msra.mxu0 %v7800_v12  ;;  %4614 = vmatpush1.msra.mxu1 %v7801_v14  ;;  %v7841_v30 = vld [vmem:[#allocation13 + $0x770] sm:$0xff]  ;;  %v7843_v26 = vld [vmem:[#allocation13 + $0x738] sm:$0xff]  ;;  %v7844_v41 = vld [vmem:[#allocation13 + $0x720] sm:$0xff] }
 0x5ee   : > { %4544 = vmatprep.subr.mxu0 %v7802_v43  ;;  %4615 = vmatprep.subr.mxu1 %v7803_v5  ;;  %v7846_v14 = vld [vmem:[#allocation13 + $0x6e8] sm:$0xff]  ;;  %v7847_v43 = vld [vmem:[#allocation13 + $0x6f8] sm:$0xff]  ;;  %v7848_v5 = vld [vmem:[#allocation13 + $0x6e0] sm:$0xff] }
 0x5ef   : > { %4545 = vmatpush1.msra.mxu0 %v7804_v13  ;;  %4616 = vmatpush1.msra.mxu1 %v7805_v42  ;;  %v7850_v13 = vld [vmem:[#allocation13 + $0x6a8] sm:$0xff]  ;;  %v7851_v42 = vld [vmem:[#allocation13 + $0x6b8] sm:$0xff]  ;;  %v7857_v1 = vld [vmem:[#allocation13 + $0x670] sm:$0xff] }
 0x5f0   : > { %4546 = vmatprep.subr.mxu0 %v7806_v48  ;;  %4617 = vmatprep.subr.mxu1 %v7807_v58  ;;  %v7852_v58 = vld [vmem:[#allocation13 + $0x6a0] sm:$0xff] }
 0x5f1   : > { %4547 = vmatpush1.msra.mxu0 %v7808_v62  ;;  %4618 = vmatpush1.msra.mxu1 %v7809_v16  ;;  %v7853_v62 = vld [vmem:[#allocation13 + $0x6b0] sm:$0xff]  ;;  %v7854_v16 = vld [vmem:[#allocation13 + $0x668] sm:$0xff] }
 0x5f2   : > { %4548 = vmatprep.subr.mxu0 %v7810_v25  ;;  %4619 = vmatprep.subr.mxu1 %v7811_v40  ;;  %v7855_v25 = vld [vmem:[#allocation13 + $0x678] sm:$0xff]  ;;  %v7856_v40 = vld [vmem:[#allocation13 + $0x660] sm:$0xff] }
 0x5f3   : > { %4549 = vmatpush1.msra.mxu0 %v7812_v3  ;;  %4620 = vmatpush1.msra.mxu1 %v7813_v6  ;;  %v7858_v3 = vld [vmem:[#allocation13 + $0x628] sm:$0xff]  ;;  %v7859_v6 = vld [vmem:[#allocation13 + $0x638] sm:$0xff] }
 0x5f4   : > { %4550 = vmatprep.subr.mxu0 %v7814_v27  ;;  %4621 = vmatprep.subr.mxu1 %v7815_v29  ;;  %v7860_v27 = vld [vmem:[#allocation13 + $0x620] sm:$0xff]  ;;  %v7861_v29 = vld [vmem:[#allocation13 + $0x630] sm:$0xff] }
 0x5f5   : > { %4551 = vmatpush1.msra.mxu0 %v7816_v34  ;;  %4622 = vmatpush1.msra.mxu1 %v7817_v63  ;;  %v7862_v34 = vld [vmem:[#allocation13 + $0x5e8] sm:$0xff]  ;;  %v7863_v63 = vld [vmem:[#allocation13 + $0x5f8] sm:$0xff] }
 0x5f6   : > { %v6285_v44 = vpop.eup %6284  ;;  %4552 = vmatprep.subr.mxu0 %v7818_v4  ;;  %4623 = vmatprep.subr.mxu1 %v7819_v52  ;;  %v7865_v4 = vld [vmem:[#allocation13 + $0x5f0] sm:$0xff]  ;;  %v7866_v52 = vld [vmem:[#allocation13 + $0x5a8] sm:$0xff] }
 0x5f7   : > { %v6287_v23 = vpop.eup %6286  ;;  %4553 = vmatpush1.msra.mxu0 %v7820_v20  ;;  %4624 = vmatpush1.msra.mxu1 %v7821_v19  ;;  %v7868_v20 = vld [vmem:[#allocation13 + $0x5a0] sm:$0xff]  ;;  %v7869_v19 = vld [vmem:[#allocation13 + $0x5b0] sm:$0xff] }
 0x5f8   : > { %4554 = vmatprep.subr.mxu0 %v7822_v35  ;;  %4625 = vmatprep.subr.mxu1 %v7823_v54  ;;  %v9587_v36 = vmul.f32 %v6287_v23, %v6285_v44  ;;  %v6289_v12 = vpop.eup %6288  ;;  %v7864_v44 = vld [vmem:[#allocation13 + $0x5e0] sm:$0xff]  ;;  %v7867_v23 = vld [vmem:[#allocation13 + $0x5b8] sm:$0xff]  ;;  %v7870_v35 = vld [vmem:[#allocation13 + $0x568] sm:$0xff] }
 0x5f9   : > { %4555 = vmatpush1.msra.mxu0 %v7824_v31  ;;  %4626 = vmatpush1.msra.mxu1 %v7825_v60  ;;  %v4774_v48 = vadd.f32 1.0, %v6289_v12  ;;  %v7871_v54 = vld [vmem:[#allocation13 + $0x578] sm:$0xff]  ;;  %v7872_v31 = vld [vmem:[#allocation13 + $0x560] sm:$0xff]  ;;  %v7873_v60 = vld [vmem:[#allocation13 + $0x570] sm:$0xff] }
 0x5fa   : > { %4556 = vmatprep.subr.mxu0 %v7826_v17  ;;  %4627 = vmatprep.subr.mxu1 %v7827_v11  ;;  %v7874_v17 = vld [vmem:[#allocation13 + $0x528] sm:$0xff]  ;;  %v7875_v11 = vld [vmem:[#allocation13 + $0x538] sm:$0xff]  ;;  %v7892_v12 = vld [vmem:[#allocation13 + $0x420] sm:$0xff] }
 0x5fb   : > { %4557 = vmatpush1.msra.mxu0 %v7828_v47  ;;  %4628 = vmatpush1.msra.mxu1 %v7829_v37  ;;  %6290 = vrcp.f32 %v4774_v48  ;;  %v7876_v47 = vld [vmem:[#allocation13 + $0x520] sm:$0xff]  ;;  %v7877_v37 = vld [vmem:[#allocation13 + $0x530] sm:$0xff]  ;;  %v7898_v48 = vld [vmem:[#allocation12 + $0x708] sm:$0xff] }
 0x5fc   : > { %4558 = vmatprep.subr.mxu0 %v7830_v8  ;;  %4629 = vmatprep.subr.mxu1 %v7831_v56  ;;  %6292 = vtanh.f32 %v9582_v21  ;;  %v7878_v8 = vld [vmem:[#allocation13 + $0x4e8] sm:$0xff]  ;;  %v7879_v56 = vld [vmem:[#allocation13 + $0x4f8] sm:$0xff] }
 0x5fd   : > { %4559 = vmatpush2.msra.mxu0 %v7832_v0  ;;  %4630 = vmatpush2.msra.mxu1 %v7833_v9  ;;  %v7880_v0 = vld [vmem:[#allocation13 + $0x4e0] sm:$0xff]  ;;  %v7881_v9 = vld [vmem:[#allocation13 + $0x4f0] sm:$0xff] }
 0x5fe   : > { %4560 = vmatprep.subr.mxu0 %v7834_v61  ;;  %4631 = vmatprep.subr.mxu1 %v7835_v38  ;;  %v7882_v61 = vld [vmem:[#allocation13 + $0x4a8] sm:$0xff]  ;;  %v7883_v38 = vld [vmem:[#allocation13 + $0x4b8] sm:$0xff] }
 0x5ff   : > { %4561 = vmatpush2.msra.mxu0 %v7836_v55  ;;  %4632 = vmatpush2.msra.mxu1 %v7837_v28  ;;  %v7884_v55 = vld [vmem:[#allocation13 + $0x4a0] sm:$0xff]  ;;  %v7885_v28 = vld [vmem:[#allocation13 + $0x4b0] sm:$0xff] }
 0x600   : > { %4562 = vmatprep.subr.mxu0 %v7838_v2  ;;  %4633 = vmatprep.subr.mxu1 %v7839_v32  ;;  %v7886_v32 = vld [vmem:[#allocation13 + $0x468] sm:$0xff] }
 0x601   : > { %4563 = vmatpush2.msra.mxu0 %v7840_v53  ;;  %4634 = vmatpush2.msra.mxu1 %v7841_v30  ;;  %v7887_v53 = vld [vmem:[#allocation13 + $0x478] sm:$0xff] }
 0x602   : > { %4564 = vmatprep.subr.mxu0 %v7842_v18  ;;  %4635 = vmatprep.subr.mxu1 %v7843_v26  ;;  %v7888_v18 = vld [vmem:[#allocation13 + $0x460] sm:$0xff]  ;;  %v7889_v26 = vld [vmem:[#allocation13 + $0x470] sm:$0xff] }
 0x603   : > { %4565 = vmatpush2.msra.mxu0 %v7844_v41  ;;  %4636 = vmatpush2.msra.mxu1 %v7845_v50  ;;  %v7890_v41 = vld [vmem:[#allocation13 + $0x428] sm:$0xff]  ;;  %v7891_v50 = vld [vmem:[#allocation13 + $0x438] sm:$0xff] }
 0x604   : > { %4566 = vmatprep.subr.mxu0 %v7846_v14  ;;  %4637 = vmatprep.subr.mxu1 %v7847_v43  ;;  %v7893_v14 = vld [vmem:[#allocation13 + $0x430] sm:$0xff] }
 0x605   : > { %4567 = vmatpush2.msra.mxu0 %v7848_v5  ;;  %4638 = vmatpush2.msra.mxu1 %v7849_v57  ;;  %v7894_v5 = vld [vmem:[#allocation12 + $0x788] sm:$0xff]  ;;  %v7895_v57 = vld [vmem:[#allocation12 + $0x798] sm:$0xff] }
 0x606   : > { %4568 = vmatprep.subr.mxu0 %v7850_v13  ;;  %4639 = vmatprep.subr.mxu1 %v7851_v42  ;;  %v7896_v13 = vld [vmem:[#allocation12 + $0x780] sm:$0xff]  ;;  %v7897_v42 = vld [vmem:[#allocation12 + $0x790] sm:$0xff] }
 0x607   : > { %4569 = vmatpush2.msra.mxu0 %v7852_v58  ;;  %4640 = vmatpush2.msra.mxu1 %v7853_v62  ;;  %v7899_v58 = vld [vmem:[#allocation12 + $0x718] sm:$0xff]  ;;  %v7900_v62 = vld [vmem:[#allocation12 + $0x700] sm:$0xff] }
 0x608   : > { %4570 = vmatprep.subr.mxu0 %v7854_v16  ;;  %4641 = vmatprep.subr.mxu1 %v7855_v25  ;;  %v6291_v2 = vpop.eup %6290  ;;  %v7902_v16 = vld [vmem:[#allocation12 + $0x688] sm:$0xff]  ;;  %v7903_v25 = vld [vmem:[#allocation12 + $0x698] sm:$0xff] }
 0x609   : > { %4571 = vmatpush2.msra.mxu0 %v7856_v40  ;;  %4642 = vmatpush2.msra.mxu1 %v7857_v1  ;;  %v6293_v30 = vpop.eup %6292  ;;  %v7904_v40 = vld [vmem:[#allocation12 + $0x680] sm:$0xff]  ;;  %v7905_v1 = vld [vmem:[#allocation12 + $0x690] sm:$0xff] }
 0x60a   : > { %4572 = vmatprep.subr.mxu0 %v7858_v3  ;;  %4643 = vmatprep.subr.mxu1 %v7859_v6  ;;  %v9592_v43 = vmul.f32 %v6293_v30, %v6291_v2  ;;  %v7906_v3 = vld [vmem:[#allocation12 + $0x608] sm:$0xff]  ;;  %v7907_v6 = vld [vmem:[#allocation12 + $0x618] sm:$0xff]  ;;  %v7937_v30 = vld [vmem:[#allocation12 + $0x290] sm:$0xff] }
 0x60b   : > { %4573 = vmatpush2.msra.mxu0 %v7860_v27  ;;  %4644 = vmatpush2.msra.mxu1 %v7861_v29  ;;  %v7908_v27 = vld [vmem:[#allocation12 + $0x600] sm:$0xff]  ;;  %v7909_v29 = vld [vmem:[#allocation12 + $0x610] sm:$0xff]  ;;  %v7934_v2 = vld [vmem:[#allocation12 + $0x288] sm:$0xff] }
 0x60c   : > { %4574 = vmatprep.subr.mxu0 %v7862_v34  ;;  %4645 = vmatprep.subr.mxu1 %v7863_v63  ;;  %v7910_v34 = vld [vmem:[#allocation12 + $0x588] sm:$0xff]  ;;  %v7911_v63 = vld [vmem:[#allocation12 + $0x598] sm:$0xff] }
 0x60d   : > { %4575 = vmatpush2.msra.mxu0 %v7864_v44  ;;  %4646 = vmatpush2.msra.mxu1 %v7865_v4  ;;  %v7912_v44 = vld [vmem:[#allocation12 + $0x580] sm:$0xff]  ;;  %v7913_v4 = vld [vmem:[#allocation12 + $0x590] sm:$0xff] }
 0x60e   : > { %4576 = vmatprep.subr.mxu0 %v7866_v52  ;;  %4647 = vmatprep.subr.mxu1 %v7867_v23  ;;  %v7914_v52 = vld [vmem:[#allocation12 + $0x508] sm:$0xff]  ;;  %v7915_v23 = vld [vmem:[#allocation12 + $0x518] sm:$0xff] }
 0x60f   : > { %4577 = vmatpush2.msra.mxu0 %v7868_v20  ;;  %4648 = vmatpush2.msra.mxu1 %v7869_v19  ;;  %v7916_v20 = vld [vmem:[#allocation12 + $0x500] sm:$0xff]  ;;  %v7917_v19 = vld [vmem:[#allocation12 + $0x510] sm:$0xff] }
 0x610   : > { %4578 = vmatprep.subr.mxu0 %v7870_v35  ;;  %4649 = vmatprep.subr.mxu1 %v7871_v54  ;;  %v7918_v35 = vld [vmem:[#allocation12 + $0x488] sm:$0xff]  ;;  %v7919_v54 = vld [vmem:[#allocation12 + $0x498] sm:$0xff] }
 0x611   : > { %4579 = vmatpush2.msra.mxu0 %v7872_v31  ;;  %4650 = vmatpush2.msra.mxu1 %v7873_v60  ;;  %v7920_v31 = vld [vmem:[#allocation12 + $0x480] sm:$0xff]  ;;  %v7921_v60 = vld [vmem:[#allocation12 + $0x490] sm:$0xff] }
 0x612   : > { %4580 = vmatprep.subr.mxu0 %v7874_v17  ;;  %4651 = vmatprep.subr.mxu1 %v7875_v11  ;;  %v7922_v17 = vld [vmem:[#allocation12 + $0x408] sm:$0xff]  ;;  %v7923_v11 = vld [vmem:[#allocation12 + $0x418] sm:$0xff] }
 0x613   : > { %4581 = vmatpush2.msra.mxu0 %v7876_v47  ;;  %4652 = vmatpush2.msra.mxu1 %v7877_v37  ;;  %v7924_v47 = vld [vmem:[#allocation12 + $0x400] sm:$0xff]  ;;  %v7925_v37 = vld [vmem:[#allocation12 + $0x410] sm:$0xff] }
 0x614   : > { %4582 = vmatprep.subr.mxu0 %v7878_v8  ;;  %4653 = vmatprep.subr.mxu1 %v7879_v56  ;;  %v7926_v8 = vld [vmem:[#allocation12 + $0x388] sm:$0xff]  ;;  %v7927_v56 = vld [vmem:[#allocation12 + $0x398] sm:$0xff] }
 0x615   : > { %4583 = vmatpush2.msra.mxu0 %v7880_v0  ;;  %4654 = vmatpush2.msra.mxu1 %v7881_v9  ;;  %v7928_v0 = vld [vmem:[#allocation12 + $0x380] sm:$0xff]  ;;  %v7929_v9 = vld [vmem:[#allocation12 + $0x390] sm:$0xff] }
 0x616   : > { %4584 = vmatprep.subr.mxu0 %v7882_v61  ;;  %4655 = vmatprep.subr.mxu1 %v7883_v38  ;;  %v7930_v61 = vld [vmem:[#allocation12 + $0x308] sm:$0xff]  ;;  %v7931_v38 = vld [vmem:[#allocation12 + $0x318] sm:$0xff] }
 0x617   : > { %4585 = vmatpush2.msra.mxu0 %v7884_v55  ;;  %4656 = vmatpush2.msra.mxu1 %v7885_v28  ;;  %v7932_v55 = vld [vmem:[#allocation12 + $0x300] sm:$0xff]  ;;  %v7933_v28 = vld [vmem:[#allocation12 + $0x310] sm:$0xff] }
 0x618   : > { %4586 = vmatprep.subr.mxu0 %v7886_v32  ;;  %4657 = vmatprep.subr.mxu1 %v7887_v53  ;;  %v7935_v32 = vld [vmem:[#allocation12 + $0x298] sm:$0xff]  ;;  %v7936_v53 = vld [vmem:[#allocation12 + $0x280] sm:$0xff] }
 0x619   : > { %4587 = vmatpush2.msra.mxu0 %v7888_v18  ;;  %4658 = vmatpush2.msra.mxu1 %v7889_v26  ;;  %v7938_v18 = vld [vmem:[#allocation12 + $0x208] sm:$0xff]  ;;  %v7939_v26 = vld [vmem:[#allocation12 + $0x218] sm:$0xff] }
 0x61a   : > { %4588 = vmatprep.subr.mxu0 %v7890_v41  ;;  %4659 = vmatprep.subr.mxu1 %v7891_v50  ;;  %v7940_v41 = vld [vmem:[#allocation12 + $0x200] sm:$0xff]  ;;  %v7941_v50 = vld [vmem:[#allocation12 + $0x210] sm:$0xff] }
 0x61b   : > { %4589 = vmatpush2.msra.mxu0 %v7892_v12  ;;  %4660 = vmatpush2.msra.mxu1 %v7893_v14  ;;  %v7942_v12 = vld [vmem:[#allocation12 + $0x188] sm:$0xff]  ;;  %v7943_v14 = vld [vmem:[#allocation12 + $0x198] sm:$0xff] }
 0x61c   : > { %4591 = vmatmul.mubr.f32.vlgmr.msra.gmra.mxu0 %v9570_v59  ;;  %4662 = vmatmul.mubr.f32.vlgmr.msra.gmra.mxu1 %v9570_v59  ;;  %v7901_v59 = vld [vmem:[#allocation12 + $0x710] sm:$0xff] }
 0x61d   : > { %4799 = vmatprep.subr.mxu0 %v7894_v5  ;;  %4870 = vmatprep.subr.mxu1 %v7895_v57  ;;  %v7944_v5 = vld [vmem:[#allocation12 + $0x180] sm:$0xff]  ;;  %v7945_v57 = vld [vmem:[#allocation12 + $0x190] sm:$0xff] }
 0x61e   : > { %4800 = vmatpush1.msra.mxu0 %v7896_v13  ;;  %4863 = vmatprep.mubr.f32.mxu0 %v9592_v43  ;;  %v7946_v13 = vld [vmem:[#allocation12 + $0x108] sm:$0xff] }
 0x61f   : > { %4871 = vmatpush1.msra.mxu1 %v7897_v42  ;;  %4934 = vmatprep.mubr.f32.mxu1 %v9592_v43  ;;  %v7947_v42 = vld [vmem:[#allocation12 + $0x118] sm:$0xff] }
 0x620   : > { %4801 = vmatprep.subr.mxu0 %v7898_v48  ;;  %4872 = vmatprep.subr.mxu1 %v7899_v58  ;;  %v7948_v48 = vld [vmem:[#allocation12 + $0x100] sm:$0xff]  ;;  %v7949_v58 = vld [vmem:[#allocation12 + $0x110] sm:$0xff] }
 0x621   : > { %4802 = vmatpush1.msra.mxu0 %v7900_v62  ;;  %4873 = vmatpush1.msra.mxu1 %v7901_v59  ;;  %v7950_v62 = vld [vmem:[#allocation12 + $0x88] sm:$0xff]  ;;  %v7951_v59 = vld [vmem:[#allocation12 + $0x98] sm:$0xff] }
 0x622   : > { %4803 = vmatprep.subr.mxu0 %v7902_v16  ;;  %4874 = vmatprep.subr.mxu1 %v7903_v25  ;;  %v7952_v16 = vld [vmem:[#allocation12 + $0x80] sm:$0xff]  ;;  %v7953_v25 = vld [vmem:[#allocation12 + $0x90] sm:$0xff] }
 0x623   : > { %4804 = vmatpush1.msra.mxu0 %v7904_v40  ;;  %4875 = vmatpush1.msra.mxu1 %v7905_v1  ;;  %v7954_v40 = vld [vmem:[#allocation12 + $0x8] sm:$0xff]  ;;  %v7955_v1 = vld [vmem:[#allocation12 + $0x18] sm:$0xff] }
 0x624   : > { %4805 = vmatprep.subr.mxu0 %v7906_v3  ;;  %4876 = vmatprep.subr.mxu1 %v7907_v6  ;;  %v7956_v3 = vld [vmem:[#allocation12] sm:$0xff]  ;;  %v7957_v6 = vld [vmem:[#allocation12 + $0x10] sm:$0xff] }
 0x625   : > { %4806 = vmatpush1.msra.mxu0 %v7908_v27  ;;  %4877 = vmatpush1.msra.mxu1 %v7909_v29  ;;  %v7958_v27 = vld [vmem:[#allocation12 + $0xf88] sm:$0xff]  ;;  %v7959_v29 = vld [vmem:[#allocation12 + $0xf98] sm:$0xff] }
 0x626   : > { %4807 = vmatprep.subr.mxu0 %v7910_v34  ;;  %4878 = vmatprep.subr.mxu1 %v7911_v63  ;;  %v7960_v34 = vld [vmem:[#allocation12 + $0xf80] sm:$0xff]  ;;  %v7961_v63 = vld [vmem:[#allocation12 + $0xf90] sm:$0xff] }
 0x627   : > { %4808 = vmatpush1.msra.mxu0 %v7912_v44  ;;  %4879 = vmatpush1.msra.mxu1 %v7913_v4  ;;  %v7962_v44 = vld [vmem:[#allocation12 + $0xf08] sm:$0xff]  ;;  %v7963_v4 = vld [vmem:[#allocation12 + $0xf18] sm:$0xff] }
 0x628   : > { %4809 = vmatprep.subr.mxu0 %v7914_v52  ;;  %4880 = vmatprep.subr.mxu1 %v7915_v23  ;;  %v7964_v52 = vld [vmem:[#allocation12 + $0xf00] sm:$0xff]  ;;  %v7965_v23 = vld [vmem:[#allocation12 + $0xf10] sm:$0xff] }
 0x629   : > { %4810 = vmatpush1.msra.mxu0 %v7916_v20  ;;  %4881 = vmatpush1.msra.mxu1 %v7917_v19  ;;  %v7966_v20 = vld [vmem:[#allocation12 + $0xe88] sm:$0xff]  ;;  %v7967_v19 = vld [vmem:[#allocation12 + $0xe98] sm:$0xff] }
 0x62a   : > { %4811 = vmatprep.subr.mxu0 %v7918_v35  ;;  %4882 = vmatprep.subr.mxu1 %v7919_v54  ;;  %v7968_v35 = vld [vmem:[#allocation12 + $0xe80] sm:$0xff]  ;;  %v7969_v54 = vld [vmem:[#allocation12 + $0xe90] sm:$0xff] }
 0x62b   : > { %4812 = vmatpush1.msra.mxu0 %v7920_v31  ;;  %4883 = vmatpush1.msra.mxu1 %v7921_v60  ;;  %v7970_v31 = vld [vmem:[#allocation12 + $0xe08] sm:$0xff]  ;;  %v7971_v60 = vld [vmem:[#allocation12 + $0xe18] sm:$0xff] }
 0x62c   : > { %4813 = vmatprep.subr.mxu0 %v7922_v17  ;;  %4884 = vmatprep.subr.mxu1 %v7923_v11  ;;  %v7972_v17 = vld [vmem:[#allocation12 + $0xe00] sm:$0xff]  ;;  %v7973_v11 = vld [vmem:[#allocation12 + $0xe10] sm:$0xff] }
 0x62d   : > { %4814 = vmatpush1.msra.mxu0 %v7924_v47  ;;  %4885 = vmatpush1.msra.mxu1 %v7925_v37  ;;  %v7974_v47 = vld [vmem:[#allocation12 + $0xd88] sm:$0xff]  ;;  %v7975_v37 = vld [vmem:[#allocation12 + $0xd98] sm:$0xff] }
 0x62e   : > { %4815 = vmatprep.subr.mxu0 %v7926_v8  ;;  %4886 = vmatprep.subr.mxu1 %v7927_v56  ;;  %v7976_v8 = vld [vmem:[#allocation12 + $0xd80] sm:$0xff]  ;;  %v7977_v56 = vld [vmem:[#allocation12 + $0xd90] sm:$0xff] }
 0x62f   : > { %4816 = vmatpush1.msra.mxu0 %v7928_v0  ;;  %4887 = vmatpush1.msra.mxu1 %v7929_v9  ;;  %v7978_v0 = vld [vmem:[#allocation12 + $0xd08] sm:$0xff]  ;;  %v7979_v9 = vld [vmem:[#allocation12 + $0xd18] sm:$0xff] }
 0x630   : > { %4817 = vmatprep.subr.mxu0 %v7930_v61  ;;  %4888 = vmatprep.subr.mxu1 %v7931_v38  ;;  %v7980_v61 = vld [vmem:[#allocation12 + $0xd00] sm:$0xff]  ;;  %v7981_v38 = vld [vmem:[#allocation12 + $0xd10] sm:$0xff] }
 0x631   : > { %4818 = vmatpush1.msra.mxu0 %v7932_v55  ;;  %4889 = vmatpush1.msra.mxu1 %v7933_v28  ;;  %v7982_v55 = vld [vmem:[#allocation12 + $0xc88] sm:$0xff]  ;;  %v7983_v28 = vld [vmem:[#allocation12 + $0xc98] sm:$0xff] }
 0x632   : > { %4819 = vmatprep.subr.mxu0 %v7934_v2  ;;  %4890 = vmatprep.subr.mxu1 %v7935_v32  ;;  %v7984_v2 = vld [vmem:[#allocation12 + $0xc80] sm:$0xff]  ;;  %v7985_v32 = vld [vmem:[#allocation12 + $0xc90] sm:$0xff] }
 0x633   : > { %4820 = vmatpush1.msra.mxu0 %v7936_v53  ;;  %4891 = vmatpush1.msra.mxu1 %v7937_v30  ;;  %v7986_v53 = vld [vmem:[#allocation12 + $0xc08] sm:$0xff]  ;;  %v7987_v30 = vld [vmem:[#allocation12 + $0xc18] sm:$0xff] }
 0x634   : > { %4821 = vmatprep.subr.mxu0 %v7938_v18  ;;  %4892 = vmatprep.subr.mxu1 %v7939_v26  ;;  %v7988_v18 = vld [vmem:[#allocation12 + $0xc00] sm:$0xff]  ;;  %v7989_v26 = vld [vmem:[#allocation12 + $0xc10] sm:$0xff] }
 0x635   : > { %4822 = vmatpush1.msra.mxu0 %v7940_v41  ;;  %4893 = vmatpush1.msra.mxu1 %v7941_v50  ;;  %v7990_v41 = vld [vmem:[#allocation12 + $0xb88] sm:$0xff]  ;;  %v7991_v50 = vld [vmem:[#allocation12 + $0xb98] sm:$0xff] }
 0x636   : > { %4823 = vmatprep.subr.mxu0 %v7942_v12  ;;  %4894 = vmatprep.subr.mxu1 %v7943_v14  ;;  %v7992_v12 = vld [vmem:[#allocation12 + $0xb80] sm:$0xff]  ;;  %v7993_v14 = vld [vmem:[#allocation12 + $0xb90] sm:$0xff] }
 0x637   : > { %4824 = vmatpush1.msra.mxu0 %v7944_v5  ;;  %4895 = vmatpush1.msra.mxu1 %v7945_v57  ;;  %v7994_v5 = vld [vmem:[#allocation12 + $0xb08] sm:$0xff]  ;;  %v7995_v57 = vld [vmem:[#allocation12 + $0xb18] sm:$0xff] }
 0x638   : > { %4825 = vmatprep.subr.mxu0 %v7946_v13  ;;  %4896 = vmatprep.subr.mxu1 %v7947_v42  ;;  %v7996_v13 = vld [vmem:[#allocation12 + $0xb00] sm:$0xff]  ;;  %v7997_v42 = vld [vmem:[#allocation12 + $0xb10] sm:$0xff] }
 0x639   : > { %4826 = vmatpush1.msra.mxu0 %v7948_v48  ;;  %4897 = vmatpush1.msra.mxu1 %v7949_v58  ;;  %v7998_v48 = vld [vmem:[#allocation12 + $0xa88] sm:$0xff]  ;;  %v7999_v58 = vld [vmem:[#allocation12 + $0xa98] sm:$0xff] }
 0x63a   : > { %4827 = vmatprep.subr.mxu0 %v7950_v62  ;;  %4898 = vmatprep.subr.mxu1 %v7951_v59  ;;  %v8000_v62 = vld [vmem:[#allocation12 + $0xa80] sm:$0xff]  ;;  %v8001_v59 = vld [vmem:[#allocation12 + $0xa90] sm:$0xff] }
 0x63b   : > { %4828 = vmatpush1.msra.mxu0 %v7952_v16  ;;  %4899 = vmatpush1.msra.mxu1 %v7953_v25  ;;  %v8002_v16 = vld [vmem:[#allocation12 + $0xa08] sm:$0xff]  ;;  %v8003_v25 = vld [vmem:[#allocation12 + $0xa18] sm:$0xff] }
 0x63c   : > { %4829 = vmatprep.subr.mxu0 %v7954_v40  ;;  %4900 = vmatprep.subr.mxu1 %v7955_v1  ;;  %v8004_v40 = vld [vmem:[#allocation12 + $0xa00] sm:$0xff]  ;;  %v8005_v1 = vld [vmem:[#allocation12 + $0xa10] sm:$0xff] }
 0x63d   : > { %4830 = vmatpush1.msra.mxu0 %v7956_v3  ;;  %4901 = vmatpush1.msra.mxu1 %v7957_v6  ;;  %v8006_v3 = vld [vmem:[#allocation12 + $0x988] sm:$0xff]  ;;  %v8007_v6 = vld [vmem:[#allocation12 + $0x998] sm:$0xff] }
 0x63e   : > { %4831 = vmatprep.subr.mxu0 %v7958_v27  ;;  %4902 = vmatprep.subr.mxu1 %v7959_v29  ;;  %v8008_v27 = vld [vmem:[#allocation12 + $0x980] sm:$0xff]  ;;  %v8009_v29 = vld [vmem:[#allocation12 + $0x990] sm:$0xff] }
 0x63f   : > { %4832 = vmatpush2.msra.mxu0 %v7960_v34  ;;  %4903 = vmatpush2.msra.mxu1 %v7961_v63  ;;  %v8010_v34 = vld [vmem:[#allocation12 + $0x908] sm:$0xff]  ;;  %v8011_v63 = vld [vmem:[#allocation12 + $0x918] sm:$0xff] }
 0x640   : > { %4833 = vmatprep.subr.mxu0 %v7962_v44  ;;  %4904 = vmatprep.subr.mxu1 %v7963_v4  ;;  %v8012_v44 = vld [vmem:[#allocation12 + $0x900] sm:$0xff]  ;;  %v8013_v4 = vld [vmem:[#allocation12 + $0x910] sm:$0xff] }
 0x641   : > { %4834 = vmatpush2.msra.mxu0 %v7964_v52  ;;  %4905 = vmatpush2.msra.mxu1 %v7965_v23  ;;  %v8014_v52 = vld [vmem:[#allocation12 + $0x888] sm:$0xff]  ;;  %v8015_v23 = vld [vmem:[#allocation12 + $0x898] sm:$0xff] }
 0x642   : > { %4835 = vmatprep.subr.mxu0 %v7966_v20  ;;  %4906 = vmatprep.subr.mxu1 %v7967_v19  ;;  %v8016_v20 = vld [vmem:[#allocation12 + $0x880] sm:$0xff]  ;;  %v8017_v19 = vld [vmem:[#allocation12 + $0x890] sm:$0xff] }
 0x643   : > { %4836 = vmatpush2.msra.mxu0 %v7968_v35  ;;  %4907 = vmatpush2.msra.mxu1 %v7969_v54  ;;  %v8018_v35 = vld [vmem:[#allocation12 + $0x808] sm:$0xff]  ;;  %v8019_v54 = vld [vmem:[#allocation12 + $0x818] sm:$0xff] }
 0x644   : > { %4837 = vmatprep.subr.mxu0 %v7970_v31  ;;  %4908 = vmatprep.subr.mxu1 %v7971_v60  ;;  %v8020_v31 = vld [vmem:[#allocation12 + $0x800] sm:$0xff]  ;;  %v8021_v60 = vld [vmem:[#allocation12 + $0x810] sm:$0xff] }
 0x645   : > { %4838 = vmatpush2.msra.mxu0 %v7972_v17  ;;  %4909 = vmatpush2.msra.mxu1 %v7973_v11  ;;  %v8022_v17 = vld [vmem:[#allocation12 + $0x7a8] sm:$0xff]  ;;  %v8023_v11 = vld [vmem:[#allocation12 + $0x7b8] sm:$0xff] }
 0x646   : > { %4839 = vmatprep.subr.mxu0 %v7974_v47  ;;  %4910 = vmatprep.subr.mxu1 %v7975_v37  ;;  %v8024_v47 = vld [vmem:[#allocation12 + $0x7a0] sm:$0xff]  ;;  %v8025_v37 = vld [vmem:[#allocation12 + $0x7b0] sm:$0xff] }
 0x647   : > { %4840 = vmatpush2.msra.mxu0 %v7976_v8  ;;  %4911 = vmatpush2.msra.mxu1 %v7977_v56  ;;  %v8026_v8 = vld [vmem:[#allocation12 + $0x728] sm:$0xff]  ;;  %v8027_v56 = vld [vmem:[#allocation12 + $0x738] sm:$0xff] }
 0x648   : > { %4841 = vmatprep.subr.mxu0 %v7978_v0  ;;  %4912 = vmatprep.subr.mxu1 %v7979_v9  ;;  %v8028_v0 = vld [vmem:[#allocation12 + $0x720] sm:$0xff]  ;;  %v8029_v9 = vld [vmem:[#allocation12 + $0x730] sm:$0xff] }
 0x649   : > { %4842 = vmatpush2.msra.mxu0 %v7980_v61  ;;  %4913 = vmatpush2.msra.mxu1 %v7981_v38  ;;  %v8030_v61 = vld [vmem:[#allocation12 + $0x6a8] sm:$0xff]  ;;  %v8031_v38 = vld [vmem:[#allocation12 + $0x6b8] sm:$0xff] }
 0x64a   : > { %4843 = vmatprep.subr.mxu0 %v7982_v55  ;;  %4914 = vmatprep.subr.mxu1 %v7983_v28  ;;  %v8032_v55 = vld [vmem:[#allocation12 + $0x6a0] sm:$0xff]  ;;  %v8033_v28 = vld [vmem:[#allocation12 + $0x6b0] sm:$0xff] }
 0x64b   : > { %4844 = vmatpush2.msra.mxu0 %v7984_v2  ;;  %4915 = vmatpush2.msra.mxu1 %v7985_v32  ;;  %v8034_v2 = vld [vmem:[#allocation12 + $0x628] sm:$0xff]  ;;  %v8035_v32 = vld [vmem:[#allocation12 + $0x638] sm:$0xff] }
 0x64c   : > { %4845 = vmatprep.subr.mxu0 %v7986_v53  ;;  %4916 = vmatprep.subr.mxu1 %v7987_v30  ;;  %v8036_v53 = vld [vmem:[#allocation12 + $0x620] sm:$0xff]  ;;  %v8037_v30 = vld [vmem:[#allocation12 + $0x630] sm:$0xff] }
 0x64d   : > { %4846 = vmatpush2.msra.mxu0 %v7988_v18  ;;  %4917 = vmatpush2.msra.mxu1 %v7989_v26  ;;  %v8038_v18 = vld [vmem:[#allocation12 + $0x5a8] sm:$0xff]  ;;  %v8039_v26 = vld [vmem:[#allocation12 + $0x5b8] sm:$0xff] }
 0x64e   : > { %4847 = vmatprep.subr.mxu0 %v7990_v41  ;;  %4918 = vmatprep.subr.mxu1 %v7991_v50  ;;  %v8040_v41 = vld [vmem:[#allocation12 + $0x5a0] sm:$0xff]  ;;  %v8041_v50 = vld [vmem:[#allocation12 + $0x5b0] sm:$0xff] }
 0x64f   : > { %4848 = vmatpush2.msra.mxu0 %v7992_v12  ;;  %4919 = vmatpush2.msra.mxu1 %v7993_v14  ;;  %v8042_v12 = vld [vmem:[#allocation12 + $0x528] sm:$0xff]  ;;  %v8043_v14 = vld [vmem:[#allocation12 + $0x538] sm:$0xff] }
 0x650   : > { %4849 = vmatprep.subr.mxu0 %v7994_v5  ;;  %4920 = vmatprep.subr.mxu1 %v7995_v57  ;;  %v8044_v5 = vld [vmem:[#allocation12 + $0x520] sm:$0xff]  ;;  %v8045_v57 = vld [vmem:[#allocation12 + $0x530] sm:$0xff] }
 0x651   : > { %4850 = vmatpush2.msra.mxu0 %v7996_v13  ;;  %4921 = vmatpush2.msra.mxu1 %v7997_v42  ;;  %v8046_v13 = vld [vmem:[#allocation12 + $0x4a8] sm:$0xff]  ;;  %v8047_v42 = vld [vmem:[#allocation12 + $0x4b8] sm:$0xff] }
 0x652   : > { %4851 = vmatprep.subr.mxu0 %v7998_v48  ;;  %4922 = vmatprep.subr.mxu1 %v7999_v58  ;;  %v8048_v48 = vld [vmem:[#allocation12 + $0x4a0] sm:$0xff]  ;;  %v8049_v58 = vld [vmem:[#allocation12 + $0x4b0] sm:$0xff] }
 0x653   : > { %4852 = vmatpush2.msra.mxu0 %v8000_v62  ;;  %4923 = vmatpush2.msra.mxu1 %v8001_v59  ;;  %v8050_v62 = vld [vmem:[#allocation12 + $0x428] sm:$0xff]  ;;  %v8051_v59 = vld [vmem:[#allocation12 + $0x438] sm:$0xff] }
 0x654   : > { %4853 = vmatprep.subr.mxu0 %v8002_v16  ;;  %4924 = vmatprep.subr.mxu1 %v8003_v25  ;;  %v8052_v16 = vld [vmem:[#allocation12 + $0x420] sm:$0xff]  ;;  %v8053_v25 = vld [vmem:[#allocation12 + $0x430] sm:$0xff] }
 0x655   : > { %4854 = vmatpush2.msra.mxu0 %v8004_v40  ;;  %4925 = vmatpush2.msra.mxu1 %v8005_v1  ;;  %v8054_v40 = vld [vmem:[#allocation12 + $0x3a8] sm:$0xff]  ;;  %v8055_v1 = vld [vmem:[#allocation12 + $0x3b8] sm:$0xff] }
 0x656   : > { %4855 = vmatprep.subr.mxu0 %v8006_v3  ;;  %4926 = vmatprep.subr.mxu1 %v8007_v6  ;;  %v8056_v3 = vld [vmem:[#allocation12 + $0x3a0] sm:$0xff]  ;;  %v8057_v6 = vld [vmem:[#allocation12 + $0x3b0] sm:$0xff] }
 0x657   : > { %4856 = vmatpush2.msra.mxu0 %v8008_v27  ;;  %4927 = vmatpush2.msra.mxu1 %v8009_v29  ;;  %v8058_v27 = vld [vmem:[#allocation12 + $0x328] sm:$0xff]  ;;  %v8059_v29 = vld [vmem:[#allocation12 + $0x338] sm:$0xff] }
 0x658   : > { %4857 = vmatprep.subr.mxu0 %v8010_v34  ;;  %4928 = vmatprep.subr.mxu1 %v8011_v63  ;;  %v8060_v34 = vld [vmem:[#allocation12 + $0x320] sm:$0xff]  ;;  %v8061_v63 = vld [vmem:[#allocation12 + $0x330] sm:$0xff] }
 0x659   : > { %4858 = vmatpush2.msra.mxu0 %v8012_v44  ;;  %4929 = vmatpush2.msra.mxu1 %v8013_v4  ;;  %v8062_v44 = vld [vmem:[#allocation12 + $0x2a8] sm:$0xff]  ;;  %v8063_v4 = vld [vmem:[#allocation12 + $0x2b8] sm:$0xff] }
 0x65a   : > { %4859 = vmatprep.subr.mxu0 %v8014_v52  ;;  %4930 = vmatprep.subr.mxu1 %v8015_v23  ;;  %v8064_v52 = vld [vmem:[#allocation12 + $0x2a0] sm:$0xff]  ;;  %v8065_v23 = vld [vmem:[#allocation12 + $0x2b0] sm:$0xff] }
 0x65b   : > { %4860 = vmatpush2.msra.mxu0 %v8016_v20  ;;  %4931 = vmatpush2.msra.mxu1 %v8017_v19  ;;  %v8066_v20 = vld [vmem:[#allocation12 + $0x228] sm:$0xff]  ;;  %v8067_v19 = vld [vmem:[#allocation12 + $0x238] sm:$0xff] }
 0x65c   : > { %4861 = vmatprep.subr.mxu0 %v8018_v35  ;;  %4932 = vmatprep.subr.mxu1 %v8019_v54  ;;  %v8068_v35 = vld [vmem:[#allocation12 + $0x220] sm:$0xff]  ;;  %v8069_v54 = vld [vmem:[#allocation12 + $0x230] sm:$0xff] }
 0x65d   : > { %4862 = vmatpush2.msra.mxu0 %v8020_v31  ;;  %4933 = vmatpush2.msra.mxu1 %v8021_v60  ;;  %v8070_v31 = vld [vmem:[#allocation12 + $0x1a8] sm:$0xff]  ;;  %v8071_v60 = vld [vmem:[#allocation12 + $0x1b8] sm:$0xff] }
 0x65e   : > { %4864 = vmatmul.mubr.f32.vlgmr.msra.gmra.mxu0 %v9587_v36  ;;  %4935 = vmatmul.mubr.f32.vlgmr.msra.gmra.mxu1 %v9587_v36 }
 0x65f   : > { %4941 = vmatprep.subr.mxu0 %v8022_v17  ;;  %5012 = vmatprep.subr.mxu1 %v8023_v11  ;;  %v8072_v17 = vld [vmem:[#allocation12 + $0x1a0] sm:$0xff]  ;;  %v8073_v11 = vld [vmem:[#allocation12 + $0x1b0] sm:$0xff] }
 0x660   : > { %4942 = vmatpush1.msra.mxu0 %v8024_v47  ;;  %5005 = vmatprep.mubr.f32.mxu0 %v9592_v43  ;;  %v8074_v47 = vld [vmem:[#allocation12 + $0x128] sm:$0xff] }
 0x661   : > { %5013 = vmatpush1.msra.mxu1 %v8025_v37  ;;  %5076 = vmatprep.mubr.f32.mxu1 %v9592_v43  ;;  %v8075_v37 = vld [vmem:[#allocation12 + $0x138] sm:$0xff] }
 0x662   : > { %4943 = vmatprep.subr.mxu0 %v8026_v8  ;;  %5014 = vmatprep.subr.mxu1 %v8027_v56  ;;  %v8076_v8 = vld [vmem:[#allocation12 + $0x120] sm:$0xff]  ;;  %v8077_v56 = vld [vmem:[#allocation12 + $0x130] sm:$0xff] }
 0x663   : > { %4944 = vmatpush1.msra.mxu0 %v8028_v0  ;;  %5015 = vmatpush1.msra.mxu1 %v8029_v9  ;;  %v8078_v0 = vld [vmem:[#allocation12 + $0xa8] sm:$0xff]  ;;  %v8079_v9 = vld [vmem:[#allocation12 + $0xb8] sm:$0xff] }
 0x664   : > { %4945 = vmatprep.subr.mxu0 %v8030_v61  ;;  %5016 = vmatprep.subr.mxu1 %v8031_v38  ;;  %v8080_v61 = vld [vmem:[#allocation12 + $0xa0] sm:$0xff]  ;;  %v8081_v38 = vld [vmem:[#allocation12 + $0xb0] sm:$0xff] }
 0x665   : > { %4946 = vmatpush1.msra.mxu0 %v8032_v55  ;;  %5017 = vmatpush1.msra.mxu1 %v8033_v28  ;;  %v8082_v55 = vld [vmem:[#allocation12 + $0x28] sm:$0xff]  ;;  %v8083_v28 = vld [vmem:[#allocation12 + $0x38] sm:$0xff] }
 0x666   : > { %4947 = vmatprep.subr.mxu0 %v8034_v2  ;;  %5018 = vmatprep.subr.mxu1 %v8035_v32  ;;  %v8084_v2 = vld [vmem:[#allocation12 + $0x20] sm:$0xff]  ;;  %v8085_v32 = vld [vmem:[#allocation12 + $0x30] sm:$0xff] }
 0x667   : > { %4948 = vmatpush1.msra.mxu0 %v8036_v53  ;;  %5019 = vmatpush1.msra.mxu1 %v8037_v30  ;;  %v8086_v53 = vld [vmem:[#allocation12 + $0xfa8] sm:$0xff]  ;;  %v8087_v30 = vld [vmem:[#allocation12 + $0xfb8] sm:$0xff] }
 0x668   : > { %4949 = vmatprep.subr.mxu0 %v8038_v18  ;;  %5020 = vmatprep.subr.mxu1 %v8039_v26  ;;  %v8088_v18 = vld [vmem:[#allocation12 + $0xfa0] sm:$0xff]  ;;  %v8089_v26 = vld [vmem:[#allocation12 + $0xfb0] sm:$0xff] }
 0x669   : > { %4950 = vmatpush1.msra.mxu0 %v8040_v41  ;;  %5021 = vmatpush1.msra.mxu1 %v8041_v50  ;;  %v8090_v41 = vld [vmem:[#allocation12 + $0xf28] sm:$0xff]  ;;  %v8091_v50 = vld [vmem:[#allocation12 + $0xf38] sm:$0xff] }
 0x66a   : > { %4951 = vmatprep.subr.mxu0 %v8042_v12  ;;  %5022 = vmatprep.subr.mxu1 %v8043_v14  ;;  %v8092_v12 = vld [vmem:[#allocation12 + $0xf20] sm:$0xff]  ;;  %v8093_v14 = vld [vmem:[#allocation12 + $0xf30] sm:$0xff] }
 0x66b   : > { %4952 = vmatpush1.msra.mxu0 %v8044_v5  ;;  %5023 = vmatpush1.msra.mxu1 %v8045_v57  ;;  %v8094_v5 = vld [vmem:[#allocation12 + $0xea8] sm:$0xff]  ;;  %v8095_v57 = vld [vmem:[#allocation12 + $0xeb8] sm:$0xff] }
 0x66c   : > { %4953 = vmatprep.subr.mxu0 %v8046_v13  ;;  %5024 = vmatprep.subr.mxu1 %v8047_v42  ;;  %v8096_v13 = vld [vmem:[#allocation12 + $0xea0] sm:$0xff]  ;;  %v8097_v42 = vld [vmem:[#allocation12 + $0xeb0] sm:$0xff] }
 0x66d   : > { %4954 = vmatpush1.msra.mxu0 %v8048_v48  ;;  %5025 = vmatpush1.msra.mxu1 %v8049_v58  ;;  %v8098_v48 = vld [vmem:[#allocation12 + $0xe28] sm:$0xff]  ;;  %v8099_v58 = vld [vmem:[#allocation12 + $0xe38] sm:$0xff] }
 0x66e   : > { %4955 = vmatprep.subr.mxu0 %v8050_v62  ;;  %5026 = vmatprep.subr.mxu1 %v8051_v59  ;;  %v8100_v62 = vld [vmem:[#allocation12 + $0xe20] sm:$0xff]  ;;  %v8101_v59 = vld [vmem:[#allocation12 + $0xe30] sm:$0xff] }
 0x66f   : > { %4956 = vmatpush1.msra.mxu0 %v8052_v16  ;;  %5027 = vmatpush1.msra.mxu1 %v8053_v25  ;;  %v8102_v16 = vld [vmem:[#allocation12 + $0xda8] sm:$0xff]  ;;  %v8103_v25 = vld [vmem:[#allocation12 + $0xdb8] sm:$0xff] }
 0x670   : > { %4957 = vmatprep.subr.mxu0 %v8054_v40  ;;  %5028 = vmatprep.subr.mxu1 %v8055_v1  ;;  %v8104_v40 = vld [vmem:[#allocation12 + $0xda0] sm:$0xff]  ;;  %v8105_v1 = vld [vmem:[#allocation12 + $0xdb0] sm:$0xff] }
 0x671   : > { %4958 = vmatpush1.msra.mxu0 %v8056_v3  ;;  %5029 = vmatpush1.msra.mxu1 %v8057_v6  ;;  %v8106_v3 = vld [vmem:[#allocation12 + $0xd28] sm:$0xff]  ;;  %v8107_v6 = vld [vmem:[#allocation12 + $0xd38] sm:$0xff] }
 0x672   : > { %4959 = vmatprep.subr.mxu0 %v8058_v27  ;;  %5030 = vmatprep.subr.mxu1 %v8059_v29  ;;  %v8108_v27 = vld [vmem:[#allocation12 + $0xd20] sm:$0xff]  ;;  %v8109_v29 = vld [vmem:[#allocation12 + $0xd30] sm:$0xff] }
 0x673   : > { %4960 = vmatpush1.msra.mxu0 %v8060_v34  ;;  %5031 = vmatpush1.msra.mxu1 %v8061_v63  ;;  %v8110_v34 = vld [vmem:[#allocation12 + $0xca8] sm:$0xff]  ;;  %v8111_v63 = vld [vmem:[#allocation12 + $0xcb8] sm:$0xff] }
 0x674   : > { %4961 = vmatprep.subr.mxu0 %v8062_v44  ;;  %5032 = vmatprep.subr.mxu1 %v8063_v4  ;;  %v8112_v44 = vld [vmem:[#allocation12 + $0xca0] sm:$0xff]  ;;  %v8113_v4 = vld [vmem:[#allocation12 + $0xcb0] sm:$0xff] }
 0x675   : > { %4962 = vmatpush1.msra.mxu0 %v8064_v52  ;;  %5033 = vmatpush1.msra.mxu1 %v8065_v23  ;;  %v8114_v52 = vld [vmem:[#allocation12 + $0xc28] sm:$0xff]  ;;  %v8115_v23 = vld [vmem:[#allocation12 + $0xc38] sm:$0xff] }
 0x676   : > { %4963 = vmatprep.subr.mxu0 %v8066_v20  ;;  %5034 = vmatprep.subr.mxu1 %v8067_v19  ;;  %v8116_v20 = vld [vmem:[#allocation12 + $0xc20] sm:$0xff]  ;;  %v8117_v19 = vld [vmem:[#allocation12 + $0xc30] sm:$0xff] }
 0x677   : > { %4964 = vmatpush1.msra.mxu0 %v8068_v35  ;;  %5035 = vmatpush1.msra.mxu1 %v8069_v54  ;;  %v8118_v35 = vld [vmem:[#allocation12 + $0xba8] sm:$0xff]  ;;  %v8119_v54 = vld [vmem:[#allocation12 + $0xbb8] sm:$0xff] }
 0x678   : > { %4965 = vmatprep.subr.mxu0 %v8070_v31  ;;  %5036 = vmatprep.subr.mxu1 %v8071_v60  ;;  %v8120_v31 = vld [vmem:[#allocation12 + $0xba0] sm:$0xff]  ;;  %v8121_v60 = vld [vmem:[#allocation12 + $0xbb0] sm:$0xff] }
 0x679   : > { %4966 = vmatpush1.msra.mxu0 %v8072_v17  ;;  %5037 = vmatpush1.msra.mxu1 %v8073_v11  ;;  %v8122_v17 = vld [vmem:[#allocation12 + $0xb28] sm:$0xff]  ;;  %v8123_v11 = vld [vmem:[#allocation12 + $0xb38] sm:$0xff] }
 0x67a   : > { %4967 = vmatprep.subr.mxu0 %v8074_v47  ;;  %5038 = vmatprep.subr.mxu1 %v8075_v37  ;;  %v8124_v47 = vld [vmem:[#allocation12 + $0xb20] sm:$0xff]  ;;  %v8125_v37 = vld [vmem:[#allocation12 + $0xb30] sm:$0xff] }
 0x67b   : > { %4968 = vmatpush1.msra.mxu0 %v8076_v8  ;;  %5039 = vmatpush1.msra.mxu1 %v8077_v56  ;;  %v8126_v8 = vld [vmem:[#allocation12 + $0xaa8] sm:$0xff]  ;;  %v8127_v56 = vld [vmem:[#allocation12 + $0xab8] sm:$0xff] }
 0x67c   : > { %4969 = vmatprep.subr.mxu0 %v8078_v0  ;;  %5040 = vmatprep.subr.mxu1 %v8079_v9  ;;  %v8128_v0 = vld [vmem:[#allocation12 + $0xaa0] sm:$0xff]  ;;  %v8129_v9 = vld [vmem:[#allocation12 + $0xab0] sm:$0xff] }
 0x67d   : > { %4970 = vmatpush1.msra.mxu0 %v8080_v61  ;;  %5041 = vmatpush1.msra.mxu1 %v8081_v38  ;;  %v8130_v61 = vld [vmem:[#allocation12 + $0xa28] sm:$0xff]  ;;  %v8131_v38 = vld [vmem:[#allocation12 + $0xa38] sm:$0xff] }
 0x67e   : > { %4971 = vmatprep.subr.mxu0 %v8082_v55  ;;  %5042 = vmatprep.subr.mxu1 %v8083_v28  ;;  %v8132_v55 = vld [vmem:[#allocation12 + $0xa20] sm:$0xff]  ;;  %v8133_v28 = vld [vmem:[#allocation12 + $0xa30] sm:$0xff] }
 0x67f   : > { %4972 = vmatpush1.msra.mxu0 %v8084_v2  ;;  %5043 = vmatpush1.msra.mxu1 %v8085_v32  ;;  %v8134_v2 = vld [vmem:[#allocation12 + $0x9a8] sm:$0xff]  ;;  %v8135_v32 = vld [vmem:[#allocation12 + $0x9b8] sm:$0xff] }
 0x680   : > { %4973 = vmatprep.subr.mxu0 %v8086_v53  ;;  %5044 = vmatprep.subr.mxu1 %v8087_v30  ;;  %v8136_v53 = vld [vmem:[#allocation12 + $0x9a0] sm:$0xff]  ;;  %v8137_v30 = vld [vmem:[#allocation12 + $0x9b0] sm:$0xff] }
 0x681   : > { %4974 = vmatpush2.msra.mxu0 %v8088_v18  ;;  %5045 = vmatpush2.msra.mxu1 %v8089_v26  ;;  %v8138_v18 = vld [vmem:[#allocation12 + $0x928] sm:$0xff]  ;;  %v8139_v26 = vld [vmem:[#allocation12 + $0x938] sm:$0xff] }
 0x682   : > { %4975 = vmatprep.subr.mxu0 %v8090_v41  ;;  %5046 = vmatprep.subr.mxu1 %v8091_v50  ;;  %v8140_v41 = vld [vmem:[#allocation12 + $0x920] sm:$0xff]  ;;  %v8141_v50 = vld [vmem:[#allocation12 + $0x930] sm:$0xff] }
 0x683   : > { %4976 = vmatpush2.msra.mxu0 %v8092_v12  ;;  %5047 = vmatpush2.msra.mxu1 %v8093_v14  ;;  %v8142_v12 = vld [vmem:[#allocation12 + $0x8a8] sm:$0xff]  ;;  %v8143_v14 = vld [vmem:[#allocation12 + $0x8b8] sm:$0xff] }
 0x684   : > { %4977 = vmatprep.subr.mxu0 %v8094_v5  ;;  %5048 = vmatprep.subr.mxu1 %v8095_v57  ;;  %v8144_v5 = vld [vmem:[#allocation12 + $0x8a0] sm:$0xff]  ;;  %v8145_v57 = vld [vmem:[#allocation12 + $0x8b0] sm:$0xff] }
 0x685   : > { %4978 = vmatpush2.msra.mxu0 %v8096_v13  ;;  %5049 = vmatpush2.msra.mxu1 %v8097_v42  ;;  %v8146_v13 = vld [vmem:[#allocation12 + $0x828] sm:$0xff]  ;;  %v8147_v42 = vld [vmem:[#allocation12 + $0x838] sm:$0xff] }
 0x686   : > { %4979 = vmatprep.subr.mxu0 %v8098_v48  ;;  %5050 = vmatprep.subr.mxu1 %v8099_v58  ;;  %v8148_v48 = vld [vmem:[#allocation12 + $0x820] sm:$0xff]  ;;  %v8149_v58 = vld [vmem:[#allocation12 + $0x830] sm:$0xff] }
 0x687   : > { %4980 = vmatpush2.msra.mxu0 %v8100_v62  ;;  %5051 = vmatpush2.msra.mxu1 %v8101_v59  ;;  %v8150_v62 = vld [vmem:[#allocation12 + $0x7c8] sm:$0xff]  ;;  %v8151_v59 = vld [vmem:[#allocation12 + $0x7d8] sm:$0xff] }
 0x688   : > { %4981 = vmatprep.subr.mxu0 %v8102_v16  ;;  %5052 = vmatprep.subr.mxu1 %v8103_v25  ;;  %v8152_v16 = vld [vmem:[#allocation12 + $0x7c0] sm:$0xff]  ;;  %v8153_v25 = vld [vmem:[#allocation12 + $0x7d0] sm:$0xff] }
 0x689   : > { %4982 = vmatpush2.msra.mxu0 %v8104_v40  ;;  %5053 = vmatpush2.msra.mxu1 %v8105_v1  ;;  %v8154_v40 = vld [vmem:[#allocation12 + $0x748] sm:$0xff]  ;;  %v8155_v1 = vld [vmem:[#allocation12 + $0x758] sm:$0xff] }
 0x68a   : > { %4983 = vmatprep.subr.mxu0 %v8106_v3  ;;  %5054 = vmatprep.subr.mxu1 %v8107_v6  ;;  %v8156_v3 = vld [vmem:[#allocation12 + $0x740] sm:$0xff]  ;;  %v8157_v6 = vld [vmem:[#allocation12 + $0x750] sm:$0xff] }
 0x68b   : > { %4984 = vmatpush2.msra.mxu0 %v8108_v27  ;;  %5055 = vmatpush2.msra.mxu1 %v8109_v29  ;;  %v8158_v27 = vld [vmem:[#allocation12 + $0x6c8] sm:$0xff]  ;;  %v8159_v29 = vld [vmem:[#allocation12 + $0x6d8] sm:$0xff] }
 0x68c   : > { %4985 = vmatprep.subr.mxu0 %v8110_v34  ;;  %5056 = vmatprep.subr.mxu1 %v8111_v63  ;;  %v8160_v34 = vld [vmem:[#allocation12 + $0x6c0] sm:$0xff]  ;;  %v8161_v63 = vld [vmem:[#allocation12 + $0x6d0] sm:$0xff] }
 0x68d   : > { %4986 = vmatpush2.msra.mxu0 %v8112_v44  ;;  %5057 = vmatpush2.msra.mxu1 %v8113_v4  ;;  %v8162_v44 = vld [vmem:[#allocation12 + $0x648] sm:$0xff]  ;;  %v8163_v4 = vld [vmem:[#allocation12 + $0x658] sm:$0xff] }
 0x68e   : > { %4987 = vmatprep.subr.mxu0 %v8114_v52  ;;  %5058 = vmatprep.subr.mxu1 %v8115_v23  ;;  %v8164_v52 = vld [vmem:[#allocation12 + $0x640] sm:$0xff]  ;;  %v8165_v23 = vld [vmem:[#allocation12 + $0x650] sm:$0xff] }
 0x68f   : > { %4988 = vmatpush2.msra.mxu0 %v8116_v20  ;;  %5059 = vmatpush2.msra.mxu1 %v8117_v19  ;;  %v8166_v20 = vld [vmem:[#allocation12 + $0x5c8] sm:$0xff]  ;;  %v8167_v19 = vld [vmem:[#allocation12 + $0x5d8] sm:$0xff] }
 0x690   : > { %4989 = vmatprep.subr.mxu0 %v8118_v35  ;;  %5060 = vmatprep.subr.mxu1 %v8119_v54  ;;  %v8168_v35 = vld [vmem:[#allocation12 + $0x5c0] sm:$0xff]  ;;  %v8169_v54 = vld [vmem:[#allocation12 + $0x5d0] sm:$0xff] }
 0x691   : > { %4990 = vmatpush2.msra.mxu0 %v8120_v31  ;;  %5061 = vmatpush2.msra.mxu1 %v8121_v60  ;;  %v8170_v31 = vld [vmem:[#allocation12 + $0x548] sm:$0xff]  ;;  %v8171_v60 = vld [vmem:[#allocation12 + $0x558] sm:$0xff] }
 0x692   : > { %4991 = vmatprep.subr.mxu0 %v8122_v17  ;;  %5062 = vmatprep.subr.mxu1 %v8123_v11  ;;  %v8172_v17 = vld [vmem:[#allocation12 + $0x540] sm:$0xff]  ;;  %v8173_v11 = vld [vmem:[#allocation12 + $0x550] sm:$0xff] }
 0x693   : > { %4992 = vmatpush2.msra.mxu0 %v8124_v47  ;;  %5063 = vmatpush2.msra.mxu1 %v8125_v37  ;;  %v8174_v47 = vld [vmem:[#allocation12 + $0x4c8] sm:$0xff]  ;;  %v8175_v37 = vld [vmem:[#allocation12 + $0x4d8] sm:$0xff] }
 0x694   : > { %4993 = vmatprep.subr.mxu0 %v8126_v8  ;;  %5064 = vmatprep.subr.mxu1 %v8127_v56  ;;  %v8176_v8 = vld [vmem:[#allocation12 + $0x4c0] sm:$0xff]  ;;  %v8177_v56 = vld [vmem:[#allocation12 + $0x4d0] sm:$0xff] }
 0x695   : > { %4994 = vmatpush2.msra.mxu0 %v8128_v0  ;;  %5065 = vmatpush2.msra.mxu1 %v8129_v9  ;;  %v9604_v0 = vpop.f32.mrf.mxu1  ;;  %v8178_v9 = vld [vmem:[#allocation12 + $0x448] sm:$0xff] }
 0x696   : > { %4995 = vmatprep.subr.mxu0 %v8130_v61  ;;  %5066 = vmatprep.subr.mxu1 %v8131_v38  ;;  %v8179_v61 = vld [vmem:[#allocation12 + $0x458] sm:$0xff]  ;;  %v9606_v38 = vpop.f32.mrf.mxu0 }
 0x697   : > { %4996 = vmatpush2.msra.mxu0 %v8132_v55  ;;  %5067 = vmatpush2.msra.mxu1 %v8133_v28  ;;  %v8180_v55 = vld [vmem:[#allocation12 + $0x440] sm:$0xff]  ;;  %v8181_v28 = vld [vmem:[#allocation12 + $0x450] sm:$0xff] }
 0x698   : > { %4997 = vmatprep.subr.mxu0 %v8134_v2  ;;  %5068 = vmatprep.subr.mxu1 %v8135_v32  ;;  %v8182_v2 = vld [vmem:[#allocation12 + $0x3c8] sm:$0xff]  ;;  %v8183_v32 = vld [vmem:[#allocation12 + $0x3d8] sm:$0xff] }
 0x699   : > { %4998 = vmatpush2.msra.mxu0 %v8136_v53  ;;  %5069 = vmatpush2.msra.mxu1 %v8137_v30  ;;  %v8184_v53 = vld [vmem:[#allocation12 + $0x3c0] sm:$0xff]  ;;  %v8185_v30 = vld [vmem:[#allocation12 + $0x3d0] sm:$0xff] }
 0x69a   : > { %4999 = vmatprep.subr.mxu0 %v8138_v18  ;;  %5070 = vmatprep.subr.mxu1 %v8139_v26  ;;  %v9608_v18 = vpop.f32.mrf.mxu1  ;;  %v8186_v26 = vld [vmem:[#allocation12 + $0x348] sm:$0xff] }
 0x69b   : > { %5000 = vmatpush2.msra.mxu0 %v8140_v41  ;;  %5071 = vmatpush2.msra.mxu1 %v8141_v50  ;;  %v8187_v41 = vld [vmem:[#allocation12 + $0x358] sm:$0xff]  ;;  %v9610_v50 = vpop.f32.mrf.mxu0 }
 0x69c   : > { %5001 = vmatprep.subr.mxu0 %v8142_v12  ;;  %5072 = vmatprep.subr.mxu1 %v8143_v14  ;;  %v8188_v12 = vld [vmem:[#allocation12 + $0x340] sm:$0xff]  ;;  %v8189_v14 = vld [vmem:[#allocation12 + $0x350] sm:$0xff] }
 0x69d   : > { %5002 = vmatpush2.msra.mxu0 %v8144_v5  ;;  %5073 = vmatpush2.msra.mxu1 %v8145_v57  ;;  %v9612_v5 = vpop.f32.mrf.mxu1  ;;  %v8190_v57 = vld [vmem:[#allocation12 + $0x2c8] sm:$0xff] }
 0x69e   : > { %5003 = vmatprep.subr.mxu0 %v8146_v13  ;;  %5074 = vmatprep.subr.mxu1 %v8147_v42  ;;  %v8191_v13 = vld [vmem:[#allocation12 + $0x2d8] sm:$0xff]  ;;  %v9614_v42 = vpop.f32.mrf.mxu0 }
 0x69f   : > { %5004 = vmatpush2.msra.mxu0 %v8148_v48  ;;  %5075 = vmatpush2.msra.mxu1 %v8149_v58  ;;  %v8192_v48 = vld [vmem:[#allocation12 + $0x2c0] sm:$0xff]  ;;  %v8193_v58 = vld [vmem:[#allocation12 + $0x2d0] sm:$0xff] }
 0x6a0   : > { %5006 = vmatmul.mubr.f32.vlgmr.msra.gmra.mxu0 %v9587_v36  ;;  %5077 = vmatmul.mubr.f32.vlgmr.msra.gmra.mxu1 %v9587_v36 }
 0x6a1   : > { %5083 = vmatprep.subr.mxu0 %v8150_v62  ;;  %5154 = vmatprep.subr.mxu1 %v8151_v59  ;;  %v8194_v62 = vld [vmem:[#allocation12 + $0x248] sm:$0xff]  ;;  %v8195_v59 = vld [vmem:[#allocation12 + $0x258] sm:$0xff] }
 0x6a2   : > { %5084 = vmatpush1.msra.mxu0 %v8152_v16  ;;  %5147 = vmatprep.mubr.f32.mxu0 %v9592_v43  ;;  %v8196_v16 = vld [vmem:[#allocation12 + $0x240] sm:$0xff] }
 0x6a3   : > { %5155 = vmatpush1.msra.mxu1 %v8153_v25  ;;  %5218 = vmatprep.mubr.f32.mxu1 %v9592_v43  ;;  %v8197_v25 = vld [vmem:[#allocation12 + $0x250] sm:$0xff] }
 0x6a4   : > { %5085 = vmatprep.subr.mxu0 %v8154_v40  ;;  %5156 = vmatprep.subr.mxu1 %v8155_v1  ;;  %v9616_v40 = vpop.f32.mrf.mxu1  ;;  %v8198_v1 = vld [vmem:[#allocation12 + $0x1c8] sm:$0xff] }
 0x6a5   : > { %5086 = vmatpush1.msra.mxu0 %v8156_v3  ;;  %5157 = vmatpush1.msra.mxu1 %v8157_v6  ;;  %v8199_v3 = vld [vmem:[#allocation12 + $0x1d8] sm:$0xff]  ;;  %v9618_v6 = vpop.f32.mrf.mxu0 }
 0x6a6   : > { %5087 = vmatprep.subr.mxu0 %v8158_v27  ;;  %5158 = vmatprep.subr.mxu1 %v8159_v29  ;;  %v8200_v27 = vld [vmem:[#allocation12 + $0x1c0] sm:$0xff]  ;;  %v8201_v29 = vld [vmem:[#allocation12 + $0x1d0] sm:$0xff] }
 0x6a7   : > { %5088 = vmatpush1.msra.mxu0 %v8160_v34  ;;  %5159 = vmatpush1.msra.mxu1 %v8161_v63  ;;  %v4521_v34 = vpop.f32.mrf.mxu1  ;;  %v8202_v63 = vld [vmem:[#allocation12 + $0x148] sm:$0xff] }
 0x6a8   : > { %5089 = vmatprep.subr.mxu0 %v8162_v44  ;;  %5160 = vmatprep.subr.mxu1 %v8163_v4  ;;  %v8203_v44 = vld [vmem:[#allocation12 + $0x158] sm:$0xff]  ;;  %v4450_v4 = vpop.f32.mrf.mxu0 }
 0x6a9   : > { %5090 = vmatpush1.msra.mxu0 %v8164_v52  ;;  %5161 = vmatpush1.msra.mxu1 %v8165_v23  ;;  %v8204_v52 = vld [vmem:[#allocation12 + $0x140] sm:$0xff]  ;;  %v8205_v23 = vld [vmem:[#allocation12 + $0x150] sm:$0xff] }
 0x6aa   : > { %5091 = vmatprep.subr.mxu0 %v8166_v20  ;;  %5162 = vmatprep.subr.mxu1 %v8167_v19  ;;  %v8206_v20 = vld [vmem:[#allocation12 + $0xc8] sm:$0xff]  ;;  %v8207_v19 = vld [vmem:[#allocation12 + $0xd8] sm:$0xff] }
 0x6ab   : > { %5092 = vmatpush1.msra.mxu0 %v8168_v35  ;;  %5163 = vmatpush1.msra.mxu1 %v8169_v54  ;;  %v4670_v35 = vadd.f32 %v4521_v34, %v9604_v0  ;;  %v8208_v54 = vld [vmem:[#allocation12 + $0xc0] sm:$0xff]  ;;  %v8238_v34 = vld [vmem:[#allocation12 + $0xcc8] sm:$0xff] }
 0x6ac   : > { %5093 = vmatprep.subr.mxu0 %v8170_v31  ;;  %5164 = vmatprep.subr.mxu1 %v8171_v60  ;;  %v8209_v31 = vld [vmem:[#allocation12 + $0xd0] sm:$0xff]  ;;  %v4668_v60 = vadd.f32 %v4450_v4, %v9606_v38 }
 0x6ad   : > { %5094 = vmatpush1.msra.mxu0 %v8172_v17  ;;  %5165 = vmatpush1.msra.mxu1 %v8173_v11  ;;  %v8210_v17 = vld [vmem:[#allocation12 + $0x48] sm:$0xff]  ;;  %v8211_v11 = vld [vmem:[#allocation12 + $0x58] sm:$0xff]  ;;  %v4678_v0 = vadd.f32 %v4670_v35, %v9384_v22  ;;  %v8241_v4 = vld [vmem:[#allocation12 + $0xcd0] sm:$0xff] }
 0x6ae   : > { %5095 = vmatprep.subr.mxu0 %v8174_v47  ;;  %5166 = vmatprep.subr.mxu1 %v8175_v37  ;;  %v8212_v47 = vld [vmem:[#allocation12 + $0x40] sm:$0xff]  ;;  %v8213_v37 = vld [vmem:[#allocation12 + $0x50] sm:$0xff]  ;;  %v4676_v38 = vadd.f32 %v4668_v60, %v9390_v46  ;;  %v8246_v35 = vld [vmem:[#allocation12 + $0xbc8] sm:$0xff] }
 0x6af   : > { %5096 = vmatpush1.msra.mxu0 %v8176_v8  ;;  %5167 = vmatpush1.msra.mxu1 %v8177_v56  ;;  %v8214_v8 = vld [vmem:[#allocation12 + $0xfc8] sm:$0xff]  ;;  %v8215_v56 = vld [vmem:[#allocation12 + $0xfd8] sm:$0xff]  ;;  %v8249_v60 = vld [vmem:[#allocation12 + $0xbd0] sm:$0xff] }
 0x6b0   : > { %5097 = vmatprep.subr.mxu0 %v8178_v9  ;;  %5168 = vmatprep.subr.mxu1 %v8179_v61  ;;  %v8216_v9 = vld [vmem:[#allocation12 + $0xfc0] sm:$0xff]  ;;  %v8217_v61 = vld [vmem:[#allocation12 + $0xfd0] sm:$0xff] }
 0x6b1   : > { %5098 = vmatpush1.msra.mxu0 %v8180_v55  ;;  %5169 = vmatpush1.msra.mxu1 %v8181_v28  ;;  %v8218_v55 = vld [vmem:[#allocation12 + $0xf48] sm:$0xff]  ;;  %v8219_v28 = vld [vmem:[#allocation12 + $0xf58] sm:$0xff] }
 0x6b2   : > { %5099 = vmatprep.subr.mxu0 %v8182_v2  ;;  %5170 = vmatprep.subr.mxu1 %v8183_v32  ;;  %v8220_v2 = vld [vmem:[#allocation12 + $0xf40] sm:$0xff]  ;;  %v8221_v32 = vld [vmem:[#allocation12 + $0xf50] sm:$0xff] }
 0x6b3   : > { %5100 = vmatpush1.msra.mxu0 %v8184_v53  ;;  %5171 = vmatpush1.msra.mxu1 %v8185_v30  ;;  %v8222_v53 = vld [vmem:[#allocation12 + $0xec8] sm:$0xff]  ;;  %v8223_v30 = vld [vmem:[#allocation12 + $0xed8] sm:$0xff] }
 0x6b4   : > { %5101 = vmatprep.subr.mxu0 %v8186_v26  ;;  %5172 = vmatprep.subr.mxu1 %v8187_v41  ;;  %v5949_v26 = vmul.f32 -1.442695, %v4678_v0  ;;  %v8224_v41 = vld [vmem:[#allocation12 + $0xec0] sm:$0xff] }
 0x6b5   : > { %5102 = vmatpush1.msra.mxu0 %v8188_v12  ;;  %5173 = vmatpush1.msra.mxu1 %v8189_v14  ;;  %v8225_v12 = vld [vmem:[#allocation12 + $0xed0] sm:$0xff]  ;;  %v5947_v14 = vmul.f32 -1.442695, %v4676_v38  ;;  %v8256_v0 = vld [vmem:[#allocation12 + $0xac0] sm:$0xff]  ;;  %v8258_v38 = vld [vmem:[#allocation12 + $0xa48] sm:$0xff] }
 0x6b6   : > { %5103 = vmatprep.subr.mxu0 %v8190_v57  ;;  %5174 = vmatprep.subr.mxu1 %v8191_v13  ;;  %v8226_v57 = vld [vmem:[#allocation12 + $0xe48] sm:$0xff]  ;;  %v8227_v13 = vld [vmem:[#allocation12 + $0xe58] sm:$0xff]  ;;  %6294 = vpow2.f32 %v5949_v26 }
 0x6b7   : > { %5104 = vmatpush1.msra.mxu0 %v8192_v48  ;;  %5175 = vmatpush1.msra.mxu1 %v8193_v58  ;;  %v8228_v48 = vld [vmem:[#allocation12 + $0xe40] sm:$0xff]  ;;  %v8229_v58 = vld [vmem:[#allocation12 + $0xe50] sm:$0xff]  ;;  %6296 = vpow2.f32 %v5947_v14  ;;  %v8262_v26 = vld [vmem:[#allocation12 + $0x9c8] sm:$0xff] }
 0x6b8   : > { %5105 = vmatprep.subr.mxu0 %v8194_v62  ;;  %5176 = vmatprep.subr.mxu1 %v8195_v59  ;;  %v8230_v62 = vld [vmem:[#allocation12 + $0xdc8] sm:$0xff]  ;;  %v8231_v59 = vld [vmem:[#allocation12 + $0xdd8] sm:$0xff]  ;;  %v8264_v14 = vld [vmem:[#allocation12 + $0x9c0] sm:$0xff] }
 0x6b9   : > { %5106 = vmatpush1.msra.mxu0 %v8196_v16  ;;  %5177 = vmatpush1.msra.mxu1 %v8197_v25  ;;  %v8232_v16 = vld [vmem:[#allocation12 + $0xdc0] sm:$0xff]  ;;  %v8233_v25 = vld [vmem:[#allocation12 + $0xdd0] sm:$0xff] }
 0x6ba   : > { %5107 = vmatprep.subr.mxu0 %v8198_v1  ;;  %5178 = vmatprep.subr.mxu1 %v8199_v3  ;;  %v8234_v1 = vld [vmem:[#allocation12 + $0xd48] sm:$0xff]  ;;  %v8235_v3 = vld [vmem:[#allocation12 + $0xd58] sm:$0xff] }
 0x6bb   : > { %5108 = vmatpush1.msra.mxu0 %v8200_v27  ;;  %5179 = vmatpush1.msra.mxu1 %v8201_v29  ;;  %v8236_v27 = vld [vmem:[#allocation12 + $0xd40] sm:$0xff]  ;;  %v8237_v29 = vld [vmem:[#allocation12 + $0xd50] sm:$0xff] }
 0x6bc   : > { %5109 = vmatprep.subr.mxu0 %v8202_v63  ;;  %5180 = vmatprep.subr.mxu1 %v8203_v44  ;;  %v8239_v63 = vld [vmem:[#allocation12 + $0xcd8] sm:$0xff]  ;;  %v8240_v44 = vld [vmem:[#allocation12 + $0xcc0] sm:$0xff] }
 0x6bd   : > { %5110 = vmatpush1.msra.mxu0 %v8204_v52  ;;  %5181 = vmatpush1.msra.mxu1 %v8205_v23  ;;  %v8242_v52 = vld [vmem:[#allocation12 + $0xc48] sm:$0xff]  ;;  %v8243_v23 = vld [vmem:[#allocation12 + $0xc58] sm:$0xff] }
 0x6be   : > { %5111 = vmatprep.subr.mxu0 %v8206_v20  ;;  %5182 = vmatprep.subr.mxu1 %v8207_v19  ;;  %v8244_v20 = vld [vmem:[#allocation12 + $0xc40] sm:$0xff]  ;;  %v8245_v19 = vld [vmem:[#allocation12 + $0xc50] sm:$0xff] }
 0x6bf   : > { %5112 = vmatpush1.msra.mxu0 %v8208_v54  ;;  %5183 = vmatpush1.msra.mxu1 %v8209_v31  ;;  %v8247_v54 = vld [vmem:[#allocation12 + $0xbd8] sm:$0xff]  ;;  %v8248_v31 = vld [vmem:[#allocation12 + $0xbc0] sm:$0xff] }
 0x6c0   : > { %5113 = vmatprep.subr.mxu0 %v8210_v17  ;;  %5184 = vmatprep.subr.mxu1 %v8211_v11  ;;  %v8250_v17 = vld [vmem:[#allocation12 + $0xb48] sm:$0xff]  ;;  %v8251_v11 = vld [vmem:[#allocation12 + $0xb58] sm:$0xff] }
 0x6c1   : > { %5114 = vmatpush1.msra.mxu0 %v8212_v47  ;;  %5185 = vmatpush1.msra.mxu1 %v8213_v37  ;;  %v8252_v47 = vld [vmem:[#allocation12 + $0xb40] sm:$0xff]  ;;  %v8253_v37 = vld [vmem:[#allocation12 + $0xb50] sm:$0xff] }
 0x6c2   : > { %5115 = vmatprep.subr.mxu0 %v8214_v8  ;;  %5186 = vmatprep.subr.mxu1 %v8215_v56  ;;  %v8254_v8 = vld [vmem:[#allocation12 + $0xac8] sm:$0xff]  ;;  %v8255_v56 = vld [vmem:[#allocation12 + $0xad8] sm:$0xff] }
 0x6c3   : > { %5116 = vmatpush2.msra.mxu0 %v8216_v9  ;;  %5187 = vmatpush2.msra.mxu1 %v8217_v61  ;;  %v8257_v9 = vld [vmem:[#allocation12 + $0xad0] sm:$0xff]  ;;  %v6295_v61 = vpop.eup %6294 }
 0x6c4   : > { %5117 = vmatprep.subr.mxu0 %v8218_v55  ;;  %5188 = vmatprep.subr.mxu1 %v8219_v28  ;;  %v8259_v55 = vld [vmem:[#allocation12 + $0xa58] sm:$0xff]  ;;  %v6297_v28 = vpop.eup %6296 }
 0x6c5   : > { %5118 = vmatpush2.msra.mxu0 %v8220_v2  ;;  %5189 = vmatpush2.msra.mxu1 %v8221_v32  ;;  %v8260_v2 = vld [vmem:[#allocation12 + $0xa40] sm:$0xff]  ;;  %v8261_v32 = vld [vmem:[#allocation12 + $0xa50] sm:$0xff] }
 0x6c6   : > { %5119 = vmatprep.subr.mxu0 %v8222_v53  ;;  %5190 = vmatprep.subr.mxu1 %v8223_v30  ;;  %v4452_v53 = vpop.f32.mrf.mxu0  ;;  %v4523_v30 = vpop.f32.mrf.mxu1 }
 0x6c7   : > { %5120 = vmatpush2.msra.mxu0 %v8224_v41  ;;  %5191 = vmatpush2.msra.mxu1 %v8225_v12  ;;  %v8263_v41 = vld [vmem:[#allocation12 + $0x9d8] sm:$0xff]  ;;  %v4704_v12 = vadd.f32 1.0, %v6295_v61  ;;  %v8290_v61 = vld [vmem:[#allocation12 + $0x668] sm:$0xff] }
 0x6c8   : > { %5121 = vmatprep.subr.mxu0 %v8226_v57  ;;  %5192 = vmatprep.subr.mxu1 %v8227_v13  ;;  %v8265_v57 = vld [vmem:[#allocation12 + $0x9d0] sm:$0xff]  ;;  %v4702_v13 = vadd.f32 1.0, %v6297_v28 }
 0x6c9   : > { %5122 = vmatpush2.msra.mxu0 %v8228_v48  ;;  %5193 = vmatpush2.msra.mxu1 %v8229_v58  ;;  %v8266_v48 = vld [vmem:[#allocation12 + $0x948] sm:$0xff]  ;;  %v8267_v58 = vld [vmem:[#allocation12 + $0x958] sm:$0xff]  ;;  %6298 = vrcp.f32 %v4704_v12  ;;  %v8293_v28 = vld [vmem:[#allocation12 + $0x670] sm:$0xff] }
 0x6ca   : > { %5123 = vmatprep.subr.mxu0 %v8230_v62  ;;  %5194 = vmatprep.subr.mxu1 %v8231_v59  ;;  %v4669_v59 = vadd.f32 %v4452_v53, %v9610_v50  ;;  %6300 = vrcp.f32 %v4702_v13  ;;  %v8274_v50 = vld [vmem:[#allocation12 + $0x848] sm:$0xff]  ;;  %v8297_v12 = vld [vmem:[#allocation12 + $0x5f0] sm:$0xff]  ;;  %v8299_v13 = vld [vmem:[#allocation12 + $0x578] sm:$0xff] }
 0x6cb   : > { %5124 = vmatpush2.msra.mxu0 %v8232_v16  ;;  %5195 = vmatpush2.msra.mxu1 %v8233_v25  ;;  %v8268_v16 = vld [vmem:[#allocation12 + $0x940] sm:$0xff]  ;;  %v8269_v25 = vld [vmem:[#allocation12 + $0x950] sm:$0xff]  ;;  %v8294_v53 = vld [vmem:[#allocation12 + $0x5e8] sm:$0xff] }
 0x6cc   : > { %5125 = vmatprep.subr.mxu0 %v8234_v1  ;;  %5196 = vmatprep.subr.mxu1 %v8235_v3  ;;  %v4671_v3 = vadd.f32 %v4523_v30, %v9608_v18  ;;  %v8277_v18 = vld [vmem:[#allocation12 + $0x850] sm:$0xff]  ;;  %v8295_v30 = vld [vmem:[#allocation12 + $0x5f8] sm:$0xff] }
 0x6cd   : > { %5126 = vmatpush2.msra.mxu0 %v8236_v27  ;;  %5197 = vmatpush2.msra.mxu1 %v8237_v29  ;;  %v8270_v27 = vld [vmem:[#allocation12 + $0x8c8] sm:$0xff]  ;;  %v8271_v29 = vld [vmem:[#allocation12 + $0x8d8] sm:$0xff] }
 0x6ce   : > { %5127 = vmatprep.subr.mxu0 %v8238_v34  ;;  %5198 = vmatprep.subr.mxu1 %v8239_v63  ;;  %v8272_v34 = vld [vmem:[#allocation12 + $0x8c0] sm:$0xff]  ;;  %v8273_v63 = vld [vmem:[#allocation12 + $0x8d0] sm:$0xff] }
 0x6cf   : > { %5128 = vmatpush2.msra.mxu0 %v8240_v44  ;;  %5199 = vmatpush2.msra.mxu1 %v8241_v4  ;;  %v8275_v4 = vld [vmem:[#allocation12 + $0x858] sm:$0xff] }
 0x6d0   : > { %5129 = vmatprep.subr.mxu0 %v8242_v52  ;;  %5200 = vmatprep.subr.mxu1 %v8243_v23  ;;  %v8276_v52 = vld [vmem:[#allocation12 + $0x840] sm:$0xff]  ;;  %v4679_v23 = vadd.f32 %v4671_v3, %v9410_v45 }
 0x6d1   : > { %5130 = vmatpush2.msra.mxu0 %v8244_v20  ;;  %5201 = vmatpush2.msra.mxu1 %v8245_v19  ;;  %v8278_v20 = vld [vmem:[#allocation12 + $0x7e8] sm:$0xff]  ;;  %v8279_v19 = vld [vmem:[#allocation12 + $0x7f8] sm:$0xff] }
 0x6d2   : > { %5131 = vmatprep.subr.mxu0 %v8246_v35  ;;  %5202 = vmatprep.subr.mxu1 %v8247_v54  ;;  %v8280_v35 = vld [vmem:[#allocation12 + $0x7e0] sm:$0xff] }
 0x6d3   : > { %5132 = vmatpush2.msra.mxu0 %v8248_v31  ;;  %5203 = vmatpush2.msra.mxu1 %v8249_v60  ;;  %v8281_v31 = vld [vmem:[#allocation12 + $0x7f0] sm:$0xff]  ;;  %v5950_v60 = vmul.f32 -1.442695, %v4679_v23  ;;  %v8312_v23 = vld [vmem:[#allocation12 + $0x3e0] sm:$0xff] }
 0x6d4   : > { %5133 = vmatprep.subr.mxu0 %v8250_v17  ;;  %5204 = vmatprep.subr.mxu1 %v8251_v11  ;;  %v8282_v17 = vld [vmem:[#allocation12 + $0x768] sm:$0xff]  ;;  %v8283_v11 = vld [vmem:[#allocation12 + $0x778] sm:$0xff] }
 0x6d5   : > { %5134 = vmatpush2.msra.mxu0 %v8252_v47  ;;  %5205 = vmatpush2.msra.mxu1 %v8253_v37  ;;  %v8284_v47 = vld [vmem:[#allocation12 + $0x760] sm:$0xff]  ;;  %v8285_v37 = vld [vmem:[#allocation12 + $0x770] sm:$0xff] }
 0x6d6   : > { %5135 = vmatprep.subr.mxu0 %v8254_v8  ;;  %5206 = vmatprep.subr.mxu1 %v8255_v56  ;;  %v8286_v8 = vld [vmem:[#allocation12 + $0x6e8] sm:$0xff]  ;;  %v8287_v56 = vld [vmem:[#allocation12 + $0x6f8] sm:$0xff] }
 0x6d7   : > { %5136 = vmatpush2.msra.mxu0 %v8256_v0  ;;  %5207 = vmatpush2.msra.mxu1 %v8257_v9  ;;  %v8288_v0 = vld [vmem:[#allocation12 + $0x6e0] sm:$0xff]  ;;  %v8289_v9 = vld [vmem:[#allocation12 + $0x6f0] sm:$0xff] }
 0x6d8   : > { %5137 = vmatprep.subr.mxu0 %v8258_v38  ;;  %5208 = vmatprep.subr.mxu1 %v8259_v55  ;;  %v8291_v38 = vld [vmem:[#allocation12 + $0x678] sm:$0xff]  ;;  %v8292_v55 = vld [vmem:[#allocation12 + $0x660] sm:$0xff] }
 0x6d9   : > { %5138 = vmatpush2.msra.mxu0 %v8260_v2  ;;  %5209 = vmatpush2.msra.mxu1 %v8261_v32  ;;  %v6299_v2 = vpop.eup %6298 }
 0x6da   : > { %5139 = vmatprep.subr.mxu0 %v8262_v26  ;;  %5210 = vmatprep.subr.mxu1 %v8263_v41  ;;  %v6301_v26 = vpop.eup %6300  ;;  %v8296_v41 = vld [vmem:[#allocation12 + $0x5e0] sm:$0xff] }
 0x6db   : > { %5140 = vmatpush2.msra.mxu0 %v8264_v14  ;;  %5211 = vmatpush2.msra.mxu1 %v8265_v57  ;;  %v8298_v57 = vld [vmem:[#allocation12 + $0x568] sm:$0xff] }
 0x6dc   : > { %5141 = vmatprep.subr.mxu0 %v8266_v48  ;;  %5212 = vmatprep.subr.mxu1 %v8267_v58  ;;  %v4663_v62 = vpop.f32.mrf.mxu1  ;;  %v9634_v32 = vpop.f32.mrf.mxu0  ;;  %v4722_v48 = vmul.f32 %v6299_v2, %v9540_v33  ;;  %v8307_v33 = vld [vmem:[#allocation12 + $0x478] sm:$0xff]  ;;  %v8326_v2 = vld [vmem:[#allocation12 + $0x1e8] sm:$0xff] }
 0x6dd   : > { %5142 = vmatpush2.msra.mxu0 %v8268_v16  ;;  %5213 = vmatpush2.msra.mxu1 %v8269_v25  ;;  %v4674_v1 = vadd.f32 %v4663_v62, %v9612_v5  ;;  %v4677_v5 = vadd.f32 %v4669_v59, %v9403_v15  ;;  %v8300_v62 = vld [vmem:[#allocation12 + $0x560] sm:$0xff]  ;;  %v8301_v59 = vld [vmem:[#allocation12 + $0x570] sm:$0xff]  ;;  %v8302_v25 = vld [vmem:[#allocation12 + $0x4e8] sm:$0xff] }
 0x6de   : > { %5143 = vmatprep.subr.mxu0 %v8270_v27  ;;  %5214 = vmatprep.subr.mxu1 %v8271_v29  ;;  %v4594_v16 = vpop.f32.mrf.mxu0  ;;  %v4665_v27 = vpop.f32.mrf.mxu1  ;;  %v8304_v29 = vld [vmem:[#allocation12 + $0x4e0] sm:$0xff] }
 0x6df   : > { %5144 = vmatpush2.msra.mxu0 %v8272_v34  ;;  %5215 = vmatpush2.msra.mxu1 %v8273_v63  ;;  %v4682_v44 = vadd.f32 %v4674_v1, %v9398_v51  ;;  %v5948_v54 = vmul.f32 -1.442695, %v4677_v5  ;;  %v8303_v1 = vld [vmem:[#allocation12 + $0x4f8] sm:$0xff]  ;;  %v8305_v34 = vld [vmem:[#allocation12 + $0x4f0] sm:$0xff]  ;;  %v8306_v63 = vld [vmem:[#allocation12 + $0x468] sm:$0xff]  ;;  %v4675_v5 = vadd.f32 %v4665_v27, %v9616_v40 }
 0x6e0   : > { %5145 = vmatprep.subr.mxu0 %v8274_v50  ;;  %5216 = vmatprep.subr.mxu1 %v8275_v4  ;;  %v8308_v50 = vld [vmem:[#allocation12 + $0x460] sm:$0xff]  ;;  %v8309_v4 = vld [vmem:[#allocation12 + $0x470] sm:$0xff]  ;;  %v8342_v27 = vld [vmem:[#allocation12 + $0xfe8] sm:$0xff] }
 0x6e1   : > { %5146 = vmatpush2.msra.mxu0 %v8276_v52  ;;  %5217 = vmatpush2.msra.mxu1 %v8277_v18  ;;  %6302 = vtanh.f32 %v4682_v44  ;;  %v4673_v44 = vadd.f32 %v4594_v16, %v9618_v6  ;;  %v8310_v52 = vld [vmem:[#allocation12 + $0x3e8] sm:$0xff]  ;;  %v8311_v18 = vld [vmem:[#allocation12 + $0x3f8] sm:$0xff]  ;;  %v4683_v40 = vadd.f32 %v4675_v5, %v9433_v24 }
 0x6e2   : > { %5148 = vmatmul.mubr.f32.vlgmr.msra.gmra.mxu0 %v9587_v36  ;;  %5219 = vmatmul.mubr.f32.vlgmr.msra.gmra.mxu1 %v9587_v36  ;;  %6304 = vpow2.f32 %v5948_v54  ;;  %v8315_v54 = vld [vmem:[#allocation12 + $0x378] sm:$0xff]  ;;  %v8350_v5 = vld [vmem:[#allocation12 + $0xee8] sm:$0xff] }
 0x6e3   : > { %5225 = vmatprep.subr.mxu0 %v8278_v20  ;;  %5296 = vmatprep.subr.mxu1 %v8279_v19  ;;  %6306 = vpow2.f32 %v5950_v60  ;;  %v8313_v20 = vld [vmem:[#allocation12 + $0x3f0] sm:$0xff]  ;;  %v8316_v60 = vld [vmem:[#allocation12 + $0x360] sm:$0xff]  ;;  %v8339_v16 = vld [vmem:[#allocation12 + $0x78] sm:$0xff] }
 0x6e4   : > { %5226 = vmatpush1.msra.mxu0 %v8280_v35  ;;  %5289 = vmatprep.mubr.f32.mxu0 %v9592_v43  ;;  %v8314_v35 = vld [vmem:[#allocation12 + $0x368] sm:$0xff]  ;;  %6308 = vtanh.f32 %v4683_v40 }
 0x6e5   : > { %5297 = vmatpush1.msra.mxu1 %v8281_v31  ;;  %5360 = vmatprep.mubr.f32.mxu1 %v9592_v43  ;;  %v4681_v31 = vadd.f32 %v4673_v44, %v9427_v39  ;;  %v8347_v44 = vld [vmem:[#allocation12 + $0xf78] sm:$0xff] }
 0x6e6   : > { %5227 = vmatprep.subr.mxu0 %v8282_v17  ;;  %5298 = vmatprep.subr.mxu1 %v8283_v11  ;;  %v8317_v17 = vld [vmem:[#allocation12 + $0x370] sm:$0xff]  ;;  %v8318_v11 = vld [vmem:[#allocation12 + $0x2e8] sm:$0xff] }
 0x6e7   : > { %5228 = vmatpush1.msra.mxu0 %v8284_v47  ;;  %5299 = vmatpush1.msra.mxu1 %v8285_v37  ;;  %v8319_v47 = vld [vmem:[#allocation12 + $0x2f8] sm:$0xff] }
 0x6e8   : > { %5229 = vmatprep.subr.mxu0 %v8286_v8  ;;  %5300 = vmatprep.subr.mxu1 %v8287_v56  ;;  %v8320_v8 = vld [vmem:[#allocation12 + $0x2e0] sm:$0xff]  ;;  %v8321_v56 = vld [vmem:[#allocation12 + $0x2f0] sm:$0xff] }
 0x6e9   : > { %5230 = vmatpush1.msra.mxu0 %v8288_v0  ;;  %5301 = vmatpush1.msra.mxu1 %v8289_v9  ;;  %v8322_v9 = vld [vmem:[#allocation12 + $0x268] sm:$0xff] }
 0x6ea   : > { %5231 = vmatprep.subr.mxu0 %v8290_v61  ;;  %5302 = vmatprep.subr.mxu1 %v8291_v38  ;;  %v8323_v61 = vld [vmem:[#allocation12 + $0x278] sm:$0xff]  ;;  %v5952_v38 = vmul.f32 -1.442695, %v4681_v31  ;;  %v8356_v31 = vld [vmem:[#allocation12 + $0xe60] sm:$0xff] }
 0x6eb   : > { %5232 = vmatpush1.msra.mxu0 %v8292_v55  ;;  %5303 = vmatpush1.msra.mxu1 %v8293_v28  ;;  %v8324_v55 = vld [vmem:[#allocation12 + $0x260] sm:$0xff]  ;;  %v8325_v28 = vld [vmem:[#allocation12 + $0x270] sm:$0xff] }
 0x6ec   : > { %5233 = vmatprep.subr.mxu0 %v8294_v53  ;;  %5304 = vmatprep.subr.mxu1 %v8295_v30  ;;  %v8327_v53 = vld [vmem:[#allocation12 + $0x1f8] sm:$0xff]  ;;  %v8328_v30 = vld [vmem:[#allocation12 + $0x1e0] sm:$0xff] }
 0x6ed   : > { %5234 = vmatpush1.msra.mxu0 %v8296_v41  ;;  %5305 = vmatpush1.msra.mxu1 %v8297_v12  ;;  %v8330_v41 = vld [vmem:[#allocation12 + $0x168] sm:$0xff]  ;;  %v8331_v12 = vld [vmem:[#allocation12 + $0x178] sm:$0xff] }
 0x6ee   : > { %v6303_v14 = vpop.eup %6302  ;;  %5235 = vmatprep.subr.mxu0 %v8298_v57  ;;  %5306 = vmatprep.subr.mxu1 %v8299_v13  ;;  %v8333_v57 = vld [vmem:[#allocation12 + $0x170] sm:$0xff]  ;;  %v8334_v13 = vld [vmem:[#allocation12 + $0xe8] sm:$0xff] }
 0x6ef   : > { %v4724_v58 = vmul.f32 %v6303_v14, %v6301_v26  ;;  %5236 = vmatpush1.msra.mxu0 %v8300_v62  ;;  %5307 = vmatpush1.msra.mxu1 %v8301_v59  ;;  %v6305_v19 = vpop.eup %6304  ;;  %v8329_v26 = vld [vmem:[#allocation12 + $0x1f0] sm:$0xff]  ;;  %v8332_v14 = vld [vmem:[#allocation12 + $0x160] sm:$0xff]  ;;  %v8338_v59 = vld [vmem:[#allocation12 + $0x68] sm:$0xff] }
 0x6f0   : > { %5237 = vmatprep.subr.mxu0 %v8302_v25  ;;  %5308 = vmatprep.subr.mxu1 %v8303_v1  ;;  %v6307_v6 = vpop.eup %6306  ;;  %v4703_v37 = vadd.f32 1.0, %v6305_v19  ;;  %v8337_v62 = vld [vmem:[#allocation12 + $0xf0] sm:$0xff]  ;;  %v8340_v25 = vld [vmem:[#allocation12 + $0x60] sm:$0xff] }
 0x6f1   : > { %v9637_v3 = vadd.f32 %v4724_v58, %v4722_v48  ;;  %5238 = vmatpush1.msra.mxu0 %v8304_v29  ;;  %5309 = vmatpush1.msra.mxu1 %v8305_v34  ;;  %v4705_v0 = vadd.f32 1.0, %v6307_v6  ;;  %v8335_v48 = vld [vmem:[#allocation12 + $0xf8] sm:$0xff]  ;;  %v8336_v58 = vld [vmem:[#allocation12 + $0xe0] sm:$0xff]  ;;  %v8341_v1 = vld [vmem:[#allocation12 + $0x70] sm:$0xff] }
 0x6f2   : > { %5239 = vmatprep.subr.mxu0 %v8306_v63  ;;  %5310 = vmatprep.subr.mxu1 %v8307_v33  ;;  %6310 = vrcp.f32 %v4703_v37  ;;  %v8343_v29 = vld [vmem:[#allocation12 + $0xff8] sm:$0xff]  ;;  %v8344_v34 = vld [vmem:[#allocation12 + $0xfe0] sm:$0xff]  ;;  %v8345_v63 = vld [vmem:[#allocation12 + $0xff0] sm:$0xff] }
 0x6f3   : > { %5240 = vmatpush1.msra.mxu0 %v8308_v50  ;;  %5311 = vmatpush1.msra.mxu1 %v8309_v4  ;;  %6312 = vrcp.f32 %v4705_v0  ;;  %v8346_v33 = vld [vmem:[#allocation12 + $0xf68] sm:$0xff]  ;;  %v8348_v50 = vld [vmem:[#allocation12 + $0xf60] sm:$0xff]  ;;  %v8349_v4 = vld [vmem:[#allocation12 + $0xf70] sm:$0xff] }
 0x6f4   : > { %5241 = vmatprep.subr.mxu0 %v8310_v52  ;;  %5312 = vmatprep.subr.mxu1 %v8311_v18  ;;  %6314 = vpow2.f32 %v5952_v38  ;;  %v8351_v52 = vld [vmem:[#allocation12 + $0xef8] sm:$0xff]  ;;  %v6309_v18 = vpop.eup %6308  ;;  %v8360_v37 = vld [vmem:[#allocation12 + $0xde0] sm:$0xff]  ;;  %v8362_v0 = vld [vmem:[#allocation12 + $0xd68] sm:$0xff] }
 0x6f5   : > { %5242 = vmatpush1.msra.mxu0 %v8312_v23  ;;  %5313 = vmatpush1.msra.mxu1 %v8313_v20  ;;  %v8352_v23 = vld [vmem:[#allocation12 + $0xee0] sm:$0xff]  ;;  %v8353_v20 = vld [vmem:[#allocation12 + $0xef0] sm:$0xff] }
 0x6f6   : > { %5243 = vmatprep.subr.mxu0 %v8314_v35  ;;  %5314 = vmatprep.subr.mxu1 %v8315_v54  ;;  %v8354_v35 = vld [vmem:[#allocation12 + $0xe68] sm:$0xff]  ;;  %v8355_v54 = vld [vmem:[#allocation12 + $0xe78] sm:$0xff]  ;;  %v8364_v38 = vld [vmem:[#allocation12 + $0xd60] sm:$0xff] }
 0x6f7   : > { %5244 = vmatpush1.msra.mxu0 %v8316_v60  ;;  %5315 = vmatpush1.msra.mxu1 %v8317_v17  ;;  %v8357_v60 = vld [vmem:[#allocation12 + $0xe70] sm:$0xff] }
 0x6f8   : > { %5245 = vmatprep.subr.mxu0 %v8318_v11  ;;  %5316 = vmatprep.subr.mxu1 %v8319_v47  ;;  %v8358_v11 = vld [vmem:[#allocation12 + $0xde8] sm:$0xff]  ;;  %v8359_v47 = vld [vmem:[#allocation12 + $0xdf8] sm:$0xff] }
 0x6f9   : > { %5246 = vmatpush1.msra.mxu0 %v8320_v8  ;;  %5317 = vmatpush1.msra.mxu1 %v8321_v56  ;;  %v8361_v8 = vld [vmem:[#allocation12 + $0xdf0] sm:$0xff] }
 0x6fa   : > { %5247 = vmatprep.subr.mxu0 %v8322_v9  ;;  %5318 = vmatprep.subr.mxu1 %v8323_v61  ;;  %v8363_v9 = vld [vmem:[#allocation12 + $0xd78] sm:$0xff] }
 0x6fb   : > { %5248 = vmatpush1.msra.mxu0 %v8324_v55  ;;  %5319 = vmatpush1.msra.mxu1 %v8325_v28  ;;  %v8365_v55 = vld [vmem:[#allocation12 + $0xd70] sm:$0xff] }
 0x6fc   : > { %5249 = vmatprep.subr.mxu0 %v8326_v2  ;;  %5320 = vmatprep.subr.mxu1 %v8327_v53  ;;  %v8366_v2 = vld [vmem:[#allocation12 + $0xce8] sm:$0xff]  ;;  %v8367_v53 = vld [vmem:[#allocation12 + $0xcf8] sm:$0xff] }
 0x6fd   : > { %5250 = vmatpush1.msra.mxu0 %v8328_v30  ;;  %5321 = vmatpush1.msra.mxu1 %v8329_v26  ;;  %v8368_v30 = vld [vmem:[#allocation12 + $0xce0] sm:$0xff]  ;;  %v8369_v26 = vld [vmem:[#allocation12 + $0xcf0] sm:$0xff] }
 0x6fe   : > { %5251 = vmatprep.subr.mxu0 %v8330_v41  ;;  %5322 = vmatprep.subr.mxu1 %v8331_v12  ;;  %v8371_v41 = vld [vmem:[#allocation12 + $0xc78] sm:$0xff]  ;;  %v8372_v12 = vld [vmem:[#allocation12 + $0xc60] sm:$0xff] }
 0x6ff   : > { %5252 = vmatpush1.msra.mxu0 %v8332_v14  ;;  %5323 = vmatpush1.msra.mxu1 %v8333_v57  ;;  %v6311_v19 = vpop.eup %6310  ;;  %v8373_v14 = vld [vmem:[#allocation12 + $0xc70] sm:$0xff]  ;;  %v8374_v57 = vld [vmem:[#allocation12 + $0xbe8] sm:$0xff] }
 0x700   : > { %5253 = vmatprep.subr.mxu0 %v8334_v13  ;;  %5324 = vmatprep.subr.mxu1 %v8335_v48  ;;  %v6313_v6 = vpop.eup %6312  ;;  %v4725_v40 = vmul.f32 %v6311_v19, %v6309_v18  ;;  %v8375_v13 = vld [vmem:[#allocation12 + $0xbf8] sm:$0xff]  ;;  %v8376_v48 = vld [vmem:[#allocation12 + $0xbe0] sm:$0xff]  ;;  %v8393_v18 = vld [vmem:[#allocation12 + $0x9f0] sm:$0xff] }
 0x701   : > { %5254 = vmatpush1.msra.mxu0 %v8336_v58  ;;  %5325 = vmatpush1.msra.mxu1 %v8337_v62  ;;  %v6315_v17 = vpop.eup %6314  ;;  %v4723_v56 = vmul.f32 %v6313_v6, %v9547_v10  ;;  %v8370_v10 = vld [vmem:[#allocation12 + $0xc68] sm:$0xff]  ;;  %v8377_v58 = vld [vmem:[#allocation12 + $0xbf0] sm:$0xff] }
 0x702   : > { %5255 = vmatprep.subr.mxu0 %v8338_v59  ;;  %5326 = vmatprep.subr.mxu1 %v8339_v16  ;;  %v4707_v61 = vadd.f32 1.0, %v6315_v17  ;;  %v8378_v62 = vld [vmem:[#allocation12 + $0xb68] sm:$0xff]  ;;  %v8379_v59 = vld [vmem:[#allocation12 + $0xb78] sm:$0xff]  ;;  %v8380_v16 = vld [vmem:[#allocation12 + $0xb60] sm:$0xff] }
 0x703   : > { %5256 = vmatpush1.msra.mxu0 %v8340_v25  ;;  %5327 = vmatpush1.msra.mxu1 %v8341_v1  ;;  %v9644_v28 = vadd.f32 %v4725_v40, %v4723_v56  ;;  %v8381_v25 = vld [vmem:[#allocation12 + $0xb70] sm:$0xff]  ;;  %v8382_v1 = vld [vmem:[#allocation12 + $0xae8] sm:$0xff]  ;;  %v8399_v17 = vld [vmem:[#allocation12 + $0x8f8] sm:$0xff] }
 0x704   : > { %5257 = vmatprep.subr.mxu0 %v8342_v27  ;;  %5328 = vmatprep.subr.mxu1 %v8343_v29  ;;  %6316 = vrcp.f32 %v4707_v61  ;;  %v8383_v27 = vld [vmem:[#allocation12 + $0xaf8] sm:$0xff]  ;;  %v8384_v29 = vld [vmem:[#allocation12 + $0xae0] sm:$0xff]  ;;  %v8397_v6 = vld [vmem:[#allocation12 + $0x970] sm:$0xff] }
 0x705   : > { %5258 = vmatpush2.msra.mxu0 %v8344_v34  ;;  %5329 = vmatpush2.msra.mxu1 %v8345_v63  ;;  %6318 = vtanh.f32 %v9644_v28  ;;  %v8385_v34 = vld [vmem:[#allocation12 + $0xaf0] sm:$0xff]  ;;  %v8386_v63 = vld [vmem:[#allocation12 + $0xa68] sm:$0xff] }
 0x706   : > { %5259 = vmatprep.subr.mxu0 %v8346_v33  ;;  %5330 = vmatprep.subr.mxu1 %v8347_v44  ;;  %v8387_v33 = vld [vmem:[#allocation12 + $0xa78] sm:$0xff]  ;;  %v8388_v44 = vld [vmem:[#allocation12 + $0xa60] sm:$0xff]  ;;  %v8402_v56 = vld [vmem:[#allocation12 + $0x868] sm:$0xff] }
 0x707   : > { %5260 = vmatpush2.msra.mxu0 %v8348_v50  ;;  %5331 = vmatpush2.msra.mxu1 %v8349_v4  ;;  %v8389_v50 = vld [vmem:[#allocation12 + $0xa70] sm:$0xff]  ;;  %v8390_v4 = vld [vmem:[#allocation12 + $0x9e8] sm:$0xff] }
 0x708   : > { %5261 = vmatprep.subr.mxu0 %v8350_v5  ;;  %5332 = vmatprep.subr.mxu1 %v8351_v52  ;;  %v8391_v5 = vld [vmem:[#allocation12 + $0x9f8] sm:$0xff]  ;;  %v8392_v52 = vld [vmem:[#allocation12 + $0x9e0] sm:$0xff]  ;;  %v8405_v61 = vld [vmem:[#allocation12 + $0x870] sm:$0xff] }
 0x709   : > { %5262 = vmatpush2.msra.mxu0 %v8352_v23  ;;  %5333 = vmatpush2.msra.mxu1 %v8353_v20  ;;  %v8394_v23 = vld [vmem:[#allocation12 + $0x968] sm:$0xff]  ;;  %v8395_v20 = vld [vmem:[#allocation12 + $0x978] sm:$0xff] }
 0x70a   : > { %5263 = vmatprep.subr.mxu0 %v8354_v35  ;;  %5334 = vmatprep.subr.mxu1 %v8355_v54  ;;  %v8396_v54 = vld [vmem:[#allocation12 + $0x960] sm:$0xff] }
 0x70b   : > { %5264 = vmatpush2.msra.mxu0 %v8356_v31  ;;  %5335 = vmatpush2.msra.mxu1 %v8357_v60  ;;  %v8398_v60 = vld [vmem:[#allocation12 + $0x8e8] sm:$0xff] }
 0x70c   : > { %5265 = vmatprep.subr.mxu0 %v8358_v11  ;;  %5336 = vmatprep.subr.mxu1 %v8359_v47 }
 0x70d   : > { %5266 = vmatpush2.msra.mxu0 %v8360_v37  ;;  %5337 = vmatpush2.msra.mxu1 %v8361_v8  ;;  %v8400_v37 = vld [vmem:[#allocation12 + $0x8e0] sm:$0xff]  ;;  %v8401_v8 = vld [vmem:[#allocation12 + $0x8f0] sm:$0xff] }
 0x70e   : > { %5267 = vmatprep.subr.mxu0 %v8362_v0  ;;  %5338 = vmatprep.subr.mxu1 %v8363_v9  ;;  %v8403_v0 = vld [vmem:[#allocation12 + $0x878] sm:$0xff]  ;;  %v8404_v9 = vld [vmem:[#allocation12 + $0x860] sm:$0xff] }
 0x70f   : > { %5268 = vmatpush2.msra.mxu0 %v8364_v38  ;;  %5339 = vmatpush2.msra.mxu1 %v8365_v55  ;;  %v8406_v55 = vld [vmem:[#allocation13 + $0x3c8] sm:$0xff] }
 0x710   : > { %5269 = vmatprep.subr.mxu0 %v8366_v2  ;;  %5340 = vmatprep.subr.mxu1 %v8367_v53  ;;  %v8407_v2 = vld [vmem:[#allocation13 + $0x3d8] sm:$0xff]  ;;  %v8408_v53 = vld [vmem:[#allocation13 + $0x3c0] sm:$0xff] }
 0x711   : > { %5270 = vmatpush2.msra.mxu0 %v8368_v30  ;;  %5341 = vmatpush2.msra.mxu1 %v8369_v26  ;;  %v6317_v31 = vpop.eup %6316  ;;  %v8409_v30 = vld [vmem:[#allocation13 + $0x3d0] sm:$0xff]  ;;  %v8410_v26 = vld [vmem:[#allocation13 + $0x388] sm:$0xff] }
 0x712   : > { %5271 = vmatprep.subr.mxu0 %v8370_v10  ;;  %5342 = vmatprep.subr.mxu1 %v8371_v41  ;;  %v6319_v47 = vpop.eup %6318  ;;  %v8411_v10 = vld [vmem:[#allocation13 + $0x398] sm:$0xff]  ;;  %v8412_v41 = vld [vmem:[#allocation13 + $0x380] sm:$0xff] }
 0x713   : > { %5272 = vmatpush2.msra.mxu0 %v8372_v12  ;;  %5343 = vmatpush2.msra.mxu1 %v8373_v14  ;;  %v9649_v38 = vmul.f32 %v6319_v47, %v6317_v31  ;;  %v8413_v12 = vld [vmem:[#allocation13 + $0x390] sm:$0xff]  ;;  %v8414_v14 = vld [vmem:[#allocation13 + $0x348] sm:$0xff] }
 0x714   : > { %5273 = vmatprep.subr.mxu0 %v8374_v57  ;;  %5344 = vmatprep.subr.mxu1 %v8375_v13  ;;  %v8415_v57 = vld [vmem:[#allocation13 + $0x358] sm:$0xff]  ;;  %v8416_v13 = vld [vmem:[#allocation13 + $0x340] sm:$0xff]  ;;  %v8446_v47 = vld [vmem:[#allocation13 + $0x148] sm:$0xff] }
 0x715   : > { %5274 = vmatpush2.msra.mxu0 %v8376_v48  ;;  %5345 = vmatpush2.msra.mxu1 %v8377_v58  ;;  %v8417_v48 = vld [vmem:[#allocation13 + $0x350] sm:$0xff]  ;;  %v8418_v58 = vld [vmem:[#allocation13 + $0x308] sm:$0xff] }
 0x716   : > { %5275 = vmatprep.subr.mxu0 %v8378_v62  ;;  %5346 = vmatprep.subr.mxu1 %v8379_v59  ;;  %v8419_v62 = vld [vmem:[#allocation13 + $0x318] sm:$0xff]  ;;  %v8420_v59 = vld [vmem:[#allocation13 + $0x300] sm:$0xff] }
 0x717   : > { %5276 = vmatpush2.msra.mxu0 %v8380_v16  ;;  %5347 = vmatpush2.msra.mxu1 %v8381_v25  ;;  %v8421_v16 = vld [vmem:[#allocation13 + $0x310] sm:$0xff]  ;;  %v8422_v25 = vld [vmem:[#allocation13 + $0x2c8] sm:$0xff] }
 0x718   : > { %5277 = vmatprep.subr.mxu0 %v8382_v1  ;;  %5348 = vmatprep.subr.mxu1 %v8383_v27  ;;  %v8423_v1 = vld [vmem:[#allocation13 + $0x2d8] sm:$0xff]  ;;  %v8424_v27 = vld [vmem:[#allocation13 + $0x2c0] sm:$0xff] }
 0x719   : > { %5278 = vmatpush2.msra.mxu0 %v8384_v29  ;;  %5349 = vmatpush2.msra.mxu1 %v8385_v34  ;;  %v8425_v29 = vld [vmem:[#allocation13 + $0x2d0] sm:$0xff]  ;;  %v8426_v34 = vld [vmem:[#allocation13 + $0x288] sm:$0xff] }
 0x71a   : > { %5279 = vmatprep.subr.mxu0 %v8386_v63  ;;  %5350 = vmatprep.subr.mxu1 %v8387_v33  ;;  %v8427_v63 = vld [vmem:[#allocation13 + $0x298] sm:$0xff]  ;;  %v8428_v33 = vld [vmem:[#allocation13 + $0x280] sm:$0xff] }
 0x71b   : > { %5280 = vmatpush2.msra.mxu0 %v8388_v44  ;;  %5351 = vmatpush2.msra.mxu1 %v8389_v50  ;;  %v8429_v44 = vld [vmem:[#allocation13 + $0x290] sm:$0xff]  ;;  %v8430_v50 = vld [vmem:[#allocation13 + $0x248] sm:$0xff] }
 0x71c   : > { %5281 = vmatprep.subr.mxu0 %v8390_v4  ;;  %5352 = vmatprep.subr.mxu1 %v8391_v5  ;;  %v8431_v4 = vld [vmem:[#allocation13 + $0x258] sm:$0xff]  ;;  %v4672_v5 = vadd.f32 %v9634_v32, %v9614_v42  ;;  %v8441_v42 = vld [vmem:[#allocation13 + $0x1d0] sm:$0xff]  ;;  %v8442_v32 = vld [vmem:[#allocation13 + $0x188] sm:$0xff] }
 0x71d   : > { %5282 = vmatpush2.msra.mxu0 %v8392_v52  ;;  %5353 = vmatpush2.msra.mxu1 %v8393_v18  ;;  %v8432_v52 = vld [vmem:[#allocation13 + $0x240] sm:$0xff]  ;;  %v8433_v18 = vld [vmem:[#allocation13 + $0x250] sm:$0xff] }
 0x71e   : > { %5283 = vmatprep.subr.mxu0 %v8394_v23  ;;  %5354 = vmatprep.subr.mxu1 %v8395_v20  ;;  %v4865_v19 = vpop.f32.mrf.mxu0  ;;  %v4936_v35 = vpop.f32.mrf.mxu1  ;;  %v8434_v23 = vld [vmem:[#allocation13 + $0x208] sm:$0xff]  ;;  %v8435_v20 = vld [vmem:[#allocation13 + $0x218] sm:$0xff]  ;;  %v4680_v31 = vadd.f32 %v4672_v5, %v9456_v49 }
 0x71f   : > { %5284 = vmatpush2.msra.mxu0 %v8396_v54  ;;  %5355 = vmatpush2.msra.mxu1 %v8397_v6  ;;  %5715 = vst [vmem:[#allocation3 + $0x30] sm:$0xff] %v4865_v19  ;;  %5717 = vst [vmem:[#allocation3 + $0x18] sm:$0xff] %v4936_v35  ;;  %v8436_v19 = vld [vmem:[#allocation13 + $0x200] sm:$0xff]  ;;  %v8437_v35 = vld [vmem:[#allocation13 + $0x210] sm:$0xff] }
 0x720   : > { %5285 = vmatprep.subr.mxu0 %v8398_v60  ;;  %5356 = vmatprep.subr.mxu1 %v8399_v17  ;;  %v4867_v40 = vpop.f32.mrf.mxu0  ;;  %v4938_v11 = vpop.f32.mrf.mxu1  ;;  %v8438_v54 = vld [vmem:[#allocation13 + $0x1c8] sm:$0xff]  ;;  %v8439_v6 = vld [vmem:[#allocation13 + $0x1d8] sm:$0xff]  ;;  %v8440_v60 = vld [vmem:[#allocation13 + $0x1c0] sm:$0xff] }
 0x721   : > { %5286 = vmatpush2.msra.mxu0 %v8400_v37  ;;  %5357 = vmatpush2.msra.mxu1 %v8401_v8  ;;  %5716 = vst [vmem:[#allocation3] sm:$0xff] %v4867_v40  ;;  %5718 = vst [vmem:[#allocation3 + $0x10] sm:$0xff] %v4938_v11  ;;  %v8443_v17 = vld [vmem:[#allocation13 + $0x198] sm:$0xff]  ;;  %v8444_v40 = vld [vmem:[#allocation13 + $0x180] sm:$0xff]  ;;  %v5951_v8 = vmul.f32 -1.442695, %v4680_v31 }
 0x722   : > { %5287 = vmatprep.subr.mxu0 %v8402_v56  ;;  %5358 = vmatprep.subr.mxu1 %v8403_v0  ;;  %v8445_v11 = vld [vmem:[#allocation13 + $0x190] sm:$0xff]  ;;  %v8447_v37 = vld [vmem:[#allocation13 + $0x158] sm:$0xff]  ;;  %v8448_v56 = vld [vmem:[#allocation13 + $0x140] sm:$0xff] }
 0x723   : > { %5288 = vmatpush2.msra.mxu0 %v8404_v9  ;;  %5359 = vmatpush2.msra.mxu1 %v8405_v61  ;;  %v8449_v0 = vld [vmem:[#allocation13 + $0x150] sm:$0xff]  ;;  %v8450_v9 = vld [vmem:[#allocation13 + $0x108] sm:$0xff]  ;;  %v8451_v61 = vld [vmem:[#allocation13 + $0x118] sm:$0xff]  ;;  %6320 = vpow2.f32 %v5951_v8 }
 0x724   : > { %5290 = vmatmul.mubr.f32.vlgmr.msra.gmra.mxu0 %v9587_v36  ;;  %5361 = vmatmul.mubr.f32.vlgmr.msra.gmra.mxu1 %v9587_v36  ;;  %v8478_v5 = vld [vmem:[#allocation13 + $0x748] sm:$0xff] }
 0x725   : > { %5367 = vmatprep.subr.mxu0 %v8406_v55  ;;  %5438 = vmatprep.subr.mxu1 %v8407_v2  ;;  %v8452_v55 = vld [vmem:[#allocation13 + $0x100] sm:$0xff]  ;;  %v8453_v2 = vld [vmem:[#allocation13 + $0x110] sm:$0xff]  ;;  %v8486_v31 = vld [vmem:[#allocation13 + $0x6c8] sm:$0xff] }
 0x726   : > { %5368 = vmatpush1.msra.mxu0 %v8408_v53  ;;  %5431 = vmatprep.mubr.f32.mxu0 %v9649_v38  ;;  %v8454_v53 = vld [vmem:[#allocation13 + $0xc8] sm:$0xff] }
 0x727   : > { %5439 = vmatpush1.msra.mxu1 %v8409_v30  ;;  %5502 = vmatprep.mubr.f32.mxu1 %v9649_v38  ;;  %v8455_v30 = vld [vmem:[#allocation13 + $0xd8] sm:$0xff]  ;;  %v8494_v8 = vld [vmem:[#allocation13 + $0x648] sm:$0xff] }
 0x728   : > { %5369 = vmatprep.subr.mxu0 %v8410_v26  ;;  %5440 = vmatprep.subr.mxu1 %v8411_v10  ;;  %v8456_v26 = vld [vmem:[#allocation13 + $0xc0] sm:$0xff]  ;;  %v8457_v10 = vld [vmem:[#allocation13 + $0xd0] sm:$0xff] }
 0x729   : > { %5370 = vmatpush1.msra.mxu0 %v8412_v41  ;;  %5441 = vmatpush1.msra.mxu1 %v8413_v12  ;;  %v8458_v41 = vld [vmem:[#allocation13 + $0x88] sm:$0xff]  ;;  %v8459_v12 = vld [vmem:[#allocation13 + $0x98] sm:$0xff] }
 0x72a   : > { %5371 = vmatprep.subr.mxu0 %v8414_v14  ;;  %5442 = vmatprep.subr.mxu1 %v8415_v57  ;;  %v8460_v14 = vld [vmem:[#allocation13 + $0x80] sm:$0xff]  ;;  %v8461_v57 = vld [vmem:[#allocation13 + $0x90] sm:$0xff] }
 0x72b   : > { %5372 = vmatpush1.msra.mxu0 %v8416_v13  ;;  %5443 = vmatpush1.msra.mxu1 %v8417_v48  ;;  %v8462_v13 = vld [vmem:[#allocation13 + $0x48] sm:$0xff]  ;;  %v8463_v48 = vld [vmem:[#allocation13 + $0x58] sm:$0xff] }
 0x72c   : > { %5373 = vmatprep.subr.mxu0 %v8418_v58  ;;  %5444 = vmatprep.subr.mxu1 %v8419_v62  ;;  %v8464_v58 = vld [vmem:[#allocation13 + $0x40] sm:$0xff]  ;;  %v8465_v62 = vld [vmem:[#allocation13 + $0x50] sm:$0xff] }
 0x72d   : > { %5374 = vmatpush1.msra.mxu0 %v8420_v59  ;;  %5445 = vmatpush1.msra.mxu1 %v8421_v16  ;;  %v8466_v59 = vld [vmem:[#allocation13 + $0x8] sm:$0xff]  ;;  %v8467_v16 = vld [vmem:[#allocation13 + $0x18] sm:$0xff] }
 0x72e   : > { %5375 = vmatprep.subr.mxu0 %v8422_v25  ;;  %5446 = vmatprep.subr.mxu1 %v8423_v1  ;;  %v8468_v25 = vld [vmem:[#allocation13] sm:$0xff]  ;;  %v8469_v1 = vld [vmem:[#allocation13 + $0x10] sm:$0xff] }
 0x72f   : > { %5376 = vmatpush1.msra.mxu0 %v8424_v27  ;;  %5447 = vmatpush1.msra.mxu1 %v8425_v29  ;;  %v8470_v27 = vld [vmem:[#allocation13 + $0x7c8] sm:$0xff]  ;;  %v8471_v29 = vld [vmem:[#allocation13 + $0x7d8] sm:$0xff] }
 0x730   : > { %5377 = vmatprep.subr.mxu0 %v8426_v34  ;;  %5448 = vmatprep.subr.mxu1 %v8427_v63  ;;  %v8472_v34 = vld [vmem:[#allocation13 + $0x7c0] sm:$0xff]  ;;  %v8473_v63 = vld [vmem:[#allocation13 + $0x7d0] sm:$0xff] }
 0x731   : > { %5378 = vmatpush1.msra.mxu0 %v8428_v33  ;;  %5449 = vmatpush1.msra.mxu1 %v8429_v44  ;;  %v8474_v33 = vld [vmem:[#allocation13 + $0x788] sm:$0xff]  ;;  %v8475_v44 = vld [vmem:[#allocation13 + $0x798] sm:$0xff] }
 0x732   : > { %5379 = vmatprep.subr.mxu0 %v8430_v50  ;;  %5450 = vmatprep.subr.mxu1 %v8431_v4  ;;  %v8476_v50 = vld [vmem:[#allocation13 + $0x780] sm:$0xff]  ;;  %v8477_v4 = vld [vmem:[#allocation13 + $0x790] sm:$0xff] }
 0x733   : > { %5380 = vmatpush1.msra.mxu0 %v8432_v52  ;;  %5451 = vmatpush1.msra.mxu1 %v8433_v18  ;;  %v8479_v52 = vld [vmem:[#allocation13 + $0x758] sm:$0xff]  ;;  %v8480_v18 = vld [vmem:[#allocation13 + $0x740] sm:$0xff] }
 0x734   : > { %5381 = vmatprep.subr.mxu0 %v8434_v23  ;;  %5452 = vmatprep.subr.mxu1 %v8435_v20  ;;  %v8481_v23 = vld [vmem:[#allocation13 + $0x750] sm:$0xff]  ;;  %v6321_v20 = vpop.eup %6320 }
 0x735   : > { %5382 = vmatpush1.msra.mxu0 %v8436_v19  ;;  %5453 = vmatpush1.msra.mxu1 %v8437_v35  ;;  %v8482_v19 = vld [vmem:[#allocation13 + $0x708] sm:$0xff]  ;;  %v8483_v35 = vld [vmem:[#allocation13 + $0x718] sm:$0xff] }
 0x736   : > { %5383 = vmatprep.subr.mxu0 %v8438_v54  ;;  %5454 = vmatprep.subr.mxu1 %v8439_v6  ;;  %v8484_v54 = vld [vmem:[#allocation13 + $0x700] sm:$0xff]  ;;  %v8485_v6 = vld [vmem:[#allocation13 + $0x710] sm:$0xff] }
 0x737   : > { %5384 = vmatpush1.msra.mxu0 %v8440_v60  ;;  %5455 = vmatpush1.msra.mxu1 %v8441_v42  ;;  %v8487_v60 = vld [vmem:[#allocation13 + $0x6d8] sm:$0xff]  ;;  %v4706_v42 = vadd.f32 1.0, %v6321_v20  ;;  %v8525_v20 = vld [vmem:[#allocation13 + $0x490] sm:$0xff] }
 0x738   : > { %5385 = vmatprep.subr.mxu0 %v8442_v32  ;;  %5456 = vmatprep.subr.mxu1 %v8443_v17  ;;  %v8488_v32 = vld [vmem:[#allocation13 + $0x6c0] sm:$0xff]  ;;  %v8489_v17 = vld [vmem:[#allocation13 + $0x6d0] sm:$0xff] }
 0x739   : > { %5386 = vmatpush1.msra.mxu0 %v8444_v40  ;;  %5457 = vmatpush1.msra.mxu1 %v8445_v11  ;;  %v8490_v40 = vld [vmem:[#allocation13 + $0x688] sm:$0xff]  ;;  %v8491_v11 = vld [vmem:[#allocation13 + $0x698] sm:$0xff]  ;;  %6322 = vrcp.f32 %v4706_v42 }
 0x73a   : > { %5387 = vmatprep.subr.mxu0 %v8446_v47  ;;  %5458 = vmatprep.subr.mxu1 %v8447_v37  ;;  %v8492_v47 = vld [vmem:[#allocation13 + $0x680] sm:$0xff]  ;;  %v8493_v37 = vld [vmem:[#allocation13 + $0x690] sm:$0xff]  ;;  %6324 = vtanh.f32 %v9637_v3  ;;  %v8530_v42 = vld [vmem:[#allocation13 + $0x408] sm:$0xff] }
 0x73b   : > { %5388 = vmatpush1.msra.mxu0 %v8448_v56  ;;  %5459 = vmatpush1.msra.mxu1 %v8449_v0  ;;  %v8495_v56 = vld [vmem:[#allocation13 + $0x658] sm:$0xff]  ;;  %v8496_v0 = vld [vmem:[#allocation13 + $0x640] sm:$0xff] }
 0x73c   : > { %5389 = vmatprep.subr.mxu0 %v8450_v9  ;;  %5460 = vmatprep.subr.mxu1 %v8451_v61  ;;  %v8497_v9 = vld [vmem:[#allocation13 + $0x650] sm:$0xff]  ;;  %v8498_v61 = vld [vmem:[#allocation13 + $0x608] sm:$0xff] }
 0x73d   : > { %5390 = vmatpush1.msra.mxu0 %v8452_v55  ;;  %5461 = vmatpush1.msra.mxu1 %v8453_v2  ;;  %v8499_v55 = vld [vmem:[#allocation13 + $0x618] sm:$0xff]  ;;  %v8500_v2 = vld [vmem:[#allocation13 + $0x600] sm:$0xff] }
 0x73e   : > { %5391 = vmatprep.subr.mxu0 %v8454_v53  ;;  %5462 = vmatprep.subr.mxu1 %v8455_v30  ;;  %v8501_v53 = vld [vmem:[#allocation13 + $0x610] sm:$0xff]  ;;  %v8502_v30 = vld [vmem:[#allocation13 + $0x5c8] sm:$0xff] }
 0x73f   : > { %5392 = vmatpush1.msra.mxu0 %v8456_v26  ;;  %5463 = vmatpush1.msra.mxu1 %v8457_v10  ;;  %v8503_v26 = vld [vmem:[#allocation13 + $0x5d8] sm:$0xff]  ;;  %v8504_v10 = vld [vmem:[#allocation13 + $0x5c0] sm:$0xff] }
 0x740   : > { %5393 = vmatprep.subr.mxu0 %v8458_v41  ;;  %5464 = vmatprep.subr.mxu1 %v8459_v12  ;;  %v8505_v41 = vld [vmem:[#allocation13 + $0x5d0] sm:$0xff]  ;;  %v8506_v12 = vld [vmem:[#allocation13 + $0x588] sm:$0xff] }
 0x741   : > { %5394 = vmatpush1.msra.mxu0 %v8460_v14  ;;  %5465 = vmatpush1.msra.mxu1 %v8461_v57  ;;  %v8507_v14 = vld [vmem:[#allocation13 + $0x598] sm:$0xff]  ;;  %v8508_v57 = vld [vmem:[#allocation13 + $0x580] sm:$0xff] }
 0x742   : > { %5395 = vmatprep.subr.mxu0 %v8462_v13  ;;  %5466 = vmatprep.subr.mxu1 %v8463_v48  ;;  %v8509_v13 = vld [vmem:[#allocation13 + $0x590] sm:$0xff]  ;;  %v8510_v48 = vld [vmem:[#allocation13 + $0x548] sm:$0xff] }
 0x743   : > { %5396 = vmatpush1.msra.mxu0 %v8464_v58  ;;  %5467 = vmatpush1.msra.mxu1 %v8465_v62  ;;  %v8511_v58 = vld [vmem:[#allocation13 + $0x558] sm:$0xff]  ;;  %v8512_v62 = vld [vmem:[#allocation13 + $0x540] sm:$0xff] }
 0x744   : > { %5397 = vmatprep.subr.mxu0 %v8466_v59  ;;  %5468 = vmatprep.subr.mxu1 %v8467_v16  ;;  %v8513_v59 = vld [vmem:[#allocation13 + $0x550] sm:$0xff]  ;;  %v8514_v16 = vld [vmem:[#allocation13 + $0x508] sm:$0xff] }
 0x745   : > { %5398 = vmatpush1.msra.mxu0 %v8468_v25  ;;  %5469 = vmatpush1.msra.mxu1 %v8469_v1  ;;  %v8515_v25 = vld [vmem:[#allocation13 + $0x518] sm:$0xff]  ;;  %v8516_v1 = vld [vmem:[#allocation13 + $0x500] sm:$0xff] }
 0x746   : > { %5399 = vmatprep.subr.mxu0 %v8470_v27  ;;  %5470 = vmatprep.subr.mxu1 %v8471_v29  ;;  %v8517_v27 = vld [vmem:[#allocation13 + $0x510] sm:$0xff]  ;;  %v8518_v29 = vld [vmem:[#allocation13 + $0x4c8] sm:$0xff] }
 0x747   : > { %5400 = vmatpush2.msra.mxu0 %v8472_v34  ;;  %5471 = vmatpush2.msra.mxu1 %v8473_v63  ;;  %v8519_v34 = vld [vmem:[#allocation13 + $0x4d8] sm:$0xff]  ;;  %v8520_v63 = vld [vmem:[#allocation13 + $0x4c0] sm:$0xff] }
 0x748   : > { %5401 = vmatprep.subr.mxu0 %v8474_v33  ;;  %5472 = vmatprep.subr.mxu1 %v8475_v44  ;;  %v8521_v33 = vld [vmem:[#allocation13 + $0x4d0] sm:$0xff]  ;;  %v6323_v44 = vpop.eup %6322 }
 0x749   : > { %5402 = vmatpush2.msra.mxu0 %v8476_v50  ;;  %5473 = vmatpush2.msra.mxu1 %v8477_v4  ;;  %v8522_v50 = vld [vmem:[#allocation13 + $0x488] sm:$0xff]  ;;  %v8523_v4 = vld [vmem:[#allocation13 + $0x498] sm:$0xff] }
 0x74a   : > { %5403 = vmatprep.subr.mxu0 %v8478_v5  ;;  %5474 = vmatprep.subr.mxu1 %v8479_v52 }
 0x74b   : > { %5404 = vmatpush2.msra.mxu0 %v8480_v18  ;;  %5475 = vmatpush2.msra.mxu1 %v8481_v23  ;;  %v6325_v18 = vpop.eup %6324  ;;  %v8524_v23 = vld [vmem:[#allocation13 + $0x480] sm:$0xff] }
 0x74c   : > { %5405 = vmatprep.subr.mxu0 %v8482_v19  ;;  %5476 = vmatprep.subr.mxu1 %v8483_v35  ;;  %v8526_v19 = vld [vmem:[#allocation13 + $0x448] sm:$0xff]  ;;  %v8527_v35 = vld [vmem:[#allocation13 + $0x458] sm:$0xff] }
 0x74d   : > { %5406 = vmatpush2.msra.mxu0 %v8484_v54  ;;  %5477 = vmatpush2.msra.mxu1 %v8485_v6 }
 0x74e   : > { %5407 = vmatprep.subr.mxu0 %v8486_v31  ;;  %5478 = vmatprep.subr.mxu1 %v8487_v60  ;;  %v8528_v31 = vld [vmem:[#allocation13 + $0x440] sm:$0xff]  ;;  %v8529_v60 = vld [vmem:[#allocation13 + $0x450] sm:$0xff] }
 0x74f   : > { %5408 = vmatpush2.msra.mxu0 %v8488_v32  ;;  %5479 = vmatpush2.msra.mxu1 %v8489_v17  ;;  %v8531_v32 = vld [vmem:[#allocation13 + $0x418] sm:$0xff]  ;;  %v9657_v17 = vmul.f32 %v6325_v18, %v6323_v44  ;;  %v8565_v44 = vld [vmem:[#allocation13 + $0x230] sm:$0xff]  ;;  %v8570_v18 = vld [vmem:[#allocation13 + $0x1a8] sm:$0xff] }
 0x750   : > { %5409 = vmatprep.subr.mxu0 %v8490_v40  ;;  %5480 = vmatprep.subr.mxu1 %v8491_v11  ;;  %v8532_v40 = vld [vmem:[#allocation13 + $0x400] sm:$0xff]  ;;  %v8533_v11 = vld [vmem:[#allocation13 + $0x410] sm:$0xff] }
 0x751   : > { %5410 = vmatpush2.msra.mxu0 %v8492_v47  ;;  %5481 = vmatpush2.msra.mxu1 %v8493_v37  ;;  %v8534_v47 = vld [vmem:[#allocation13 + $0x3e8] sm:$0xff]  ;;  %v8535_v37 = vld [vmem:[#allocation13 + $0x3f8] sm:$0xff] }
 0x752   : > { %5411 = vmatprep.subr.mxu0 %v8494_v8  ;;  %5482 = vmatprep.subr.mxu1 %v8495_v56  ;;  %v8536_v8 = vld [vmem:[#allocation13 + $0x3e0] sm:$0xff]  ;;  %v8537_v56 = vld [vmem:[#allocation13 + $0x3f0] sm:$0xff] }
 0x753   : > { %5412 = vmatpush2.msra.mxu0 %v8496_v0  ;;  %5483 = vmatpush2.msra.mxu1 %v8497_v9  ;;  %v8538_v0 = vld [vmem:[#allocation13 + $0x3a8] sm:$0xff]  ;;  %v8539_v9 = vld [vmem:[#allocation13 + $0x3b8] sm:$0xff] }
 0x754   : > { %5413 = vmatprep.subr.mxu0 %v8498_v61  ;;  %5484 = vmatprep.subr.mxu1 %v8499_v55  ;;  %v8540_v61 = vld [vmem:[#allocation13 + $0x3a0] sm:$0xff]  ;;  %v8541_v55 = vld [vmem:[#allocation13 + $0x3b0] sm:$0xff] }
 0x755   : > { %5414 = vmatpush2.msra.mxu0 %v8500_v2  ;;  %5485 = vmatpush2.msra.mxu1 %v8501_v53  ;;  %v8542_v2 = vld [vmem:[#allocation13 + $0x368] sm:$0xff]  ;;  %v8543_v53 = vld [vmem:[#allocation13 + $0x378] sm:$0xff] }
 0x756   : > { %5415 = vmatprep.subr.mxu0 %v8502_v30  ;;  %5486 = vmatprep.subr.mxu1 %v8503_v26  ;;  %v8544_v30 = vld [vmem:[#allocation13 + $0x360] sm:$0xff]  ;;  %v8545_v26 = vld [vmem:[#allocation13 + $0x370] sm:$0xff] }
 0x757   : > { %5416 = vmatpush2.msra.mxu0 %v8504_v10  ;;  %5487 = vmatpush2.msra.mxu1 %v8505_v41  ;;  %v8546_v10 = vld [vmem:[#allocation13 + $0x328] sm:$0xff]  ;;  %v8547_v41 = vld [vmem:[#allocation13 + $0x338] sm:$0xff] }
 0x758   : > { %5417 = vmatprep.subr.mxu0 %v8506_v12  ;;  %5488 = vmatprep.subr.mxu1 %v8507_v14  ;;  %v8549_v12 = vld [vmem:[#allocation13 + $0x330] sm:$0xff]  ;;  %v8550_v14 = vld [vmem:[#allocation13 + $0x2e8] sm:$0xff] }
 0x759   : > { %5418 = vmatpush2.msra.mxu0 %v8508_v57  ;;  %5489 = vmatpush2.msra.mxu1 %v8509_v13  ;;  %v8551_v57 = vld [vmem:[#allocation13 + $0x2f8] sm:$0xff]  ;;  %v8552_v13 = vld [vmem:[#allocation13 + $0x2e0] sm:$0xff] }
 0x75a   : > { %5419 = vmatprep.subr.mxu0 %v8510_v48  ;;  %5490 = vmatprep.subr.mxu1 %v8511_v58  ;;  %v8553_v48 = vld [vmem:[#allocation13 + $0x2f0] sm:$0xff]  ;;  %v8554_v58 = vld [vmem:[#allocation13 + $0x2a8] sm:$0xff] }
 0x75b   : > { %5420 = vmatpush2.msra.mxu0 %v8512_v62  ;;  %5491 = vmatpush2.msra.mxu1 %v8513_v59  ;;  %v8555_v62 = vld [vmem:[#allocation13 + $0x2b8] sm:$0xff]  ;;  %v8556_v59 = vld [vmem:[#allocation13 + $0x2a0] sm:$0xff] }
 0x75c   : > { %5421 = vmatprep.subr.mxu0 %v8514_v16  ;;  %5492 = vmatprep.subr.mxu1 %v8515_v25  ;;  %v8557_v16 = vld [vmem:[#allocation13 + $0x2b0] sm:$0xff]  ;;  %v8558_v25 = vld [vmem:[#allocation13 + $0x268] sm:$0xff] }
 0x75d   : > { %5422 = vmatpush2.msra.mxu0 %v8516_v1  ;;  %5493 = vmatpush2.msra.mxu1 %v8517_v27  ;;  %v8559_v1 = vld [vmem:[#allocation13 + $0x278] sm:$0xff]  ;;  %v8560_v27 = vld [vmem:[#allocation13 + $0x260] sm:$0xff] }
 0x75e   : > { %5423 = vmatprep.subr.mxu0 %v8518_v29  ;;  %5494 = vmatprep.subr.mxu1 %v8519_v34  ;;  %v8561_v29 = vld [vmem:[#allocation13 + $0x270] sm:$0xff]  ;;  %v8562_v34 = vld [vmem:[#allocation13 + $0x228] sm:$0xff] }
 0x75f   : > { %5424 = vmatpush2.msra.mxu0 %v8520_v63  ;;  %5495 = vmatpush2.msra.mxu1 %v8521_v33  ;;  %v8563_v63 = vld [vmem:[#allocation13 + $0x238] sm:$0xff]  ;;  %v8564_v33 = vld [vmem:[#allocation13 + $0x220] sm:$0xff] }
 0x760   : > { %5425 = vmatprep.subr.mxu0 %v8522_v50  ;;  %5496 = vmatprep.subr.mxu1 %v8523_v4  ;;  %v5007_v5 = vpop.f32.mrf.mxu0  ;;  %v5078_v52 = vpop.f32.mrf.mxu1  ;;  %v8566_v50 = vld [vmem:[#allocation13 + $0x1e8] sm:$0xff]  ;;  %v8567_v4 = vld [vmem:[#allocation13 + $0x1f8] sm:$0xff] }
 0x761   : > { %5426 = vmatpush2.msra.mxu0 %v8524_v23  ;;  %5497 = vmatpush2.msra.mxu1 %v8525_v20  ;;  %5719 = vst [vmem:[#allocation3 + $0x8] sm:$0xff] %v5007_v5  ;;  %5721 = vst [vmem:[#allocation3 + $0x28] sm:$0xff] %v5078_v52  ;;  %v8568_v5 = vld [vmem:[#allocation13 + $0x1e0] sm:$0xff]  ;;  %v8569_v52 = vld [vmem:[#allocation13 + $0x1f0] sm:$0xff] }
 0x762   : > { %5427 = vmatprep.subr.mxu0 %v8526_v19  ;;  %5498 = vmatprep.subr.mxu1 %v8527_v35  ;;  %v5009_v54 = vpop.f32.mrf.mxu0  ;;  %v5080_v6 = vpop.f32.mrf.mxu1  ;;  %v8571_v23 = vld [vmem:[#allocation13 + $0x1b8] sm:$0xff]  ;;  %v8572_v20 = vld [vmem:[#allocation13 + $0x1a0] sm:$0xff]  ;;  %v8573_v19 = vld [vmem:[#allocation13 + $0x1b0] sm:$0xff] }
 0x763   : > { %5428 = vmatpush2.msra.mxu0 %v8528_v31  ;;  %5499 = vmatpush2.msra.mxu1 %v8529_v60  ;;  %5720 = vst [vmem:[#allocation3 + $0x20] sm:$0xff] %v5009_v54  ;;  %5722 = vst [vmem:[#allocation3 + $0x38] sm:$0xff] %v5080_v6  ;;  %v8574_v35 = vld [vmem:[#allocation13 + $0x168] sm:$0xff]  ;;  %v8575_v54 = vld [vmem:[#allocation13 + $0x178] sm:$0xff] }
 0x764   : > { %5429 = vmatprep.subr.mxu0 %v8530_v42  ;;  %5500 = vmatprep.subr.mxu1 %v8531_v32  ;;  %v8576_v6 = vld [vmem:[#allocation13 + $0x160] sm:$0xff]  ;;  %v8577_v31 = vld [vmem:[#allocation13 + $0x170] sm:$0xff]  ;;  %v8578_v60 = vld [vmem:[#allocation13 + $0x128] sm:$0xff] }
 0x765   : > { %5430 = vmatpush2.msra.mxu0 %v8532_v40  ;;  %5501 = vmatpush2.msra.mxu1 %v8533_v11  ;;  %v8579_v42 = vld [vmem:[#allocation13 + $0x138] sm:$0xff]  ;;  %v8580_v32 = vld [vmem:[#allocation13 + $0x120] sm:$0xff]  ;;  %v8581_v40 = vld [vmem:[#allocation13 + $0x130] sm:$0xff] }
 0x766   : > { %5432 = vmatmul.mubr.f32.vlgmr.msra.gmra.mxu0 %v9657_v17  ;;  %5503 = vmatmul.mubr.f32.vlgmr.msra.gmra.mxu1 %v9657_v17  ;;  %v8582_v11 = vld [vmem:[#allocation13 + $0xe8] sm:$0xff] }
 0x767   : > { %5509 = vmatprep.subr.mxu0 %v8534_v47  ;;  %5580 = vmatprep.subr.mxu1 %v8535_v37  ;;  %v8583_v47 = vld [vmem:[#allocation13 + $0xf8] sm:$0xff]  ;;  %v8584_v37 = vld [vmem:[#allocation13 + $0xe0] sm:$0xff] }
 0x768   : > { %5510 = vmatpush1.msra.mxu0 %v8536_v8  ;;  %5573 = vmatprep.mubr.f32.mxu0 %v9649_v38  ;;  %v8585_v8 = vld [vmem:[#allocation13 + $0xf0] sm:$0xff] }
 0x769   : > { %5581 = vmatpush1.msra.mxu1 %v8537_v56  ;;  %5644 = vmatprep.mubr.f32.mxu1 %v9649_v38  ;;  %v8548_v38 = vld [vmem:[#allocation13 + $0x320] sm:$0xff]  ;;  %v8586_v56 = vld [vmem:[#allocation13 + $0xa8] sm:$0xff] }
 0x76a   : > { %5511 = vmatprep.subr.mxu0 %v8538_v0  ;;  %5582 = vmatprep.subr.mxu1 %v8539_v9  ;;  %v8587_v0 = vld [vmem:[#allocation13 + $0xb8] sm:$0xff]  ;;  %v8588_v9 = vld [vmem:[#allocation13 + $0xa0] sm:$0xff] }
 0x76b   : > { %5512 = vmatpush1.msra.mxu0 %v8540_v61  ;;  %5583 = vmatpush1.msra.mxu1 %v8541_v55  ;;  %v8589_v61 = vld [vmem:[#allocation13 + $0xb0] sm:$0xff]  ;;  %v8590_v55 = vld [vmem:[#allocation13 + $0x68] sm:$0xff] }
 0x76c   : > { %5513 = vmatprep.subr.mxu0 %v8542_v2  ;;  %5584 = vmatprep.subr.mxu1 %v8543_v53  ;;  %v8591_v2 = vld [vmem:[#allocation13 + $0x78] sm:$0xff]  ;;  %v8592_v53 = vld [vmem:[#allocation13 + $0x60] sm:$0xff] }
 0x76d   : > { %5514 = vmatpush1.msra.mxu0 %v8544_v30  ;;  %5585 = vmatpush1.msra.mxu1 %v8545_v26  ;;  %v8593_v30 = vld [vmem:[#allocation13 + $0x70] sm:$0xff]  ;;  %v8594_v26 = vld [vmem:[#allocation13 + $0x28] sm:$0xff] }
 0x76e   : > { %5515 = vmatprep.subr.mxu0 %v8546_v10  ;;  %5586 = vmatprep.subr.mxu1 %v8547_v41  ;;  %v8595_v10 = vld [vmem:[#allocation13 + $0x38] sm:$0xff]  ;;  %v8596_v41 = vld [vmem:[#allocation13 + $0x20] sm:$0xff] }
 0x76f   : > { %5516 = vmatpush1.msra.mxu0 %v8548_v38  ;;  %5587 = vmatpush1.msra.mxu1 %v8549_v12  ;;  %v8597_v38 = vld [vmem:[#allocation13 + $0x30] sm:$0xff]  ;;  %v8598_v12 = vld [vmem:[#allocation13 + $0x7e8] sm:$0xff] }
 0x770   : > { %5517 = vmatprep.subr.mxu0 %v8550_v14  ;;  %5588 = vmatprep.subr.mxu1 %v8551_v57  ;;  %v8599_v14 = vld [vmem:[#allocation13 + $0x7f8] sm:$0xff]  ;;  %v8600_v57 = vld [vmem:[#allocation13 + $0x7e0] sm:$0xff] }
 0x771   : > { %5518 = vmatpush1.msra.mxu0 %v8552_v13  ;;  %5589 = vmatpush1.msra.mxu1 %v8553_v48  ;;  %v8601_v13 = vld [vmem:[#allocation13 + $0x7f0] sm:$0xff]  ;;  %v8602_v48 = vld [vmem:[#allocation13 + $0x7a8] sm:$0xff] }
 0x772   : > { %5519 = vmatprep.subr.mxu0 %v8554_v58  ;;  %5590 = vmatprep.subr.mxu1 %v8555_v62  ;;  %v8603_v58 = vld [vmem:[#allocation13 + $0x7b8] sm:$0xff]  ;;  %v8604_v62 = vld [vmem:[#allocation13 + $0x7a0] sm:$0xff] }
 0x773   : > { %5520 = vmatpush1.msra.mxu0 %v8556_v59  ;;  %5591 = vmatpush1.msra.mxu1 %v8557_v16  ;;  %v8605_v59 = vld [vmem:[#allocation13 + $0x7b0] sm:$0xff]  ;;  %v8606_v16 = vld [vmem:[#allocation13 + $0x768] sm:$0xff] }
 0x774   : > { %5521 = vmatprep.subr.mxu0 %v8558_v25  ;;  %5592 = vmatprep.subr.mxu1 %v8559_v1  ;;  %v8607_v25 = vld [vmem:[#allocation13 + $0x778] sm:$0xff]  ;;  %v8608_v1 = vld [vmem:[#allocation13 + $0x760] sm:$0xff] }
 0x775   : > { %5522 = vmatpush1.msra.mxu0 %v8560_v27  ;;  %5593 = vmatpush1.msra.mxu1 %v8561_v29  ;;  %v8609_v27 = vld [vmem:[#allocation13 + $0x770] sm:$0xff]  ;;  %v8610_v29 = vld [vmem:[#allocation13 + $0x728] sm:$0xff] }
 0x776   : > { %5523 = vmatprep.subr.mxu0 %v8562_v34  ;;  %5594 = vmatprep.subr.mxu1 %v8563_v63  ;;  %v8611_v34 = vld [vmem:[#allocation13 + $0x738] sm:$0xff]  ;;  %v8612_v63 = vld [vmem:[#allocation13 + $0x720] sm:$0xff] }
 0x777   : > { %5524 = vmatpush1.msra.mxu0 %v8564_v33  ;;  %5595 = vmatpush1.msra.mxu1 %v8565_v44  ;;  %v8613_v33 = vld [vmem:[#allocation13 + $0x730] sm:$0xff]  ;;  %v8614_v44 = vld [vmem:[#allocation13 + $0x6e8] sm:$0xff] }
 0x778   : > { %5525 = vmatprep.subr.mxu0 %v8566_v50  ;;  %5596 = vmatprep.subr.mxu1 %v8567_v4  ;;  %v8615_v50 = vld [vmem:[#allocation13 + $0x6f8] sm:$0xff]  ;;  %v8616_v4 = vld [vmem:[#allocation13 + $0x6e0] sm:$0xff] }
 0x779   : > { %5526 = vmatpush1.msra.mxu0 %v8568_v5  ;;  %5597 = vmatpush1.msra.mxu1 %v8569_v52  ;;  %v8617_v5 = vld [vmem:[#allocation13 + $0x6f0] sm:$0xff]  ;;  %v8618_v52 = vld [vmem:[#allocation13 + $0x6a8] sm:$0xff] }
 0x77a   : > { %5527 = vmatprep.subr.mxu0 %v8570_v18  ;;  %5598 = vmatprep.subr.mxu1 %v8571_v23  ;;  %v8619_v18 = vld [vmem:[#allocation13 + $0x6b8] sm:$0xff]  ;;  %v8620_v23 = vld [vmem:[#allocation13 + $0x6a0] sm:$0xff] }
 0x77b   : > { %5528 = vmatpush1.msra.mxu0 %v8572_v20  ;;  %5599 = vmatpush1.msra.mxu1 %v8573_v19  ;;  %v8621_v20 = vld [vmem:[#allocation13 + $0x6b0] sm:$0xff]  ;;  %v8622_v19 = vld [vmem:[#allocation13 + $0x668] sm:$0xff] }
 0x77c   : > { %5529 = vmatprep.subr.mxu0 %v8574_v35  ;;  %5600 = vmatprep.subr.mxu1 %v8575_v54  ;;  %v8623_v35 = vld [vmem:[#allocation13 + $0x678] sm:$0xff]  ;;  %v8624_v54 = vld [vmem:[#allocation13 + $0x660] sm:$0xff] }
 0x77d   : > { %5530 = vmatpush1.msra.mxu0 %v8576_v6  ;;  %5601 = vmatpush1.msra.mxu1 %v8577_v31  ;;  %v8625_v6 = vld [vmem:[#allocation13 + $0x670] sm:$0xff]  ;;  %v8626_v31 = vld [vmem:[#allocation13 + $0x628] sm:$0xff] }
 0x77e   : > { %5531 = vmatprep.subr.mxu0 %v8578_v60  ;;  %5602 = vmatprep.subr.mxu1 %v8579_v42  ;;  %v8627_v60 = vld [vmem:[#allocation13 + $0x638] sm:$0xff]  ;;  %v8628_v42 = vld [vmem:[#allocation13 + $0x620] sm:$0xff] }
 0x77f   : > { %5532 = vmatpush1.msra.mxu0 %v8580_v32  ;;  %5603 = vmatpush1.msra.mxu1 %v8581_v40  ;;  %v8629_v32 = vld [vmem:[#allocation13 + $0x630] sm:$0xff]  ;;  %v8630_v40 = vld [vmem:[#allocation13 + $0x5e8] sm:$0xff] }
 0x780   : > { %5533 = vmatprep.subr.mxu0 %v8582_v11  ;;  %5604 = vmatprep.subr.mxu1 %v8583_v47  ;;  %v8631_v11 = vld [vmem:[#allocation13 + $0x5f8] sm:$0xff]  ;;  %v8632_v47 = vld [vmem:[#allocation13 + $0x5e0] sm:$0xff] }
 0x781   : > { %5534 = vmatpush1.msra.mxu0 %v8584_v37  ;;  %5605 = vmatpush1.msra.mxu1 %v8585_v8  ;;  %v8633_v37 = vld [vmem:[#allocation13 + $0x5f0] sm:$0xff]  ;;  %v8634_v8 = vld [vmem:[#allocation13 + $0x5a8] sm:$0xff] }
 0x782   : > { %5535 = vmatprep.subr.mxu0 %v8586_v56  ;;  %5606 = vmatprep.subr.mxu1 %v8587_v0  ;;  %v8635_v56 = vld [vmem:[#allocation13 + $0x5b8] sm:$0xff]  ;;  %v8636_v0 = vld [vmem:[#allocation13 + $0x5a0] sm:$0xff] }
 0x783   : > { %5536 = vmatpush1.msra.mxu0 %v8588_v9  ;;  %5607 = vmatpush1.msra.mxu1 %v8589_v61  ;;  %v8637_v9 = vld [vmem:[#allocation13 + $0x5b0] sm:$0xff]  ;;  %v8638_v61 = vld [vmem:[#allocation13 + $0x568] sm:$0xff] }
 0x784   : > { %5537 = vmatprep.subr.mxu0 %v8590_v55  ;;  %5608 = vmatprep.subr.mxu1 %v8591_v2  ;;  %v8639_v55 = vld [vmem:[#allocation13 + $0x578] sm:$0xff]  ;;  %v8640_v2 = vld [vmem:[#allocation13 + $0x560] sm:$0xff] }
 0x785   : > { %5538 = vmatpush1.msra.mxu0 %v8592_v53  ;;  %5609 = vmatpush1.msra.mxu1 %v8593_v30  ;;  %v8641_v53 = vld [vmem:[#allocation13 + $0x570] sm:$0xff]  ;;  %v8642_v30 = vld [vmem:[#allocation13 + $0x528] sm:$0xff] }
 0x786   : > { %5539 = vmatprep.subr.mxu0 %v8594_v26  ;;  %5610 = vmatprep.subr.mxu1 %v8595_v10  ;;  %v8643_v26 = vld [vmem:[#allocation13 + $0x538] sm:$0xff]  ;;  %v8644_v10 = vld [vmem:[#allocation13 + $0x520] sm:$0xff] }
 0x787   : > { %5540 = vmatpush1.msra.mxu0 %v8596_v41  ;;  %5611 = vmatpush1.msra.mxu1 %v8597_v38  ;;  %v8645_v41 = vld [vmem:[#allocation13 + $0x530] sm:$0xff]  ;;  %v8646_v38 = vld [vmem:[#allocation13 + $0x4e8] sm:$0xff] }
 0x788   : > { %5541 = vmatprep.subr.mxu0 %v8598_v12  ;;  %5612 = vmatprep.subr.mxu1 %v8599_v14  ;;  %v8647_v12 = vld [vmem:[#allocation13 + $0x4f8] sm:$0xff]  ;;  %v8648_v14 = vld [vmem:[#allocation13 + $0x4e0] sm:$0xff] }
 0x789   : > { %5542 = vmatpush2.msra.mxu0 %v8600_v57  ;;  %5613 = vmatpush2.msra.mxu1 %v8601_v13  ;;  %v8649_v57 = vld [vmem:[#allocation13 + $0x4f0] sm:$0xff]  ;;  %v8650_v13 = vld [vmem:[#allocation13 + $0x4a8] sm:$0xff] }
 0x78a   : > { %5543 = vmatprep.subr.mxu0 %v8602_v48  ;;  %5614 = vmatprep.subr.mxu1 %v8603_v58  ;;  %v8651_v48 = vld [vmem:[#allocation13 + $0x4b8] sm:$0xff]  ;;  %v8652_v58 = vld [vmem:[#allocation13 + $0x4a0] sm:$0xff] }
 0x78b   : > { %5544 = vmatpush2.msra.mxu0 %v8604_v62  ;;  %5615 = vmatpush2.msra.mxu1 %v8605_v59  ;;  %v8653_v62 = vld [vmem:[#allocation13 + $0x4b0] sm:$0xff]  ;;  %v8654_v59 = vld [vmem:[#allocation13 + $0x468] sm:$0xff] }
 0x78c   : > { %5545 = vmatprep.subr.mxu0 %v8606_v16  ;;  %5616 = vmatprep.subr.mxu1 %v8607_v25  ;;  %v8655_v16 = vld [vmem:[#allocation13 + $0x478] sm:$0xff]  ;;  %v8656_v25 = vld [vmem:[#allocation13 + $0x460] sm:$0xff] }
 0x78d   : > { %5546 = vmatpush2.msra.mxu0 %v8608_v1  ;;  %5617 = vmatpush2.msra.mxu1 %v8609_v27  ;;  %v8657_v1 = vld [vmem:[#allocation13 + $0x470] sm:$0xff]  ;;  %v8658_v27 = vld [vmem:[#allocation13 + $0x428] sm:$0xff] }
 0x78e   : > { %5547 = vmatprep.subr.mxu0 %v8610_v29  ;;  %5618 = vmatprep.subr.mxu1 %v8611_v34  ;;  %v8659_v29 = vld [vmem:[#allocation13 + $0x438] sm:$0xff]  ;;  %v8660_v34 = vld [vmem:[#allocation13 + $0x420] sm:$0xff] }
 0x78f   : > { %5548 = vmatpush2.msra.mxu0 %v8612_v63  ;;  %5619 = vmatpush2.msra.mxu1 %v8613_v33  ;;  %v8661_v63 = vld [vmem:[#allocation13 + $0x430] sm:$0xff] }
 0x790   : > { %5549 = vmatprep.subr.mxu0 %v8614_v44  ;;  %5620 = vmatprep.subr.mxu1 %v8615_v50 }
 0x791   : > { %5550 = vmatpush2.msra.mxu0 %v8616_v4  ;;  %5621 = vmatpush2.msra.mxu1 %v8617_v5 }
 0x792   : > { %5551 = vmatprep.subr.mxu0 %v8618_v52  ;;  %5622 = vmatprep.subr.mxu1 %v8619_v18 }
 0x793   : > { %5552 = vmatpush2.msra.mxu0 %v8620_v23  ;;  %5623 = vmatpush2.msra.mxu1 %v8621_v20 }
 0x794   : > { %5553 = vmatprep.subr.mxu0 %v8622_v19  ;;  %5624 = vmatprep.subr.mxu1 %v8623_v35 }
 0x795   : > { %5554 = vmatpush2.msra.mxu0 %v8624_v54  ;;  %5625 = vmatpush2.msra.mxu1 %v8625_v6 }
 0x796   : > { %5555 = vmatprep.subr.mxu0 %v8626_v31  ;;  %5626 = vmatprep.subr.mxu1 %v8627_v60 }
 0x797   : > { %5556 = vmatpush2.msra.mxu0 %v8628_v42  ;;  %5627 = vmatpush2.msra.mxu1 %v8629_v32 }
 0x798   : > { %5557 = vmatprep.subr.mxu0 %v8630_v40  ;;  %5628 = vmatprep.subr.mxu1 %v8631_v11 }
 0x799   : > { %5558 = vmatpush2.msra.mxu0 %v8632_v47  ;;  %5629 = vmatpush2.msra.mxu1 %v8633_v37 }
 0x79a   : > { %5559 = vmatprep.subr.mxu0 %v8634_v8  ;;  %5630 = vmatprep.subr.mxu1 %v8635_v56 }
 0x79b   : > { %5560 = vmatpush2.msra.mxu0 %v8636_v0  ;;  %5631 = vmatpush2.msra.mxu1 %v8637_v9 }
 0x79c   : > { %5561 = vmatprep.subr.mxu0 %v8638_v61  ;;  %5632 = vmatprep.subr.mxu1 %v8639_v55 }
 0x79d   : > { %5562 = vmatpush2.msra.mxu0 %v8640_v2  ;;  %5633 = vmatpush2.msra.mxu1 %v8641_v53 }
 0x79e   : > { %5563 = vmatprep.subr.mxu0 %v8642_v30  ;;  %5634 = vmatprep.subr.mxu1 %v8643_v26 }
 0x79f   : > { %5564 = vmatpush2.msra.mxu0 %v8644_v10  ;;  %5635 = vmatpush2.msra.mxu1 %v8645_v41 }
 0x7a0   : > { %5565 = vmatprep.subr.mxu0 %v8646_v38  ;;  %5636 = vmatprep.subr.mxu1 %v8647_v12 }
 0x7a1   : > { %5566 = vmatpush2.msra.mxu0 %v8648_v14  ;;  %5637 = vmatpush2.msra.mxu1 %v8649_v57 }
 0x7a2   : > { %5567 = vmatprep.subr.mxu0 %v8650_v13  ;;  %5638 = vmatprep.subr.mxu1 %v8651_v48  ;;  %v5149_v33 = vpop.f32.mrf.mxu0  ;;  %v5220_v44 = vpop.f32.mrf.mxu1 }
 0x7a3   : > { %5568 = vmatpush2.msra.mxu0 %v8652_v58  ;;  %5639 = vmatpush2.msra.mxu1 %v8653_v62 }
 0x7a4   : > { %5569 = vmatprep.subr.mxu0 %v8654_v59  ;;  %5640 = vmatprep.subr.mxu1 %v8655_v16  ;;  %v5151_v50 = vpop.f32.mrf.mxu0  ;;  %v5222_v4 = vpop.f32.mrf.mxu1 }
 0x7a5   : > { %5570 = vmatpush2.msra.mxu0 %v8656_v25  ;;  %5641 = vmatpush2.msra.mxu1 %v8657_v1 }
 0x7a6   : > { %5571 = vmatprep.subr.mxu0 %v8658_v27  ;;  %5642 = vmatprep.subr.mxu1 %v8659_v29 }
 0x7a7   : > { %5572 = vmatpush2.msra.mxu0 %v8660_v34  ;;  %5643 = vmatpush2.msra.mxu1 %v8661_v63 }
 0x7a8   : > { %5574 = vmatmul.mubr.f32.vlgmr.msra.gmra.mxu0 %v9657_v17  ;;  %5645 = vmatmul.mubr.f32.vlgmr.msra.gmra.mxu1 %v9657_v17 }
 0x7e4   : > { %v5291_v5 = vpop.f32.mrf.mxu0  ;;  %v5362_v52 = vpop.f32.mrf.mxu1 }
 0x7e6   : > { %v5293_v18 = vpop.f32.mrf.mxu0  ;;  %v5364_v23 = vpop.f32.mrf.mxu1 }
 0x826   : > { %v5433_v20 = vpop.f32.mrf.mxu0  ;;  %v5504_v19 = vpop.f32.mrf.mxu1 }
 0x827   : > { %v5651_v35 = vadd.f32 %v5433_v20, %v5149_v33  ;;  %v5653_v6 = vadd.f32 %v5504_v19, %v5220_v44 }
 0x828   : > { %v5435_v54 = vpop.f32.mrf.mxu0  ;;  %v5506_v31 = vpop.f32.mrf.mxu1 }
 0x829   : > { %v5652_v60 = vadd.f32 %v5435_v54, %v5151_v50  ;;  %v5659_v42 = vadd.f32 %v5651_v35, %v9390_v46  ;;  %v5661_v32 = vadd.f32 %v5653_v6, %v9384_v22  ;;  %v5654_v17 = vadd.f32 %v5506_v31, %v5222_v4 }
 0x82b   : > { %v5660_v40 = vadd.f32 %v5652_v60, %v9403_v15  ;;  %v5959_v11 = vmul.f32 -1.442695, %v5659_v42  ;;  %v5961_v47 = vmul.f32 -1.442695, %v5661_v32  ;;  %v5662_v37 = vadd.f32 %v5654_v17, %v9410_v45 }
 0x82d   : > { %v5960_v8 = vmul.f32 -1.442695, %v5660_v40  ;;  %6326 = vpow2.f32 %v5959_v11  ;;  %v5962_v56 = vmul.f32 -1.442695, %v5662_v37 }
 0x82e   : > { %6328 = vpow2.f32 %v5961_v47 }
 0x82f   : > { %6330 = vpow2.f32 %v5960_v8 }
 0x830   : > { %6332 = vpow2.f32 %v5962_v56 }
 0x83a   : > { %v6327_v0 = vpop.eup %6326 }
 0x83b   : > { %v6329_v9 = vpop.eup %6328  ;;  %v5685_v55 = vadd.f32 1.0, %v6327_v0 }
 0x83c   : > { %v6331_v61 = vpop.eup %6330  ;;  %v5687_v46 = vadd.f32 1.0, %v6329_v9 }
 0x83d   : > { %v6333_v2 = vpop.eup %6332  ;;  %v5686_v22 = vadd.f32 1.0, %v6331_v61  ;;  %6334 = vrcp.f32 %v5685_v55 }
 0x83e   : > { %6336 = vrcp.f32 %v5687_v46  ;;  %v5688_v45 = vadd.f32 1.0, %v6333_v2 }
 0x83f   : > { %6338 = vrcp.f32 %v5686_v22 }
 0x84a   : > { %v6335_v59 = vpop.eup %6334 }
 0x84b   : > { %v6337_v16 = vpop.eup %6336 }
 0x84c   : > { %v6339_v25 = vpop.eup %6338 }
 0x868   : > { %v5575_v53 = vpop.f32.mrf.mxu0  ;;  %v5646_v30 = vpop.f32.mrf.mxu1 }
 0x869   : > { %v5655_v15 = vadd.f32 %v5575_v53, %v5291_v5  ;;  %v5657_v26 = vadd.f32 %v5646_v30, %v5362_v52 }
 0x86a   : > { %v5577_v10 = vpop.f32.mrf.mxu0  ;;  %v5648_v41 = vpop.f32.mrf.mxu1 }
 0x86b   : > { %v5663_v38 = vadd.f32 %v5655_v15, %v9456_v49  ;;  %v5665_v12 = vadd.f32 %v5657_v26, %v9398_v51  ;;  %v5656_v14 = vadd.f32 %v5577_v10, %v5293_v18  ;;  %v5658_v57 = vadd.f32 %v5648_v41, %v5364_v23 }
 0x86c   : > { %v5705_v51 = vmul.f32 %v6337_v16, %v9637_v3 }
 0x86d   : > { %v5963_v13 = vmul.f32 -1.442695, %v5663_v38  ;;  %6340 = vtanh.f32 %v5665_v12  ;;  %v5664_v48 = vadd.f32 %v5656_v14, %v9427_v39  ;;  %v5666_v58 = vadd.f32 %v5658_v57, %v9433_v24 }
 0x86e   : > { %6342 = vrcp.f32 %v5688_v45 }
 0x86f   : > { %6344 = vpow2.f32 %v5963_v13  ;;  %v5964_v62 = vmul.f32 -1.442695, %v5664_v48 }
 0x870   : > { %6346 = vtanh.f32 %v5666_v58 }
 0x871   : > { %6348 = vpow2.f32 %v5964_v62 }
 0x87a   : > { %v6341_v49 = vpop.eup %6340 }
 0x87b   : > { %v6343_v1 = vpop.eup %6342  ;;  %v5707_v27 = vmul.f32 %v6341_v49, %v6335_v59 }
 0x87c   : > { %v6345_v29 = vpop.eup %6344  ;;  %v5706_v24 = vmul.f32 %v6343_v1, %v9644_v28 }
 0x87d   : > { %v6347_v34 = vpop.eup %6346  ;;  %v5689_v63 = vadd.f32 1.0, %v6345_v29  ;;  %v5709_v33 = vadd.f32 %v5707_v27, %v5705_v51 }
 0x87e   : > { %v6349_v39 = vpop.eup %6348  ;;  %v5708_v44 = vmul.f32 %v6347_v34, %v6339_v25 }
 0x87f   : > { %6350 = vrcp.f32 %v5689_v63  ;;  %5727 = vst [vmem:[#allocation6] sm:$0xff] %v5709_v33  ;;  %v5690_v50 = vadd.f32 1.0, %v6349_v39 }
 0x880   : > { %6352 = vtanh.f32 %v5709_v33  ;;  %v5710_v4 = vadd.f32 %v5708_v44, %v5706_v24 }
 0x881   : > { %6354 = vrcp.f32 %v5690_v50 }
 0x882   : > { %6356 = vtanh.f32 %v5710_v4  ;;  %5728 = vst [vmem:[#allocation6 + $0x8] sm:$0xff] %v5710_v4 }
 0x88c   : > { %v6351_v5 = vpop.eup %6350 }
 0x88d   : > { %v6353_v52 = vpop.eup %6352 }
 0x88e   : > { %v6355_v3 = vpop.eup %6354  ;;  %v5713_v18 = vmul.f32 %v6353_v52, %v6351_v5  ;;  %5732 = sbr.rel (%p5965_p12) target bundleno = 2199 (0x897), region = 76 }
 0x88f   : > { %v6357_v23 = vpop.eup %6356 }
 0x890   : > { %5725 = vst [vmem:[#allocation5] sm:$0xff] %v5713_v18  ;;  %v5714_v20 = vmul.f32 %v6357_v23, %v6355_v3 }
 0x892   : > { %5726 = vst [vmem:[#allocation5 + $0x8] sm:$0xff] %v5714_v20 }
 0x893   : > { %5733 = vst [vmem:[#allocation18] sm:$0xff] %v9587_v36  ;;  %5734 = vst [vmem:[#allocation18 + $0x8] sm:$0xff] %v9592_v43 }
 0x894   : > { %5736 = vst [vmem:[#allocation18 + $0x10] sm:$0xff] %v5713_v18  ;;  %5737 = vst [vmem:[#allocation18 + $0x18] sm:$0xff] %v5714_v20 }
 0x895   : > { %5738 = vst [vmem:[#allocation19] sm:$0xff] %v9577_v7  ;;  %5739 = vst [vmem:[#allocation19 + $0x8] sm:$0xff] %v9582_v21 }
 0x896   : > { %5741 = vst [vmem:[#allocation19 + $0x10] sm:$0xff] %v5709_v33  ;;  %5742 = vst [vmem:[#allocation19 + $0x18] sm:$0xff] %v5710_v4 }
 0x897 PF: > { %s9752_s1 = sadd.s32 4294967295, %s8938_s29   ;;  %s8953_s27 = smov [#allocation18]  }
 0x898   : > { %p9682_p13 = scmp.eq.s32.totalorder %s9752_s1, 3  ;;  %s5752_s8 = sshll.u32 %s8953_s27, 4  ;;  %s5753_s8 = int_to_ptr.vmem [resolvable:$true] %s5752_s8 }
 0x899   : > { %s8820_s9 = scalar_lea.vmem %s5753_s8, 512  ;;  %p8827_p3 = scmp.lt.s32.totalorder %s5753_s8, %s5753_s8 }
 0x89a   : > { %p8821_p5 = scmp.ne.s32.totalorder %s5753_s8, %s8820_s9  ;;  %p8828_p4 = scmp.lt.s32.totalorder %s8820_s9, %s8820_s9 }
 0x89c   : > { %p8822_p0 = pnand %p8821_p5, %p9682_p13  ;;  %p8829_p6 = por %p8828_p4, %p8827_p3 }
 0x89e   : > { %p8823_p2 = pneg %p8822_p0 }
 0x8a0   : > { %p8830_p1 = pnand %p8829_p6, %p8823_p2 }
 0x8a2   : > { %8833 = shalt.err (!%p8830_p1)
}
 0x8a3   : > { %s8954_s18 = smov 256   ;;  %s8955_s19 = smov 16  }
 0x8a4   : > { %5996 = dma.vmem_to_hbm [thread:$0]  (%p9682_p13), %s5753_s8, 512, %s9732_s6, [#allocation9], %s8954_s18, %s8954_s18, %s8955_s19  }
 0x8a5   : > { %s8956_s14 = smov [#allocation19]  }
 0x8a6   : > { %s5768_s12 = sshll.u32 %s8956_s14, 4  ;;  %s5769_s12 = int_to_ptr.vmem [resolvable:$true] %s5768_s12 }
 0x8a7   : > { %s8844_s23 = scalar_lea.vmem %s5769_s12, 512  ;;  %p8851_p9 = scmp.lt.s32.totalorder %s5769_s12, %s5769_s12 }
 0x8a8   : > { %p8845_p7 = scmp.ne.s32.totalorder %s5769_s12, %s8844_s23  ;;  %p8852_p11 = scmp.lt.s32.totalorder %s8844_s23, %s8844_s23 }
 0x8aa   : > { %p8846_p8 = pnand %p8845_p7, %p9682_p13  ;;  %p8853_p12 = por %p8852_p11, %p8851_p9 }
 0x8ac   : > { %p8847_p10 = pneg %p8846_p8 }
 0x8ae   : > { %p8854_p5 = pnand %p8853_p12, %p8847_p10 }
 0x8b0   : > { %8857 = shalt.err (!%p8854_p5)
}
 0x8b1   : > { %5998 = dma.vmem_to_hbm [thread:$0]  (%p9682_p13), %s5769_s12, 512, %s9733_s7, [#allocation20], %s8954_s18, %s8954_s18, %s8955_s19  }
 0x8b2   : > { %8909 = dma.done.wait (%p9682_p13), [#allocation9], 512  }
 0x8b3   : > { %8911 = vsyncadd (%p9682_p13), [#allocation9], 4294966784 }
 0x8b4   : > { %8913 = dma.done.wait (%p9682_p13), [#allocation20], 512  }
 0x8b5   : > { %8915 = vsyncadd (%p9682_p13), [#allocation20], 4294966784 }
 0x8b6 PF: > { %s26_s29 = sadd.s32 1, %s8938_s29   ;;  %s9754_s24 = smov %s8922_s25 }
 0x8b7   : > { %p23_p0 = scmp.ge.s32.totalorder %s26_s29, 6   ;;  %s9755_s25 = smov %s8926_s26 }
 0x8b8   : > { %s9756_s26 = smov %s9115_s10  ;;  %s9757_s27 = smov %s8934_s28 }
 0x8b9   : > { %s9758_s28 = smov %s9760_s17  ;;  %25 = sbr.rel (!%p23_p0) target bundleno = 11 (0xb), region = 125 }
 0x8be   :  { %5788 = vsyncpa [#allocation8], 1 }
 0x8bf   :  { %5790 = vsyncpa [#allocation8 + $0x1], 1 }
 0x8c0   :  { %5791 = vsyncpa [#allocation11], 1 }
 0x8c1   :  { %5792 = vsyncpa [#allocation14], 1 }
 0x8c2   :  { %5793 = vsyncpa [#allocation17], 1 }
 0x8c3   :  { %5794 = vsyncpa [#allocation9], 1 }
 0x8c4   :  { %5796 = vsyncpa [#allocation9 + $0x1], 1 }
 0x8c5   :  { %5797 = vsyncpa [#allocation20], 1 }

</bundles_post_ra>
